<compile_context>
chip_gen: v7x
topology: tpu7x:2x2x1
jax: 0.10.0
libtpu: 0.0.40
codegen_flags: <defaults>
</compile_context>

<pallas_src>
from functools import partial

import jax
import jax.numpy as jnp
from jax.experimental import pallas as pl
from jax.experimental.pallas import tpu as pltpu

N_EMBD = 32
BLOCK_SIZE = 8
HEAD_SIZE = 4
N_HEADS = N_EMBD // HEAD_SIZE      # sa_head = MultiHeadAttention(head_size=4, num_heads=8)
VOCAB_SIZE = 65                    # synthetic vocab (len(chars) of the corpus)
VOCAB_PAD = 128                    # lane-dense padded vocab for weights/logits
ROW_TILE = 128                     # flattened (batch*seq) rows per grid step


def bigram_kernel(T, idx_ref, emb_ref, w1_ref, w2_ref, out_ref):
    """One grid step: ROW_TILE = (128 // T) samples x T positions, flattened to 128 rows.

    idx_ref: (ROW_TILE, 1) int32   token ids for this row block
    emb_ref: (128, 64)     f32     lanes 0:32  = token embedding table (vocab padded to 128 rows)
                                   lanes 32:64 = position embedding tiled to ROW_TILE rows
    w1_ref:  (40, 128)     f32     rows 0:32 = [Wq^T | Wk^T | Wv^T | Wff^T] (each 32x32)
                                   row 32, lanes 96:128 = bff  (rest zero padding)
    w2_ref:  (40, 128)     f32     rows 0:32 = Wlm^T (vocab padded to 128 lanes), row 32 = blm
    out_ref: (ROW_TILE, 128) f32   logits, vocab padded to 128 lanes
    """
    n = idx_ref.shape[0]
    c = N_EMBD

    # --- token + position embedding: one-hot gather done on the MXU ---
    ids = idx_ref[...]                                                    # (n, 1)
    vocab_iota = jax.lax.broadcasted_iota(jnp.int32, (n, VOCAB_PAD), 1)
    onehot = (ids == vocab_iota).astype(jnp.float32)                      # (n, 128)
    tok = jnp.dot(onehot, emb_ref[:, 0:c], preferred_element_type=jnp.float32)   # (n, 32)
    x = tok + emb_ref[:, c:2 * c]                                         # (n, 32)

    # --- fused QKV projection: one lane-dense (n,32)@(32,96) matmul ---
    qkv = jnp.dot(x, w1_ref[0:c, 0:3 * c], preferred_element_type=jnp.float32)   # (n, 96)
    q = qkv[:, 0:c]
    k = qkv[:, c:2 * c]
    v = qkv[:, 2 * c:3 * c]

    # --- block-diagonal causal mask over the flattened rows (samples stay independent) ---
    row = jax.lax.broadcasted_iota(jnp.int32, (n, n), 0)
    col = jax.lax.broadcasted_iota(jnp.int32, (n, n), 1)
    log2_t = T.bit_length() - 1            # T divides 128 -> power of two (asserted in wrapper)
    same_sample = (row >> log2_t) == (col >> log2_t)
    mask = same_sample & (col <= row)

    scale = N_EMBD ** -0.5                 # reference scales by x.shape[-1]**-0.5 == n_embd**-0.5
    wffT_all = w1_ref[0:c, 3 * c:4 * c]    # (32, 32) = Wff^T, rows indexed by concat-head dim

    ff_acc = jnp.zeros((n, c), dtype=jnp.float32)
    for h in range(N_HEADS):
        lo, hi = h * HEAD_SIZE, (h + 1) * HEAD_SIZE
        qh = q[:, lo:hi]                                                  # (n, hs)
        kh = k[:, lo:hi]
        vh = v[:, lo:hi]
        # scores = qh @ kh^T, lane-dense (n, n) output
        s = jax.lax.dot_general(qh, kh, (((1,), (1,)), ((), ())),
                                preferred_element_type=jnp.float32) * scale
        s = jnp.where(mask, s, -1e30)      # large finite negative (diagonal always unmasked)
        s = s - jnp.max(s, axis=-1, keepdims=True)
        p = jnp.exp(s)
        p = p * pl.reciprocal(jnp.sum(p, axis=-1, keepdims=True), approx=True)
        oh = jnp.dot(p, vh, preferred_element_type=jnp.float32)           # (n, hs)
        # concat_h(oh_h) @ Wff^T  ==  sum_h  oh_h @ Wff^T[h*hs:(h+1)*hs, :]   (exact)
        ff_acc = ff_acc + jnp.dot(oh, wffT_all[lo:hi, :],
                                  preferred_element_type=jnp.float32)     # (n, 32)

    # FeedForward: Linear + ReLU
    bff = w1_ref[c:c + 1, 3 * c:4 * c]                                    # (1, 32)
    hidden = jnp.maximum(ff_acc + bff, 0.0)                               # (n, 32)

    # lm_head: Linear(C, vocab_pad) -> lane-dense (n, 128) store
    wlmT = w2_ref[0:c, :]                                                 # (32, 128)
    blm = w2_ref[c:c + 1, :]                                              # (1, 128)
    out_ref[...] = jnp.dot(hidden, wlmT, preferred_element_type=jnp.float32) + blm


def init_params(key):
    ks = jax.random.split(key, 10)

    def lin_w(k, out_f, in_f):
        bound = 1.0 / (in_f ** 0.5)
        return jax.random.uniform(k, (out_f, in_f), jnp.float32, -bound, bound)

    def lin_b(k, out_f, in_f):
        bound = 1.0 / (in_f ** 0.5)
        return jax.random.uniform(k, (out_f,), jnp.float32, -bound, bound)

    params = {
        "tok_table": jax.random.normal(ks[0], (VOCAB_SIZE, N_EMBD), jnp.float32),
        "pos_table": jax.random.normal(ks[1], (BLOCK_SIZE, N_EMBD), jnp.float32),
        # per-head q/k/v weights, PyTorch layout (out=head_size, in=n_embd)
        "wq": jnp.stack([lin_w(k, HEAD_SIZE, N_EMBD)
                         for k in jax.random.split(ks[2], N_HEADS)]),
        "wk": jnp.stack([lin_w(k, HEAD_SIZE, N_EMBD)
                         for k in jax.random.split(ks[3], N_HEADS)]),
        "wv": jnp.stack([lin_w(k, HEAD_SIZE, N_EMBD)
                         for k in jax.random.split(ks[4], N_HEADS)]),
        "wff": lin_w(ks[5], N_EMBD, N_EMBD),
        "bff": lin_b(ks[6], N_EMBD, N_EMBD),
        "wlm": lin_w(ks[7], VOCAB_SIZE, N_EMBD),
        "blm": lin_b(ks[8], VOCAB_SIZE, N_EMBD),
    }
    return params


@jax.jit
def bigram_forward(idx, params):
    """BigramLanguageModel.forward, targets=None path. Returns logits (B, T, vocab)."""
    B, T = idx.shape
    assert ROW_TILE % T == 0, "sequence length must divide 128 (block_size=8 does)"
    bblk = ROW_TILE // T                       # samples per grid step
    b_pad = ((B + bblk - 1) // bblk) * bblk    # pad batch to a multiple of bblk
    n_steps = b_pad // bblk
    c = N_EMBD

    # idx as a flattened (rows, 1) int32 column (padding samples use token 0, sliced away later)
    idx_p = jnp.pad(idx.astype(jnp.int32), ((0, b_pad - B), (0, 0)))
    idx_col = idx_p.reshape(b_pad * T, 1)

    # --- embedding slab: [token table padded to 128 rows | position rows tiled to 128] ---
    tok_pad = jnp.pad(params["tok_table"], ((0, VOCAB_PAD - VOCAB_SIZE), (0, 0)))     # (128, 32)
    pos_tiled = jnp.tile(params["pos_table"][:T], (bblk, 1))                          # (128, 32)
    emb_slab = jnp.concatenate([tok_pad, pos_tiled], axis=1)                          # (128, 64)

    # --- weight slab 1: fused QKV + FF weights + FF bias ---
    # wq.reshape(H*hs, C).T maps x @ wqT -> per-head q columns in torch.cat order.
    wqT = params["wq"].reshape(c, c).T
    wkT = params["wk"].reshape(c, c).T
    wvT = params["wv"].reshape(c, c).T
    wffT = params["wff"].T
    w1_top = jnp.concatenate([wqT, wkT, wvT, wffT], axis=1)                           # (32, 128)
    bff_row = jnp.pad(params["bff"].reshape(1, c), ((0, 0), (3 * c, 0)))              # (1, 128)
    w1_slab = jnp.pad(jnp.concatenate([w1_top, bff_row], axis=0), ((0, 7), (0, 0)))   # (40, 128)

    # --- weight slab 2: lm_head with vocab padded to 128 lanes (lane-dense output store) ---
    wlmT_pad = jnp.pad(params["wlm"].T, ((0, 0), (0, VOCAB_PAD - VOCAB_SIZE)))        # (32, 128)
    blm_pad = jnp.pad(params["blm"].reshape(1, -1), ((0, 0), (0, VOCAB_PAD - VOCAB_SIZE)))
    w2_slab = jnp.pad(jnp.concatenate([wlmT_pad, blm_pad], axis=0), ((0, 7), (0, 0))) # (40, 128)

    out_flat = pl.pallas_call(
        partial(bigram_kernel, T),
        out_shape=jax.ShapeDtypeStruct((b_pad * T, VOCAB_PAD), jnp.float32),
        grid=(n_steps,),
        in_specs=[
            pl.BlockSpec((ROW_TILE, 1), lambda s: (s, 0)),
            pl.BlockSpec((VOCAB_PAD, 2 * c), lambda s: (0, 0)),
            pl.BlockSpec((40, 4 * c), lambda s: (0, 0)),
            pl.BlockSpec((40, VOCAB_PAD), lambda s: (0, 0)),
        ],
        out_specs=pl.BlockSpec((ROW_TILE, VOCAB_PAD), lambda s: (s, 0)),
        compiler_params=pltpu.CompilerParams(dimension_semantics=("parallel",)),
    )(idx_col, emb_slab, w1_slab, w2_slab)

    logits = out_flat.reshape(b_pad, T, VOCAB_PAD)[:B, :, :VOCAB_SIZE]
    return logits


def reference_forward(idx, params):
    """Pure-JAX reference mirroring the PyTorch forward exactly (f32, exact softmax)."""
    B, T = idx.shape
    x = params["tok_table"][idx] + params["pos_table"][:T]          # (B, T, C)
    tril = jnp.tril(jnp.ones((T, T), jnp.float32))
    heads = []
    for h in range(N_HEADS):
        q = x @ params["wq"][h].T
        k = x @ params["wk"][h].T
        v = x @ params["wv"][h].T
        wei = q @ jnp.swapaxes(k, -2, -1) * (N_EMBD ** -0.5)
        wei = jnp.where(tril == 0, -jnp.inf, wei)
        wei = jax.nn.softmax(wei, axis=-1)
        heads.append(wei @ v)
    attn = jnp.concatenate(heads, axis=-1)                          # (B, T, C)
    hidden = jax.nn.relu(attn @ params["wff"].T + params["bff"])
    return hidden @ params["wlm"].T + params["blm"]


if __name__ == "__main__":
    key = jax.random.PRNGKey(0)
    pkey, ikey = jax.random.split(key)
    params = init_params(pkey)

    # B=32, T=8 -> 16 samples per grid step, grid=(2,) (keeps both v7x TensorCores fed).
    B, T = 32, BLOCK_SIZE
    idx = jax.random.randint(ikey, (B, T), 0, VOCAB_SIZE, dtype=jnp.int32)

    logits = jax.block_until_ready(bigram_forward(idx, params))
    ref = reference_forward(idx, params)
    assert logits.shape == (B, T, VOCAB_SIZE)
    # approx=True reciprocal (EUP vrcp) introduces ~1e-3 relative error vs exact f32 softmax,
    # so the tolerance is looser than the previous 1e-4 check.
    assert jnp.allclose(logits, ref, atol=1e-2, rtol=1e-2), "mismatch vs reference (B=32)"

    # Also exercise the batch-padding path (B not a multiple of the 16-sample block).
    idx_small = idx[:2]
    logits_small = jax.block_until_ready(bigram_forward(idx_small, params))
    ref_small = reference_forward(idx_small, params)
    assert logits_small.shape == (2, T, VOCAB_SIZE)
    assert jnp.allclose(logits_small, ref_small, atol=1e-2, rtol=1e-2), "mismatch vs reference (B=2)"

    # TODO(synk): loss (cross_entropy) path and generate() (multinomial sampling) are
    # host-side control flow / not part of the targets=None forward, not implemented as kernels.
    print("KERNEL_OK")
</pallas_src>

<mosaic_0001>
module attributes {stable_mosaic.version = 11 : i64} {
  func.func @bigram_kernel(%arg0: i32, %arg1: memref<128x1xi32, #tpu.memory_space<vmem>>, %arg2: memref<128x64xf32, #tpu.memory_space<vmem>>, %arg3: memref<40x128xf32, #tpu.memory_space<vmem>>, %arg4: memref<40x128xf32, #tpu.memory_space<vmem>>, %arg5: memref<128x128xf32, #tpu.memory_space<vmem>>) attributes {dimension_semantics = [#tpu.dimension_semantics<parallel>], iteration_bounds = array<i64: 2>, scalar_prefetch = 0 : i64, scratch_operands = 0 : i64, tpu.core_type = #tpu.core_type<tc>, window_params = [{transform_indices = @transform_0, window_bounds = array<i64: 128, 1>}, {pipeline_mode = #tpu.pipeline_mode<synchronous>, transform_indices = @transform_1, window_bounds = array<i64: 128, 64>}, {pipeline_mode = #tpu.pipeline_mode<synchronous>, transform_indices = @transform_2, window_bounds = array<i64: 40, 128>}, {pipeline_mode = #tpu.pipeline_mode<synchronous>, transform_indices = @transform_3, window_bounds = array<i64: 40, 128>}, {transform_indices = @transform_4, window_bounds = array<i64: 128, 128>}]} {
    %c0 = arith.constant 0 : index
    %c0_0 = arith.constant 0 : index
    %0 = vector.load %arg1[%c0, %c0_0] : memref<128x1xi32, #tpu.memory_space<vmem>>, vector<128x1xi32>
    %1 = tpu.iota {dimensions = array<i32: 1>} : vector<128x128xi32>
    %2 = vector.broadcast %0 : vector<128x1xi32> to vector<128x128xi32>
    %3 = arith.cmpi eq, %2, %1 : vector<128x128xi32>
    %4 = arith.extui %3 : vector<128x128xi1> to vector<128x128xi32>
    %5 = arith.sitofp %4 : vector<128x128xi32> to vector<128x128xf32>
    %c0_1 = arith.constant 0 : index
    %c0_2 = arith.constant 0 : index
    %6 = vector.load %arg2[%c0_1, %c0_2] : memref<128x64xf32, #tpu.memory_space<vmem>>, vector<128x32xf32>
    %cst = arith.constant dense<0.000000e+00> : vector<128x32xf32>
    %7 = tpu.matmul %5, %6, %cst {dimension_numbers = #tpu.dot_dimension_numbers<[1], [0], [0], [1], [0, 0, 1, 1], [], []>} : vector<128x128xf32>, vector<128x32xf32>, vector<128x32xf32> -> vector<128x32xf32>
    %c0_3 = arith.constant 0 : index
    %c32 = arith.constant 32 : index
    %8 = vector.load %arg2[%c0_3, %c32] : memref<128x64xf32, #tpu.memory_space<vmem>>, vector<128x32xf32>
    %9 = arith.addf %7, %8 : vector<128x32xf32>
    %c0_4 = arith.constant 0 : index
    %c0_5 = arith.constant 0 : index
    %10 = vector.load %arg3[%c0_4, %c0_5] : memref<40x128xf32, #tpu.memory_space<vmem>>, vector<32x96xf32>
    %cst_6 = arith.constant dense<0.000000e+00> : vector<128x96xf32>
    %11 = tpu.matmul %9, %10, %cst_6 {dimension_numbers = #tpu.dot_dimension_numbers<[1], [0], [0], [1], [0, 0, 1, 1], [], []>} : vector<128x32xf32>, vector<32x96xf32>, vector<128x96xf32> -> vector<128x96xf32>
    %12 = vector.extract_strided_slice %11 {offsets = [0, 0], sizes = [128, 32], strides = [1, 1]} : vector<128x96xf32> to vector<128x32xf32>
    %13 = vector.extract_strided_slice %11 {offsets = [0, 32], sizes = [128, 32], strides = [1, 1]} : vector<128x96xf32> to vector<128x32xf32>
    %14 = vector.extract_strided_slice %11 {offsets = [0, 64], sizes = [128, 32], strides = [1, 1]} : vector<128x96xf32> to vector<128x32xf32>
    %15 = tpu.iota {dimensions = array<i32: 0>} : vector<128x128xi32>
    %16 = tpu.iota {dimensions = array<i32: 1>} : vector<128x128xi32>
    %c3_i32 = arith.constant 3 : i32
    %17 = vector.broadcast %c3_i32 : i32 to vector<128x128xi32>
    %18 = arith.shrsi %15, %17 : vector<128x128xi32>
    %c3_i32_7 = arith.constant 3 : i32
    %19 = vector.broadcast %c3_i32_7 : i32 to vector<128x128xi32>
    %20 = arith.shrsi %16, %19 : vector<128x128xi32>
    %21 = arith.cmpi eq, %18, %20 : vector<128x128xi32>
    %22 = arith.cmpi sle, %16, %15 : vector<128x128xi32>
    %23 = arith.andi %21, %22 : vector<128x128xi1>
    %c0_8 = arith.constant 0 : index
    %c96 = arith.constant 96 : index
    %24 = vector.load %arg3[%c0_8, %c96] : memref<40x128xf32, #tpu.memory_space<vmem>>, vector<32x32xf32>
    %cst_9 = arith.constant 0.000000e+00 : f32
    %25 = vector.broadcast %cst_9 : f32 to vector<128x32xf32>
    %26 = vector.extract_strided_slice %12 {offsets = [0, 0], sizes = [128, 4], strides = [1, 1]} : vector<128x32xf32> to vector<128x4xf32>
    %27 = vector.extract_strided_slice %13 {offsets = [0, 0], sizes = [128, 4], strides = [1, 1]} : vector<128x32xf32> to vector<128x4xf32>
    %28 = vector.extract_strided_slice %14 {offsets = [0, 0], sizes = [128, 4], strides = [1, 1]} : vector<128x32xf32> to vector<128x4xf32>
    %cst_10 = arith.constant dense<0.000000e+00> : vector<128x128xf32>
    %29 = tpu.matmul %26, %27, %cst_10 {dimension_numbers = #tpu.dot_dimension_numbers<[1], [1], [0], [0], [0, 0, 1, 0], [], []>} : vector<128x4xf32>, vector<128x4xf32>, vector<128x128xf32> -> vector<128x128xf32>
    %cst_11 = arith.constant 0.176776692 : f32
    %30 = vector.broadcast %cst_11 : f32 to vector<128x128xf32>
    %31 = arith.mulf %29, %30 : vector<128x128xf32>
    %cst_12 = arith.constant -1.000000e+30 : f32
    %32 = vector.broadcast %cst_12 : f32 to vector<128x128xf32>
    %33 = arith.select %23, %31, %32 : vector<128x128xi1>, vector<128x128xf32>
    %cst_13 = arith.constant dense<0xFF800000> : vector<128xf32>
    %34 = vector.multi_reduction <maximumf>, %33, %cst_13 [1] : vector<128x128xf32> to vector<128xf32>
    %35 = vector.shape_cast %34 : vector<128xf32> to vector<128x1xf32>
    %36 = vector.broadcast %35 : vector<128x1xf32> to vector<128x128xf32>
    %37 = arith.subf %33, %36 : vector<128x128xf32>
    %38 = math.exp %37 : vector<128x128xf32>
    %cst_14 = arith.constant dense<0.000000e+00> : vector<128xf32>
    %39 = vector.multi_reduction <add>, %38, %cst_14 [1] : vector<128x128xf32> to vector<128xf32>
    %40 = vector.shape_cast %39 : vector<128xf32> to vector<128x1xf32>
    %41 = tpu.reciprocal %40 {approx = true} : vector<128x1xf32> -> vector<128x1xf32>
    %42 = vector.broadcast %41 : vector<128x1xf32> to vector<128x128xf32>
    %43 = arith.mulf %38, %42 : vector<128x128xf32>
    %cst_15 = arith.constant dense<0.000000e+00> : vector<128x4xf32>
    %44 = tpu.matmul %43, %28, %cst_15 {dimension_numbers = #tpu.dot_dimension_numbers<[1], [0], [0], [1], [0, 0, 1, 1], [], []>} : vector<128x128xf32>, vector<128x4xf32>, vector<128x4xf32> -> vector<128x4xf32>
    %45 = vector.extract_strided_slice %24 {offsets = [0, 0], sizes = [4, 32], strides = [1, 1]} : vector<32x32xf32> to vector<4x32xf32>
    %cst_16 = arith.constant dense<0.000000e+00> : vector<128x32xf32>
    %46 = tpu.matmul %44, %45, %cst_16 {dimension_numbers = #tpu.dot_dimension_numbers<[1], [0], [0], [1], [0, 0, 1, 1], [], []>} : vector<128x4xf32>, vector<4x32xf32>, vector<128x32xf32> -> vector<128x32xf32>
    %47 = arith.addf %25, %46 : vector<128x32xf32>
    %48 = vector.extract_strided_slice %12 {offsets = [0, 4], sizes = [128, 4], strides = [1, 1]} : vector<128x32xf32> to vector<128x4xf32>
    %49 = vector.extract_strided_slice %13 {offsets = [0, 4], sizes = [128, 4], strides = [1, 1]} : vector<128x32xf32> to vector<128x4xf32>
    %50 = vector.extract_strided_slice %14 {offsets = [0, 4], sizes = [128, 4], strides = [1, 1]} : vector<128x32xf32> to vector<128x4xf32>
    %cst_17 = arith.constant dense<0.000000e+00> : vector<128x128xf32>
    %51 = tpu.matmul %48, %49, %cst_17 {dimension_numbers = #tpu.dot_dimension_numbers<[1], [1], [0], [0], [0, 0, 1, 0], [], []>} : vector<128x4xf32>, vector<128x4xf32>, vector<128x128xf32> -> vector<128x128xf32>
    %cst_18 = arith.constant 0.176776692 : f32
    %52 = vector.broadcast %cst_18 : f32 to vector<128x128xf32>
    %53 = arith.mulf %51, %52 : vector<128x128xf32>
    %cst_19 = arith.constant -1.000000e+30 : f32
    %54 = vector.broadcast %cst_19 : f32 to vector<128x128xf32>
    %55 = arith.select %23, %53, %54 : vector<128x128xi1>, vector<128x128xf32>
    %cst_20 = arith.constant dense<0xFF800000> : vector<128xf32>
    %56 = vector.multi_reduction <maximumf>, %55, %cst_20 [1] : vector<128x128xf32> to vector<128xf32>
    %57 = vector.shape_cast %56 : vector<128xf32> to vector<128x1xf32>
    %58 = vector.broadcast %57 : vector<128x1xf32> to vector<128x128xf32>
    %59 = arith.subf %55, %58 : vector<128x128xf32>
    %60 = math.exp %59 : vector<128x128xf32>
    %cst_21 = arith.constant dense<0.000000e+00> : vector<128xf32>
    %61 = vector.multi_reduction <add>, %60, %cst_21 [1] : vector<128x128xf32> to vector<128xf32>
    %62 = vector.shape_cast %61 : vector<128xf32> to vector<128x1xf32>
    %63 = tpu.reciprocal %62 {approx = true} : vector<128x1xf32> -> vector<128x1xf32>
    %64 = vector.broadcast %63 : vector<128x1xf32> to vector<128x128xf32>
    %65 = arith.mulf %60, %64 : vector<128x128xf32>
    %cst_22 = arith.constant dense<0.000000e+00> : vector<128x4xf32>
    %66 = tpu.matmul %65, %50, %cst_22 {dimension_numbers = #tpu.dot_dimension_numbers<[1], [0], [0], [1], [0, 0, 1, 1], [], []>} : vector<128x128xf32>, vector<128x4xf32>, vector<128x4xf32> -> vector<128x4xf32>
    %67 = vector.extract_strided_slice %24 {offsets = [4, 0], sizes = [4, 32], strides = [1, 1]} : vector<32x32xf32> to vector<4x32xf32>
    %cst_23 = arith.constant dense<0.000000e+00> : vector<128x32xf32>
    %68 = tpu.matmul %66, %67, %cst_23 {dimension_numbers = #tpu.dot_dimension_numbers<[1], [0], [0], [1], [0, 0, 1, 1], [], []>} : vector<128x4xf32>, vector<4x32xf32>, vector<128x32xf32> -> vector<128x32xf32>
    %69 = arith.addf %47, %68 : vector<128x32xf32>
    %70 = vector.extract_strided_slice %12 {offsets = [0, 8], sizes = [128, 4], strides = [1, 1]} : vector<128x32xf32> to vector<128x4xf32>
    %71 = vector.extract_strided_slice %13 {offsets = [0, 8], sizes = [128, 4], strides = [1, 1]} : vector<128x32xf32> to vector<128x4xf32>
    %72 = vector.extract_strided_slice %14 {offsets = [0, 8], sizes = [128, 4], strides = [1, 1]} : vector<128x32xf32> to vector<128x4xf32>
    %cst_24 = arith.constant dense<0.000000e+00> : vector<128x128xf32>
    %73 = tpu.matmul %70, %71, %cst_24 {dimension_numbers = #tpu.dot_dimension_numbers<[1], [1], [0], [0], [0, 0, 1, 0], [], []>} : vector<128x4xf32>, vector<128x4xf32>, vector<128x128xf32> -> vector<128x128xf32>
    %cst_25 = arith.constant 0.176776692 : f32
    %74 = vector.broadcast %cst_25 : f32 to vector<128x128xf32>
    %75 = arith.mulf %73, %74 : vector<128x128xf32>
    %cst_26 = arith.constant -1.000000e+30 : f32
    %76 = vector.broadcast %cst_26 : f32 to vector<128x128xf32>
    %77 = arith.select %23, %75, %76 : vector<128x128xi1>, vector<128x128xf32>
    %cst_27 = arith.constant dense<0xFF800000> : vector<128xf32>
    %78 = vector.multi_reduction <maximumf>, %77, %cst_27 [1] : vector<128x128xf32> to vector<128xf32>
    %79 = vector.shape_cast %78 : vector<128xf32> to vector<128x1xf32>
    %80 = vector.broadcast %79 : vector<128x1xf32> to vector<128x128xf32>
    %81 = arith.subf %77, %80 : vector<128x128xf32>
    %82 = math.exp %81 : vector<128x128xf32>
    %cst_28 = arith.constant dense<0.000000e+00> : vector<128xf32>
    %83 = vector.multi_reduction <add>, %82, %cst_28 [1] : vector<128x128xf32> to vector<128xf32>
    %84 = vector.shape_cast %83 : vector<128xf32> to vector<128x1xf32>
    %85 = tpu.reciprocal %84 {approx = true} : vector<128x1xf32> -> vector<128x1xf32>
    %86 = vector.broadcast %85 : vector<128x1xf32> to vector<128x128xf32>
    %87 = arith.mulf %82, %86 : vector<128x128xf32>
    %cst_29 = arith.constant dense<0.000000e+00> : vector<128x4xf32>
    %88 = tpu.matmul %87, %72, %cst_29 {dimension_numbers = #tpu.dot_dimension_numbers<[1], [0], [0], [1], [0, 0, 1, 1], [], []>} : vector<128x128xf32>, vector<128x4xf32>, vector<128x4xf32> -> vector<128x4xf32>
    %89 = vector.extract_strided_slice %24 {offsets = [8, 0], sizes = [4, 32], strides = [1, 1]} : vector<32x32xf32> to vector<4x32xf32>
    %cst_30 = arith.constant dense<0.000000e+00> : vector<128x32xf32>
    %90 = tpu.matmul %88, %89, %cst_30 {dimension_numbers = #tpu.dot_dimension_numbers<[1], [0], [0], [1], [0, 0, 1, 1], [], []>} : vector<128x4xf32>, vector<4x32xf32>, vector<128x32xf32> -> vector<128x32xf32>
    %91 = arith.addf %69, %90 : vector<128x32xf32>
    %92 = vector.extract_strided_slice %12 {offsets = [0, 12], sizes = [128, 4], strides = [1, 1]} : vector<128x32xf32> to vector<128x4xf32>
    %93 = vector.extract_strided_slice %13 {offsets = [0, 12], sizes = [128, 4], strides = [1, 1]} : vector<128x32xf32> to vector<128x4xf32>
    %94 = vector.extract_strided_slice %14 {offsets = [0, 12], sizes = [128, 4], strides = [1, 1]} : vector<128x32xf32> to vector<128x4xf32>
    %cst_31 = arith.constant dense<0.000000e+00> : vector<128x128xf32>
    %95 = tpu.matmul %92, %93, %cst_31 {dimension_numbers = #tpu.dot_dimension_numbers<[1], [1], [0], [0], [0, 0, 1, 0], [], []>} : vector<128x4xf32>, vector<128x4xf32>, vector<128x128xf32> -> vector<128x128xf32>
    %cst_32 = arith.constant 0.176776692 : f32
    %96 = vector.broadcast %cst_32 : f32 to vector<128x128xf32>
    %97 = arith.mulf %95, %96 : vector<128x128xf32>
    %cst_33 = arith.constant -1.000000e+30 : f32
    %98 = vector.broadcast %cst_33 : f32 to vector<128x128xf32>
    %99 = arith.select %23, %97, %98 : vector<128x128xi1>, vector<128x128xf32>
    %cst_34 = arith.constant dense<0xFF800000> : vector<128xf32>
    %100 = vector.multi_reduction <maximumf>, %99, %cst_34 [1] : vector<128x128xf32> to vector<128xf32>
    %101 = vector.shape_cast %100 : vector<128xf32> to vector<128x1xf32>
    %102 = vector.broadcast %101 : vector<128x1xf32> to vector<128x128xf32>
    %103 = arith.subf %99, %102 : vector<128x128xf32>
    %104 = math.exp %103 : vector<128x128xf32>
    %cst_35 = arith.constant dense<0.000000e+00> : vector<128xf32>
    %105 = vector.multi_reduction <add>, %104, %cst_35 [1] : vector<128x128xf32> to vector<128xf32>
    %106 = vector.shape_cast %105 : vector<128xf32> to vector<128x1xf32>
    %107 = tpu.reciprocal %106 {approx = true} : vector<128x1xf32> -> vector<128x1xf32>
    %108 = vector.broadcast %107 : vector<128x1xf32> to vector<128x128xf32>
    %109 = arith.mulf %104, %108 : vector<128x128xf32>
    %cst_36 = arith.constant dense<0.000000e+00> : vector<128x4xf32>
    %110 = tpu.matmul %109, %94, %cst_36 {dimension_numbers = #tpu.dot_dimension_numbers<[1], [0], [0], [1], [0, 0, 1, 1], [], []>} : vector<128x128xf32>, vector<128x4xf32>, vector<128x4xf32> -> vector<128x4xf32>
    %111 = vector.extract_strided_slice %24 {offsets = [12, 0], sizes = [4, 32], strides = [1, 1]} : vector<32x32xf32> to vector<4x32xf32>
    %cst_37 = arith.constant dense<0.000000e+00> : vector<128x32xf32>
    %112 = tpu.matmul %110, %111, %cst_37 {dimension_numbers = #tpu.dot_dimension_numbers<[1], [0], [0], [1], [0, 0, 1, 1], [], []>} : vector<128x4xf32>, vector<4x32xf32>, vector<128x32xf32> -> vector<128x32xf32>
    %113 = arith.addf %91, %112 : vector<128x32xf32>
    %114 = vector.extract_strided_slice %12 {offsets = [0, 16], sizes = [128, 4], strides = [1, 1]} : vector<128x32xf32> to vector<128x4xf32>
    %115 = vector.extract_strided_slice %13 {offsets = [0, 16], sizes = [128, 4], strides = [1, 1]} : vector<128x32xf32> to vector<128x4xf32>
    %116 = vector.extract_strided_slice %14 {offsets = [0, 16], sizes = [128, 4], strides = [1, 1]} : vector<128x32xf32> to vector<128x4xf32>
    %cst_38 = arith.constant dense<0.000000e+00> : vector<128x128xf32>
    %117 = tpu.matmul %114, %115, %cst_38 {dimension_numbers = #tpu.dot_dimension_numbers<[1], [1], [0], [0], [0, 0, 1, 0], [], []>} : vector<128x4xf32>, vector<128x4xf32>, vector<128x128xf32> -> vector<128x128xf32>
    %cst_39 = arith.constant 0.176776692 : f32
    %118 = vector.broadcast %cst_39 : f32 to vector<128x128xf32>
    %119 = arith.mulf %117, %118 : vector<128x128xf32>
    %cst_40 = arith.constant -1.000000e+30 : f32
    %120 = vector.broadcast %cst_40 : f32 to vector<128x128xf32>
    %121 = arith.select %23, %119, %120 : vector<128x128xi1>, vector<128x128xf32>
    %cst_41 = arith.constant dense<0xFF800000> : vector<128xf32>
    %122 = vector.multi_reduction <maximumf>, %121, %cst_41 [1] : vector<128x128xf32> to vector<128xf32>
    %123 = vector.shape_cast %122 : vector<128xf32> to vector<128x1xf32>
    %124 = vector.broadcast %123 : vector<128x1xf32> to vector<128x128xf32>
    %125 = arith.subf %121, %124 : vector<128x128xf32>
    %126 = math.exp %125 : vector<128x128xf32>
    %cst_42 = arith.constant dense<0.000000e+00> : vector<128xf32>
    %127 = vector.multi_reduction <add>, %126, %cst_42 [1] : vector<128x128xf32> to vector<128xf32>
    %128 = vector.shape_cast %127 : vector<128xf32> to vector<128x1xf32>
    %129 = tpu.reciprocal %128 {approx = true} : vector<128x1xf32> -> vector<128x1xf32>
    %130 = vector.broadcast %129 : vector<128x1xf32> to vector<128x128xf32>
    %131 = arith.mulf %126, %130 : vector<128x128xf32>
    %cst_43 = arith.constant dense<0.000000e+00> : vector<128x4xf32>
    %132 = tpu.matmul %131, %116, %cst_43 {dimension_numbers = #tpu.dot_dimension_numbers<[1], [0], [0], [1], [0, 0, 1, 1], [], []>} : vector<128x128xf32>, vector<128x4xf32>, vector<128x4xf32> -> vector<128x4xf32>
    %133 = vector.extract_strided_slice %24 {offsets = [16, 0], sizes = [4, 32], strides = [1, 1]} : vector<32x32xf32> to vector<4x32xf32>
    %cst_44 = arith.constant dense<0.000000e+00> : vector<128x32xf32>
    %134 = tpu.matmul %132, %133, %cst_44 {dimension_numbers = #tpu.dot_dimension_numbers<[1], [0], [0], [1], [0, 0, 1, 1], [], []>} : vector<128x4xf32>, vector<4x32xf32>, vector<128x32xf32> -> vector<128x32xf32>
    %135 = arith.addf %113, %134 : vector<128x32xf32>
    %136 = vector.extract_strided_slice %12 {offsets = [0, 20], sizes = [128, 4], strides = [1, 1]} : vector<128x32xf32> to vector<128x4xf32>
    %137 = vector.extract_strided_slice %13 {offsets = [0, 20], sizes = [128, 4], strides = [1, 1]} : vector<128x32xf32> to vector<128x4xf32>
    %138 = vector.extract_strided_slice %14 {offsets = [0, 20], sizes = [128, 4], strides = [1, 1]} : vector<128x32xf32> to vector<128x4xf32>
    %cst_45 = arith.constant dense<0.000000e+00> : vector<128x128xf32>
    %139 = tpu.matmul %136, %137, %cst_45 {dimension_numbers = #tpu.dot_dimension_numbers<[1], [1], [0], [0], [0, 0, 1, 0], [], []>} : vector<128x4xf32>, vector<128x4xf32>, vector<128x128xf32> -> vector<128x128xf32>
    %cst_46 = arith.constant 0.176776692 : f32
    %140 = vector.broadcast %cst_46 : f32 to vector<128x128xf32>
    %141 = arith.mulf %139, %140 : vector<128x128xf32>
    %cst_47 = arith.constant -1.000000e+30 : f32
    %142 = vector.broadcast %cst_47 : f32 to vector<128x128xf32>
    %143 = arith.select %23, %141, %142 : vector<128x128xi1>, vector<128x128xf32>
    %cst_48 = arith.constant dense<0xFF800000> : vector<128xf32>
    %144 = vector.multi_reduction <maximumf>, %143, %cst_48 [1] : vector<128x128xf32> to vector<128xf32>
    %145 = vector.shape_cast %144 : vector<128xf32> to vector<128x1xf32>
    %146 = vector.broadcast %145 : vector<128x1xf32> to vector<128x128xf32>
    %147 = arith.subf %143, %146 : vector<128x128xf32>
    %148 = math.exp %147 : vector<128x128xf32>
    %cst_49 = arith.constant dense<0.000000e+00> : vector<128xf32>
    %149 = vector.multi_reduction <add>, %148, %cst_49 [1] : vector<128x128xf32> to vector<128xf32>
    %150 = vector.shape_cast %149 : vector<128xf32> to vector<128x1xf32>
    %151 = tpu.reciprocal %150 {approx = true} : vector<128x1xf32> -> vector<128x1xf32>
    %152 = vector.broadcast %151 : vector<128x1xf32> to vector<128x128xf32>
    %153 = arith.mulf %148, %152 : vector<128x128xf32>
    %cst_50 = arith.constant dense<0.000000e+00> : vector<128x4xf32>
    %154 = tpu.matmul %153, %138, %cst_50 {dimension_numbers = #tpu.dot_dimension_numbers<[1], [0], [0], [1], [0, 0, 1, 1], [], []>} : vector<128x128xf32>, vector<128x4xf32>, vector<128x4xf32> -> vector<128x4xf32>
    %155 = vector.extract_strided_slice %24 {offsets = [20, 0], sizes = [4, 32], strides = [1, 1]} : vector<32x32xf32> to vector<4x32xf32>
    %cst_51 = arith.constant dense<0.000000e+00> : vector<128x32xf32>
    %156 = tpu.matmul %154, %155, %cst_51 {dimension_numbers = #tpu.dot_dimension_numbers<[1], [0], [0], [1], [0, 0, 1, 1], [], []>} : vector<128x4xf32>, vector<4x32xf32>, vector<128x32xf32> -> vector<128x32xf32>
    %157 = arith.addf %135, %156 : vector<128x32xf32>
    %158 = vector.extract_strided_slice %12 {offsets = [0, 24], sizes = [128, 4], strides = [1, 1]} : vector<128x32xf32> to vector<128x4xf32>
    %159 = vector.extract_strided_slice %13 {offsets = [0, 24], sizes = [128, 4], strides = [1, 1]} : vector<128x32xf32> to vector<128x4xf32>
    %160 = vector.extract_strided_slice %14 {offsets = [0, 24], sizes = [128, 4], strides = [1, 1]} : vector<128x32xf32> to vector<128x4xf32>
    %cst_52 = arith.constant dense<0.000000e+00> : vector<128x128xf32>
    %161 = tpu.matmul %158, %159, %cst_52 {dimension_numbers = #tpu.dot_dimension_numbers<[1], [1], [0], [0], [0, 0, 1, 0], [], []>} : vector<128x4xf32>, vector<128x4xf32>, vector<128x128xf32> -> vector<128x128xf32>
    %cst_53 = arith.constant 0.176776692 : f32
    %162 = vector.broadcast %cst_53 : f32 to vector<128x128xf32>
    %163 = arith.mulf %161, %162 : vector<128x128xf32>
    %cst_54 = arith.constant -1.000000e+30 : f32
    %164 = vector.broadcast %cst_54 : f32 to vector<128x128xf32>
    %165 = arith.select %23, %163, %164 : vector<128x128xi1>, vector<128x128xf32>
    %cst_55 = arith.constant dense<0xFF800000> : vector<128xf32>
    %166 = vector.multi_reduction <maximumf>, %165, %cst_55 [1] : vector<128x128xf32> to vector<128xf32>
    %167 = vector.shape_cast %166 : vector<128xf32> to vector<128x1xf32>
    %168 = vector.broadcast %167 : vector<128x1xf32> to vector<128x128xf32>
    %169 = arith.subf %165, %168 : vector<128x128xf32>
    %170 = math.exp %169 : vector<128x128xf32>
    %cst_56 = arith.constant dense<0.000000e+00> : vector<128xf32>
    %171 = vector.multi_reduction <add>, %170, %cst_56 [1] : vector<128x128xf32> to vector<128xf32>
    %172 = vector.shape_cast %171 : vector<128xf32> to vector<128x1xf32>
    %173 = tpu.reciprocal %172 {approx = true} : vector<128x1xf32> -> vector<128x1xf32>
    %174 = vector.broadcast %173 : vector<128x1xf32> to vector<128x128xf32>
    %175 = arith.mulf %170, %174 : vector<128x128xf32>
    %cst_57 = arith.constant dense<0.000000e+00> : vector<128x4xf32>
    %176 = tpu.matmul %175, %160, %cst_57 {dimension_numbers = #tpu.dot_dimension_numbers<[1], [0], [0], [1], [0, 0, 1, 1], [], []>} : vector<128x128xf32>, vector<128x4xf32>, vector<128x4xf32> -> vector<128x4xf32>
    %177 = vector.extract_strided_slice %24 {offsets = [24, 0], sizes = [4, 32], strides = [1, 1]} : vector<32x32xf32> to vector<4x32xf32>
    %cst_58 = arith.constant dense<0.000000e+00> : vector<128x32xf32>
    %178 = tpu.matmul %176, %177, %cst_58 {dimension_numbers = #tpu.dot_dimension_numbers<[1], [0], [0], [1], [0, 0, 1, 1], [], []>} : vector<128x4xf32>, vector<4x32xf32>, vector<128x32xf32> -> vector<128x32xf32>
    %179 = arith.addf %157, %178 : vector<128x32xf32>
    %180 = vector.extract_strided_slice %12 {offsets = [0, 28], sizes = [128, 4], strides = [1, 1]} : vector<128x32xf32> to vector<128x4xf32>
    %181 = vector.extract_strided_slice %13 {offsets = [0, 28], sizes = [128, 4], strides = [1, 1]} : vector<128x32xf32> to vector<128x4xf32>
    %182 = vector.extract_strided_slice %14 {offsets = [0, 28], sizes = [128, 4], strides = [1, 1]} : vector<128x32xf32> to vector<128x4xf32>
    %cst_59 = arith.constant dense<0.000000e+00> : vector<128x128xf32>
    %183 = tpu.matmul %180, %181, %cst_59 {dimension_numbers = #tpu.dot_dimension_numbers<[1], [1], [0], [0], [0, 0, 1, 0], [], []>} : vector<128x4xf32>, vector<128x4xf32>, vector<128x128xf32> -> vector<128x128xf32>
    %cst_60 = arith.constant 0.176776692 : f32
    %184 = vector.broadcast %cst_60 : f32 to vector<128x128xf32>
    %185 = arith.mulf %183, %184 : vector<128x128xf32>
    %cst_61 = arith.constant -1.000000e+30 : f32
    %186 = vector.broadcast %cst_61 : f32 to vector<128x128xf32>
    %187 = arith.select %23, %185, %186 : vector<128x128xi1>, vector<128x128xf32>
    %cst_62 = arith.constant dense<0xFF800000> : vector<128xf32>
    %188 = vector.multi_reduction <maximumf>, %187, %cst_62 [1] : vector<128x128xf32> to vector<128xf32>
    %189 = vector.shape_cast %188 : vector<128xf32> to vector<128x1xf32>
    %190 = vector.broadcast %189 : vector<128x1xf32> to vector<128x128xf32>
    %191 = arith.subf %187, %190 : vector<128x128xf32>
    %192 = math.exp %191 : vector<128x128xf32>
    %cst_63 = arith.constant dense<0.000000e+00> : vector<128xf32>
    %193 = vector.multi_reduction <add>, %192, %cst_63 [1] : vector<128x128xf32> to vector<128xf32>
    %194 = vector.shape_cast %193 : vector<128xf32> to vector<128x1xf32>
    %195 = tpu.reciprocal %194 {approx = true} : vector<128x1xf32> -> vector<128x1xf32>
    %196 = vector.broadcast %195 : vector<128x1xf32> to vector<128x128xf32>
    %197 = arith.mulf %192, %196 : vector<128x128xf32>
    %cst_64 = arith.constant dense<0.000000e+00> : vector<128x4xf32>
    %198 = tpu.matmul %197, %182, %cst_64 {dimension_numbers = #tpu.dot_dimension_numbers<[1], [0], [0], [1], [0, 0, 1, 1], [], []>} : vector<128x128xf32>, vector<128x4xf32>, vector<128x4xf32> -> vector<128x4xf32>
    %199 = vector.extract_strided_slice %24 {offsets = [28, 0], sizes = [4, 32], strides = [1, 1]} : vector<32x32xf32> to vector<4x32xf32>
    %cst_65 = arith.constant dense<0.000000e+00> : vector<128x32xf32>
    %200 = tpu.matmul %198, %199, %cst_65 {dimension_numbers = #tpu.dot_dimension_numbers<[1], [0], [0], [1], [0, 0, 1, 1], [], []>} : vector<128x4xf32>, vector<4x32xf32>, vector<128x32xf32> -> vector<128x32xf32>
    %201 = arith.addf %179, %200 : vector<128x32xf32>
    %c32_66 = arith.constant 32 : index
    %c96_67 = arith.constant 96 : index
    %202 = vector.load %arg3[%c32_66, %c96_67] : memref<40x128xf32, #tpu.memory_space<vmem>>, vector<1x32xf32>
    %203 = vector.broadcast %202 : vector<1x32xf32> to vector<128x32xf32>
    %204 = arith.addf %201, %203 : vector<128x32xf32>
    %cst_68 = arith.constant 0.000000e+00 : f32
    %205 = vector.broadcast %cst_68 : f32 to vector<128x32xf32>
    %206 = arith.maximumf %204, %205 : vector<128x32xf32>
    %c0_69 = arith.constant 0 : index
    %c0_70 = arith.constant 0 : index
    %207 = vector.load %arg4[%c0_69, %c0_70] : memref<40x128xf32, #tpu.memory_space<vmem>>, vector<32x128xf32>
    %c32_71 = arith.constant 32 : index
    %c0_72 = arith.constant 0 : index
    %208 = vector.load %arg4[%c32_71, %c0_72] : memref<40x128xf32, #tpu.memory_space<vmem>>, vector<1x128xf32>
    %cst_73 = arith.constant dense<0.000000e+00> : vector<128x128xf32>
    %209 = tpu.matmul %206, %207, %cst_73 {dimension_numbers = #tpu.dot_dimension_numbers<[1], [0], [0], [1], [0, 0, 1, 1], [], []>} : vector<128x32xf32>, vector<32x128xf32>, vector<128x128xf32> -> vector<128x128xf32>
    %210 = vector.broadcast %208 : vector<1x128xf32> to vector<128x128xf32>
    %211 = arith.addf %209, %210 : vector<128x128xf32>
    %c0_74 = arith.constant 0 : index
    %c0_75 = arith.constant 0 : index
    %212 = vector.load %arg5[%c0_74, %c0_75] : memref<128x128xf32, #tpu.memory_space<vmem>>, vector<128x128xf32>
    tpu.vector_store %arg5[%c0_74, %c0_75], %211 {strides = array<i32>} : memref<128x128xf32, #tpu.memory_space<vmem>>, vector<128x128xf32>,
    return
  }
  func.func @transform_0(%arg0: i32) -> (i32, i32) {
    %c0_i32 = arith.constant 0 : i32
    %c0_i32_0 = arith.constant 0 : i32
    return %arg0, %c0_i32 : i32, i32
  }
  func.func @transform_1(%arg0: i32) -> (i32, i32) {
    %c0_i32 = arith.constant 0 : i32
    %c0_i32_0 = arith.constant 0 : i32
    %c0_i32_1 = arith.constant 0 : i32
    return %c0_i32, %c0_i32_0 : i32, i32
  }
  func.func @transform_2(%arg0: i32) -> (i32, i32) {
    %c0_i32 = arith.constant 0 : i32
    %c0_i32_0 = arith.constant 0 : i32
    %c0_i32_1 = arith.constant 0 : i32
    return %c0_i32, %c0_i32_0 : i32, i32
  }
  func.func @transform_3(%arg0: i32) -> (i32, i32) {
    %c0_i32 = arith.constant 0 : i32
    %c0_i32_0 = arith.constant 0 : i32
    %c0_i32_1 = arith.constant 0 : i32
    return %c0_i32, %c0_i32_0 : i32, i32
  }
  func.func @transform_4(%arg0: i32) -> (i32, i32) {
    %c0_i32 = arith.constant 0 : i32
    %c0_i32_0 = arith.constant 0 : i32
    return %arg0, %c0_i32 : i32, i32
  }
}

</mosaic_0001>

<bundles_post_ra>
// kernel: bigram_forward.1
= control target key start
LH: loop header
LB: loop body
LE: loop exit
PB: predicated region body
PF: predicated region fallthrough
CT: control target
= control target key end

     0   :  { %9 = vsyncpa [#allocation3], 0  ;;  %s16035_s0 = inlined_call_operand.vmem [shape: s32[256,1], index: 0, kind: input, shape index: {}]   ;;  %s16036_s1 = inlined_call_operand.vmem [shape: f32[128,64], index: 1, kind: input, shape index: {}]   ;;  %s16037_s2 = inlined_call_operand.vmem [shape: f32[40,128], index: 2, kind: input, shape index: {}]   ;;  %s16038_s3 = inlined_call_operand.vmem [shape: f32[40,128], index: 3, kind: input, shape index: {}]   ;;  %s16039_s4 = inlined_call_operand.hbm [shape: f32[256,128], index: 4, kind: output, shape index: {}]  }
   0x1   :  { %11 = vsyncpa [#allocation3 + $0x1], 0  ;;  %s12513_s15 = smov 0   ;;  %s12515_s16 = smov 0  }
   0x2   :  { %s12517_s17 = smov 0   ;;  %s12519_s18 = smov 0  }
   0x3 LB: > { %s12534_s19 = sadd.s32 4294967295, %s12457_s18   ;;  %s7955_s20 = sadd.s32 4294967294, %s12457_s18   ;;  %s12457_s18 = sphi %s12519_s18, %s16843_s18   ;;  %s12453_s17 = sphi %s12517_s17, %s16842_s17   ;;  %s12449_s16 = sphi %s12515_s16, %s16841_s16   ;;  %s12445_s15 = sphi %s12513_s15, %s16840_s15  }
   0x4   : > { %s12538_s21 = sadd.s32 1, %s12457_s18   ;;  %s113_s22 = sadd.s32 1, %s12453_s17 }
   0x5   : > { %s110_s23 = ssub.s32 %s12457_s18, %s12538_s21  ;;  %p123_p0 = scmp.ne.s32.totalorder %s12453_s17, %s12449_s16 }
   0x6   : > { %p111_p1 = scmp.eq.s32.totalorder %s110_s23, 0  ;;  %p124_p2 = scmp.eq.s32.totalorder %s12534_s19, 1 }
   0x7   : > { %p129_p3 = scmp.ne.s32.totalorder %s12449_s16, %s12445_s15  ;;  %p130_p4 = scmp.eq.s32.totalorder %s7955_s20, 1 }
   0x8   : > { %s12549_s24 = scalar_select %p111_p1, %s12453_s17, %s113_s22  }
   0x9   : > { %p12551_p5 = por %p124_p2, %p123_p0  ;;  %p12555_p6 = por %p130_p4, %p129_p3 }
   0xa   : > { %p7958_p7 = scmp.ge.s32.totalorder %s12457_s18, 1  ;;  %p166_p8 = scmp.lt.s32.totalorder %s12457_s18, 3 }
   0xc   : > { %p167_p9 = pnand %p7958_p7, %p166_p8 }
   0xe   : > { %170 = sbr.rel (%p167_p9) target bundleno = 4674 (0x1242), region = 36 }
  0x15   : > { %s7960_s27 = sshll.u32 %s12534_s19, 4  ;;  %v12565_v0 = vld [vmem:[%s16036_s1] sm:$0xff]  ;;  %v12570_v1 = vld [vmem:[%s16036_s1 + $0x8] sm:$0xff]  ;;  %v12575_v2 = vld [vmem:[%s16036_s1 + $0x10] sm:$0xff]  ;;  %v12459_v3 = vmov 0   ;;  %s12460_s9 = smov 96   ;;  %v215_v44 = vlaneseq }
  0x16   : > { %11238 = vset.pattern.permute.xlu1 %v12459_v3  ;;  %11237 = vset.pattern.permute.xlu0 %v12459_v3  ;;  %p193_p10 = scmp.lt.s32.totalorder %s7960_s27, 31  ;;  %v10370_v4 = vpack.c.bf16 %v12570_v1, %v12565_v0  ;;  %v12582_v5 = vld [vmem:[%s16036_s1 + $0x18] sm:$0xff]  ;;  %v12589_v7 = vld [vmem:[%s16036_s1 + $0x20] sm:$0xff]  ;;  %v12594_v8 = vld [vmem:[%s16036_s1 + $0x28] sm:$0xff]  ;;  %v12461_v48 = vmov 1.0   ;;  %s12462_s13 = smov 64  }
  0x17   : > { %v10374_v6 = vpack.c.bf16 %v12582_v5, %v12575_v2  ;;  %v10378_v9 = vpack.c.bf16 %v12594_v8, %v12589_v7  ;;  %v12606_v10 = vld [vmem:[%s16036_s1 + $0x30] sm:$0xff]  ;;  %v12613_v13 = vld [vmem:[%s16036_s1 + $0x38] sm:$0xff]  ;;  %v12622_v17 = vld [vmem:[%s16036_s1 + $0x40] sm:$0xff]  ;;  %v12690_v45 = vand.u32 127, %v215_v44  ;;  %s12464_s20 = smov 124   ;;  %s12465_s22 = smov 88  }
  0x18   : > { %s16845_s27 = smov (!%p193_p10, %s7960_s27), 31  ;;  %10371 = vmatprep.subr.bf16.mxu0 %v10370_v4  ;;  %v10382_v16 = vpack.c.bf16 %v12613_v13, %v12606_v10  ;;  %v322_v18 = vld [vmem:[%s16036_s1 + $0x48] sm:$0xff]  ;;  %v323_v22 = vld [vmem:[%s16036_s1 + $0x50] sm:$0xff]  ;;  %v324_v23 = vld [vmem:[%s16036_s1 + $0x58] sm:$0xff]  ;;  %s12466_s28 = smov 120  }
  0x19   : > { %10373 = vmatpush3.bf16.msra.mxu0 %v10370_v4  ;;  %s7961_s14 = sshll.u32 %s16845_s27, 3  ;;  %v10386_v21 = vpack.c.bf16 %v322_v18, %v12622_v17  ;;  %v10390_v26 = vpack.c.bf16 %v324_v23, %v323_v22  ;;  %v325_v27 = vld [vmem:[%s16036_s1 + $0x60] sm:$0xff]  ;;  %v326_v28 = vld [vmem:[%s16036_s1 + $0x68] sm:$0xff]  ;;  %v327_v32 = vld [vmem:[%s16036_s1 + $0x70] sm:$0xff]  ;;  %s12467_s29 = smov 60  }
  0x1a   : > { %10375 = vmatprep.subr.bf16.mxu0 %v10374_v6  ;;  %s12599_s23 = scalar_lea.vmem %s16035_s0, %s7961_s14  ;;  %v10394_v31 = vpack.c.bf16 %v326_v28, %v325_v27  ;;  %v328_v33 = vld [vmem:[%s16036_s1 + $0x78] sm:$0xff]  ;;  %v538_v41 = vld [vmem:[%s16037_s2] sm:$0xff]  ;;  %v539_v42 = vld [vmem:[%s16037_s2 + $0x8] sm:$0xff]  ;;  %s12463_s14 = smov 92  }
  0x1b   : > { %v201_v11 = vld [vmem:[%s12599_s23 + $0x10] sm:$0xff]  ;;  %v199_v12 = vld [vmem:[%s12599_s23] sm:$0xff]  ;;  %v202_v14 = vld [vmem:[%s12599_s23 + $0x18] sm:$0xff]  ;;  %v10398_v36 = vpack.c.bf16 %v328_v33, %v327_v32  ;;  %v10402_v43 = vpack.c.bf16 %v539_v42, %v538_v41  ;;  %s12468_s27 = smov 84   ;;  %s12469_s30 = smov 116  }
  0x1c   : > { %224 = vperm.xlu1 %11238, %v201_v11   ;;  %218 = vperm.xlu0 %11237, %v199_v12   ;;  %v200_v15 = vld [vmem:[%s12599_s23 + $0x8] sm:$0xff]  ;;  %v203_v20 = vld [vmem:[%s12599_s23 + $0x20] sm:$0xff]  ;;  %v206_v24 = vld [vmem:[%s12599_s23 + $0x38] sm:$0xff]  ;;  %s12470_s7 = smov 32   ;;  %s12471_s8 = smov 56  }
  0x1d   : > { %10377 = vmatpush3.bf16.msra.mxu0 %v10374_v6  ;;  %v204_v19 = vld [vmem:[%s12599_s23 + $0x28] sm:$0xff]  ;;  %v205_v25 = vld [vmem:[%s12599_s23 + $0x30] sm:$0xff]  ;;  %v207_v30 = vld [vmem:[%s12599_s23 + $0x40] sm:$0xff]  ;;  %10403 = vmatprep.subr.bf16.mxu1 %v10402_v43  ;;  %s12474_s12 = smov 52   ;;  %s12481_s5 = smov 68  }
  0x1e   : > { %10379 = vmatprep.subr.bf16.mxu0 %v10378_v9  ;;  %v208_v29 = vld [vmem:[%s12599_s23 + $0x48] sm:$0xff]  ;;  %v210_v34 = vld [vmem:[%s12599_s23 + $0x58] sm:$0xff]  ;;  %v209_v35 = vld [vmem:[%s12599_s23 + $0x50] sm:$0xff]  ;;  %10405 = vmatpush3.bf16.msra.mxu1 %v10402_v43  ;;  %s12482_s6 = smov 100   ;;  %s12484_s10 = smov 36  }
  0x1f   : > { %v212_v37 = vld [vmem:[%s12599_s23 + $0x68] sm:$0xff]  ;;  %v211_v38 = vld [vmem:[%s12599_s23 + $0x60] sm:$0xff]  ;;  %v214_v39 = vld [vmem:[%s12599_s23 + $0x78] sm:$0xff] }
  0x20   : > { %227 = vperm.xlu1 %11238, %v202_v14   ;;  %221 = vperm.xlu0 %11237, %v200_v15   ;;  %v213_v40 = vld [vmem:[%s12599_s23 + $0x70] sm:$0xff]  ;;  %s12473_s23 = smov 112  }
  0x21   : > { %10381 = vmatpush3.bf16.msra.mxu0 %v10378_v9  ;;  %v540_v63 = vld [vmem:[%s16037_s2 + $0x10] sm:$0xff] }
  0x22   : > { %10383 = vmatprep.subr.bf16.mxu0 %v10382_v16 }
  0x24   : > { %233 = vperm.xlu1 %11238, %v204_v19   ;;  %230 = vperm.xlu0 %11237, %v203_v20  }
  0x25   : > { %10385 = vmatpush3.bf16.msra.mxu0 %v10382_v16 }
  0x26   : > { %10387 = vmatprep.subr.bf16.mxu0 %v10386_v21 }
  0x28   : > { %239 = vperm.xlu1 %11238, %v206_v24   ;;  %236 = vperm.xlu0 %11237, %v205_v25  }
  0x29   : > { %10389 = vmatpush3.bf16.msra.mxu0 %v10386_v21 }
  0x2a   : > { %10391 = vmatprep.subr.bf16.mxu0 %v10390_v26 }
  0x2c   : > { %245 = vperm.xlu1 %11238, %v208_v29   ;;  %242 = vperm.xlu0 %11237, %v207_v30  }
  0x2d   : > { %10393 = vmatpush3.bf16.msra.mxu0 %v10390_v26 }
  0x2e   : > { %10395 = vmatprep.subr.bf16.mxu0 %v10394_v31 }
  0x30   : > { %251 = vperm.xlu1 %11238, %v210_v34   ;;  %248 = vperm.xlu0 %11237, %v209_v35  }
  0x31   : > { %10397 = vmatpush3.bf16.msra.mxu0 %v10394_v31 }
  0x32   : > { %10399 = vmatprep.subr.bf16.mxu0 %v10398_v36 }
  0x34   : > { %257 = vperm.xlu1 %11238, %v212_v37   ;;  %254 = vperm.xlu0 %11237, %v211_v38  }
  0x35   : > { %10401 = vmatpush3.bf16.msra.mxu0 %v10398_v36 }
  0x38   : > { %263 = vperm.xlu1 %11238, %v214_v39   ;;  %260 = vperm.xlu0 %11237, %v213_v40  }
  0x3c   : > { %347 = vrot.lane.b32.xlu1 %v12570_v1, %s12460_s9  ;;  %345 = vrot.lane.b32.xlu0 %v12565_v0, %s12460_s9  ;;  %v541_v0 = vld [vmem:[%s16037_s2 + $0x18] sm:$0xff] }
  0x3d   : > { %v10406_v1 = vpack.c.bf16 %v541_v0, %v540_v63 }
  0x3f   : > { %10407 = vmatprep.subr.bf16.mxu1 %v10406_v1 }
  0x40   : > { %351 = vrot.lane.b32.xlu1 %v12582_v5, %s12460_s9  ;;  %349 = vrot.lane.b32.xlu0 %v12575_v2, %s12460_s9 }
  0x41   : > { %10409 = vmatpush3.bf16.msra.mxu1 %v10406_v1 }
  0x44   : > { %355 = vrot.lane.b32.xlu1 %v12594_v8, %s12460_s9  ;;  %353 = vrot.lane.b32.xlu0 %v12589_v7, %s12460_s9 }
  0x48   : > { %359 = vrot.lane.b32.xlu1 %v12613_v13, %s12460_s9  ;;  %357 = vrot.lane.b32.xlu0 %v12606_v10, %s12460_s9 }
  0x4c   : > { %363 = vrot.lane.b32.xlu1 %v322_v18, %s12460_s9  ;;  %361 = vrot.lane.b32.xlu0 %v12622_v17, %s12460_s9 }
  0x50   : > { %367 = vrot.lane.b32.xlu1 %v324_v23, %s12460_s9  ;;  %365 = vrot.lane.b32.xlu0 %v323_v22, %s12460_s9 }
  0x54   : > { %371 = vrot.lane.b32.xlu1 %v326_v28, %s12460_s9  ;;  %369 = vrot.lane.b32.xlu0 %v325_v27, %s12460_s9 }
  0x58   : > { %375 = vrot.lane.b32.xlu1 %v328_v33, %s12460_s9  ;;  %373 = vrot.lane.b32.xlu0 %v327_v32, %s12460_s9 }
  0x9b   : > { %v225_v46 = vpop.permute.xlu1 %224  ;;  %v219_v47 = vpop.permute.xlu0 %218 }
  0x9c   : > { %vm265_vm0 = vcmp.eq.s32.totalorder %v219_v47, %v12690_v45  ;;  %vm267_vm1 = vcmp.eq.s32.totalorder %v225_v46, %v12690_v45 }
  0x9d   : > { %9178 = vmatprep.mubr.msk.f32.mxu0 %vm265_vm0, %v12461_v48  ;;  %vm16040_vm0 = vcmask 261120  }
  0x9f   : > { %v228_v49 = vpop.permute.xlu1 %227  ;;  %v222_v50 = vpop.permute.xlu0 %221 }
  0xa0   : > { %vm266_vm2 = vcmp.eq.s32.totalorder %v222_v50, %v12690_v45  ;;  %vm268_vm3 = vcmp.eq.s32.totalorder %v228_v49, %v12690_v45 }
  0xa1   : > { %9179 = vmatmul.mubr.msk.f32.vlgmr.msra.gmra.mrb[0].mxu0 %vm266_vm2, %v12461_v48 }
  0xa2   : > { %9181 = vmatprep.mubr.msk.f32.mxu0 %vm267_vm1, %v12461_v48  ;;  %vm16041_vm1 = vcmask 31744  }
  0xa3   : > { %v234_v51 = vpop.permute.xlu1 %233  ;;  %v231_v52 = vpop.permute.xlu0 %230  ;;  %vm12822_vm2 = vmpackc.low %vm16041_vm1, %vm16041_vm1 }
  0xa4   : > { %vm269_vm4 = vcmp.eq.s32.totalorder %v231_v52, %v12690_v45  ;;  %vm270_vm5 = vcmp.eq.s32.totalorder %v234_v51, %v12690_v45 }
  0xa5   : > { %9182 = vmatmul.mubr.msk.f32.gmra.mrb[2].mxu0 %vm268_vm3, %v12461_v48 }
  0xa6   : > { %9184 = vmatprep.mubr.msk.f32.mxu0 %vm269_vm4, %v12461_v48 }
  0xa7   : > { %v240_v53 = vpop.permute.xlu1 %239  ;;  %v237_v54 = vpop.permute.xlu0 %236 }
  0xa8   : > { %vm271_vm6 = vcmp.eq.s32.totalorder %v237_v54, %v12690_v45  ;;  %vm272_vm7 = vcmp.eq.s32.totalorder %v240_v53, %v12690_v45 }
  0xa9   : > { %9185 = vmatmul.mubr.msk.f32.gmra.mrb[4].mxu0 %vm270_vm5, %v12461_v48 }
  0xaa   : > { %9187 = vmatprep.mubr.msk.f32.mxu0 %vm271_vm6, %v12461_v48 }
  0xab   : > { %v246_v55 = vpop.permute.xlu1 %245  ;;  %v243_v56 = vpop.permute.xlu0 %242 }
  0xac   : > { %vm273_vm8 = vcmp.eq.s32.totalorder %v243_v56, %v12690_v45  ;;  %vm274_vm9 = vcmp.eq.s32.totalorder %v246_v55, %v12690_v45 }
  0xad   : > { %9188 = vmatmul.mubr.msk.f32.gmra.mrb[6].mxu0 %vm272_vm7, %v12461_v48 }
  0xae   : > { %9190 = vmatprep.mubr.msk.f32.mxu0 %vm273_vm8, %v12461_v48 }
  0xaf   : > { %v252_v57 = vpop.permute.xlu1 %251  ;;  %v249_v58 = vpop.permute.xlu0 %248 }
  0xb0   : > { %vm275_vm10 = vcmp.eq.s32.totalorder %v249_v58, %v12690_v45  ;;  %vm276_vm11 = vcmp.eq.s32.totalorder %v252_v57, %v12690_v45 }
  0xb1   : > { %9191 = vmatmul.mubr.msk.f32.gmra.mrb[8].mxu0 %vm274_vm9, %v12461_v48 }
  0xb2   : > { %9193 = vmatprep.mubr.msk.f32.mxu0 %vm275_vm10, %v12461_v48 }
  0xb3   : > { %v258_v59 = vpop.permute.xlu1 %257  ;;  %v255_v60 = vpop.permute.xlu0 %254 }
  0xb4   : > { %vm277_vm12 = vcmp.eq.s32.totalorder %v255_v60, %v12690_v45  ;;  %vm278_vm13 = vcmp.eq.s32.totalorder %v258_v59, %v12690_v45 }
  0xb5   : > { %9194 = vmatmul.mubr.msk.f32.gmra.mrb[10].mxu0 %vm276_vm11, %v12461_v48 }
  0xb6   : > { %9196 = vmatprep.mubr.msk.f32.mxu0 %vm277_vm12, %v12461_v48 }
  0xb7   : > { %v261_v61 = vpop.permute.xlu0 %260  ;;  %v264_v62 = vpop.permute.xlu1 %263 }
  0xb8   : > { %vm279_vm14 = vcmp.eq.s32.totalorder %v261_v61, %v12690_v45  ;;  %vm280_vm15 = vcmp.eq.s32.totalorder %v264_v62, %v12690_v45 }
  0xb9   : > { %9197 = vmatmul.mubr.msk.f32.gmra.mrb[12].mxu0 %vm278_vm13, %v12461_v48 }
  0xba   : > { %9199 = vmatprep.mubr.msk.f32.mxu0 %vm279_vm14, %v12461_v48 }
  0xbb   : > { %v346_v2 = vpop.permute.xlu0 %345  ;;  %v348_v3 = vpop.permute.xlu1 %347 }
  0xbd   : > { %9200 = vmatmul.mubr.msk.f32.gmra.mrb[14].mxu0 %vm280_vm15, %v12461_v48 }
  0xbf   : > { %v350_v4 = vpop.permute.xlu0 %349  ;;  %v352_v5 = vpop.permute.xlu1 %351 }
  0xc3   : > { %v354_v6 = vpop.permute.xlu0 %353  ;;  %v356_v7 = vpop.permute.xlu1 %355 }
  0xc7   : > { %v358_v12 = vpop.permute.xlu0 %357  ;;  %v360_v14 = vpop.permute.xlu1 %359 }
  0xcb   : > { %v362_v20 = vpop.permute.xlu0 %361  ;;  %v364_v22 = vpop.permute.xlu1 %363 }
  0xcf   : > { %v366_v28 = vpop.permute.xlu0 %365  ;;  %v368_v30 = vpop.permute.xlu1 %367 }
  0xd3   : > { %v370_v36 = vpop.permute.xlu0 %369  ;;  %v372_v38 = vpop.permute.xlu1 %371 }
  0xd7   : > { %v374_v46 = vpop.permute.xlu0 %373  ;;  %v376_v47 = vpop.permute.xlu1 %375 }
 0x174   : > { %v9180_v8 = vpop.f32.mrb[0].mxu0 }
 0x175   : > { %v459_v9 = vpop.f32.mrb[1].mxu0  ;;  %v465_v11 = vadd.f32 %v9180_v8, %v348_v3 }
 0x176   : > { %v460_v10 = vadd.f32 %v459_v9, %v346_v2 }
 0x178   : > { %v9183_v13 = vpop.f32.mrb[2].mxu0  ;;  %9210 = vmatprep.mubr.msk.f32.mxu1 %vm16040_vm0, %v460_v10 }
 0x179   : > { %v469_v15 = vpop.f32.mrb[3].mxu0  ;;  %9211 = vmatmul.mubr.msk.f32.vlgmr.msra.gmra.mrb[0].mxu1 %vm16040_vm0, %v465_v11  ;;  %v475_v17 = vadd.f32 %v9183_v13, %v352_v5 }
 0x17a   : > { %v470_v16 = vadd.f32 %v469_v15, %v350_v4  ;;  %v16259_v15 = vmov 0 }
 0x17b   : > { %v16260_v15 = vsel %vm12822_vm2, 4294967295, %v16259_v15 }
 0x17c   : > { %v9186_v18 = vpop.f32.mrb[4].mxu0  ;;  %9213 = vmatprep.mubr.msk.f32.mxu1 %vm16040_vm0, %v470_v16  ;;  %16261 = vst [vmem:[#allocation29_spill] sm:$0xff] %v16260_v15 }
 0x17d   : > { %v479_v19 = vpop.f32.mrb[5].mxu0  ;;  %9214 = vmatmul.mubr.msk.f32.gmra.mrb[2].mxu1 %vm16040_vm0, %v475_v17  ;;  %v485_v23 = vadd.f32 %v9186_v18, %v356_v7 }
 0x17e   : > { %v480_v21 = vadd.f32 %v479_v19, %v354_v6 }
 0x180   : > { %v9189_v24 = vpop.f32.mrb[6].mxu0  ;;  %9216 = vmatprep.mubr.msk.f32.mxu1 %vm16040_vm0, %v480_v21 }
 0x181   : > { %v489_v25 = vpop.f32.mrb[7].mxu0  ;;  %9217 = vmatmul.mubr.msk.f32.gmra.mrb[4].mxu1 %vm16040_vm0, %v485_v23  ;;  %v495_v27 = vadd.f32 %v9189_v24, %v360_v14 }
 0x182   : > { %v490_v26 = vadd.f32 %v489_v25, %v358_v12 }
 0x184   : > { %v9192_v29 = vpop.f32.mrb[8].mxu0  ;;  %9219 = vmatprep.mubr.msk.f32.mxu1 %vm16040_vm0, %v490_v26 }
 0x185   : > { %v499_v31 = vpop.f32.mrb[9].mxu0  ;;  %9220 = vmatmul.mubr.msk.f32.gmra.mrb[6].mxu1 %vm16040_vm0, %v495_v27  ;;  %v505_v33 = vadd.f32 %v9192_v29, %v364_v22 }
 0x186   : > { %v500_v32 = vadd.f32 %v499_v31, %v362_v20 }
 0x188   : > { %v9195_v34 = vpop.f32.mrb[10].mxu0  ;;  %9222 = vmatprep.mubr.msk.f32.mxu1 %vm16040_vm0, %v500_v32 }
 0x189   : > { %v509_v35 = vpop.f32.mrb[11].mxu0  ;;  %9223 = vmatmul.mubr.msk.f32.gmra.mrb[8].mxu1 %vm16040_vm0, %v505_v33  ;;  %v515_v39 = vadd.f32 %v9195_v34, %v368_v30 }
 0x18a   : > { %v510_v37 = vadd.f32 %v509_v35, %v366_v28 }
 0x18c   : > { %v9198_v40 = vpop.f32.mrb[12].mxu0  ;;  %9225 = vmatprep.mubr.msk.f32.mxu1 %vm16040_vm0, %v510_v37 }
 0x18d   : > { %v519_v41 = vpop.f32.mrb[13].mxu0  ;;  %9226 = vmatmul.mubr.msk.f32.gmra.mrb[10].mxu1 %vm16040_vm0, %v515_v39  ;;  %v525_v43 = vadd.f32 %v9198_v40, %v372_v38 }
 0x18e   : > { %v520_v42 = vadd.f32 %v519_v41, %v370_v36 }
 0x190   : > { %v9201_v48 = vpop.f32.mrb[14].mxu0  ;;  %9228 = vmatprep.mubr.msk.f32.mxu1 %vm16040_vm0, %v520_v42 }
 0x191   : > { %v529_v49 = vpop.f32.mrb[15].mxu0  ;;  %9229 = vmatmul.mubr.msk.f32.gmra.mrb[12].mxu1 %vm16040_vm0, %v525_v43  ;;  %v535_v51 = vadd.f32 %v9201_v48, %v376_v47 }
 0x192   : > { %v530_v50 = vadd.f32 %v529_v49, %v374_v46 }
 0x194   : > { %9231 = vmatprep.mubr.msk.f32.mxu1 %vm16040_vm0, %v530_v50 }
 0x195   : > { %9232 = vmatmul.mubr.msk.f32.gmra.mrb[14].mxu1 %vm16040_vm0, %v535_v51 }
 0x24c   : > { %v12730_v52 = vpop.f32.mrb[0].mxu1 }
 0x24d   : > { %16235 = vst [vmem:[#allocation5_spill] sm:$0xff] %v12730_v52  ;;  %v12732_v53 = vpop.f32.mrb[1].mxu1 }
 0x24e   : > { %16236 = vst [vmem:[#allocation6_spill] sm:$0xff] %v12732_v53  ;;  %9266 = vmatprep.mubr.msk.f32.mxu1 %vm16041_vm1, %v12732_v53  ;;  %v12738_v54 = vpack.i.bf16 %v12730_v52, %v12732_v53 }
 0x250   : > { %16237 = vst [vmem:[#allocation7_spill] sm:$0xff] %v12738_v54  ;;  %11240 = vrot.lane.b32.xlu0 %v12738_v54, %s12460_s9  ;;  %v12742_v55 = vpop.f32.mrb[2].mxu1 }
 0x251   : > { %16238 = vst [vmem:[#allocation8_spill] sm:$0xff] %v12742_v55  ;;  %v12744_v56 = vpop.f32.mrb[3].mxu1 }
 0x252   : > { %16239 = vst [vmem:[#allocation9_spill] sm:$0xff] %v12744_v56  ;;  %v12748_v57 = vpack.i.bf16 %v12742_v55, %v12744_v56 }
 0x254   : > { %16240 = vst [vmem:[#allocation10_spill] sm:$0xff] %v12748_v57  ;;  %11245 = vrot.lane.b32.xlu1 %v12748_v57, %s12460_s9  ;;  %v12752_v58 = vpop.f32.mrb[4].mxu1 }
 0x255   : > { %16241 = vst [vmem:[#allocation11_spill] sm:$0xff] %v12752_v58  ;;  %v12754_v59 = vpop.f32.mrb[5].mxu1 }
 0x256   : > { %16242 = vst [vmem:[#allocation12_spill] sm:$0xff] %v12754_v59  ;;  %v12758_v60 = vpack.i.bf16 %v12752_v58, %v12754_v59 }
 0x258   : > { %16243 = vst [vmem:[#allocation13_spill] sm:$0xff] %v12758_v60  ;;  %11250 = vrot.lane.b32.xlu0 %v12758_v60, %s12460_s9  ;;  %v12762_v61 = vpop.f32.mrb[6].mxu1 }
 0x259   : > { %16244 = vst [vmem:[#allocation14_spill] sm:$0xff] %v12762_v61  ;;  %v12764_v62 = vpop.f32.mrb[7].mxu1 }
 0x25a   : > { %16245 = vst [vmem:[#allocation15_spill] sm:$0xff] %v12764_v62  ;;  %v12768_v63 = vpack.i.bf16 %v12762_v61, %v12764_v62 }
 0x25c   : > { %16246 = vst [vmem:[#allocation16_spill] sm:$0xff] %v12768_v63  ;;  %11255 = vrot.lane.b32.xlu1 %v12768_v63, %s12460_s9  ;;  %v12772_v0 = vpop.f32.mrb[8].mxu1 }
 0x25d   : > { %16247 = vst [vmem:[#allocation17_spill] sm:$0xff] %v12772_v0  ;;  %v12774_v1 = vpop.f32.mrb[9].mxu1 }
 0x25e   : > { %16248 = vst [vmem:[#allocation18_spill] sm:$0xff] %v12774_v1  ;;  %v12778_v2 = vpack.i.bf16 %v12772_v0, %v12774_v1 }
 0x260   : > { %16249 = vst [vmem:[#allocation19_spill] sm:$0xff] %v12778_v2  ;;  %11260 = vrot.lane.b32.xlu0 %v12778_v2, %s12460_s9  ;;  %v12782_v3 = vpop.f32.mrb[10].mxu1 }
 0x261   : > { %16250 = vst [vmem:[#allocation20_spill] sm:$0xff] %v12782_v3  ;;  %v12784_v4 = vpop.f32.mrb[11].mxu1 }
 0x262   : > { %16251 = vst [vmem:[#allocation21_spill] sm:$0xff] %v12784_v4  ;;  %v12788_v5 = vpack.i.bf16 %v12782_v3, %v12784_v4 }
 0x264   : > { %16252 = vst [vmem:[#allocation22_spill] sm:$0xff] %v12788_v5  ;;  %11265 = vrot.lane.b32.xlu1 %v12788_v5, %s12460_s9  ;;  %v12792_v6 = vpop.f32.mrb[12].mxu1 }
 0x265   : > { %16253 = vst [vmem:[#allocation23_spill] sm:$0xff] %v12792_v6  ;;  %v12794_v7 = vpop.f32.mrb[13].mxu1 }
 0x266   : > { %16254 = vst [vmem:[#allocation24_spill] sm:$0xff] %v12794_v7  ;;  %v12798_v8 = vpack.i.bf16 %v12792_v6, %v12794_v7 }
 0x268   : > { %16255 = vst [vmem:[#allocation25_spill] sm:$0xff] %v12798_v8  ;;  %11270 = vrot.lane.b32.xlu0 %v12798_v8, %s12460_s9  ;;  %v12802_v9 = vpop.f32.mrb[14].mxu1 }
 0x269   : > { %16256 = vst [vmem:[#allocation26_spill] sm:$0xff] %v12802_v9  ;;  %v12804_v10 = vpop.f32.mrb[15].mxu1 }
 0x26a   : > { %16257 = vst [vmem:[#allocation27_spill] sm:$0xff] %v12804_v10  ;;  %v12808_v11 = vpack.i.bf16 %v12802_v9, %v12804_v10 }
 0x26c   : > { %16258 = vst [vmem:[#allocation28_spill] sm:$0xff] %v12808_v11  ;;  %11285 = vrot.lane.b32.xlu0 %v12748_v57, %s12462_s13  ;;  %11275 = vrot.lane.b32.xlu1 %v12808_v11, %s12460_s9  ;;  %s12472_s9 = smov 80  }
 0x270   : > { %11295 = vrot.lane.b32.xlu0 %v12768_v63, %s12462_s13  ;;  %11280 = vrot.lane.b32.xlu1 %v12738_v54, %s12462_s13 }
 0x274   : > { %11305 = vrot.lane.b32.xlu0 %v12788_v5, %s12462_s13  ;;  %11290 = vrot.lane.b32.xlu1 %v12758_v60, %s12462_s13 }
 0x278   : > { %11300 = vrot.lane.b32.xlu1 %v12778_v2, %s12462_s13 }
 0x27c   : > { %11310 = vrot.lane.b32.xlu1 %v12798_v8, %s12462_s13 }
 0x280   : > { %11315 = vrot.lane.b32.xlu1 %v12808_v11, %s12462_s13  ;;  %s12475_s13 = smov 76  }
 0x2c2   : > { %v11241_v12 = vpop.permute.xlu0 %11240 }
 0x2c3   : > { %v11243_v13 = vunpack.i.h.bf16 %v11241_v12  ;;  %v11242_v14 = vunpack.i.l.bf16 %v11241_v12 }
 0x2c5   : > { %v10410_v16 = vpack.c.bf16 %v11243_v13, %v11242_v14 }
 0x2c6   : > { %v11246_v17 = vpop.permute.xlu1 %11245 }
 0x2c7   : > { %v11248_v18 = vunpack.i.h.bf16 %v11246_v17  ;;  %v11247_v19 = vunpack.i.l.bf16 %v11246_v17  ;;  %10412 = vmatprep.subr.msk.bf16.mxu1 %vm12822_vm2, %v10410_v16 }
 0x2c8   : > { %10415 = vmatpush3.bf16.xpose.msk.msra.mxu1 %vm12822_vm2, %v10410_v16 }
 0x2c9   : > { %v10416_v20 = vpack.c.bf16 %v11248_v18, %v11247_v19 }
 0x2ca   : > { %v11251_v21 = vpop.permute.xlu0 %11250 }
 0x2cb   : > { %v11253_v22 = vunpack.i.h.bf16 %v11251_v21  ;;  %v11252_v23 = vunpack.i.l.bf16 %v11251_v21  ;;  %10418 = vmatprep.subr.msk.bf16.mxu1 %vm12822_vm2, %v10416_v20 }
 0x2cd   : > { %v10422_v24 = vpack.c.bf16 %v11253_v22, %v11252_v23 }
 0x2ce   : > { %v11256_v25 = vpop.permute.xlu1 %11255 }
 0x2cf   : > { %v11258_v26 = vunpack.i.h.bf16 %v11256_v25  ;;  %v11257_v27 = vunpack.i.l.bf16 %v11256_v25 }
 0x2d0   : > { %10421 = vmatpush3.bf16.xpose.msk.msra.mxu1 %vm12822_vm2, %v10416_v20 }
 0x2d1   : > { %10424 = vmatprep.subr.msk.bf16.mxu1 %vm12822_vm2, %v10422_v24  ;;  %v10428_v29 = vpack.c.bf16 %v11258_v26, %v11257_v27 }
 0x2d2   : > { %v11261_v28 = vpop.permute.xlu0 %11260 }
 0x2d3   : > { %v11263_v32 = vunpack.i.h.bf16 %v11261_v28  ;;  %v11262_v33 = vunpack.i.l.bf16 %v11261_v28 }
 0x2d5   : > { %v10434_v35 = vpack.c.bf16 %v11263_v32, %v11262_v33 }
 0x2d6   : > { %v11266_v30 = vpop.permute.xlu1 %11265 }
 0x2d7   : > { %v11268_v37 = vunpack.i.h.bf16 %v11266_v30  ;;  %v11267_v38 = vunpack.i.l.bf16 %v11266_v30 }
 0x2d8   : > { %10427 = vmatpush3.bf16.xpose.msk.msra.mxu1 %vm12822_vm2, %v10422_v24 }
 0x2d9   : > { %10430 = vmatprep.subr.msk.bf16.mxu1 %vm12822_vm2, %v10428_v29  ;;  %v10440_v48 = vpack.c.bf16 %v11268_v37, %v11267_v38 }
 0x2da   : > { %v11271_v31 = vpop.permute.xlu0 %11270 }
 0x2db   : > { %v11273_v13 = vunpack.i.h.bf16 %v11271_v31  ;;  %v11272_v14 = vunpack.i.l.bf16 %v11271_v31 }
 0x2dd   : > { %v10446_v20 = vpack.c.bf16 %v11273_v13, %v11272_v14  ;;  %v16268_v14 = vmov 0 }
 0x2de   : > { %v11276_v34 = vpop.permute.xlu1 %11275  ;;  %v11286_v36 = vpop.permute.xlu0 %11285 }
 0x2df   : > { %v11288_v40 = vunpack.i.h.bf16 %v11286_v36  ;;  %v11287_v41 = vunpack.i.l.bf16 %v11286_v36  ;;  %v11278_v25 = vunpack.i.h.bf16 %v11276_v34  ;;  %v11277_v27 = vunpack.i.l.bf16 %v11276_v34 }
 0x2e0   : > { %10433 = vmatpush3.bf16.xpose.msk.msra.mxu1 %vm12822_vm2, %v10428_v29 }
 0x2e1   : > { %10436 = vmatprep.subr.msk.bf16.mxu1 %vm12822_vm2, %v10434_v35  ;;  %v10462_v51 = vpack.c.bf16 %v11288_v40, %v11287_v41  ;;  %v10452_v31 = vpack.c.bf16 %v11278_v25, %v11277_v27  ;;  %v12889_v40 = vshrl.u32 %v215_v44, 7  ;;  %v16262_v44 = vmov 0 }
 0x2e2   : > { %v11281_v39 = vpop.permute.xlu1 %11280  ;;  %v11296_v12 = vpop.permute.xlu0 %11295  ;;  %v16280_v27 = vmov 0 }
 0x2e3   : > { %v11283_v42 = vunpack.i.h.bf16 %v11281_v39  ;;  %v11282_v43 = vunpack.i.l.bf16 %v11281_v39  ;;  %v11298_v16 = vunpack.i.h.bf16 %v11296_v12  ;;  %v11297_v17 = vunpack.i.l.bf16 %v11296_v12 }
 0x2e4   : > { %v744_v41 = vadd.s32 56, %v12889_v40  ;;  %v748_v13 = vadd.s32 88, %v12889_v40 }
 0x2e5   : > { %v10458_v46 = vpack.c.bf16 %v11283_v42, %v11282_v43  ;;  %v10470_v23 = vpack.c.bf16 %v11298_v16, %v11297_v17  ;;  %v743_v42 = vadd.s32 48, %v12889_v40  ;;  %v12894_v43 = vshra.s32 %v12690_v45, 3 }
 0x2e6   : > { %v11291_v47 = vpop.permute.xlu1 %11290  ;;  %v11306_v24 = vpop.permute.xlu0 %11305  ;;  %vm793_vm4 = vcmp.le.s32.totalorder %v12690_v45, %v744_v41  ;;  %v747_v16 = vadd.s32 80, %v12889_v40  ;;  %v16271_v17 = vmov 0 }
 0x2e7   : > { %v11293_v49 = vunpack.i.h.bf16 %v11291_v47  ;;  %v11292_v50 = vunpack.i.l.bf16 %v11291_v47  ;;  %10459 = vmatprep.subr.bf16.mxu0 %v10458_v46  ;;  %v11308_v28 = vunpack.i.h.bf16 %v11306_v24  ;;  %v11307_v29 = vunpack.i.l.bf16 %v11306_v24 }
 0x2e8   : > { %10439 = vmatpush3.bf16.xpose.msk.msra.mxu1 %vm12822_vm2, %v10434_v35  ;;  %10461 = vmatpush3.bf16.msra.mxu0 %v10458_v46  ;;  %v760_v46 = vshra.s32 %v744_v41, 3  ;;  %v759_v47 = vshra.s32 %v743_v42, 3  ;;  %vm792_vm6 = vcmp.le.s32.totalorder %v12690_v45, %v743_v42  ;;  %v16295_v42 = vmov 0 }
 0x2e9   : > { %10442 = vmatprep.subr.msk.bf16.mxu1 %vm12822_vm2, %v10440_v48  ;;  %10463 = vmatprep.subr.bf16.mxu0 %v10462_v51  ;;  %v10466_v18 = vpack.c.bf16 %v11293_v49, %v11292_v50  ;;  %v10478_v35 = vpack.c.bf16 %v11308_v28, %v11307_v29  ;;  %v745_v49 = vadd.s32 64, %v12889_v40  ;;  %v16265_v50 = vmov 0 }
 0x2ea   : > { %v11301_v19 = vpop.permute.xlu1 %11300  ;;  %vm777_vm3 = vcmp.eq.s32.totalorder %v760_v46, %v12894_v43  ;;  %vm776_vm5 = vcmp.eq.s32.totalorder %v759_v47, %v12894_v43  ;;  %v751_v28 = vadd.s32 112, %v12889_v40  ;;  %v16283_v29 = vmov 0 }
 0x2eb   : > { %v11303_v21 = vunpack.i.h.bf16 %v11301_v19  ;;  %v11302_v22 = vunpack.i.l.bf16 %v11301_v19  ;;  %vm12901_vm7 = vmand %vm777_vm3, %vm793_vm4  ;;  %v761_v12 = vshra.s32 %v745_v49, 3  ;;  %vm794_vm12 = vcmp.le.s32.totalorder %v12690_v45, %v745_v49 }
 0x2ec   : > { %10465 = vmatpush3.bf16.msra.mxu0 %v10462_v51  ;;  %v16263_v44 = vsel %vm12901_vm7, 4294967295, %v16262_v44  ;;  %vm12906_vm8 = vmand %vm776_vm5, %vm792_vm6  ;;  %v763_v19 = vshra.s32 %v747_v16, 3  ;;  %vm797_vm3 = vcmp.le.s32.totalorder %v12690_v45, %v748_v13  ;;  %vm796_vm5 = vcmp.le.s32.totalorder %v12690_v45, %v747_v16 }
 0x2ed   : > { %10467 = vmatprep.subr.bf16.mxu0 %v10466_v18  ;;  %v10474_v30 = vpack.c.bf16 %v11303_v21, %v11302_v22  ;;  %16264 = vst [vmem:[#allocation30_spill] sm:$0xff] %v16263_v44  ;;  %v16266_v50 = vsel %vm12906_vm8, 4294967295, %v16265_v50  ;;  %vm778_vm11 = vcmp.eq.s32.totalorder %v761_v12, %v12894_v43  ;;  %v16274_v21 = vmov 0 }
 0x2ee   : > { %v11311_v26 = vpop.permute.xlu1 %11310  ;;  %16267 = vst [vmem:[#allocation31_spill] sm:$0xff] %v16266_v50  ;;  %vm12920_vm14 = vmand %vm778_vm11, %vm794_vm12  ;;  %vm780_vm4 = vcmp.eq.s32.totalorder %v763_v19, %v12894_v43  ;;  %v749_v22 = vadd.s32 96, %v12889_v40 }
 0x2ef   : > { %v11313_v32 = vunpack.i.h.bf16 %v11311_v26  ;;  %v11312_v33 = vunpack.i.l.bf16 %v11311_v26  ;;  %v16272_v17 = vsel %vm12920_vm14, 4294967295, %v16271_v17  ;;  %v752_v26 = vadd.s32 120, %v12889_v40 }
 0x2f0   : > { %10445 = vmatpush3.bf16.xpose.msk.msra.mxu1 %vm12822_vm2, %v10440_v48  ;;  %10469 = vmatpush3.bf16.msra.mxu0 %v10466_v18  ;;  %v746_v48 = vadd.s32 72, %v12889_v40  ;;  %16273 = vst [vmem:[#allocation33_spill] sm:$0xff] %v16272_v17  ;;  %v764_v18 = vshra.s32 %v748_v13, 3  ;;  %v765_v25 = vshra.s32 %v749_v22, 3 }
 0x2f1   : > { %10448 = vmatprep.subr.msk.bf16.mxu1 %vm12822_vm2, %v10446_v20  ;;  %10471 = vmatprep.subr.bf16.mxu0 %v10470_v23  ;;  %v10482_v38 = vpack.c.bf16 %v11313_v32, %v11312_v33  ;;  %vm801_vm0 = vcmp.le.s32.totalorder %v12690_v45, %v752_v26  ;;  %v16286_v32 = vmov 0  ;;  %v16289_v33 = vmov 0 }
 0x2f2   : > { %v11316_v36 = vpop.permute.xlu1 %11315  ;;  %v762_v51 = vshra.s32 %v746_v48, 3  ;;  %vm795_vm10 = vcmp.le.s32.totalorder %v12690_v45, %v746_v48  ;;  %vm781_vm15 = vcmp.eq.s32.totalorder %v764_v18, %v12894_v43  ;;  %vm782_vm12 = vcmp.eq.s32.totalorder %v765_v25, %v12894_v43 }
 0x2f3   : > { %v11318_v37 = vunpack.i.h.bf16 %v11316_v36  ;;  %v11317_v34 = vunpack.i.l.bf16 %v11316_v36  ;;  %vm12929_vm6 = vmand %vm781_vm15, %vm797_vm3  ;;  %vm798_vm15 = vcmp.le.s32.totalorder %v12690_v45, %v749_v22 }
 0x2f4   : > { %10473 = vmatpush3.bf16.msra.mxu0 %v10470_v23  ;;  %vm779_vm9 = vcmp.eq.s32.totalorder %v762_v51, %v12894_v43  ;;  %v16275_v21 = vsel %vm12929_vm6, 4294967295, %v16274_v21  ;;  %v16277_v23 = vmov 0 }
 0x2f5   : > { %10475 = vmatprep.subr.bf16.mxu0 %v10474_v30  ;;  %v10486_v39 = vpack.c.bf16 %v11318_v37, %v11317_v34  ;;  %vm12915_vm13 = vmand %vm779_vm9, %vm795_vm10  ;;  %16276 = vst [vmem:[#allocation34_spill] sm:$0xff] %v16275_v21  ;;  %v753_v37 = vshra.s32 %v12889_v40, 3 }
 0x2f6   : > { %v16269_v14 = vsel %vm12915_vm13, 4294967295, %v16268_v14  ;;  %vm12934_vm9 = vmand %vm780_vm4, %vm796_vm5 }
 0x2f7   : > { %16270 = vst [vmem:[#allocation32_spill] sm:$0xff] %v16269_v14  ;;  %v16278_v23 = vsel %vm12934_vm9, 4294967295, %v16277_v23  ;;  %vm12948_vm4 = vmand %vm782_vm12, %vm798_vm15 }
 0x2f8   : > { %10451 = vmatpush3.bf16.xpose.msk.msra.mxu1 %vm12822_vm2, %v10446_v20  ;;  %10477 = vmatpush3.bf16.msra.mxu0 %v10474_v30  ;;  %v750_v20 = vadd.s32 104, %v12889_v40  ;;  %16279 = vst [vmem:[#allocation35_spill] sm:$0xff] %v16278_v23  ;;  %v16284_v29 = vsel %vm12948_vm4, 4294967295, %v16283_v29  ;;  %v768_v30 = vshra.s32 %v752_v26, 3 }
 0x2f9   : > { %10454 = vmatprep.subr.msk.bf16.mxu1 %vm12822_vm2, %v10452_v31  ;;  %10479 = vmatprep.subr.bf16.mxu0 %v10478_v35  ;;  %16285 = vst [vmem:[#allocation37_spill] sm:$0xff] %v16284_v29 }
 0x2fa   : > { %v766_v24 = vshra.s32 %v750_v20, 3  ;;  %vm799_vm11 = vcmp.le.s32.totalorder %v12690_v45, %v750_v20  ;;  %vm785_vm5 = vcmp.eq.s32.totalorder %v768_v30, %v12894_v43 }
 0x2fc   : > { %10481 = vmatpush3.bf16.msra.mxu0 %v10478_v35  ;;  %vm783_vm10 = vcmp.eq.s32.totalorder %v766_v24, %v12894_v43  ;;  %v738_v35 = vadd.s32 8, %v12889_v40 }
 0x2fd   : > { %10483 = vmatprep.subr.bf16.mxu0 %v10482_v38  ;;  %vm12943_vm3 = vmand %vm783_vm10, %vm799_vm11 }
 0x2fe   : > { %v16281_v27 = vsel %vm12943_vm3, 4294967295, %v16280_v27  ;;  %vm12956_vm10 = vmand %vm785_vm5, %vm801_vm0  ;;  %v754_v36 = vshra.s32 %v738_v35, 3  ;;  %vm787_vm15 = vcmp.le.s32.totalorder %v12690_v45, %v738_v35  ;;  %vm770_vm3 = vcmp.eq.s32.totalorder %v753_v37, %v12894_v43 }
 0x2ff   : > { %16282 = vst [vmem:[#allocation36_spill] sm:$0xff] %v16281_v27  ;;  %v16287_v32 = vsel %vm12956_vm10, 4294967295, %v16286_v32  ;;  %vm786_vm0 = vcmp.le.s32.totalorder %v12690_v45, %v12889_v40  ;;  %v741_v37 = vadd.s32 32, %v12889_v40 }
 0x300   : > { %10457 = vmatpush3.bf16.xpose.msk.msra.mxu1 %vm12822_vm2, %v10452_v31  ;;  %10485 = vmatpush3.bf16.msra.mxu0 %v10482_v38  ;;  %v767_v31 = vshra.s32 %v751_v28, 3  ;;  %vm800_vm2 = vcmp.le.s32.totalorder %v12690_v45, %v751_v28  ;;  %16288 = vst [vmem:[#allocation38_spill] sm:$0xff] %v16287_v32  ;;  %vm771_vm12 = vcmp.eq.s32.totalorder %v754_v36, %v12894_v43  ;;  %v16292_v38 = vmov 0 }
 0x301   : > { %10487 = vmatprep.subr.bf16.mxu0 %v10486_v39  ;;  %vm12971_vm5 = vmand %vm771_vm12, %vm787_vm15  ;;  %v739_v36 = vadd.s32 16, %v12889_v40 }
 0x302   : > { %v16293_v38 = vsel %vm12971_vm5, 4294967295, %v16292_v38 }
 0x303   : > { %16294 = vst [vmem:[#allocation40_spill] sm:$0xff] %v16293_v38 }
 0x304   : > { %10489 = vmatpush3.bf16.msra.mxu0 %v10486_v39 }
 0x307   : > { %9267 = vmatmul.mubr.msk.f32.vlgmr.msra.gmra.mrb[16].mxu1 %vm16041_vm1, %v12730_v52 }
 0x308   : > { %9269 = vmatprep.mubr.msk.f32.mxu1 %vm16041_vm1, %v12744_v56 }
 0x30b   : > { %9270 = vmatmul.mubr.msk.f32.gmra.mrb[18].mxu1 %vm16041_vm1, %v12742_v55 }
 0x30c   : > { %9272 = vmatprep.mubr.msk.f32.mxu1 %vm16041_vm1, %v12754_v59 }
 0x30f   : > { %9273 = vmatmul.mubr.msk.f32.gmra.mrb[20].mxu1 %vm16041_vm1, %v12752_v58 }
 0x310   : > { %9275 = vmatprep.mubr.msk.f32.mxu1 %vm16041_vm1, %v12764_v62 }
 0x313   : > { %9276 = vmatmul.mubr.msk.f32.gmra.mrb[22].mxu1 %vm16041_vm1, %v12762_v61 }
 0x314   : > { %9278 = vmatprep.mubr.msk.f32.mxu1 %vm16041_vm1, %v12774_v1 }
 0x317   : > { %9279 = vmatmul.mubr.msk.f32.gmra.mrb[24].mxu1 %vm16041_vm1, %v12772_v0 }
 0x318   : > { %9281 = vmatprep.mubr.msk.f32.mxu1 %vm16041_vm1, %v12784_v4 }
 0x31b   : > { %9282 = vmatmul.mubr.msk.f32.gmra.mrb[26].mxu1 %vm16041_vm1, %v12782_v3 }
 0x31c   : > { %9284 = vmatprep.mubr.msk.f32.mxu1 %vm16041_vm1, %v12794_v7 }
 0x31f   : > { %9285 = vmatmul.mubr.msk.f32.gmra.mrb[28].mxu1 %vm16041_vm1, %v12792_v6 }
 0x320   : > { %9287 = vmatprep.mubr.msk.f32.mxu1 %vm16041_vm1, %v12804_v10 }
 0x323   : > { %9288 = vmatmul.mubr.msk.f32.gmra.mrb[30].mxu1 %vm16041_vm1, %v12802_v9  ;;  %vm784_vm1 = vcmp.eq.s32.totalorder %v767_v31, %v12894_v43  ;;  %v740_v31 = vadd.s32 24, %v12889_v40 }
 0x324   : > { %vm12960_vm11 = vmand %vm784_vm1, %vm800_vm2 }
 0x325   : > { %v16290_v33 = vsel %vm12960_vm11, 4294967295, %v16289_v33  ;;  %vm12975_vm1 = vmand %vm770_vm3, %vm786_vm0  ;;  %v756_v35 = vshra.s32 %v740_v31, 3  ;;  %vm789_vm3 = vcmp.le.s32.totalorder %v12690_v45, %v740_v31  ;;  %vm788_vm0 = vcmp.le.s32.totalorder %v12690_v45, %v739_v36 }
 0x326   : > { %16291 = vst [vmem:[#allocation39_spill] sm:$0xff] %v16290_v33  ;;  %v16296_v42 = vsel %vm12975_vm1, 4294967295, %v16295_v42 }
 0x327   : > { %16297 = vst [vmem:[#allocation41_spill] sm:$0xff] %v16296_v42  ;;  %vm773_vm2 = vcmp.eq.s32.totalorder %v756_v35, %v12894_v43  ;;  %v757_v42 = vshra.s32 %v741_v37, 3 }
 0x328   : > { %vm13003_vm12 = vmand %vm773_vm2, %vm789_vm3  ;;  %vm790_vm3 = vcmp.le.s32.totalorder %v12690_v45, %v741_v37 }
 0x329   : > { %vm774_vm2 = vcmp.eq.s32.totalorder %v757_v42, %v12894_v43  ;;  %v16307_v42 = vmov 0 }
 0x3da   : > { %v9268_v34 = vpop.f32.mrb[16].mxu1 }
 0x3db   : > { %v1077_v39 = vmul.f32 0.17677669, %v9268_v34  ;;  %v997_v41 = vpop.f32.mrb[17].mxu1  ;;  %v755_v34 = vshra.s32 %v739_v36, 3  ;;  %v16304_v36 = vmov 0 }
 0x3dc   : > { %v1076_v46 = vmul.f32 0.17677669, %v997_v41 }
 0x3dd   : > { %v12981_v47 = vsel %vm12971_vm5, %v1077_v39, -1e+30  ;;  %v742_v39 = vadd.s32 40, %v12889_v40  ;;  %vm772_vm15 = vcmp.eq.s32.totalorder %v755_v34, %v12894_v43  ;;  %v16301_v40 = vmov 0 }
 0x3de   : > { %1110 = vmax.xlane.f32.xlu1 %v12981_v47  ;;  %v9271_v48 = vpop.f32.mrb[18].mxu1  ;;  %v12986_v49 = vsel %vm12975_vm1, %v1076_v46, -1e+30  ;;  %v16298_v46 = vmov 0  ;;  %vm13014_vm1 = vmand %vm772_vm15, %vm788_vm0  ;;  %vm16312_vm0 = vnez %v16260_v15 }
 0x3df   : > { %1108 = vmax.xlane.f32.xlu0 %v12986_v49  ;;  %v1007_v51 = vpop.f32.mrb[19].mxu1  ;;  %v1079_v41 = vmul.f32 0.17677669, %v9271_v48  ;;  %v16299_v46 = vsel %vm13003_vm12, 4294967295, %v16298_v46  ;;  %v758_v38 = vshra.s32 %v742_v39, 3  ;;  %v16302_v40 = vsel %vm13014_vm1, 4294967295, %v16301_v40 }
 0x3e0   : > { %16300 = vst [vmem:[#allocation42_spill] sm:$0xff] %v16299_v46  ;;  %16303 = vst [vmem:[#allocation43_spill] sm:$0xff] %v16302_v40  ;;  %vm791_vm10 = vcmp.le.s32.totalorder %v12690_v45, %v742_v39 }
 0x3e1   : > { %v13011_v35 = vsel %vm13003_vm12, %v1079_v41, -1e+30  ;;  %vm775_vm5 = vcmp.eq.s32.totalorder %v758_v38, %v12894_v43  ;;  %vm13026_vm12 = vmand %vm774_vm2, %vm790_vm3  ;;  %vm16314_vm2 = vcmask 31744  }
 0x3e2   : > { %v9274_v12 = vpop.f32.mrb[20].mxu1  ;;  %v16305_v36 = vsel %vm13026_vm12, 4294967295, %v16304_v36  ;;  %vm13031_vm15 = vmand %vm775_vm5, %vm791_vm10  ;;  %vm16310_vm10 = vnez %v16281_v27  ;;  %vm16311_vm5 = vnez %v16287_v32 }
 0x3e3   : > { %v1017_v13 = vpop.f32.mrb[21].mxu1  ;;  %16306 = vst [vmem:[#allocation44_spill] sm:$0xff] %v16305_v36  ;;  %v16308_v42 = vsel %vm13031_vm15, 4294967295, %v16307_v42  ;;  %vm16315_vm3 = vmmov %vm16314_vm2 }
 0x3e4   : > { %v1080_v48 = vmul.f32 0.17677669, %v1017_v13  ;;  %16309 = vst [vmem:[#allocation45_spill] sm:$0xff] %v16308_v42 }
 0x3e6   : > { %v9277_v16 = vpop.f32.mrb[22].mxu1  ;;  %v13037_v45 = vsel %vm13026_vm12, %v1080_v48, -1e+30 }
 0x3e7   : > { %v1027_v18 = vpop.f32.mrb[23].mxu1  ;;  %v1083_v43 = vmul.f32 0.17677669, %v9277_v16 }
 0x3e8   : > { %v1082_v37 = vmul.f32 0.17677669, %v1027_v18 }
 0x3e9   : > { %v13052_v18 = vsel %vm12901_vm7, %v1083_v43, -1e+30 }
 0x3ea   : > { %v9280_v19 = vpop.f32.mrb[24].mxu1 }
 0x3eb   : > { %v1037_v20 = vpop.f32.mrb[25].mxu1  ;;  %v1085_v13 = vmul.f32 0.17677669, %v9280_v19 }
 0x3ec   : > { %v1084_v38 = vmul.f32 0.17677669, %v1037_v20 }
 0x3ed   : > { %v13062_v20 = vsel %vm12915_vm13, %v1085_v13, -1e+30 }
 0x3ee   : > { %v9283_v22 = vpop.f32.mrb[26].mxu1  ;;  %v13057_v34 = vsel %vm12920_vm14, %v1084_v38, -1e+30 }
 0x3ef   : > { %11325 = vrot.lane.b32.xlu1 %v12748_v57, %s12463_s14  ;;  %v1047_v24 = vpop.f32.mrb[27].mxu1  ;;  %v1087_v39 = vmul.f32 0.17677669, %v9283_v22 }
 0x3f0   : > { %v1086_v16 = vmul.f32 0.17677669, %v1047_v24 }
 0x3f1   : > { %v13072_v24 = vsel %vm12929_vm6, %v1087_v39, -1e+30 }
 0x3f2   : > { %v9286_v25 = vpop.f32.mrb[28].mxu1  ;;  %v13067_v41 = vsel %vm12934_vm9, %v1086_v16, -1e+30  ;;  %vm16321_vm9 = vmmov %vm16314_vm2 }
 0x3f3   : > { %11330 = vrot.lane.b32.xlu1 %v12758_v60, %s12463_s14  ;;  %v1057_v26 = vpop.f32.mrb[29].mxu1  ;;  %v1089_v48 = vmul.f32 0.17677669, %v9286_v25 }
 0x3f4   : > { %v1088_v19 = vmul.f32 0.17677669, %v1057_v26 }
 0x3f5   : > { %11320 = vrot.lane.b32.xlu0 %v12738_v54, %s12463_s14  ;;  %v13082_v26 = vsel %vm16310_vm10, %v1089_v48, -1e+30  ;;  %vm16319_vm10 = vmmov %vm16314_vm2 }
 0x3f6   : > { %v9289_v28 = vpop.f32.mrb[30].mxu1 }
 0x3f7   : > { %11335 = vrot.lane.b32.xlu1 %v12768_v63, %s12463_s14  ;;  %v1067_v30 = vpop.f32.mrb[31].mxu1  ;;  %v1078_v63 = vmul.f32 0.17677669, %v1007_v51  ;;  %v1081_v51 = vmul.f32 0.17677669, %v9274_v12 }
 0x3f8   : > { %v13047_v12 = vsel %vm12906_vm8, %v1082_v37, -1e+30  ;;  %v1090_v22 = vmul.f32 0.17677669, %v1067_v30  ;;  %v1091_v37 = vmul.f32 0.17677669, %v9289_v28 }
 0x3f9   : > { %v13024_v31 = vsel %vm13014_vm1, %v1078_v63, -1e+30  ;;  %v13042_v63 = vsel %vm13031_vm15, %v1081_v51, -1e+30  ;;  %v13077_v51 = vsel %vm12948_vm4, %v1088_v19, -1e+30  ;;  %vm16318_vm4 = vmmov %vm16314_vm2 }
 0x3fa   : > { %v13087_v25 = vsel %vm12960_vm11, %v1090_v22, -1e+30  ;;  %v13092_v30 = vsel %vm16311_vm5, %v1091_v37, -1e+30  ;;  %vm16316_vm11 = vmmov %vm16314_vm2 }
 0x3fb   : > { %vm16317_vm5 = vmmov %vm16314_vm2 }
 0x414   : > { %1114 = vmax.xlane.f32.xlu0 %v13011_v35 }
 0x418   : > { %1112 = vmax.xlane.f32.xlu0 %v13024_v31 }
 0x41b   : > { %1116 = vmax.xlane.f32.xlu1 %v13037_v45 }
 0x41c   : > { %1118 = vmax.xlane.f32.xlu0 %v13042_v63 }
 0x41f   : > { %1120 = vmax.xlane.f32.xlu1 %v13047_v12 }
 0x420   : > { %1122 = vmax.xlane.f32.xlu0 %v13052_v18 }
 0x423   : > { %1124 = vmax.xlane.f32.xlu1 %v13057_v34 }
 0x424   : > { %1126 = vmax.xlane.f32.xlu0 %v13062_v20 }
 0x427   : > { %1128 = vmax.xlane.f32.xlu1 %v13067_v41 }
 0x428   : > { %1130 = vmax.xlane.f32.xlu0 %v13072_v24 }
 0x42b   : > { %1132 = vmax.xlane.f32.xlu1 %v13077_v51 }
 0x42c   : > { %1134 = vmax.xlane.f32.xlu0 %v13082_v26 }
 0x42f   : > { %1136 = vmax.xlane.f32.xlu1 %v13087_v25 }
 0x430   : > { %1138 = vmax.xlane.f32.xlu0 %v13092_v30 }
 0x440   : > { %11345 = vrot.lane.b32.xlu1 %v12788_v5, %s12463_s14 }
 0x444   : > { %11350 = vrot.lane.b32.xlu1 %v12798_v8, %s12463_s14 }
 0x46b   : > { %v1111_v28 = vpop.xlane.xlu1 %1110 }
 0x46c   : > { %v1141_v43 = vsub.f32 %v12981_v47, %v1111_v28  ;;  %v1109_v38 = vpop.xlane.xlu0 %1108 }
 0x46d   : > { %v1140_v13 = vsub.f32 %v12986_v49, %v1109_v38 }
 0x46e   : > { %v1158_v16 = vmul.f32 1.442695, %v1141_v43 }
 0x46f   : > { %v1156_v39 = vmul.f32 1.442695, %v1140_v13  ;;  %v13114_v47 = vpop.permute.xlu1 %11325 }
 0x470   : > { %11879 = vpow2.f32 %v1158_v16  ;;  %v11321_v19 = vpop.permute.xlu0 %11320 }
 0x471   : > { %11881 = vpow2.f32 %v1156_v39  ;;  %v11323_v48 = vunpack.i.h.bf16 %v11321_v19  ;;  %v11322_v22 = vunpack.i.l.bf16 %v11321_v19 }
 0x473   : > { %v13101_v37 = vpack.c.bf16 %v11323_v48, %v11322_v22  ;;  %v13116_v49 = vpop.permute.xlu1 %11330 }
 0x475   : > { %10492 = vmatprep.subr.msk.bf16.mxu0 %vm16312_vm0, %v13101_v37 }
 0x477   : > { %v13119_v38 = vpop.permute.xlu1 %11335 }
 0x47a   : > { %v13106_v33 = vpop.eup %11879 }
 0x47b   : > { %v13108_v32 = vpop.eup %11881  ;;  %1190 = vadd.xlane.f32.xlu0 %v13106_v33 }
 0x47c   : > { %1188 = vadd.xlane.f32.xlu1 %v13108_v32 }
 0x491   : > { %11340 = vrot.lane.b32.xlu0 %v12778_v2, %s12463_s14 }
 0x4a1   : > { %v1115_v28 = vpop.xlane.xlu0 %1114 }
 0x4a2   : > { %v1143_v43 = vsub.f32 %v13011_v35, %v1115_v28 }
 0x4a4   : > { %v1162_v13 = vmul.f32 1.442695, %v1143_v43 }
 0x4a5   : > { %v1113_v16 = vpop.xlane.xlu0 %1112 }
 0x4a6   : > { %11883 = vpow2.f32 %v1162_v13  ;;  %v1142_v39 = vsub.f32 %v13024_v31, %v1113_v16 }
 0x4a8   : > { %v1160_v19 = vmul.f32 1.442695, %v1142_v39  ;;  %v1117_v48 = vpop.xlane.xlu1 %1116 }
 0x4a9   : > { %v1119_v22 = vpop.xlane.xlu0 %1118  ;;  %v1144_v29 = vsub.f32 %v13037_v45, %v1117_v48 }
 0x4aa   : > { %11885 = vpow2.f32 %v1160_v19  ;;  %v1145_v27 = vsub.f32 %v13042_v63, %v1119_v22 }
 0x4ab   : > { %v1164_v17 = vmul.f32 1.442695, %v1144_v29 }
 0x4ac   : > { %v1166_v23 = vmul.f32 1.442695, %v1145_v27  ;;  %v1121_v28 = vpop.xlane.xlu1 %1120 }
 0x4ad   : > { %v1123_v21 = vpop.xlane.xlu0 %1122  ;;  %v1146_v31 = vsub.f32 %v13047_v12, %v1121_v28 }
 0x4ae   : > { %11887 = vpow2.f32 %v1166_v23  ;;  %v1147_v35 = vsub.f32 %v13052_v18, %v1123_v21 }
 0x4af   : > { %11889 = vpow2.f32 %v1164_v17  ;;  %v1168_v27 = vmul.f32 1.442695, %v1146_v31 }
 0x4b0   : > { %v13125_v43 = vpop.eup %11883  ;;  %v1170_v13 = vmul.f32 1.442695, %v1147_v35  ;;  %v1125_v45 = vpop.xlane.xlu1 %1124 }
 0x4b1   : > { %1194 = vadd.xlane.f32.xlu1 %v13125_v43  ;;  %v1127_v16 = vpop.xlane.xlu0 %1126  ;;  %v1148_v17 = vsub.f32 %v13057_v34, %v1125_v45 }
 0x4b2   : > { %11891 = vpow2.f32 %v1170_v13  ;;  %v1149_v23 = vsub.f32 %v13062_v20, %v1127_v16 }
 0x4b3   : > { %11893 = vpow2.f32 %v1168_v27  ;;  %v1172_v19 = vmul.f32 1.442695, %v1148_v17 }
 0x4b4   : > { %v13129_v39 = vpop.eup %11885  ;;  %v1174_v63 = vmul.f32 1.442695, %v1149_v23  ;;  %v1129_v12 = vpop.xlane.xlu1 %1128 }
 0x4b5   : > { %1192 = vadd.xlane.f32.xlu0 %v13129_v39  ;;  %v1131_v29 = vpop.xlane.xlu0 %1130  ;;  %v1150_v48 = vsub.f32 %v13067_v41, %v1129_v12 }
 0x4b6   : > { %11895 = vpow2.f32 %v1174_v63 }
 0x4b7   : > { %11897 = vpow2.f32 %v1172_v19  ;;  %v1176_v28 = vmul.f32 1.442695, %v1150_v48 }
 0x4b8   : > { %v13133_v21 = vpop.eup %11887  ;;  %v1133_v35 = vpop.xlane.xlu1 %1132 }
 0x4b9   : > { %1198 = vadd.xlane.f32.xlu0 %v13133_v21  ;;  %v13137_v18 = vpop.eup %11889  ;;  %v1135_v22 = vpop.xlane.xlu0 %1134  ;;  %11899 = vpow2.f32 %v1176_v28  ;;  %v1152_v41 = vsub.f32 %v13077_v51, %v1133_v35  ;;  %v1151_v51 = vsub.f32 %v13072_v24, %v1131_v29 }
 0x4ba   : > { %v1153_v34 = vsub.f32 %v13082_v26, %v1135_v22 }
 0x4bb   : > { %v1180_v27 = vmul.f32 1.442695, %v1152_v41  ;;  %v1178_v48 = vmul.f32 1.442695, %v1151_v51 }
 0x4bc   : > { %v13141_v20 = vpop.eup %11891  ;;  %v1182_v13 = vmul.f32 1.442695, %v1153_v34  ;;  %v1137_v16 = vpop.xlane.xlu1 %1136 }
 0x4bd   : > { %1196 = vadd.xlane.f32.xlu0 %v13137_v18  ;;  %v13147_v31 = vpop.eup %11893  ;;  %v1154_v26 = vsub.f32 %v13087_v25, %v1137_v16  ;;  %v1139_v19 = vpop.xlane.xlu0 %1138 }
 0x4be   : > { %11901 = vpow2.f32 %v1182_v13  ;;  %v1155_v25 = vsub.f32 %v13092_v30, %v1139_v19 }
 0x4bf   : > { %11903 = vpow2.f32 %v1180_v27  ;;  %v1184_v17 = vmul.f32 1.442695, %v1154_v26  ;;  %v11328_v26 = vunpack.i.h.bf16 %v13114_v47 }
 0x4c0   : > { %v13151_v45 = vpop.eup %11895  ;;  %v1186_v35 = vmul.f32 1.442695, %v1155_v25  ;;  %v13186_v30 = vpop.permute.xlu1 %11345  ;;  %v16313_v25 = vld [vmem:[#allocation16_spill] sm:$0xff] }
 0x4c1   : > { %1202 = vadd.xlane.f32.xlu0 %v13141_v20  ;;  %v13155_v23 = vpop.eup %11897  ;;  %11905 = vpow2.f32 %v1184_v17  ;;  %v11327_v17 = vunpack.i.l.bf16 %v13114_v47  ;;  %v11338_v47 = vunpack.i.h.bf16 %v13119_v38 }
 0x4c2   : > { %11355 = vrot.lane.b32.xlu1 %v12808_v11, %s12463_s14  ;;  %11907 = vpow2.f32 %v1178_v48  ;;  %s12476_s14 = smov 108  }
 0x4c3   : > { %v13158_v63 = vpop.eup %11899  ;;  %11909 = vpow2.f32 %v1186_v35  ;;  %v10496_v48 = vpack.c.bf16 %v11328_v26, %v11327_v17  ;;  %v11347_v26 = vunpack.i.l.bf16 %v13186_v30 }
 0x4c4   : > { %v13196_v34 = vpop.permute.xlu1 %11350 }
 0x4c5   : > { %1200 = vadd.xlane.f32.xlu0 %v13147_v31 }
 0x4c8   : > { %v13162_v12 = vpop.eup %11901 }
 0x4c9   : > { %1206 = vadd.xlane.f32.xlu0 %v13151_v45  ;;  %v13166_v22 = vpop.eup %11903 }
 0x4cb   : > { %v13169_v28 = vpop.eup %11905 }
 0x4cc   : > { %v13172_v24 = vpop.eup %11907 }
 0x4cd   : > { %1204 = vadd.xlane.f32.xlu0 %v13155_v23  ;;  %v13175_v29 = vpop.eup %11909 }
 0x4d1   : > { %1208 = vadd.xlane.f32.xlu0 %v13158_v63 }
 0x4d5   : > { %1214 = vadd.xlane.f32.xlu0 %v13162_v12 }
 0x4d9   : > { %1212 = vadd.xlane.f32.xlu0 %v13166_v22 }
 0x4dd   : > { %1216 = vadd.xlane.f32.xlu0 %v13169_v28 }
 0x4e6   : > { %1210 = vadd.xlane.f32.xlu1 %v13172_v24 }
 0x4ea   : > { %1218 = vadd.xlane.f32.xlu1 %v13175_v29 }
 0x4f3   : > { %1445 = vrot.lane.b32.xlu0 %v12732_v53, %s12464_s20 }
 0x4f7   : > { %1457 = vrot.lane.b32.xlu0 %v12764_v62, %s12464_s20 }
 0x4fb   : > { %1447 = vrot.lane.b32.xlu1 %v12730_v52, %s12464_s20  ;;  %1461 = vrot.lane.b32.xlu0 %v12774_v1, %s12464_s20 }
 0x4ff   : > { %1449 = vrot.lane.b32.xlu1 %v12744_v56, %s12464_s20  ;;  %1465 = vrot.lane.b32.xlu0 %v12784_v4, %s12464_s20 }
 0x503   : > { %1451 = vrot.lane.b32.xlu1 %v12742_v55, %s12464_s20  ;;  %1469 = vrot.lane.b32.xlu0 %v12794_v7, %s12464_s20 }
 0x507   : > { %1453 = vrot.lane.b32.xlu1 %v12754_v59, %s12464_s20  ;;  %1473 = vrot.lane.b32.xlu0 %v12804_v10, %s12464_s20 }
 0x508   : > { %v1191_v41 = vpop.xlane.xlu0 %1190 }
 0x509   : > { %11911 = vrcp.f32 %v1191_v41  ;;  %v1189_v13 = vpop.xlane.xlu1 %1188 }
 0x50a   : > { %11913 = vrcp.f32 %v1189_v13 }
 0x50b   : > { %1455 = vrot.lane.b32.xlu1 %v12752_v58, %s12464_s20  ;;  %11360 = vrot.lane.b32.xlu0 %v12738_v54, %s12465_s22 }
 0x50c   : > { %v11341_v41 = vpop.permute.xlu0 %11340 }
 0x50d   : > { %v11342_v13 = vunpack.i.l.bf16 %v11341_v41 }
 0x50f   : > { %1459 = vrot.lane.b32.xlu1 %v12762_v61, %s12464_s20  ;;  %11370 = vrot.lane.b32.xlu0 %v12758_v60, %s12465_s22 }
 0x513   : > { %v11912_v16 = vpop.eup %11911  ;;  %1463 = vrot.lane.b32.xlu1 %v12772_v0, %s12464_s20  ;;  %11380 = vrot.lane.b32.xlu0 %v12778_v2, %s12465_s22 }
 0x514   : > { %v11914_v27 = vpop.eup %11913  ;;  %v1237_v19 = vmul.f32 %v11912_v16, %v13106_v33  ;;  %v11332_v33 = vunpack.i.l.bf16 %v13116_v49 }
 0x515   : > { %v1236_v51 = vmul.f32 %v11914_v27, %v13108_v32  ;;  %v11333_v32 = vunpack.i.h.bf16 %v13116_v49  ;;  %v11337_v49 = vunpack.i.l.bf16 %v13119_v38  ;;  %v11343_v38 = vunpack.i.h.bf16 %v11341_v41 }
 0x516   : > { %v11348_v27 = vunpack.i.h.bf16 %v13186_v30  ;;  %v11353_v30 = vunpack.i.h.bf16 %v13196_v34 }
 0x517   : > { %1467 = vrot.lane.b32.xlu1 %v12782_v3, %s12464_s20  ;;  %11390 = vrot.lane.b32.xlu0 %v12798_v8, %s12465_s22  ;;  %v10508_v35 = vpack.c.bf16 %v11338_v47, %v11337_v49  ;;  %v10514_v16 = vpack.c.bf16 %v11343_v38, %v11342_v13 }
 0x518   : > { %9322 = vmatprep.mubr.f32.mxu0 %v1236_v51  ;;  %v10520_v17 = vpack.c.bf16 %v11348_v27, %v11347_v26  ;;  %v11352_v51 = vunpack.i.l.bf16 %v13196_v34 }
 0x519   : > { %9323 = vmatmul.mubr.f32.vlgmr.msra.gmra.mrb[16].mxu0 %v1237_v19 }
 0x51a   : > { %10495 = vmatpush3.bf16.xpose.msk.msra.mxu0 %vm16312_vm0, %v13101_v37  ;;  %v10502_v37 = vpack.c.bf16 %v11333_v32, %v11332_v33 }
 0x51b   : > { %10498 = vmatprep.subr.msk.bf16.mxu0 %vm16312_vm0, %v10496_v48  ;;  %1471 = vrot.lane.b32.xlu1 %v12792_v6, %s12464_s20 }
 0x51c   : > { %2484 = vrot.lane.b32.xlu0 %v12732_v53, %s12466_s28 }
 0x51f   : > { %1475 = vrot.lane.b32.xlu1 %v12802_v9, %s12464_s20  ;;  %s12477_s20 = smov 48  }
 0x520   : > { %2490 = vrot.lane.b32.xlu0 %v12742_v55, %s12466_s28 }
 0x522   : > { %10501 = vmatpush3.bf16.xpose.msk.msra.mxu0 %vm16312_vm0, %v10496_v48  ;;  %v10526_v48 = vpack.c.bf16 %v11353_v30, %v11352_v51 }
 0x523   : > { %10504 = vmatprep.subr.msk.bf16.mxu0 %vm16312_vm0, %v10502_v37  ;;  %11365 = vrot.lane.b32.xlu1 %v12748_v57, %s12465_s22 }
 0x524   : > { %2496 = vrot.lane.b32.xlu0 %v12764_v62, %s12466_s28 }
 0x527   : > { %11375 = vrot.lane.b32.xlu1 %v16313_v25, %s12465_s22 }
 0x528   : > { %2498 = vrot.lane.b32.xlu0 %v12762_v61, %s12466_s28 }
 0x52a   : > { %10507 = vmatpush3.bf16.xpose.msk.msra.mxu0 %vm16312_vm0, %v10502_v37 }
 0x52b   : > { %10510 = vmatprep.subr.msk.bf16.mxu0 %vm16312_vm0, %v10508_v35  ;;  %11385 = vrot.lane.b32.xlu1 %v12788_v5, %s12465_s22 }
 0x52c   : > { %2500 = vrot.lane.b32.xlu0 %v12774_v1, %s12466_s28 }
 0x52f   : > { %11395 = vrot.lane.b32.xlu1 %v12808_v11, %s12465_s22  ;;  %s12478_s22 = smov 72  }
 0x530   : > { %2502 = vrot.lane.b32.xlu0 %v12772_v0, %s12466_s28 }
 0x532   : > { %10513 = vmatpush3.bf16.xpose.msk.msra.mxu0 %vm16312_vm0, %v10508_v35 }
 0x533   : > { %10516 = vmatprep.subr.msk.bf16.mxu0 %vm16312_vm0, %v10514_v16  ;;  %2486 = vrot.lane.b32.xlu1 %v12730_v52, %s12466_s28 }
 0x534   : > { %2504 = vrot.lane.b32.xlu0 %v12784_v4, %s12466_s28 }
 0x537   : > { %2488 = vrot.lane.b32.xlu1 %v12744_v56, %s12466_s28 }
 0x538   : > { %2506 = vrot.lane.b32.xlu0 %v12782_v3, %s12466_s28 }
 0x53a   : > { %10519 = vmatpush3.bf16.xpose.msk.msra.mxu0 %vm16312_vm0, %v10514_v16 }
 0x53b   : > { %10522 = vmatprep.subr.msk.bf16.mxu0 %vm16312_vm0, %v10520_v17  ;;  %2492 = vrot.lane.b32.xlu1 %v12754_v59, %s12466_s28 }
 0x53c   : > { %2508 = vrot.lane.b32.xlu0 %v12794_v7, %s12466_s28 }
 0x53e   : > { %v1195_v19 = vpop.xlane.xlu1 %1194 }
 0x53f   : > { %2494 = vrot.lane.b32.xlu1 %v12752_v58, %s12466_s28  ;;  %11915 = vrcp.f32 %v1195_v19 }
 0x540   : > { %2510 = vrot.lane.b32.xlu0 %v12792_v6, %s12466_s28 }
 0x542   : > { %10525 = vmatpush3.bf16.xpose.msk.msra.mxu0 %vm16312_vm0, %v10520_v17  ;;  %v1193_v32 = vpop.xlane.xlu0 %1192  ;;  %v11356_v33 = vpop.permute.xlu1 %11355 }
 0x543   : > { %10528 = vmatprep.subr.msk.bf16.mxu0 %vm16312_vm0, %v10526_v48  ;;  %11917 = vrcp.f32 %v1193_v32  ;;  %2514 = vrot.lane.b32.xlu1 %v12802_v9, %s12466_s28  ;;  %v11358_v34 = vunpack.i.h.bf16 %v11356_v33  ;;  %v11357_v37 = vunpack.i.l.bf16 %v11356_v33 }
 0x544   : > { %2512 = vrot.lane.b32.xlu0 %v12804_v10, %s12466_s28  ;;  %s12479_s28 = smov 104  }
 0x545   : > { %v10532_v49 = vpack.c.bf16 %v11358_v34, %v11357_v37 }
 0x546   : > { %v1199_v47 = vpop.xlane.xlu0 %1198 }
 0x547   : > { %11415 = vrot.lane.b32.xlu1 %v16313_v25, %s12467_s29  ;;  %11919 = vrcp.f32 %v1199_v47 }
 0x548   : > { %11400 = vrot.lane.b32.xlu0 %v12738_v54, %s12467_s29 }
 0x549   : > { %v11916_v41 = vpop.eup %11915 }
 0x54a   : > { %10531 = vmatpush3.bf16.xpose.msk.msra.mxu0 %vm16312_vm0, %v10526_v48  ;;  %v1197_v35 = vpop.xlane.xlu0 %1196  ;;  %v1239_v27 = vmul.f32 %v11916_v41, %v13125_v43 }
 0x54b   : > { %10534 = vmatprep.subr.msk.bf16.mxu0 %vm16312_vm0, %v10532_v49  ;;  %11921 = vrcp.f32 %v1197_v35  ;;  %11425 = vrot.lane.b32.xlu1 %v12788_v5, %s12467_s29 }
 0x54c   : > { %11405 = vrot.lane.b32.xlu0 %v12748_v57, %s12467_s29 }
 0x54d   : > { %v11918_v38 = vpop.eup %11917 }
 0x54e   : > { %v1203_v13 = vpop.xlane.xlu0 %1202  ;;  %v1238_v16 = vmul.f32 %v11918_v38, %v13129_v39 }
 0x54f   : > { %11435 = vrot.lane.b32.xlu1 %v12808_v11, %s12467_s29  ;;  %11923 = vrcp.f32 %v1203_v13 }
 0x550   : > { %11410 = vrot.lane.b32.xlu0 %v12758_v60, %s12467_s29  ;;  %9325 = vmatprep.mubr.f32.mxu0 %v1238_v16 }
 0x551   : > { %9326 = vmatmul.mubr.f32.gmra.mrb[18].mxu0 %v1239_v27  ;;  %v11920_v39 = vpop.eup %11919 }
 0x552   : > { %10537 = vmatpush3.bf16.xpose.msk.msra.mxu0 %vm16312_vm0, %v10532_v49  ;;  %v1201_v26 = vpop.xlane.xlu0 %1200  ;;  %v1241_v51 = vmul.f32 %v11920_v39, %v13133_v21 }
 0x553   : > { %11925 = vrcp.f32 %v1201_v26  ;;  %11445 = vrot.lane.b32.xlu1 %v12748_v57, %s12468_s27 }
 0x554   : > { %11420 = vrot.lane.b32.xlu0 %v12778_v2, %s12467_s29 }
 0x555   : > { %v11922_v43 = vpop.eup %11921 }
 0x556   : > { %v1207_v17 = vpop.xlane.xlu0 %1206  ;;  %v1240_v30 = vmul.f32 %v11922_v43, %v13137_v18 }
 0x557   : > { %11927 = vrcp.f32 %v1207_v17 }
 0x558   : > { %11430 = vrot.lane.b32.xlu0 %v12798_v8, %s12467_s29  ;;  %9328 = vmatprep.mubr.f32.mxu0 %v1240_v30 }
 0x559   : > { %9329 = vmatmul.mubr.f32.gmra.mrb[20].mxu0 %v1241_v51  ;;  %v11924_v48 = vpop.eup %11923 }
 0x55a   : > { %v1205_v19 = vpop.xlane.xlu0 %1204  ;;  %v1243_v18 = vmul.f32 %v11924_v48, %v13141_v20 }
 0x55b   : > { %11929 = vrcp.f32 %v1205_v19 }
 0x55c   : > { %11440 = vrot.lane.b32.xlu0 %v12738_v54, %s12468_s27 }
 0x55d   : > { %v11926_v32 = vpop.eup %11925 }
 0x55e   : > { %v1209_v33 = vpop.xlane.xlu0 %1208  ;;  %v1242_v34 = vmul.f32 %v11926_v32, %v13147_v31 }
 0x55f   : > { %11931 = vrcp.f32 %v1209_v33 }
 0x560   : > { %11450 = vrot.lane.b32.xlu0 %v12758_v60, %s12468_s27  ;;  %9331 = vmatprep.mubr.f32.mxu0 %v1242_v34 }
 0x561   : > { %9332 = vmatmul.mubr.f32.gmra.mrb[22].mxu0 %v1243_v18  ;;  %v11928_v37 = vpop.eup %11927 }
 0x562   : > { %v1215_v21 = vpop.xlane.xlu0 %1214  ;;  %v1245_v41 = vmul.f32 %v11928_v37, %v13151_v45 }
 0x565   : > { %v11930_v47 = vpop.eup %11929 }
 0x566   : > { %v1213_v49 = vpop.xlane.xlu0 %1212  ;;  %v1244_v35 = vmul.f32 %v11930_v47, %v13155_v23 }
 0x567   : > { %11933 = vrcp.f32 %v1213_v49 }
 0x568   : > { %9334 = vmatprep.mubr.f32.mxu0 %v1244_v35 }
 0x569   : > { %v11932_v38 = vpop.eup %11931  ;;  %9335 = vmatmul.mubr.f32.gmra.mrb[24].mxu0 %v1245_v41 }
 0x56a   : > { %v1217_v31 = vpop.xlane.xlu0 %1216  ;;  %v1246_v13 = vmul.f32 %v11932_v38, %v13158_v63 }
 0x56c   : > { %9337 = vmatprep.mubr.f32.mxu0 %v1246_v13 }
 0x56e   : > { %v1446_v20 = vpop.permute.xlu0 %1445 }
 0x571   : > { %v11934_v45 = vpop.eup %11933 }
 0x572   : > { %v1458_v16 = vpop.permute.xlu0 %1457  ;;  %v1248_v48 = vmul.f32 %v11934_v45, %v13166_v22 }
 0x573   : > { %v1211_v27 = vpop.xlane.xlu1 %1210 }
 0x574   : > { %11935 = vrcp.f32 %v1211_v27 }
 0x575   : > { %11937 = vrcp.f32 %v1215_v21 }
 0x576   : > { %v1462_v26 = vpop.permute.xlu0 %1461  ;;  %11939 = vrcp.f32 %v1217_v31 }
 0x577   : > { %v1219_v39 = vpop.xlane.xlu1 %1218 }
 0x578   : > { %11941 = vrcp.f32 %v1219_v39 }
 0x57a   : > { %v1466_v23 = vpop.permute.xlu0 %1465 }
 0x57b   : > { %v1448_v43 = vpop.permute.xlu1 %1447 }
 0x57e   : > { %v11936_v17 = vpop.eup %11935  ;;  %v1470_v30 = vpop.permute.xlu0 %1469 }
 0x57f   : > { %v1450_v51 = vpop.permute.xlu1 %1449  ;;  %v1247_v19 = vmul.f32 %v11936_v17, %v13172_v24  ;;  %v11938_v63 = vpop.eup %11937 }
 0x580   : > { %v11940_v32 = vpop.eup %11939  ;;  %v1249_v18 = vmul.f32 %v11938_v63, %v13162_v12 }
 0x581   : > { %9338 = vmatmul.mubr.f32.gmra.mrb[26].mxu0 %v1247_v19  ;;  %v1250_v37 = vmul.f32 %v11940_v32, %v13169_v28 }
 0x582   : > { %v1474_v33 = vpop.permute.xlu0 %1473  ;;  %9340 = vmatprep.mubr.f32.mxu0 %v1248_v48  ;;  %v11942_v21 = vpop.eup %11941 }
 0x583   : > { %v1452_v34 = vpop.permute.xlu1 %1451  ;;  %v1251_v24 = vmul.f32 %v11942_v21, %v13175_v29 }
 0x585   : > { %9341 = vmatmul.mubr.f32.gmra.mrb[28].mxu0 %v1249_v18 }
 0x586   : > { %v11361_v47 = vpop.permute.xlu0 %11360  ;;  %9343 = vmatprep.mubr.f32.mxu0 %v1250_v37 }
 0x587   : > { %v11363_v49 = vunpack.i.h.bf16 %v11361_v47  ;;  %v11362_v35 = vunpack.i.l.bf16 %v11361_v47  ;;  %v1454_v41 = vpop.permute.xlu1 %1453 }
 0x589   : > { %v10570_v38 = vpack.c.bf16 %v11363_v49, %v11362_v35  ;;  %9344 = vmatmul.mubr.f32.gmra.mrb[30].mxu0 %v1251_v24 }
 0x58a   : > { %v11371_v22 = vpop.permute.xlu0 %11370  ;;  %9378 = vmatprep.mubr.msk.f32.mxu0 %vm16314_vm2, %v1446_v20 }
 0x58b   : > { %v1456_v31 = vpop.permute.xlu1 %1455  ;;  %10572 = vmatprep.subr.msk.bf16.mxu0 %vm16312_vm0, %v10570_v38  ;;  %v11373_v48 = vunpack.i.h.bf16 %v11371_v22  ;;  %v11372_v32 = vunpack.i.l.bf16 %v11371_v22 }
 0x58d   : > { %9379 = vmatmul.mubr.msk.f32.vlgmr.msra.gmra.mrb[32].mxu0 %vm16315_vm3, %v1448_v43  ;;  %vm16320_vm3 = vmmov %vm16314_vm2  ;;  %v10582_v18 = vpack.c.bf16 %v11373_v48, %v11372_v32 }
 0x58e   : > { %10575 = vmatpush3.bf16.xpose.msk.msra.mxu0 %vm16312_vm0, %v10570_v38  ;;  %v11381_v12 = vpop.permute.xlu0 %11380  ;;  %9381 = vmatprep.mubr.msk.f32.mxu0 %vm16316_vm11, %v1450_v51  ;;  %vm16322_vm11 = vmmov %vm16314_vm2 }
 0x58f   : > { %v1460_v28 = vpop.permute.xlu1 %1459  ;;  %v11383_v38 = vunpack.i.h.bf16 %v11381_v12  ;;  %v11382_v22 = vunpack.i.l.bf16 %v11381_v12 }
 0x591   : > { %9382 = vmatmul.mubr.msk.f32.gmra.mrb[34].mxu0 %vm16317_vm5, %v1452_v34  ;;  %vm16323_vm5 = vmmov %vm16314_vm2 }
 0x592   : > { %v13349_v29 = vpop.permute.xlu0 %11390  ;;  %9384 = vmatprep.mubr.msk.f32.mxu0 %vm16318_vm4, %v1454_v41  ;;  %vm16324_vm4 = vmmov %vm16314_vm2 }
 0x593   : > { %v1464_v13 = vpop.permute.xlu1 %1463 }
 0x595   : > { %9385 = vmatmul.mubr.msk.f32.gmra.mrb[36].mxu0 %vm16314_vm2, %v1456_v31 }
 0x596   : > { %v2485_v20 = vpop.permute.xlu0 %2484  ;;  %9387 = vmatprep.mubr.msk.f32.mxu0 %vm16319_vm10, %v1458_v16  ;;  %vm16325_vm10 = vmmov %vm16314_vm2 }
 0x597   : > { %v1468_v27 = vpop.permute.xlu1 %1467 }
 0x599   : > { %9388 = vmatmul.mubr.msk.f32.gmra.mrb[38].mxu0 %vm16320_vm3, %v1460_v28  ;;  %vm16327_vm3 = vmmov %vm16314_vm2 }
 0x59a   : > { %v13355_v39 = vpop.permute.xlu0 %2490  ;;  %9390 = vmatprep.mubr.msk.f32.mxu0 %vm16321_vm9, %v1462_v26  ;;  %vm16326_vm9 = vmmov %vm16314_vm2 }
 0x59b   : > { %v1472_v43 = vpop.permute.xlu1 %1471 }
 0x59d   : > { %9391 = vmatmul.mubr.msk.f32.gmra.mrb[40].mxu0 %vm16322_vm11, %v1464_v13  ;;  %vm16328_vm11 = vmmov %vm16314_vm2  ;;  %v10594_v13 = vpack.c.bf16 %v11383_v38, %v11382_v22 }
 0x59e   : > { %v13359_v45 = vpop.permute.xlu0 %2496  ;;  %9393 = vmatprep.mubr.msk.f32.mxu0 %vm16323_vm5, %v1466_v23  ;;  %vm16329_vm5 = vmmov %vm16314_vm2 }
 0x59f   : > { %v1476_v17 = vpop.permute.xlu1 %1475 }
 0x5a1   : > { %9394 = vmatmul.mubr.msk.f32.gmra.mrb[42].mxu0 %vm16324_vm4, %v1468_v27  ;;  %vm16330_vm4 = vmmov %vm16314_vm2 }
 0x5a2   : > { %v13363_v51 = vpop.permute.xlu0 %2498  ;;  %9396 = vmatprep.mubr.msk.f32.mxu0 %vm16325_vm10, %v1470_v30  ;;  %vm16331_vm10 = vmmov %vm16314_vm2 }
 0x5a3   : > { %v11366_v16 = vpop.permute.xlu1 %11365 }
 0x5a4   : > { %v11368_v19 = vunpack.i.h.bf16 %v11366_v16  ;;  %v11367_v63 = vunpack.i.l.bf16 %v11366_v16 }
 0x5a5   : > { %9397 = vmatmul.mubr.msk.f32.gmra.mrb[44].mxu0 %vm16326_vm9, %v1472_v43  ;;  %vm16332_vm9 = vmmov %vm16314_vm2 }
 0x5a6   : > { %v10576_v26 = vpack.c.bf16 %v11368_v19, %v11367_v63  ;;  %v13367_v34 = vpop.permute.xlu0 %2500  ;;  %9399 = vmatprep.mubr.msk.f32.mxu0 %vm16314_vm2, %v1474_v33 }
 0x5a7   : > { %v11376_v23 = vpop.permute.xlu1 %11375 }
 0x5a8   : > { %10578 = vmatprep.subr.msk.bf16.mxu0 %vm16312_vm0, %v10576_v26  ;;  %v11378_v37 = vunpack.i.h.bf16 %v11376_v23  ;;  %v11377_v33 = vunpack.i.l.bf16 %v11376_v23  ;;  %v11393_v23 = vunpack.i.h.bf16 %v13349_v29 }
 0x5a9   : > { %9400 = vmatmul.mubr.msk.f32.gmra.mrb[46].mxu0 %vm16327_vm3, %v1476_v17  ;;  %vm16333_vm3 = vmmov %vm16314_vm2 }
 0x5aa   : > { %10581 = vmatpush3.bf16.xpose.msk.msra.mxu0 %vm16312_vm0, %v10576_v26  ;;  %v13375_v30 = vpop.permute.xlu0 %2502  ;;  %9542 = vmatprep.mubr.msk.f32.mxu0 %vm16328_vm11, %v2485_v20  ;;  %v10588_v35 = vpack.c.bf16 %v11378_v37, %v11377_v33  ;;  %vm16336_vm11 = vmmov %vm16314_vm2 }
 0x5ab   : > { %10584 = vmatprep.subr.msk.bf16.mxu0 %vm16312_vm0, %v10582_v18  ;;  %v11386_v21 = vpop.permute.xlu1 %11385 }
 0x5ac   : > { %v11388_v43 = vunpack.i.h.bf16 %v11386_v21  ;;  %v11387_v17 = vunpack.i.l.bf16 %v11386_v21 }
 0x5ae   : > { %v13380_v47 = vpop.permute.xlu0 %2504  ;;  %v10600_v19 = vpack.c.bf16 %v11388_v43, %v11387_v17 }
 0x5af   : > { %v11396_v49 = vpop.permute.xlu1 %11395 }
 0x5b2   : > { %10587 = vmatpush3.bf16.xpose.msk.msra.mxu0 %vm16312_vm0, %v10582_v18  ;;  %v13384_v41 = vpop.permute.xlu0 %2506  ;;  %v11392_v18 = vunpack.i.l.bf16 %v13349_v29  ;;  %v11398_v29 = vunpack.i.h.bf16 %v11396_v49 }
 0x5b3   : > { %10590 = vmatprep.subr.msk.bf16.mxu0 %vm16312_vm0, %v10588_v35  ;;  %v13388_v24 = vpop.permute.xlu1 %2486 }
 0x5b4   : > { %v10606_v22 = vpack.c.bf16 %v11393_v23, %v11392_v18 }
 0x5b6   : > { %v13390_v31 = vpop.permute.xlu0 %2508 }
 0x5b7   : > { %v13392_v28 = vpop.permute.xlu1 %2488 }
 0x5ba   : > { %10593 = vmatpush3.bf16.xpose.msk.msra.mxu0 %vm16312_vm0, %v10588_v35  ;;  %v13396_v20 = vpop.permute.xlu0 %2510 }
 0x5bb   : > { %10596 = vmatprep.subr.msk.bf16.mxu0 %vm16312_vm0, %v10594_v13  ;;  %v13400_v27 = vpop.permute.xlu1 %2492 }
 0x5be   : > { %v13402_v16 = vpop.permute.xlu0 %2512 }
 0x5bf   : > { %v13404_v12 = vpop.permute.xlu1 %2494 }
 0x5c2   : > { %10599 = vmatpush3.bf16.xpose.msk.msra.mxu0 %vm16312_vm0, %v10594_v13  ;;  %v11401_v63 = vpop.permute.xlu0 %11400 }
 0x5c3   : > { %v11403_v48 = vunpack.i.h.bf16 %v11401_v63  ;;  %v11402_v32 = vunpack.i.l.bf16 %v11401_v63  ;;  %10602 = vmatprep.subr.msk.bf16.mxu0 %vm16312_vm0, %v10600_v19  ;;  %v13410_v26 = vpop.permute.xlu1 %2514 }
 0x5c5   : > { %v10538_v21 = vpack.c.bf16 %v11403_v48, %v11402_v32  ;;  %v11397_v48 = vunpack.i.l.bf16 %v11396_v49 }
 0x5c6   : > { %v11406_v37 = vpop.permute.xlu0 %11405 }
 0x5c7   : > { %v11408_v33 = vunpack.i.h.bf16 %v11406_v37  ;;  %v11407_v35 = vunpack.i.l.bf16 %v11406_v37  ;;  %10539 = vmatprep.subr.bf16.mxu1 %v10538_v21  ;;  %v11416_v38 = vpop.permute.xlu1 %11415 }
 0x5c8   : > { %10541 = vmatpush3.bf16.msra.mxu1 %v10538_v21  ;;  %v11418_v17 = vunpack.i.h.bf16 %v11416_v38  ;;  %v11417_v63 = vunpack.i.l.bf16 %v11416_v38 }
 0x5c9   : > { %v10542_v13 = vpack.c.bf16 %v11408_v33, %v11407_v35 }
 0x5ca   : > { %10605 = vmatpush3.bf16.xpose.msk.msra.mxu0 %vm16312_vm0, %v10600_v19  ;;  %v11411_v43 = vpop.permute.xlu0 %11410  ;;  %v10550_v33 = vpack.c.bf16 %v11418_v17, %v11417_v63  ;;  %v10612_v19 = vpack.c.bf16 %v11398_v29, %v11397_v48 }
 0x5cb   : > { %v11413_v60 = vunpack.i.h.bf16 %v11411_v43  ;;  %v11412_v57 = vunpack.i.l.bf16 %v11411_v43  ;;  %10608 = vmatprep.subr.msk.bf16.mxu0 %vm16312_vm0, %v10606_v22  ;;  %10543 = vmatprep.subr.bf16.mxu1 %v10542_v13  ;;  %v11426_v37 = vpop.permute.xlu1 %11425 }
 0x5cc   : > { %10545 = vmatpush3.bf16.msra.mxu1 %v10542_v13  ;;  %v11428_v35 = vunpack.i.h.bf16 %v11426_v37  ;;  %v11427_v38 = vunpack.i.l.bf16 %v11426_v37 }
 0x5cd   : > { %v10546_v32 = vpack.c.bf16 %v11413_v60, %v11412_v57 }
 0x5ce   : > { %v11421_v21 = vpop.permute.xlu0 %11420  ;;  %v10558_v13 = vpack.c.bf16 %v11428_v35, %v11427_v38 }
 0x5cf   : > { %v11423_v23 = vunpack.i.h.bf16 %v11421_v21  ;;  %v11422_v18 = vunpack.i.l.bf16 %v11421_v21  ;;  %10547 = vmatprep.subr.bf16.mxu1 %v10546_v32  ;;  %v11436_v57 = vpop.permute.xlu1 %11435 }
 0x5d0   : > { %10549 = vmatpush3.bf16.msra.mxu1 %v10546_v32  ;;  %v11437_v37 = vunpack.i.l.bf16 %v11436_v57 }
 0x5d1   : > { %10551 = vmatprep.subr.bf16.mxu1 %v10550_v33  ;;  %v10554_v49 = vpack.c.bf16 %v11423_v23, %v11422_v18 }
 0x5d2   : > { %10611 = vmatpush3.bf16.xpose.msk.msra.mxu0 %vm16312_vm0, %v10606_v22  ;;  %v11431_v43 = vpop.permute.xlu0 %11430  ;;  %v11438_v22 = vunpack.i.h.bf16 %v11436_v57 }
 0x5d3   : > { %10614 = vmatprep.subr.msk.bf16.mxu0 %vm16312_vm0, %v10612_v19  ;;  %v11433_v21 = vunpack.i.h.bf16 %v11431_v43  ;;  %v11432_v17 = vunpack.i.l.bf16 %v11431_v43  ;;  %v11446_v32 = vpop.permute.xlu1 %11445 }
 0x5d4   : > { %10553 = vmatpush3.bf16.msra.mxu1 %v10550_v33  ;;  %v11448_v18 = vunpack.i.h.bf16 %v11446_v32  ;;  %v11447_v33 = vunpack.i.l.bf16 %v11446_v32  ;;  %v10566_v35 = vpack.c.bf16 %v11438_v22, %v11437_v37  ;;  %v16360_v22 = vld [vmem:[#allocation41_spill] sm:$0xff] }
 0x5d5   : > { %10555 = vmatprep.subr.bf16.mxu1 %v10554_v49  ;;  %v10562_v23 = vpack.c.bf16 %v11433_v21, %v11432_v17 }
 0x5d6   : > { %v11441_v60 = vpop.permute.xlu0 %11440  ;;  %v10656_v38 = vpack.c.bf16 %v11448_v18, %v11447_v33 }
 0x5d7   : > { %v11443_v63 = vunpack.i.h.bf16 %v11441_v60  ;;  %v11442_v29 = vunpack.i.l.bf16 %v11441_v60 }
 0x5d8   : > { %10557 = vmatpush3.bf16.msra.mxu1 %v10554_v49 }
 0x5d9   : > { %v10650_v48 = vpack.c.bf16 %v11443_v63, %v11442_v29  ;;  %10559 = vmatprep.subr.bf16.mxu1 %v10558_v13  ;;  %v16358_v29 = vld [vmem:[#allocation40_spill] sm:$0xff] }
 0x5da   : > { %10617 = vmatpush3.bf16.xpose.msk.msra.mxu0 %vm16312_vm0, %v10612_v19  ;;  %v11451_v43 = vpop.permute.xlu0 %11450 }
 0x5db   : > { %10652 = vmatprep.subr.msk.bf16.mxu0 %vm16312_vm0, %v10650_v48  ;;  %v11453_v19 = vunpack.i.h.bf16 %v11451_v43  ;;  %v11452_v49 = vunpack.i.l.bf16 %v11451_v43 }
 0x5dc   : > { %10561 = vmatpush3.bf16.msra.mxu1 %v10558_v13 }
 0x5dd   : > { %10563 = vmatprep.subr.bf16.mxu1 %v10562_v23 }
 0x5e0   : > { %10565 = vmatpush3.bf16.msra.mxu1 %v10562_v23 }
 0x5e1   : > { %9543 = vmatmul.mubr.msk.f32.vlgmr.msra.gmra.mrb[48].mxu0 %vm16329_vm5, %v13388_v24  ;;  %10567 = vmatprep.subr.bf16.mxu1 %v10566_v35  ;;  %v10662_v24 = vpack.c.bf16 %v11453_v19, %v11452_v49  ;;  %vm16337_vm5 = vmmov %vm16314_vm2 }
 0x5e2   : > { %9545 = vmatprep.mubr.msk.f32.mxu0 %vm16330_vm4, %v13392_v28  ;;  %10655 = vmatpush3.bf16.xpose.msk.msra.mxu0 %vm16312_vm0, %v10650_v48  ;;  %vm16338_vm4 = vmmov %vm16314_vm2 }
 0x5e3   : > { %10658 = vmatprep.subr.msk.bf16.mxu0 %vm16312_vm0, %v10656_v38 }
 0x5e4   : > { %10569 = vmatpush3.bf16.msra.mxu1 %v10566_v35 }
 0x5e5   : > { %9546 = vmatmul.mubr.msk.f32.gmra.mrb[50].mxu0 %vm16331_vm10, %v13355_v39  ;;  %vm16339_vm10 = vmmov %vm16314_vm2 }
 0x5e6   : > { %9548 = vmatprep.mubr.msk.f32.mxu0 %vm16332_vm9, %v13400_v27  ;;  %vm16340_vm9 = vmmov %vm16314_vm2 }
 0x5e9   : > { %9549 = vmatmul.mubr.msk.f32.gmra.mrb[52].mxu0 %vm16314_vm2, %v13404_v12 }
 0x5ea   : > { %9551 = vmatprep.mubr.msk.f32.mxu0 %vm16333_vm3, %v13359_v45  ;;  %10661 = vmatpush3.bf16.xpose.msk.msra.mxu0 %vm16312_vm0, %v10656_v38  ;;  %vm16341_vm3 = vmmov %vm16314_vm2 }
 0x5eb   : > { %10664 = vmatprep.subr.msk.bf16.mxu0 %vm16312_vm0, %v10662_v24 }
 0x5ec   : > { %v13446_v28 = vpop.f32.mrb[16].mxu0 }
 0x5ed   : > { %16334 = vst [vmem:[#allocation46_spill] sm:$0xff] %v13446_v28  ;;  %v13448_v57 = vpop.f32.mrb[17].mxu0  ;;  %9552 = vmatmul.mubr.msk.f32.gmra.mrb[54].mxu0 %vm16336_vm11, %v13363_v51  ;;  %vm16342_vm11 = vmmov %vm16314_vm2 }
 0x5ee   : > { %16335 = vst [vmem:[#allocation47_spill] sm:$0xff] %v13448_v57  ;;  %9554 = vmatprep.mubr.msk.f32.mxu0 %vm16337_vm5, %v13367_v34  ;;  %vm16343_vm5 = vmmov %vm16314_vm2 }
 0x5f1   : > { %9555 = vmatmul.mubr.msk.f32.gmra.mrb[56].mxu0 %vm16338_vm4, %v13375_v30  ;;  %vm16359_vm4 = vnez %v16358_v29 }
 0x5f2   : > { %9557 = vmatprep.mubr.msk.f32.mxu0 %vm16339_vm10, %v13380_v47  ;;  %10667 = vmatpush3.bf16.xpose.msk.msra.mxu0 %vm16312_vm0, %v10662_v24  ;;  %vm16361_vm10 = vnez %v16360_v22 }
 0x5f5   : > { %9558 = vmatmul.mubr.msk.f32.gmra.mrb[58].mxu0 %vm16340_vm9, %v13384_v41  ;;  %vm16362_vm9 = vnez %v16299_v46 }
 0x5f6   : > { %9560 = vmatprep.mubr.msk.f32.mxu0 %vm16314_vm2, %v13390_v31 }
 0x5f9   : > { %9561 = vmatmul.mubr.msk.f32.gmra.mrb[60].mxu0 %vm16341_vm3, %v13396_v20 }
 0x5fa   : > { %9563 = vmatprep.mubr.msk.f32.mxu0 %vm16342_vm11, %v13402_v16 }
 0x5fd   : > { %9564 = vmatmul.mubr.msk.f32.gmra.mrb[62].mxu0 %vm16343_vm5, %v13410_v26 }
 0x624   : > { %v13470_v39 = vpop.f32.mrb[18].mxu0 }
 0x625   : > { %16344 = vst [vmem:[#allocation48_spill] sm:$0xff] %v13470_v39  ;;  %v13472_v45 = vpop.f32.mrb[19].mxu0 }
 0x626   : > { %16345 = vst [vmem:[#allocation49_spill] sm:$0xff] %v13472_v45 }
 0x62c   : > { %v13474_v51 = vpop.f32.mrb[20].mxu0 }
 0x62d   : > { %16346 = vst [vmem:[#allocation50_spill] sm:$0xff] %v13474_v51  ;;  %v13476_v34 = vpop.f32.mrb[21].mxu0 }
 0x62e   : > { %16347 = vst [vmem:[#allocation51_spill] sm:$0xff] %v13476_v34 }
 0x634   : > { %v13478_v30 = vpop.f32.mrb[22].mxu0 }
 0x635   : > { %16348 = vst [vmem:[#allocation52_spill] sm:$0xff] %v13478_v30  ;;  %v13480_v47 = vpop.f32.mrb[23].mxu0 }
 0x636   : > { %16349 = vst [vmem:[#allocation53_spill] sm:$0xff] %v13480_v47 }
 0x63c   : > { %v13482_v41 = vpop.f32.mrb[24].mxu0 }
 0x63d   : > { %16350 = vst [vmem:[#allocation54_spill] sm:$0xff] %v13482_v41  ;;  %v13484_v31 = vpop.f32.mrb[25].mxu0 }
 0x63e   : > { %16351 = vst [vmem:[#allocation55_spill] sm:$0xff] %v13484_v31 }
 0x654   : > { %v13486_v20 = vpop.f32.mrb[26].mxu0 }
 0x655   : > { %16352 = vst [vmem:[#allocation56_spill] sm:$0xff] %v13486_v20  ;;  %v13488_v27 = vpop.f32.mrb[27].mxu0 }
 0x656   : > { %16353 = vst [vmem:[#allocation57_spill] sm:$0xff] %v13488_v27 }
 0x658   : > { %v13490_v16 = vpop.f32.mrb[28].mxu0 }
 0x659   : > { %16354 = vst [vmem:[#allocation58_spill] sm:$0xff] %v13490_v16  ;;  %v13492_v12 = vpop.f32.mrb[29].mxu0 }
 0x65a   : > { %16355 = vst [vmem:[#allocation59_spill] sm:$0xff] %v13492_v12 }
 0x65c   : > { %v13494_v26 = vpop.f32.mrb[30].mxu0 }
 0x65d   : > { %16356 = vst [vmem:[#allocation60_spill] sm:$0xff] %v13494_v26  ;;  %v13496_v60 = vpop.f32.mrb[31].mxu0 }
 0x65e   : > { %16357 = vst [vmem:[#allocation61_spill] sm:$0xff] %v13496_v60 }
 0x660   : > { %v9380_v13 = vpop.f32.mrb[32].mxu0 }
 0x661   : > { %v1719_v21 = vmul.f32 0.17677669, %v9380_v13  ;;  %v1639_v17 = vpop.f32.mrb[33].mxu0 }
 0x662   : > { %v1718_v63 = vmul.f32 0.17677669, %v1639_v17 }
 0x663   : > { %v13500_v48 = vsel %vm16359_vm4, %v1719_v21, -1e+30 }
 0x664   : > { %1752 = vmax.xlane.f32.xlu1 %v13500_v48  ;;  %v9383_v32 = vpop.f32.mrb[34].mxu0  ;;  %v13505_v37 = vsel %vm16361_vm10, %v1718_v63, -1e+30 }
 0x665   : > { %1750 = vmax.xlane.f32.xlu0 %v13505_v37  ;;  %v1649_v23 = vpop.f32.mrb[35].mxu0 }
 0x666   : > { %v1720_v18 = vmul.f32 0.17677669, %v1649_v23 }
 0x668   : > { %v9386_v33 = vpop.f32.mrb[36].mxu0  ;;  %v13510_v35 = vsel %vm13014_vm1, %v1720_v18, -1e+30 }
 0x669   : > { %v1723_v38 = vmul.f32 0.17677669, %v9386_v33  ;;  %1754 = vmax.xlane.f32.xlu1 %v13510_v35  ;;  %v1659_v43 = vpop.f32.mrb[37].mxu0 }
 0x66a   : > { %v1722_v49 = vmul.f32 0.17677669, %v1659_v43 }
 0x66b   : > { %v13515_v19 = vsel %vm13031_vm15, %v1723_v38, -1e+30 }
 0x66c   : > { %v9389_v24 = vpop.f32.mrb[38].mxu0  ;;  %v13520_v63 = vsel %vm13026_vm12, %v1722_v49, -1e+30  ;;  %v1721_v49 = vmul.f32 0.17677669, %v9383_v32 }
 0x66d   : > { %1760 = vmax.xlane.f32.xlu1 %v13515_v19  ;;  %v1669_v13 = vpop.f32.mrb[39].mxu0  ;;  %v1725_v21 = vmul.f32 0.17677669, %v9389_v24 }
 0x66e   : > { %v13542_v16 = vsel %vm16362_vm9, %v1721_v49, -1e+30 }
 0x66f   : > { %v13525_v33 = vsel %vm12901_vm7, %v1725_v21, -1e+30  ;;  %v1724_v21 = vmul.f32 0.17677669, %v1669_v13 }
 0x670   : > { %v9392_v17 = vpop.f32.mrb[40].mxu0 }
 0x671   : > { %1758 = vmax.xlane.f32.xlu1 %v13520_v63  ;;  %v1679_v23 = vpop.f32.mrb[41].mxu0  ;;  %v13549_v12 = vsel %vm12906_vm8, %v1724_v21, -1e+30  ;;  %v1727_v20 = vmul.f32 0.17677669, %v9392_v17 }
 0x672   : > { %v1726_v21 = vmul.f32 0.17677669, %v1679_v23 }
 0x673   : > { %v13572_v30 = vsel %vm12915_vm13, %v1727_v20, -1e+30 }
 0x674   : > { %v9395_v18 = vpop.f32.mrb[42].mxu0  ;;  %v13583_v39 = vsel %vm12920_vm14, %v1726_v21, -1e+30 }
 0x675   : > { %1764 = vmax.xlane.f32.xlu1 %v13525_v33  ;;  %v1689_v38 = vpop.f32.mrb[43].mxu0  ;;  %v1729_v17 = vmul.f32 0.17677669, %v9395_v18 }
 0x676   : > { %v1728_v20 = vmul.f32 0.17677669, %v1689_v38 }
 0x677   : > { %v13594_v57 = vsel %vm12929_vm6, %v1729_v17, -1e+30 }
 0x678   : > { %v9398_v43 = vpop.f32.mrb[44].mxu0 }
 0x679   : > { %v1699_v26 = vpop.f32.mrb[45].mxu0  ;;  %v1731_v21 = vmul.f32 0.17677669, %v9398_v43 }
 0x67a   : > { %v1730_v17 = vmul.f32 0.17677669, %v1699_v26 }
 0x67b   : > { %11455 = vrot.lane.b32.xlu0 %v16313_v25, %s12468_s27 }
 0x67c   : > { %v9401_v24 = vpop.f32.mrb[46].mxu0 }
 0x67d   : > { %v1709_v60 = vpop.f32.mrb[47].mxu0 }
 0x67e   : > { %v1732_v26 = vmul.f32 0.17677669, %v1709_v60 }
 0x686   : > { %11465 = vrot.lane.b32.xlu1 %v12788_v5, %s12468_s27 }
 0x68a   : > { %11475 = vrot.lane.b32.xlu1 %v12808_v11, %s12468_s27 }
 0x68e   : > { %3342 = vrot.lane.b32.xlu1 %v12730_v52, %s12469_s30  ;;  %v16372_v52 = vld [vmem:[#allocation37_spill] sm:$0xff] }
 0x68f   : > { %vm16373_vm11 = vnez %v16372_v52 }
 0x692   : > { %3346 = vrot.lane.b32.xlu1 %v12742_v55, %s12469_s30 }
 0x696   : > { %3350 = vrot.lane.b32.xlu1 %v12752_v58, %s12469_s30  ;;  %v16369_v58 = vld [vmem:[#allocation36_spill] sm:$0xff] }
 0x697   : > { %vm16370_vm3 = vnez %v16369_v58 }
 0x69a   : > { %1756 = vmax.xlane.f32.xlu0 %v13542_v16  ;;  %3354 = vrot.lane.b32.xlu1 %v12762_v61, %s12469_s30 }
 0x69e   : > { %1762 = vmax.xlane.f32.xlu0 %v13549_v12 }
 0x6b4   : > { %v13552_v32 = vpop.f32.mrb[48].mxu0  ;;  %11460 = vrot.lane.b32.xlu0 %v12778_v2, %s12468_s27 }
 0x6b5   : > { %v13556_v13 = vpop.f32.mrb[49].mxu0 }
 0x6b8   : > { %v13558_v49 = vpop.f32.mrb[50].mxu0  ;;  %11470 = vrot.lane.b32.xlu0 %v12798_v8, %s12468_s27  ;;  %v13625_v8 = vsel %vm16373_vm11, %v1730_v17, -1e+30 }
 0x6b9   : > { %v13562_v27 = vpop.f32.mrb[51].mxu0 }
 0x6bc   : > { %v13564_v41 = vpop.f32.mrb[52].mxu0  ;;  %3340 = vrot.lane.b32.xlu0 %v12732_v53, %s12469_s30  ;;  %v16366_v53 = vld [vmem:[#allocation35_spill] sm:$0xff] }
 0x6bd   : > { %v13568_v31 = vpop.f32.mrb[53].mxu0  ;;  %vm16367_vm2 = vnez %v16366_v53 }
 0x6be   : > { %1768 = vmax.xlane.f32.xlu1 %v13572_v30 }
 0x6c0   : > { %v13575_v47 = vpop.f32.mrb[54].mxu0  ;;  %3344 = vrot.lane.b32.xlu0 %v12744_v56, %s12469_s30 }
 0x6c1   : > { %v13579_v51 = vpop.f32.mrb[55].mxu0 }
 0x6c2   : > { %1766 = vmax.xlane.f32.xlu1 %v13583_v39 }
 0x6c4   : > { %v13586_v23 = vpop.f32.mrb[56].mxu0  ;;  %3348 = vrot.lane.b32.xlu0 %v12754_v59, %s12469_s30  ;;  %v13605_v59 = vsel %vm16367_vm2, %v1728_v20, -1e+30  ;;  %v1733_v20 = vmul.f32 0.17677669, %v9401_v24 }
 0x6c5   : > { %v13590_v45 = vpop.f32.mrb[57].mxu0 }
 0x6c6   : > { %1772 = vmax.xlane.f32.xlu1 %v13594_v57 }
 0x6c8   : > { %v13597_v18 = vpop.f32.mrb[58].mxu0  ;;  %3352 = vrot.lane.b32.xlu0 %v12764_v62, %s12469_s30  ;;  %v13616_v62 = vsel %vm16370_vm3, %v1731_v21, -1e+30  ;;  %v16376_v21 = vld [vmem:[#allocation39_spill] sm:$0xff] }
 0x6c9   : > { %16365 = vst [vmem:[#allocation62_spill] sm:$0xff] %v13597_v18  ;;  %v13601_v56 = vpop.f32.mrb[59].mxu0  ;;  %vm16377_vm3 = vnez %v16376_v21 }
 0x6ca   : > { %1770 = vmax.xlane.f32.xlu1 %v13605_v59  ;;  %v13635_v11 = vsel %vm16377_vm3, %v1732_v26, -1e+30 }
 0x6cc   : > { %v13608_v38 = vpop.f32.mrb[60].mxu0  ;;  %3356 = vrot.lane.b32.xlu0 %v12774_v1, %s12469_s30  ;;  %v16374_v1 = vld [vmem:[#allocation38_spill] sm:$0xff] }
 0x6cd   : > { %16368 = vst [vmem:[#allocation63_spill] sm:$0xff] %v13608_v38  ;;  %v13612_v61 = vpop.f32.mrb[61].mxu0  ;;  %vm16375_vm5 = vnez %v16374_v1 }
 0x6ce   : > { %1776 = vmax.xlane.f32.xlu1 %v13616_v62  ;;  %v13630_v2 = vsel %vm16375_vm5, %v1733_v20, -1e+30  ;;  %vm16380_vm5 = vcmask 31744  }
 0x6cf   : > { %vm16381_vm6 = vmmov %vm16380_vm5 }
 0x6d0   : > { %v13619_v43 = vpop.f32.mrb[62].mxu0 }
 0x6d1   : > { %16371 = vst [vmem:[#allocation64_spill] sm:$0xff] %v13619_v43  ;;  %v13621_v55 = vpop.f32.mrb[63].mxu0 }
 0x6d2   : > { %1774 = vmax.xlane.f32.xlu1 %v13625_v8 }
 0x6d6   : > { %1780 = vmax.xlane.f32.xlu1 %v13630_v2 }
 0x6da   : > { %1778 = vmax.xlane.f32.xlu1 %v13635_v11 }
 0x6eb   : > { %3358 = vrot.lane.b32.xlu1 %v12772_v0, %s12469_s30 }
 0x6f1   : > { %v1753_v24 = vpop.xlane.xlu1 %1752 }
 0x6f2   : > { %v1751_v17 = vpop.xlane.xlu0 %1750  ;;  %v1783_v26 = vsub.f32 %v13500_v48, %v1753_v24 }
 0x6f3   : > { %v1782_v5 = vsub.f32 %v13505_v37, %v1751_v17 }
 0x6f4   : > { %v1800_v37 = vmul.f32 1.442695, %v1783_v26 }
 0x6f5   : > { %v1798_v60 = vmul.f32 1.442695, %v1782_v5 }
 0x6f6   : > { %v11456_v25 = vpop.permute.xlu0 %11455  ;;  %v1755_v54 = vpop.xlane.xlu1 %1754 }
 0x6f7   : > { %11943 = vpow2.f32 %v1798_v60  ;;  %v11458_v20 = vunpack.i.h.bf16 %v11456_v25  ;;  %v11457_v1 = vunpack.i.l.bf16 %v11456_v25 }
 0x6f9   : > { %v10668_v58 = vpack.c.bf16 %v11458_v20, %v11457_v1 }
 0x6fa   : > { %v1761_v43 = vpop.xlane.xlu1 %1760 }
 0x6fb   : > { %10670 = vmatprep.subr.msk.bf16.mxu0 %vm16312_vm0, %v10668_v58 }
 0x6fc   : > { %10673 = vmatpush3.bf16.xpose.msk.msra.mxu0 %vm16312_vm0, %v10668_v58 }
 0x6fe   : > { %v1759_v0 = vpop.xlane.xlu1 %1758 }
 0x6ff   : > { %v1786_v28 = vsub.f32 %v13520_v63, %v1759_v0  ;;  %v1784_v0 = vsub.f32 %v13510_v35, %v1755_v54 }
 0x701   : > { %v13647_v5 = vpop.eup %11943  ;;  %v1806_v17 = vmul.f32 1.442695, %v1786_v28  ;;  %v1802_v26 = vmul.f32 1.442695, %v1784_v0 }
 0x702   : > { %v1765_v60 = vpop.xlane.xlu1 %1764  ;;  %1830 = vadd.xlane.f32.xlu0 %v13647_v5 }
 0x703   : > { %11945 = vpow2.f32 %v1806_v17  ;;  %v1789_v1 = vsub.f32 %v13525_v33, %v1765_v60 }
 0x704   : > { %11947 = vpow2.f32 %v1800_v37  ;;  %v1787_v37 = vsub.f32 %v13515_v19, %v1761_v43 }
 0x705   : > { %v1812_v25 = vmul.f32 1.442695, %v1789_v1 }
 0x706   : > { %v11466_v33 = vpop.permute.xlu1 %11465  ;;  %v1808_v60 = vmul.f32 1.442695, %v1787_v37 }
 0x707   : > { %11949 = vpow2.f32 %v1812_v25  ;;  %v11468_v1 = vunpack.i.h.bf16 %v11466_v33  ;;  %v11467_v38 = vunpack.i.l.bf16 %v11466_v33 }
 0x70a   : > { %v11476_v25 = vpop.permute.xlu1 %11475 }
 0x70b   : > { %v11478_v33 = vunpack.i.h.bf16 %v11476_v25 }
 0x70d   : > { %v13651_v48 = vpop.eup %11945 }
 0x70e   : > { %16378 = vst [vmem:[#allocation65_spill] sm:$0xff] %v13651_v48  ;;  %v13653_v24 = vpop.eup %11947  ;;  %1838 = vadd.xlane.f32.xlu0 %v13651_v48  ;;  %v3343_v19 = vpop.permute.xlu1 %3342 }
 0x70f   : > { %1832 = vadd.xlane.f32.xlu1 %v13653_v24 }
 0x711   : > { %v13657_v58 = vpop.eup %11949 }
 0x712   : > { %16379 = vst [vmem:[#allocation66_spill] sm:$0xff] %v13657_v58  ;;  %1844 = vadd.xlane.f32.xlu0 %v13657_v58 }
 0x727   : > { %v1757_v28 = vpop.xlane.xlu0 %1756 }
 0x728   : > { %v1785_v63 = vsub.f32 %v13542_v16, %v1757_v28  ;;  %v10680_v16 = vpack.c.bf16 %v11468_v1, %v11467_v38 }
 0x72a   : > { %v1804_v20 = vmul.f32 1.442695, %v1785_v63 }
 0x72b   : > { %v1763_v17 = vpop.xlane.xlu0 %1762 }
 0x72c   : > { %11951 = vpow2.f32 %v1804_v20  ;;  %v1788_v58 = vsub.f32 %v13549_v12, %v1763_v17 }
 0x72d   : > { %11953 = vpow2.f32 %v1802_v26 }
 0x72e   : > { %11955 = vpow2.f32 %v1808_v60  ;;  %v1810_v28 = vmul.f32 1.442695, %v1788_v58  ;;  %v3347_v58 = vpop.permute.xlu1 %3346 }
 0x72f   : > { %v11461_v48 = vpop.permute.xlu0 %11460 }
 0x730   : > { %v11463_v14 = vunpack.i.h.bf16 %v11461_v48  ;;  %v11462_v54 = vunpack.i.l.bf16 %v11461_v48  ;;  %11957 = vpow2.f32 %v1810_v28 }
 0x732   : > { %v10674_v35 = vpack.c.bf16 %v11463_v14, %v11462_v54  ;;  %v3351_v20 = vpop.permute.xlu1 %3350 }
 0x733   : > { %v11471_v18 = vpop.permute.xlu0 %11470 }
 0x734   : > { %10676 = vmatprep.subr.msk.bf16.mxu0 %vm16312_vm0, %v10674_v35  ;;  %v11473_v14 = vunpack.i.h.bf16 %v11471_v18  ;;  %v11472_v48 = vunpack.i.l.bf16 %v11471_v18  ;;  %v11477_v18 = vunpack.i.l.bf16 %v11476_v25 }
 0x735   : > { %10679 = vmatpush3.bf16.xpose.msk.msra.mxu0 %vm16312_vm0, %v10674_v35 }
 0x736   : > { %v13668_v43 = vpop.eup %11951  ;;  %10682 = vmatprep.subr.msk.bf16.mxu0 %vm16312_vm0, %v10680_v16  ;;  %v10686_v0 = vpack.c.bf16 %v11473_v14, %v11472_v48  ;;  %v10692_v37 = vpack.c.bf16 %v11478_v33, %v11477_v18  ;;  %v3355_v17 = vpop.permute.xlu1 %3354 }
 0x737   : > { %v3341_v12 = vpop.permute.xlu0 %3340  ;;  %1836 = vadd.xlane.f32.xlu1 %v13668_v43  ;;  %v13674_v38 = vpop.eup %11953 }
 0x738   : > { %9680 = vmatprep.mubr.msk.f32.mxu0 %vm16380_vm5, %v3341_v12  ;;  %v13679_v63 = vpop.eup %11955 }
 0x73a   : > { %v13684_v26 = vpop.eup %11957 }
 0x73b   : > { %1834 = vadd.xlane.f32.xlu1 %v13674_v38  ;;  %v3345_v25 = vpop.permute.xlu0 %3344 }
 0x73d   : > { %10685 = vmatpush3.bf16.xpose.msk.msra.mxu0 %vm16312_vm0, %v10680_v16 }
 0x73e   : > { %10688 = vmatprep.subr.msk.bf16.mxu0 %vm16312_vm0, %v10686_v0 }
 0x73f   : > { %1840 = vadd.xlane.f32.xlu1 %v13679_v63  ;;  %v3349_v14 = vpop.permute.xlu0 %3348 }
 0x743   : > { %1842 = vadd.xlane.f32.xlu1 %v13684_v26  ;;  %v3353_v18 = vpop.permute.xlu0 %3352 }
 0x745   : > { %10691 = vmatpush3.bf16.xpose.msk.msra.mxu0 %vm16312_vm0, %v10686_v0 }
 0x746   : > { %10694 = vmatprep.subr.msk.bf16.mxu0 %vm16312_vm0, %v10692_v37 }
 0x74b   : > { %v1769_v60 = vpop.xlane.xlu1 %1768 }
 0x74c   : > { %v1791_v1 = vsub.f32 %v13572_v30, %v1769_v60 }
 0x74d   : > { %10697 = vmatpush3.bf16.xpose.msk.msra.mxu0 %vm16312_vm0, %v10692_v37  ;;  %vm16382_vm0 = vmmov %vm16380_vm5 }
 0x74e   : > { %v1816_v54 = vmul.f32 1.442695, %v1791_v1  ;;  %vm16383_vm13 = vmmov %vm16382_vm0  ;;  %v3357_v1 = vpop.permute.xlu0 %3356 }
 0x74f   : > { %v1767_v35 = vpop.xlane.xlu1 %1766 }
 0x750   : > { %11959 = vpow2.f32 %v1816_v54  ;;  %v1790_v16 = vsub.f32 %v13583_v39, %v1767_v35 }
 0x752   : > { %v1814_v28 = vmul.f32 1.442695, %v1790_v16 }
 0x753   : > { %v1773_v12 = vpop.xlane.xlu1 %1772 }
 0x754   : > { %11961 = vpow2.f32 %v1814_v28  ;;  %v1793_v48 = vsub.f32 %v13594_v57, %v1773_v12  ;;  %9681 = vmatmul.mubr.msk.f32.vlgmr.msra.gmra.mrb[64].mxu0 %vm16380_vm5, %v3343_v19  ;;  %vm16385_vm5 = vmmov %vm16382_vm0 }
 0x755   : > { %9683 = vmatprep.mubr.msk.f32.mxu0 %vm16381_vm6, %v3345_v25  ;;  %vm16384_vm6 = vmmov %vm16382_vm0 }
 0x756   : > { %v1820_v30 = vmul.f32 1.442695, %v1793_v48 }
 0x757   : > { %v1771_v0 = vpop.xlane.xlu1 %1770 }
 0x758   : > { %11963 = vpow2.f32 %v1820_v30  ;;  %v1792_v33 = vsub.f32 %v13605_v59, %v1771_v0  ;;  %9684 = vmatmul.mubr.msk.f32.gmra.mrb[66].mxu0 %vm16382_vm0, %v3347_v58 }
 0x759   : > { %9686 = vmatprep.mubr.msk.f32.mxu0 %vm16383_vm13, %v3349_v14  ;;  %vm16386_vm13 = vmmov %vm16382_vm0 }
 0x75a   : > { %v13701_v39 = vpop.eup %11959  ;;  %v1818_v37 = vmul.f32 1.442695, %v1792_v33 }
 0x75b   : > { %1848 = vadd.xlane.f32.xlu0 %v13701_v39  ;;  %v1777_v57 = vpop.xlane.xlu1 %1776 }
 0x75c   : > { %11965 = vpow2.f32 %v1818_v37  ;;  %v1795_v19 = vsub.f32 %v13616_v62, %v1777_v57  ;;  %9687 = vmatmul.mubr.msk.f32.gmra.mrb[68].mxu0 %vm16384_vm6, %v3351_v20  ;;  %vm16387_vm6 = vmmov %vm16382_vm0  ;;  %v2757_v57 = vmul.f32 0.17677669, %v13556_v13  ;;  %v2763_v13 = vmul.f32 0.17677669, %v13579_v51 }
 0x75d   : > { %9689 = vmatprep.mubr.msk.f32.mxu0 %vm16385_vm5, %v3353_v18  ;;  %v2760_v51 = vmul.f32 0.17677669, %v13558_v49 }
 0x75e   : > { %v13707_v60 = vpop.eup %11961  ;;  %v1824_v59 = vmul.f32 1.442695, %v1795_v19 }
 0x75f   : > { %v1775_v58 = vpop.xlane.xlu1 %1774  ;;  %1846 = vadd.xlane.f32.xlu1 %v13707_v60  ;;  %v13794_v49 = vsel %vm16362_vm9, %v2760_v51, -1e+30 }
 0x760   : > { %11967 = vpow2.f32 %v1824_v59  ;;  %v1794_v25 = vsub.f32 %v13625_v8, %v1775_v58  ;;  %9690 = vmatmul.mubr.msk.f32.gmra.mrb[70].mxu0 %vm16386_vm13, %v3355_v17  ;;  %v2759_v59 = vmul.f32 0.17677669, %v13562_v27  ;;  %v13751_v58 = vsel %vm16361_vm10, %v2757_v57, -1e+30 }
 0x761   : > { %9692 = vmatprep.mubr.msk.f32.mxu0 %vm16382_vm0, %v3357_v1 }
 0x762   : > { %v13713_v54 = vpop.eup %11963  ;;  %v1822_v62 = vmul.f32 1.442695, %v1794_v25  ;;  %v2761_v25 = vmul.f32 0.17677669, %v13568_v31  ;;  %v13771_v31 = vsel %vm12906_vm8, %v2763_v13, -1e+30 }
 0x763   : > { %1852 = vadd.xlane.f32.xlu0 %v13713_v54  ;;  %v1781_v20 = vpop.xlane.xlu1 %1780 }
 0x764   : > { %11969 = vpow2.f32 %v1822_v62  ;;  %v1797_v35 = vsub.f32 %v13630_v2, %v1781_v20  ;;  %v13764_v27 = vsel %vm13026_vm12, %v2761_v25, -1e+30  ;;  %v2758_v62 = vmul.f32 0.17677669, %v13552_v32 }
 0x765   : > { %v2769_v32 = vmul.f32 0.17677669, %v13612_v61  ;;  %v2771_v61 = vmul.f32 0.17677669, %v13621_v55 }
 0x766   : > { %v13717_v16 = vpop.eup %11965  ;;  %v1828_v28 = vmul.f32 1.442695, %v1797_v35  ;;  %v13776_v20 = vsel %vm16359_vm4, %v2758_v62, -1e+30  ;;  %v2767_v35 = vmul.f32 0.17677669, %v13601_v56 }
 0x767   : > { %1850 = vadd.xlane.f32.xlu1 %v13717_v16  ;;  %v1779_v12 = vpop.xlane.xlu1 %1778 }
 0x768   : > { %11971 = vpow2.f32 %v1828_v28  ;;  %v1796_v8 = vsub.f32 %v13635_v11, %v1779_v12  ;;  %v13790_v12 = vsel %vm16367_vm2, %v2767_v35, -1e+30  ;;  %v16395_v35 = vld [vmem:[#allocation36_spill] sm:$0xff] }
 0x769   : > { %vm16396_vm0 = vnez %v16395_v35 }
 0x76a   : > { %v13721_v17 = vpop.eup %11967  ;;  %v1826_v14 = vmul.f32 1.442695, %v1796_v8  ;;  %v13806_v8 = vsel %vm16373_vm11, %v2769_v32, -1e+30 }
 0x76b   : > { %1856 = vadd.xlane.f32.xlu0 %v13721_v17  ;;  %v3359_v48 = vpop.permute.xlu1 %3358 }
 0x76c   : > { %11973 = vpow2.f32 %v1826_v14  ;;  %9693 = vmatmul.mubr.msk.f32.gmra.mrb[72].mxu0 %vm16387_vm6, %v3359_v48  ;;  %v2766_v14 = vmul.f32 0.17677669, %v13586_v23  ;;  %v13813_v48 = vsel %vm16377_vm3, %v2771_v61, -1e+30  ;;  %v12391_v61 = vld [vmem:[%s16037_s2] sm:$0xff]  ;;  %vm16414_vm3 = vcmask 31744  }
 0x76d   : > { %vm16416_vm11 = vmmov %vm16414_vm3 }
 0x76e   : > { %v13725_v30 = vpop.eup %11969 }
 0x76f   : > { %1854 = vadd.xlane.f32.xlu1 %v13725_v30 }
 0x772   : > { %v13728_v2 = vpop.eup %11971 }
 0x773   : > { %1860 = vadd.xlane.f32.xlu0 %v13728_v2 }
 0x776   : > { %v13731_v0 = vpop.eup %11973 }
 0x777   : > { %1858 = vadd.xlane.f32.xlu0 %v13731_v0 }
 0x780   : > { %3362 = vrot.lane.b32.xlu1 %v12782_v3, %s12469_s30 }
 0x784   : > { %3366 = vrot.lane.b32.xlu1 %v12792_v6, %s12469_s30 }
 0x78d   : > { %3360 = vrot.lane.b32.xlu0 %v12784_v4, %s12469_s30 }
 0x78f   : > { %v1831_v11 = vpop.xlane.xlu0 %1830 }
 0x790   : > { %11975 = vrcp.f32 %v1831_v11 }
 0x791   : > { %3364 = vrot.lane.b32.xlu0 %v12794_v7, %s12469_s30 }
 0x795   : > { %3368 = vrot.lane.b32.xlu0 %v12804_v10, %s12469_s30 }
 0x799   : > { %3370 = vrot.lane.b32.xlu0 %v12802_v9, %s12469_s30  ;;  %s12480_s30 = smov 44  }
 0x79a   : > { %v11976_v33 = vpop.eup %11975 }
 0x79b   : > { %v1878_v18 = vmul.f32 %v11976_v33, %v13647_v5  ;;  %v13758_v5 = vsel %vm13014_vm1, %v2759_v59, -1e+30  ;;  %v16388_v33 = vld [vmem:[#allocation62_spill] sm:$0xff] }
 0x79c   : > { %v1833_v37 = vpop.xlane.xlu1 %1832 }
 0x79d   : > { %11977 = vrcp.f32 %v1833_v37  ;;  %9434 = vmatprep.mubr.f32.mxu1 %v1878_v18  ;;  %v2768_v18 = vmul.f32 0.17677669, %v16388_v33  ;;  %v16389_v37 = vld [vmem:[#allocation32_spill] sm:$0xff]  ;;  %v16397_v33 = vld [vmem:[#allocation38_spill] sm:$0xff] }
 0x79e   : > { %vm16390_vm5 = vnez %v16389_v37  ;;  %vm16398_vm6 = vnez %v16397_v33 }
 0x79f   : > { %v13824_v23 = vsel %vm16390_vm5, %v2766_v14, -1e+30  ;;  %v2088_v14 = vrot.slane %v12391_v61, 4 }
 0x7a7   : > { %v11978_v19 = vpop.eup %11977 }
 0x7a8   : > { %2789 = vmax.xlane.f32.xlu1 %v13751_v58  ;;  %v1879_v1 = vmul.f32 %v11978_v19, %v13653_v24  ;;  %v2765_v24 = vmul.f32 0.17677669, %v13590_v45  ;;  %v2762_v45 = vmul.f32 0.17677669, %v13564_v41  ;;  %v2764_v41 = vmul.f32 0.17677669, %v13575_v47  ;;  %v1839_v47 = vpop.xlane.xlu0 %1838 }
 0x7a9   : > { %11979 = vrcp.f32 %v1839_v47  ;;  %v16391_v19 = vld [vmem:[#allocation63_spill] sm:$0xff] }
 0x7aa   : > { %9435 = vmatmul.mubr.f32.vlgmr.msra.gmra.mrb[32].mxu1 %v1879_v1  ;;  %v13782_v28 = vsel %vm12920_vm14, %v2765_v24, -1e+30  ;;  %v13800_v56 = vsel %vm13031_vm15, %v2762_v45, -1e+30  ;;  %v13817_v11 = vsel %vm12901_vm7, %v2764_v41, -1e+30 }
 0x7ab   : > { %v2770_v59 = vmul.f32 0.17677669, %v16391_v19  ;;  %v16392_v1 = vld [vmem:[#allocation34_spill] sm:$0xff]  ;;  %v16394_v24 = vld [vmem:[#allocation64_spill] sm:$0xff] }
 0x7ac   : > { %2793 = vmax.xlane.f32.xlu1 %v13758_v5  ;;  %vm16393_vm13 = vnez %v16392_v1  ;;  %v1845_v62 = vpop.xlane.xlu0 %1844  ;;  %v2772_v51 = vmul.f32 0.17677669, %v16394_v24 }
 0x7ad   : > { %v13830_v25 = vsel %vm16393_vm13, %v2768_v18, -1e+30  ;;  %v13836_v45 = vsel %vm16396_vm0, %v2770_v59, -1e+30  ;;  %v16399_v59 = vld [vmem:[#allocation65_spill] sm:$0xff] }
 0x7ae   : > { %v13844_v18 = vsel %vm16398_vm6, %v2772_v51, -1e+30  ;;  %v16400_v51 = vld [vmem:[#allocation7_spill] sm:$0xff]  ;;  %vm16415_vm6 = vmmov %vm16414_vm3 }
 0x7b0   : > { %2797 = vmax.xlane.f32.xlu1 %v13764_v27 }
 0x7b3   : > { %v11980_v41 = vpop.eup %11979 }
 0x7b4   : > { %2801 = vmax.xlane.f32.xlu1 %v13771_v31 }
 0x7b8   : > { %2805 = vmax.xlane.f32.xlu1 %v13782_v28  ;;  %2791 = vmax.xlane.f32.xlu0 %v13776_v20 }
 0x7bc   : > { %2809 = vmax.xlane.f32.xlu1 %v13790_v12  ;;  %2795 = vmax.xlane.f32.xlu0 %v13794_v49 }
 0x7c0   : > { %2813 = vmax.xlane.f32.xlu1 %v13806_v8  ;;  %2799 = vmax.xlane.f32.xlu0 %v13800_v56 }
 0x7c4   : > { %2817 = vmax.xlane.f32.xlu1 %v13813_v48  ;;  %2803 = vmax.xlane.f32.xlu0 %v13817_v11  ;;  %v1837_v55 = vpop.xlane.xlu1 %1836 }
 0x7c5   : > { %11981 = vrcp.f32 %v1837_v55 }
 0x7c8   : > { %2807 = vmax.xlane.f32.xlu0 %v13824_v23  ;;  %v1835_v57 = vpop.xlane.xlu1 %1834 }
 0x7c9   : > { %11983 = vrcp.f32 %v1835_v57 }
 0x7cc   : > { %2811 = vmax.xlane.f32.xlu0 %v13830_v25  ;;  %v1841_v13 = vpop.xlane.xlu1 %1840 }
 0x7cd   : > { %11985 = vrcp.f32 %v1841_v13  ;;  %v1882_v13 = vmul.f32 %v11980_v41, %v16399_v59  ;;  %v16403_v41 = vld [vmem:[#allocation16_spill] sm:$0xff]  ;;  %v16407_v59 = vld [vmem:[#allocation19_spill] sm:$0xff] }
 0x7ce   : > { %11987 = vrcp.f32 %v1845_v62 }
 0x7cf   : > { %v11982_v47 = vpop.eup %11981 }
 0x7d0   : > { %2815 = vmax.xlane.f32.xlu0 %v13836_v45  ;;  %v1843_v32 = vpop.xlane.xlu1 %1842  ;;  %v1881_v19 = vmul.f32 %v11982_v47, %v13668_v43  ;;  %v16404_v47 = vld [vmem:[#allocation22_spill] sm:$0xff] }
 0x7d1   : > { %11989 = vrcp.f32 %v1843_v32 }
 0x7d3   : > { %v11984_v55 = vpop.eup %11983 }
 0x7d4   : > { %2819 = vmax.xlane.f32.xlu0 %v13844_v18  ;;  %v1880_v57 = vmul.f32 %v11984_v55, %v13674_v38  ;;  %v16401_v55 = vld [vmem:[#allocation10_spill] sm:$0xff] }
 0x7d5   : > { %2089 = vrot.lane.b32.xlu1 %v2088_v14, %s12470_s7  ;;  %v16402_v14 = vld [vmem:[#allocation66_spill] sm:$0xff] }
 0x7d6   : > { %9437 = vmatprep.mubr.f32.mxu1 %v1880_v57 }
 0x7d7   : > { %v11986_v62 = vpop.eup %11985  ;;  %9438 = vmatmul.mubr.f32.gmra.mrb[34].mxu1 %v1881_v19 }
 0x7d8   : > { %9440 = vmatprep.mubr.f32.mxu1 %v1882_v13  ;;  %v1883_v24 = vmul.f32 %v11986_v62, %v13679_v63  ;;  %v11988_v32 = vpop.eup %11987  ;;  %v16405_v63 = vld [vmem:[#allocation28_spill] sm:$0xff]  ;;  %v16408_v62 = vld [vmem:[#allocation25_spill] sm:$0xff] }
 0x7d9   : > { %11480 = vrot.lane.b32.xlu1 %v16400_v51, %s12471_s8  ;;  %v1885_v43 = vmul.f32 %v11988_v32, %v16402_v14  ;;  %v16409_v14 = vld [vmem:[#allocation5_spill] sm:$0xff] }
 0x7db   : > { %v11990_v21 = vpop.eup %11989  ;;  %9441 = vmatmul.mubr.f32.gmra.mrb[36].mxu1 %v1883_v24 }
 0x7dc   : > { %v1884_v38 = vmul.f32 %v11990_v21, %v13684_v26  ;;  %v16406_v21 = vld [vmem:[#allocation13_spill] sm:$0xff] }
 0x7dd   : > { %11485 = vrot.lane.b32.xlu1 %v16401_v55, %s12471_s8 }
 0x7de   : > { %9443 = vmatprep.mubr.f32.mxu1 %v1884_v38 }
 0x7df   : > { %9444 = vmatmul.mubr.f32.gmra.mrb[38].mxu1 %v1885_v43 }
 0x7e1   : > { %11495 = vrot.lane.b32.xlu1 %v16403_v41, %s12471_s8 }
 0x7e5   : > { %11505 = vrot.lane.b32.xlu1 %v16404_v47, %s12471_s8 }
 0x7e8   : > { %v1849_v57 = vpop.xlane.xlu0 %1848 }
 0x7e9   : > { %11515 = vrot.lane.b32.xlu1 %v16405_v63, %s12471_s8  ;;  %11991 = vrcp.f32 %v1849_v57 }
 0x7ea   : > { %2287 = vrot.lane.b32.xlu0 %v12391_v61, %s12470_s7 }
 0x7ec   : > { %v1847_v19 = vpop.xlane.xlu1 %1846 }
 0x7ed   : > { %11993 = vrcp.f32 %v1847_v19  ;;  %11525 = vrot.lane.b32.xlu1 %v16401_v55, %s12472_s9  ;;  %v16410_v19 = vld [vmem:[#allocation8_spill] sm:$0xff] }
 0x7ee   : > { %11490 = vrot.lane.b32.xlu0 %v16406_v21, %s12471_s8 }
 0x7f0   : > { %v1853_v26 = vpop.xlane.xlu0 %1852 }
 0x7f1   : > { %11545 = vrot.lane.b32.xlu1 %v16404_v47, %s12472_s9  ;;  %11995 = vrcp.f32 %v1853_v26 }
 0x7f2   : > { %11500 = vrot.lane.b32.xlu0 %v16407_v59, %s12471_s8 }
 0x7f3   : > { %v11992_v61 = vpop.eup %11991 }
 0x7f4   : > { %v1851_v13 = vpop.xlane.xlu1 %1850  ;;  %v1887_v43 = vmul.f32 %v11992_v61, %v13701_v39  ;;  %v16411_v39 = vld [vmem:[#allocation11_spill] sm:$0xff] }
 0x7f5   : > { %11997 = vrcp.f32 %v1851_v13  ;;  %11555 = vrot.lane.b32.xlu1 %v16405_v63, %s12472_s9 }
 0x7f6   : > { %11510 = vrot.lane.b32.xlu0 %v16408_v62, %s12471_s8  ;;  %s12483_s8 = smov 40  }
 0x7f7   : > { %v11994_v24 = vpop.eup %11993 }
 0x7f8   : > { %v1886_v32 = vmul.f32 %v11994_v24, %v13707_v60  ;;  %v1857_v38 = vpop.xlane.xlu0 %1856 }
 0x7f9   : > { %4198 = vrot.lane.b32.xlu1 %v16409_v14, %s12473_s23  ;;  %11999 = vrcp.f32 %v1857_v38  ;;  %v16412_v38 = vld [vmem:[#allocation14_spill] sm:$0xff] }
 0x7fa   : > { %11520 = vrot.lane.b32.xlu0 %v16400_v51, %s12472_s9  ;;  %9446 = vmatprep.mubr.f32.mxu1 %v1886_v32 }
 0x7fb   : > { %9447 = vmatmul.mubr.f32.gmra.mrb[40].mxu1 %v1887_v43  ;;  %v11996_v26 = vpop.eup %11995 }
 0x7fc   : > { %v1855_v57 = vpop.xlane.xlu1 %1854  ;;  %v1889_v61 = vmul.f32 %v11996_v26, %v13713_v54  ;;  %v16413_v26 = vld [vmem:[#allocation17_spill] sm:$0xff] }
 0x7fd   : > { %12001 = vrcp.f32 %v1855_v57  ;;  %4202 = vrot.lane.b32.xlu1 %v16410_v19, %s12473_s23 }
 0x7fe   : > { %11530 = vrot.lane.b32.xlu0 %v16406_v21, %s12472_s9 }
 0x7ff   : > { %v11998_v60 = vpop.eup %11997 }
 0x800   : > { %v1861_v13 = vpop.xlane.xlu0 %1860  ;;  %v1888_v24 = vmul.f32 %v11998_v60, %v13717_v16  ;;  %v3363_v57 = vpop.permute.xlu1 %3362 }
 0x801   : > { %4206 = vrot.lane.b32.xlu1 %v16411_v39, %s12473_s23  ;;  %12003 = vrcp.f32 %v1861_v13 }
 0x802   : > { %11535 = vrot.lane.b32.xlu0 %v16403_v41, %s12472_s9  ;;  %9449 = vmatprep.mubr.f32.mxu1 %v1888_v24 }
 0x803   : > { %9450 = vmatmul.mubr.f32.gmra.mrb[42].mxu1 %v1889_v61  ;;  %v12000_v43 = vpop.eup %11999 }
 0x804   : > { %v1859_v32 = vpop.xlane.xlu0 %1858  ;;  %v1891_v13 = vmul.f32 %v12000_v43, %v13721_v17  ;;  %v3367_v61 = vpop.permute.xlu1 %3366 }
 0x805   : > { %12005 = vrcp.f32 %v1859_v32  ;;  %4210 = vrot.lane.b32.xlu1 %v16412_v38, %s12473_s23  ;;  %v16417_v32 = vld [vmem:[#allocation6_spill] sm:$0xff] }
 0x806   : > { %11540 = vrot.lane.b32.xlu0 %v16407_v59, %s12472_s9 }
 0x807   : > { %v12002_v16 = vpop.eup %12001 }
 0x808   : > { %v3361_v60 = vpop.permute.xlu0 %3360  ;;  %v1890_v54 = vmul.f32 %v12002_v16, %v13725_v30 }
 0x809   : > { %4214 = vrot.lane.b32.xlu1 %v16413_v26, %s12473_s23  ;;  %9695 = vmatprep.mubr.msk.f32.mxu0 %vm16414_vm3, %v3361_v60  ;;  %v16419_v60 = vld [vmem:[#allocation9_spill] sm:$0xff] }
 0x80a   : > { %11550 = vrot.lane.b32.xlu0 %v16408_v62, %s12472_s9  ;;  %9452 = vmatprep.mubr.f32.mxu1 %v1890_v54 }
 0x80b   : > { %9696 = vmatmul.mubr.msk.f32.gmra.mrb[74].mxu0 %vm16415_vm6, %v3363_v57  ;;  %9453 = vmatmul.mubr.f32.gmra.mrb[44].mxu1 %v1891_v13  ;;  %v12004_v30 = vpop.eup %12003  ;;  %vm16418_vm6 = vmmov %vm16414_vm3  ;;  %v16421_v13 = vld [vmem:[#allocation12_spill] sm:$0xff] }
 0x80c   : > { %v3365_v24 = vpop.permute.xlu0 %3364  ;;  %v1893_v57 = vmul.f32 %v12004_v30, %v13728_v2 }
 0x80d   : > { %4218 = vrot.lane.b32.xlu1 %v12782_v3, %s12473_s23  ;;  %9698 = vmatprep.mubr.msk.f32.mxu0 %vm16416_vm11, %v3365_v24  ;;  %vm16420_vm11 = vmmov %vm16414_vm3  ;;  %v16423_v24 = vld [vmem:[#allocation18_spill] sm:$0xff] }
 0x80e   : > { %4196 = vrot.lane.b32.xlu0 %v16417_v32, %s12473_s23 }
 0x80f   : > { %v12006_v16 = vpop.eup %12005  ;;  %9699 = vmatmul.mubr.msk.f32.gmra.mrb[76].mxu0 %vm16414_vm3, %v3367_v61  ;;  %vm16144_vm3 = vcmask 1043456  }
 0x810   : > { %v3369_v17 = vpop.permute.xlu0 %3368  ;;  %v1892_v43 = vmul.f32 %v12006_v16, %v13731_v0  ;;  %v16422_v0 = vld [vmem:[#allocation15_spill] sm:$0xff] }
 0x811   : > { %4222 = vrot.lane.b32.xlu1 %v12792_v6, %s12473_s23  ;;  %9701 = vmatprep.mubr.msk.f32.mxu0 %vm16418_vm6, %v3369_v17  ;;  %vm16427_vm6 = vnez %v16260_v15 }
 0x812   : > { %4200 = vrot.lane.b32.xlu0 %v16419_v60, %s12473_s23  ;;  %9455 = vmatprep.mubr.f32.mxu1 %v1892_v43 }
 0x813   : > { %9456 = vmatmul.mubr.f32.gmra.mrb[46].mxu1 %v1893_v57 }
 0x814   : > { %v3371_v54 = vpop.permute.xlu0 %3370 }
 0x815   : > { %9702 = vmatmul.mubr.msk.f32.gmra.mrb[78].mxu0 %vm16420_vm11, %v3371_v54 }
 0x816   : > { %4204 = vrot.lane.b32.xlu0 %v16421_v13, %s12473_s23 }
 0x81a   : > { %4208 = vrot.lane.b32.xlu0 %v16422_v0, %s12473_s23 }
 0x81e   : > { %4212 = vrot.lane.b32.xlu0 %v16423_v24, %s12473_s23 }
 0x822   : > { %4216 = vrot.lane.b32.xlu0 %v12784_v4, %s12473_s23 }
 0x826   : > { %4220 = vrot.lane.b32.xlu0 %v12794_v7, %s12473_s23 }
 0x827   : > { %v13921_v2 = vpop.f32.mrb[64].mxu0 }
 0x828   : > { %v3534_v30 = vpop.f32.mrb[65].mxu0 }
 0x82b   : > { %v13923_v61 = vpop.f32.mrb[66].mxu0 }
 0x82c   : > { %v13925_v16 = vpop.f32.mrb[67].mxu0 }
 0x82f   : > { %v13927_v17 = vpop.f32.mrb[68].mxu0 }
 0x830   : > { %v13929_v43 = vpop.f32.mrb[69].mxu0 }
 0x833   : > { %v13931_v57 = vpop.f32.mrb[70].mxu0 }
 0x834   : > { %v13933_v54 = vpop.f32.mrb[71].mxu0 }
 0x835   : > { %v2790_v6 = vpop.xlane.xlu1 %2789 }
 0x836   : > { %v2821_v4 = vsub.f32 %v13751_v58, %v2790_v6 }
 0x838   : > { %v2837_v24 = vmul.f32 1.442695, %v2821_v4 }
 0x839   : > { %v2794_v7 = vpop.xlane.xlu1 %2793 }
 0x83a   : > { %12007 = vpow2.f32 %v2837_v24  ;;  %v2823_v63 = vsub.f32 %v13758_v5, %v2794_v7 }
 0x83c   : > { %v2841_v21 = vmul.f32 1.442695, %v2823_v63 }
 0x83d   : > { %v13936_v0 = vpop.xlane.xlu1 %2797 }
 0x83f   : > { %v13938_v13 = vpop.f32.mrb[72].mxu0 }
 0x840   : > { %v13940_v3 = vpop.f32.mrb[73].mxu0 }
 0x841   : > { %v2802_v60 = vpop.xlane.xlu1 %2801 }
 0x844   : > { %v13942_v26 = vpop.eup %12007 }
 0x845   : > { %16424 = vst [vmem:[#allocation62_spill] sm:$0xff] %v13942_v26  ;;  %v2792_v32 = vpop.xlane.xlu0 %2791  ;;  %2869 = vadd.xlane.f32.xlu0 %v13942_v26  ;;  %v13945_v38 = vpop.xlane.xlu1 %2805 }
 0x846   : > { %v2822_v39 = vsub.f32 %v13776_v20, %v2792_v32 }
 0x848   : > { %v2839_v6 = vmul.f32 1.442695, %v2822_v39  ;;  %v3613_v39 = vmul.f32 0.17677669, %v3534_v30 }
 0x849   : > { %v2796_v4 = vpop.xlane.xlu0 %2795  ;;  %v2810_v58 = vpop.xlane.xlu1 %2809 }
 0x84a   : > { %12009 = vpow2.f32 %v2839_v6  ;;  %v2824_v24 = vsub.f32 %v13794_v49, %v2796_v4  ;;  %v13961_v5 = vsel %vm16361_vm10, %v3613_v39, -1e+30 }
 0x84b   : > { %16425 = vst [vmem:[#allocation63_spill] sm:$0xff] %v13961_v5 }
 0x84c   : > { %v2843_v62 = vmul.f32 1.442695, %v2824_v24 }
 0x84d   : > { %v2800_v19 = vpop.xlane.xlu0 %2799  ;;  %v2814_v14 = vpop.xlane.xlu1 %2813 }
 0x84e   : > { %12011 = vpow2.f32 %v2843_v62  ;;  %v2826_v26 = vsub.f32 %v13800_v56, %v2800_v19  ;;  %v2827_v62 = vsub.f32 %v13771_v31, %v2802_v60  ;;  %v2831_v60 = vsub.f32 %v13790_v12, %v2810_v58 }
 0x84f   : > { %12013 = vpow2.f32 %v2841_v21 }
 0x850   : > { %v2847_v6 = vmul.f32 1.442695, %v2826_v26  ;;  %v2849_v26 = vmul.f32 1.442695, %v2827_v62 }
 0x851   : > { %v2804_v59 = vpop.xlane.xlu0 %2803  ;;  %v13950_v47 = vpop.xlane.xlu1 %2817 }
 0x852   : > { %v2828_v7 = vsub.f32 %v13817_v11, %v2804_v59  ;;  %12015 = vpow2.f32 %v2847_v6 }
 0x854   : > { %v13953_v20 = vpop.eup %12009  ;;  %v2851_v21 = vmul.f32 1.442695, %v2828_v7  ;;  %v2857_v7 = vmul.f32 1.442695, %v2831_v60 }
 0x855   : > { %2871 = vadd.xlane.f32.xlu1 %v13953_v20  ;;  %v2808_v32 = vpop.xlane.xlu0 %2807  ;;  %v2090_v49 = vpop.permute.xlu1 %2089 }
 0x856   : > { %9458 = vmatprep.subr.msk.mxu1 %vm16144_vm3, %v2090_v49  ;;  %12017 = vpow2.f32 %v2851_v21  ;;  %v2830_v30 = vsub.f32 %v13824_v23, %v2808_v32  ;;  %v2833_v23 = vsub.f32 %v13806_v8, %v2814_v14  ;;  %v2825_v32 = vsub.f32 %v13764_v27, %v13936_v0 }
 0x857   : > { %9459 = vmatpush3.msk.msra.mxu1 %vm16144_vm3, %v2090_v49  ;;  %12019 = vpow2.f32 %v2849_v26  ;;  %v2829_v8 = vsub.f32 %v13782_v28, %v13945_v38 }
 0x858   : > { %v13969_v11 = vpop.eup %12011  ;;  %v2855_v39 = vmul.f32 1.442695, %v2830_v30  ;;  %v2861_v21 = vmul.f32 1.442695, %v2833_v23  ;;  %v2845_v26 = vmul.f32 1.442695, %v2825_v32 }
 0x859   : > { %3645 = vmax.xlane.f32.xlu1 %v13961_v5  ;;  %v2812_v56 = vpop.xlane.xlu0 %2811  ;;  %v13964_v63 = vpop.permute.xlu1 %11480  ;;  %v2853_v27 = vmul.f32 1.442695, %v2829_v8 }
 0x85a   : > { %v13975_v4 = vpop.eup %12013  ;;  %12021 = vpow2.f32 %v2855_v39  ;;  %v2832_v0 = vsub.f32 %v13830_v25, %v2812_v56 }
 0x85b   : > { %4224 = vrot.lane.b32.xlu0 %v12804_v10, %s12473_s23  ;;  %12023 = vpow2.f32 %v2857_v7 }
 0x85c   : > { %v13981_v49 = vpop.eup %12015  ;;  %12025 = vpow2.f32 %v2861_v21  ;;  %v2859_v28 = vmul.f32 1.442695, %v2832_v0 }
 0x85d   : > { %2875 = vadd.xlane.f32.xlu1 %v13969_v11  ;;  %v2816_v59 = vpop.xlane.xlu0 %2815  ;;  %v13972_v19 = vpop.permute.xlu1 %11485  ;;  %12027 = vpow2.f32 %v2845_v26 }
 0x85e   : > { %12029 = vpow2.f32 %v2853_v27  ;;  %v2834_v38 = vsub.f32 %v13836_v45, %v2816_v59  ;;  %v3615_v27 = vmul.f32 0.17677669, %v13925_v16  ;;  %v3617_v16 = vmul.f32 0.17677669, %v13929_v43 }
 0x85f   : > { %12031 = vpow2.f32 %v2859_v28  ;;  %v11482_v28 = vunpack.i.l.bf16 %v13964_v63 }
 0x860   : > { %v13993_v12 = vpop.eup %12017  ;;  %v2863_v56 = vmul.f32 1.442695, %v2834_v38  ;;  %v14038_v38 = vsel %vm13014_vm1, %v3615_v27, -1e+30  ;;  %vm16429_vm1 = vcmask 1043456  }
 0x861   : > { %v2820_v24 = vpop.xlane.xlu0 %2819  ;;  %2873 = vadd.xlane.f32.xlu1 %v13975_v4  ;;  %v13978_v31 = vpop.permute.xlu1 %11495 }
 0x862   : > { %v14000_v14 = vpop.eup %12019  ;;  %v2836_v10 = vsub.f32 %v13844_v18, %v2820_v24  ;;  %12033 = vpow2.f32 %v2863_v56  ;;  %v11483_v24 = vunpack.i.h.bf16 %v13964_v63  ;;  %v3619_v63 = vmul.f32 0.17677669, %v13933_v54 }
 0x863   : > { %v3621_v54 = vmul.f32 0.17677669, %v13940_v3 }
 0x864   : > { %v14008_v39 = vpop.eup %12021  ;;  %v2867_v18 = vmul.f32 1.442695, %v2836_v10 }
 0x865   : > { %v13983_v6 = vpop.permute.xlu0 %2287  ;;  %2879 = vadd.xlane.f32.xlu1 %v13981_v49  ;;  %v13991_v62 = vpop.permute.xlu1 %11505  ;;  %16426 = vst [vmem:[#allocation64_spill] sm:$0xff] %v14008_v39 }
 0x866   : > { %9484 = vmatprep.subr.msk.mxu1 %vm16144_vm3, %v13983_v6  ;;  %v14014_v32 = vpop.eup %12023  ;;  %12035 = vpow2.f32 %v2867_v18  ;;  %vm16428_vm3 = vmmov %vm16420_vm11 }
 0x867   : > { %v14018_v5 = vpop.eup %12025 }
 0x868   : > { %v14021_v45 = vpop.eup %12027 }
 0x869   : > { %v13995_v58 = vpop.permute.xlu0 %11490  ;;  %2883 = vadd.xlane.f32.xlu1 %v13993_v12  ;;  %v14002_v30 = vpop.permute.xlu1 %11515 }
 0x86d   : > { %v14004_v60 = vpop.permute.xlu0 %11500  ;;  %2881 = vadd.xlane.f32.xlu1 %v14000_v14  ;;  %v11526_v23 = vpop.permute.xlu1 %11525 }
 0x86e   : > { %v11528_v21 = vunpack.i.h.bf16 %v11526_v23  ;;  %v11527_v26 = vunpack.i.l.bf16 %v11526_v23  ;;  %v14040_v23 = vpop.eup %12029 }
 0x86f   : > { %v14053_v56 = vpop.eup %12031 }
 0x871   : > { %v14010_v7 = vpop.permute.xlu0 %11510  ;;  %2887 = vadd.xlane.f32.xlu1 %v14008_v39  ;;  %v10736_v39 = vpack.c.bf16 %v11528_v21, %v11527_v26 }
 0x875   : > { %v11521_v22 = vpop.permute.xlu0 %11520  ;;  %2889 = vadd.xlane.f32.xlu1 %v14014_v32 }
 0x876   : > { %v11523_v8 = vunpack.i.h.bf16 %v11521_v22  ;;  %v11522_v25 = vunpack.i.l.bf16 %v11521_v22  ;;  %v2835_v22 = vsub.f32 %v13813_v48, %v13950_v47 }
 0x878   : > { %v10730_v0 = vpack.c.bf16 %v11523_v8, %v11522_v25  ;;  %v2865_v26 = vmul.f32 1.442695, %v2835_v22  ;;  %v14049_v8 = vsel %vm13026_vm12, %v3617_v16, -1e+30  ;;  %v14051_v25 = vpack.c.bf16 %v11483_v24, %v11482_v28 }
 0x879   : > { %v11531_v59 = vpop.permute.xlu0 %11530  ;;  %2893 = vadd.xlane.f32.xlu1 %v14018_v5 }
 0x87a   : > { %10732 = vmatprep.subr.msk.bf16.mxu0 %vm16427_vm6, %v10730_v0  ;;  %2877 = vadd.xlane.f32.xlu0 %v14021_v45  ;;  %v11533_v47 = vunpack.i.h.bf16 %v11531_v59  ;;  %v11532_v21 = vunpack.i.l.bf16 %v11531_v59  ;;  %12037 = vpow2.f32 %v2865_v26  ;;  %v14069_v59 = vpop.eup %12033 }
 0x87b   : > { %10735 = vmatpush3.bf16.xpose.msk.msra.mxu0 %vm16427_vm6, %v10730_v0  ;;  %v14077_v3 = vpop.eup %12035 }
 0x87c   : > { %10738 = vmatprep.subr.msk.bf16.mxu0 %vm16427_vm6, %v10736_v39  ;;  %v10742_v0 = vpack.c.bf16 %v11533_v47, %v11532_v21 }
 0x87d   : > { %v11536_v48 = vpop.permute.xlu0 %11535  ;;  %v9436_v10 = vpop.f32.mrb[32].mxu1  ;;  %3649 = vmax.xlane.f32.xlu1 %v14038_v38 }
 0x87e   : > { %v2008_v43 = vpop.f32.mrb[33].mxu1  ;;  %2885 = vadd.xlane.f32.xlu0 %v14040_v23  ;;  %v11538_v18 = vunpack.i.h.bf16 %v11536_v48  ;;  %v11537_v16 = vunpack.i.l.bf16 %v11536_v48 }
 0x87f   : > { %9460 = vmatprep.mubr.msk.f32.mxu1 %vm16420_vm11, %v2008_v43  ;;  %v11546_v43 = vpop.permute.xlu1 %11545 }
 0x880   : > { %9461 = vmatmul.mubr.msk.f32.vlgmr.msra.gmra.mrb[48].mxu1 %vm16428_vm3, %v9436_v10  ;;  %v10748_v28 = vpack.c.bf16 %v11538_v18, %v11537_v16  ;;  %v11548_v26 = vunpack.i.h.bf16 %v11546_v43 }
 0x881   : > { %9485 = vmatpush3.msk.msra.mxu1 %vm16429_vm1, %v13983_v6  ;;  %v11541_v27 = vpop.permute.xlu0 %11540  ;;  %3653 = vmax.xlane.f32.xlu1 %v14049_v8  ;;  %v14067_v6 = vsel %vm12906_vm8, %v3619_v63, -1e+30  ;;  %vm16430_vm1 = vmmov %vm16428_vm3  ;;  %v11547_v63 = vunpack.i.l.bf16 %v11546_v43 }
 0x882   : > { %10619 = vmatprep.subr.bf16.mxu1 %v14051_v25  ;;  %2891 = vadd.xlane.f32.xlu0 %v14053_v56  ;;  %v11543_v10 = vunpack.i.h.bf16 %v11541_v27  ;;  %v11542_v47 = vunpack.i.l.bf16 %v11541_v27  ;;  %vm16431_vm3 = vmmov %vm16430_vm1 }
 0x883   : > { %10741 = vmatpush3.bf16.xpose.msk.msra.mxu0 %vm16427_vm6, %v10736_v39  ;;  %v14075_v39 = vsel %vm12920_vm14, %v3621_v54, -1e+30  ;;  %v11556_v16 = vpop.permute.xlu1 %11555  ;;  %vm16432_vm11 = vmmov %vm16430_vm1 }
 0x884   : > { %10744 = vmatprep.subr.msk.bf16.mxu0 %vm16427_vm6, %v10742_v0  ;;  %v14086_v48 = vpop.eup %12037  ;;  %v10754_v21 = vpack.c.bf16 %v11543_v10, %v11542_v47  ;;  %vm16433_vm14 = vmmov %vm16430_vm1 }
 0x885   : > { %v11551_v22 = vpop.permute.xlu0 %11550  ;;  %3657 = vmax.xlane.f32.xlu1 %v14067_v6  ;;  %vm16435_vm8 = vmmov %vm16430_vm1 }
 0x886   : > { %2895 = vadd.xlane.f32.xlu0 %v14069_v59  ;;  %v11553_v27 = vunpack.i.h.bf16 %v11551_v22  ;;  %v11552_v54 = vunpack.i.l.bf16 %v11551_v22  ;;  %vm16437_vm12 = vmmov %vm16430_vm1 }
 0x887   : > { %v4199_v22 = vpop.permute.xlu1 %4198 }
 0x888   : > { %v10766_v18 = vpack.c.bf16 %v11553_v27, %v11552_v54 }
 0x889   : > { %v4197_v24 = vpop.permute.xlu0 %4196  ;;  %3661 = vmax.xlane.f32.xlu1 %v14075_v39 }
 0x88a   : > { %9818 = vmatprep.mubr.msk.f32.mxu0 %vm16430_vm1, %v4197_v24  ;;  %2899 = vadd.xlane.f32.xlu0 %v14077_v3  ;;  %v11558_v24 = vunpack.i.h.bf16 %v11556_v16 }
 0x88b   : > { %10747 = vmatpush3.bf16.xpose.msk.msra.mxu0 %vm16427_vm6, %v10742_v0  ;;  %v10760_v0 = vpack.c.bf16 %v11548_v26, %v11547_v63  ;;  %v4203_v27 = vpop.permute.xlu1 %4202 }
 0x88c   : > { %10750 = vmatprep.subr.msk.bf16.mxu0 %vm16427_vm6, %v10748_v28 }
 0x88d   : > { %v4201_v63 = vpop.permute.xlu0 %4200 }
 0x88e   : > { %2897 = vadd.xlane.f32.xlu0 %v14086_v48 }
 0x893   : > { %10753 = vmatpush3.bf16.xpose.msk.msra.mxu0 %vm16427_vm6, %v10748_v28  ;;  %v11557_v28 = vunpack.i.l.bf16 %v11556_v16  ;;  %v4207_v16 = vpop.permute.xlu1 %4206 }
 0x894   : > { %10756 = vmatprep.subr.msk.bf16.mxu0 %vm16427_vm6, %v10754_v21 }
 0x895   : > { %v10772_v10 = vpack.c.bf16 %v11558_v24, %v11557_v28  ;;  %v3614_v28 = vmul.f32 0.17677669, %v13921_v2  ;;  %v3618_v2 = vmul.f32 0.17677669, %v13927_v17 }
 0x89b   : > { %10759 = vmatpush3.bf16.xpose.msk.msra.mxu0 %vm16427_vm6, %v10754_v21 }
 0x89c   : > { %10762 = vmatprep.subr.msk.bf16.mxu0 %vm16427_vm6, %v10760_v0 }
 0x8a3   : > { %10765 = vmatpush3.bf16.xpose.msk.msra.mxu0 %vm16427_vm6, %v10760_v0 }
 0x8a4   : > { %4226 = vrot.lane.b32.xlu0 %v12802_v9, %s12473_s23  ;;  %10768 = vmatprep.subr.msk.bf16.mxu0 %vm16427_vm6, %v10766_v18  ;;  %s8425_s23 = sshll.u32 %s12534_s19, 11 }
 0x8aa   : > { %v9439_v47 = vpop.f32.mrb[34].mxu1 }
 0x8ab   : > { %v2018_v21 = vpop.f32.mrb[35].mxu1  ;;  %10771 = vmatpush3.bf16.xpose.msk.msra.mxu0 %vm16427_vm6, %v10766_v18  ;;  %v4205_v18 = vpop.permute.xlu0 %4204 }
 0x8ac   : > { %9463 = vmatprep.mubr.msk.f32.mxu1 %vm16431_vm3, %v2018_v21  ;;  %10774 = vmatprep.subr.msk.bf16.mxu0 %vm16427_vm6, %v10772_v10  ;;  %vm16434_vm3 = vmmov %vm16430_vm1 }
 0x8ad   : > { %9464 = vmatmul.mubr.msk.f32.gmra.mrb[50].mxu1 %vm16432_vm11, %v9439_v47  ;;  %vm16436_vm11 = vmmov %vm16430_vm1  ;;  %v4211_v47 = vpop.permute.xlu1 %4210 }
 0x8ae   : > { %v9442_v43 = vpop.f32.mrb[36].mxu1 }
 0x8af   : > { %v2028_v26 = vpop.f32.mrb[37].mxu1  ;;  %v4209_v24 = vpop.permute.xlu0 %4208 }
 0x8b0   : > { %9466 = vmatprep.mubr.msk.f32.mxu1 %vm16430_vm1, %v2028_v26 }
 0x8b1   : > { %9467 = vmatmul.mubr.msk.f32.gmra.mrb[52].mxu1 %vm16433_vm14, %v9442_v43  ;;  %vm16438_vm14 = vmmov %vm16430_vm1  ;;  %v14124_v43 = vsel %vm16359_vm4, %v3614_v28, -1e+30 }
 0x8b2   : > { %v9445_v0 = vpop.f32.mrb[38].mxu1 }
 0x8b3   : > { %v2038_v54 = vpop.f32.mrb[39].mxu1  ;;  %10777 = vmatpush3.bf16.xpose.msk.msra.mxu0 %vm16427_vm6, %v10772_v10  ;;  %v3616_v10 = vmul.f32 0.17677669, %v13923_v61  ;;  %v4213_v21 = vpop.permute.xlu0 %4212 }
 0x8b4   : > { %9469 = vmatprep.mubr.msk.f32.mxu1 %vm16434_vm3, %v2038_v54  ;;  %vm16439_vm3 = vmmov %vm16430_vm1 }
 0x8b5   : > { %9470 = vmatmul.mubr.msk.f32.gmra.mrb[54].mxu1 %vm16435_vm8, %v9445_v0  ;;  %vm16440_vm8 = vmmov %vm16430_vm1  ;;  %v14132_v26 = vsel %vm16362_vm9, %v3616_v10, -1e+30  ;;  %v14140_v0 = vsel %vm13031_vm15, %v3618_v2, -1e+30 }
 0x8b7   : > { %v4217_v61 = vpop.permute.xlu0 %4216 }
 0x8ba   : > { %9819 = vmatmul.mubr.msk.f32.vlgmr.msra.gmra.mrb[80].mxu0 %vm16436_vm11, %v4199_v22  ;;  %v4215_v22 = vpop.permute.xlu1 %4214  ;;  %vm16442_vm11 = vmmov %vm16430_vm1 }
 0x8bb   : > { %9821 = vmatprep.mubr.msk.f32.mxu0 %vm16437_vm12, %v4201_v63  ;;  %vm16441_vm12 = vmmov %vm16430_vm1  ;;  %v3620_v63 = vmul.f32 0.17677669, %v13931_v57  ;;  %v4221_v54 = vpop.permute.xlu0 %4220 }
 0x8bd   : > { %v14148_v57 = vsel %vm12901_vm7, %v3620_v63, -1e+30 }
 0x8be   : > { %9822 = vmatmul.mubr.msk.f32.gmra.mrb[82].mxu0 %vm16438_vm14, %v4203_v27  ;;  %vm16443_vm14 = vmmov %vm16430_vm1  ;;  %v4219_v17 = vpop.permute.xlu1 %4218  ;;  %v3622_v27 = vmul.f32 0.17677669, %v13938_v13 }
 0x8bf   : > { %9824 = vmatprep.mubr.msk.f32.mxu0 %vm16430_vm1, %v4205_v18 }
 0x8c0   : > { %v14159_v13 = vsel %vm16390_vm5, %v3622_v27, -1e+30 }
 0x8c2   : > { %9825 = vmatmul.mubr.msk.f32.gmra.mrb[84].mxu0 %vm16439_vm3, %v4207_v16  ;;  %vm16444_vm3 = vmmov %vm16430_vm1 }
 0x8c3   : > { %3647 = vmax.xlane.f32.xlu0 %v14124_v43  ;;  %9827 = vmatprep.mubr.msk.f32.mxu0 %vm16440_vm8, %v4209_v24  ;;  %vm16445_vm8 = vmmov %vm16430_vm1  ;;  %v4223_v24 = vpop.permute.xlu1 %4222 }
 0x8c6   : > { %9828 = vmatmul.mubr.msk.f32.gmra.mrb[86].mxu0 %vm16441_vm12, %v4211_v47  ;;  %vm16446_vm12 = vmmov %vm16430_vm1 }
 0x8c7   : > { %3651 = vmax.xlane.f32.xlu0 %v14132_v26  ;;  %9830 = vmatprep.mubr.msk.f32.mxu0 %vm16442_vm11, %v4213_v21  ;;  %vm16447_vm11 = vmmov %vm16430_vm1 }
 0x8ca   : > { %9831 = vmatmul.mubr.msk.f32.gmra.mrb[88].mxu0 %vm16443_vm14, %v4215_v22  ;;  %vm16448_vm14 = vmmov %vm16430_vm1 }
 0x8cb   : > { %3655 = vmax.xlane.f32.xlu0 %v14140_v0  ;;  %9833 = vmatprep.mubr.msk.f32.mxu0 %vm16430_vm1, %v4217_v61 }
 0x8ce   : > { %v9448_v18 = vpop.f32.mrb[40].mxu1  ;;  %9834 = vmatmul.mubr.msk.f32.gmra.mrb[90].mxu0 %vm16444_vm3, %v4219_v17  ;;  %vm16449_vm3 = vmmov %vm16430_vm1 }
 0x8cf   : > { %v2048_v16 = vpop.f32.mrb[41].mxu1  ;;  %3659 = vmax.xlane.f32.xlu0 %v14148_v57  ;;  %9836 = vmatprep.mubr.msk.f32.mxu0 %vm16445_vm8, %v4221_v54  ;;  %vm16450_vm8 = vmmov %vm16430_vm1 }
 0x8d0   : > { %9472 = vmatprep.mubr.msk.f32.mxu1 %vm16446_vm12, %v2048_v16  ;;  %vm16451_vm12 = vmmov %vm16430_vm1 }
 0x8d1   : > { %9473 = vmatmul.mubr.msk.f32.gmra.mrb[56].mxu1 %vm16447_vm11, %v9448_v18  ;;  %vm16452_vm11 = vmmov %vm16430_vm1 }
 0x8d2   : > { %v14154_v28 = vpop.xlane.xlu0 %2869  ;;  %9837 = vmatmul.mubr.msk.f32.gmra.mrb[92].mxu0 %vm16448_vm14, %v4223_v24  ;;  %vm16453_vm14 = vnez %v16372_v52  ;;  %v16456_v52 = vld [vmem:[#allocation47_spill] sm:$0xff] }
 0x8d3   : > { %3663 = vmax.xlane.f32.xlu0 %v14159_v13  ;;  %12039 = vrcp.f32 %v14154_v28 }
 0x8d6   : > { %v9451_v47 = vpop.f32.mrb[42].mxu1  ;;  %v4225_v10 = vpop.permute.xlu0 %4224 }
 0x8d7   : > { %v2058_v21 = vpop.f32.mrb[43].mxu1  ;;  %9839 = vmatprep.mubr.msk.f32.mxu0 %vm16430_vm1, %v4225_v10 }
 0x8d8   : > { %9475 = vmatprep.mubr.msk.f32.mxu1 %vm16449_vm3, %v2058_v21  ;;  %vm16455_vm3 = vmmov %vm16430_vm1 }
 0x8d9   : > { %9476 = vmatmul.mubr.msk.f32.gmra.mrb[58].mxu1 %vm16450_vm8, %v9451_v47  ;;  %vm16457_vm8 = vmmov %vm16430_vm1 }
 0x8de   : > { %v9697_v22 = vpop.f32.mrb[74].mxu0  ;;  %v9454_v2 = vpop.f32.mrb[44].mxu1 }
 0x8df   : > { %v3624_v61 = vmul.f32 0.17677669, %v9697_v22  ;;  %v3584_v63 = vpop.f32.mrb[75].mxu0  ;;  %v2068_v17 = vpop.f32.mrb[45].mxu1 }
 0x8e0   : > { %v3623_v54 = vmul.f32 0.17677669, %v3584_v63  ;;  %9478 = vmatprep.mubr.msk.f32.mxu1 %vm16451_vm12, %v2068_v17  ;;  %vm16458_vm12 = vnez %v16397_v33 }
 0x8e1   : > { %v14168_v27 = vsel %vm16393_vm13, %v3624_v61, -1e+30  ;;  %9479 = vmatmul.mubr.msk.f32.gmra.mrb[60].mxu1 %vm16452_vm11, %v9454_v2 }
 0x8e2   : > { %v9700_v18 = vpop.f32.mrb[76].mxu0  ;;  %3667 = vmax.xlane.f32.xlu0 %v14168_v27  ;;  %v14174_v16 = vsel %vm16367_vm2, %v3623_v54, -1e+30  ;;  %v2872_v24 = vpop.xlane.xlu1 %2871 }
 0x8e3   : > { %v3626_v47 = vmul.f32 0.17677669, %v9700_v18  ;;  %v3594_v10 = vpop.f32.mrb[77].mxu0  ;;  %3665 = vmax.xlane.f32.xlu1 %v14174_v16  ;;  %v11488_v18 = vunpack.i.h.bf16 %v13972_v19  ;;  %12041 = vrcp.f32 %v2872_v24  ;;  %v11517_v24 = vunpack.i.l.bf16 %v14002_v30 }
 0x8e4   : > { %v3625_v21 = vmul.f32 0.17677669, %v3594_v10 }
 0x8e5   : > { %v14179_v22 = vsel %vm16396_vm0, %v3626_v47, -1e+30  ;;  %v11487_v47 = vunpack.i.l.bf16 %v13972_v19  ;;  %v11493_v19 = vunpack.i.h.bf16 %v13995_v58 }
 0x8e6   : > { %3671 = vmax.xlane.f32.xlu0 %v14179_v22  ;;  %v9457_v2 = vpop.f32.mrb[46].mxu1  ;;  %v14184_v61 = vsel %vm16453_vm14, %v3625_v21, -1e+30  ;;  %v14186_v63 = vpop.xlane.xlu1 %3645 }
 0x8e7   : > { %16454 = vst [vmem:[#allocation65_spill] sm:$0xff] %v14184_v61  ;;  %3669 = vmax.xlane.f32.xlu1 %v14184_v61  ;;  %v2078_v17 = vpop.f32.mrb[47].mxu1 }
 0x8e8   : > { %9481 = vmatprep.mubr.msk.f32.mxu1 %vm16430_vm1, %v2078_v17  ;;  %v9703_v54 = vpop.f32.mrb[78].mxu0  ;;  %v16460_v17 = vld [vmem:[#allocation39_spill] sm:$0xff] }
 0x8e9   : > { %v3628_v10 = vmul.f32 0.17677669, %v9703_v54  ;;  %9482 = vmatmul.mubr.msk.f32.gmra.mrb[62].mxu1 %vm16455_vm3, %v9457_v2  ;;  %v3604_v53 = vpop.f32.mrb[79].mxu0  ;;  %vm16461_vm11 = vnez %v16460_v17  ;;  %v11492_v2 = vunpack.i.l.bf16 %v13995_v58  ;;  %v16464_v54 = vld [vmem:[#allocation49_spill] sm:$0xff]  ;;  %vm16465_vm3 = vmmov %vm16430_vm1  ;;  %v16466_v17 = vld [vmem:[#allocation48_spill] sm:$0xff] }
 0x8ea   : > { %v3627_v34 = vmul.f32 0.17677669, %v3604_v53  ;;  %9486 = vmatprep.mubr.msk.f32.mxu1 %vm16457_vm8, %v16456_v52  ;;  %v2876_v21 = vpop.xlane.xlu1 %2875  ;;  %v16463_v53 = vld [vmem:[#allocation46_spill] sm:$0xff]  ;;  %v10622_v52 = vpack.c.bf16 %v11488_v18, %v11487_v47  ;;  %vm16467_vm8 = vmmov %vm16430_vm1  ;;  %v11502_v47 = vunpack.i.l.bf16 %v14004_v60 }
 0x8eb   : > { %v14197_v61 = vsel %vm16458_vm12, %v3628_v10, -1e+30  ;;  %v10626_v58 = vpack.c.bf16 %v11493_v19, %v11492_v2  ;;  %v11507_v19 = vunpack.i.l.bf16 %v13991_v62  ;;  %v16473_v2 = vld [vmem:[#allocation52_spill] sm:$0xff] }
 0x8ec   : > { %16459 = vst [vmem:[#allocation66_spill] sm:$0xff] %v14197_v61  ;;  %3675 = vmax.xlane.f32.xlu0 %v14197_v61  ;;  %v14202_v50 = vsel %vm16461_vm11, %v3627_v34, -1e+30  ;;  %v11498_v34 = vunpack.i.h.bf16 %v13978_v31  ;;  %v11497_v61 = vunpack.i.l.bf16 %v13978_v31  ;;  %vm16469_vm11 = vmmov %vm16430_vm1  ;;  %v16471_v31 = vld [vmem:[#allocation53_spill] sm:$0xff] }
 0x8ed   : > { %16462 = vst [vmem:[#allocation47_spill] sm:$0xff] %v14202_v50  ;;  %3673 = vmax.xlane.f32.xlu1 %v14202_v50  ;;  %9487 = vmatmul.mubr.msk.f32.vlgmr.msra.gmra.mrb[48].mxu1 %vm16430_vm1, %v16463_v53  ;;  %v16468_v50 = vld [vmem:[#allocation51_spill] sm:$0xff]  ;;  %v16470_v53 = vld [vmem:[#allocation50_spill] sm:$0xff] }
 0x8ee   : > { %10621 = vmatpush3.bf16.msra.mxu1 %v14051_v25  ;;  %9489 = vmatprep.mubr.msk.f32.mxu1 %vm16465_vm3, %v16464_v54  ;;  %v2874_v10 = vpop.xlane.xlu1 %2873  ;;  %v11503_v25 = vunpack.i.h.bf16 %v14004_v60  ;;  %v10630_v54 = vpack.c.bf16 %v11498_v34, %v11497_v61  ;;  %vm16472_vm3 = vmmov %vm16430_vm1  ;;  %v16475_v60 = vld [vmem:[#allocation55_spill] sm:$0xff]  ;;  %v16477_v61 = vld [vmem:[#allocation54_spill] sm:$0xff] }
 0x8ef   : > { %10623 = vmatprep.subr.bf16.mxu1 %v10622_v52  ;;  %12043 = vrcp.f32 %v2874_v10  ;;  %v16482_v10 = vld [vmem:[#allocation59_spill] sm:$0xff] }
 0x8f0   : > { %12045 = vrcp.f32 %v2876_v21  ;;  %v16485_v21 = vld [vmem:[#allocation13_spill] sm:$0xff] }
 0x8f1   : > { %9490 = vmatmul.mubr.msk.f32.gmra.mrb[50].mxu1 %vm16467_vm8, %v16466_v17  ;;  %v11508_v17 = vunpack.i.h.bf16 %v13991_v62  ;;  %vm16476_vm8 = vmmov %vm16430_vm1  ;;  %v11512_v62 = vunpack.i.l.bf16 %v14010_v7 }
 0x8f2   : > { %10625 = vmatpush3.bf16.msra.mxu1 %v10622_v52  ;;  %9492 = vmatprep.mubr.msk.f32.mxu1 %vm16469_vm11, %v16468_v50  ;;  %v2880_v18 = vpop.xlane.xlu1 %2879  ;;  %vm16474_vm11 = vmmov %vm16430_vm1  ;;  %v10634_v52 = vpack.c.bf16 %v11503_v25, %v11502_v47  ;;  %v14238_v25 = vld [vmem:[%s16037_s2 + $0x8] sm:$0xff]  ;;  %v16478_v47 = vld [vmem:[#allocation57_spill] sm:$0xff] }
 0x8f3   : > { %10627 = vmatprep.subr.bf16.mxu1 %v10626_v58  ;;  %v10638_v34 = vpack.c.bf16 %v11508_v17, %v11507_v19  ;;  %v16484_v17 = vld [vmem:[#allocation58_spill] sm:$0xff]  ;;  %v12040_v19 = vpop.eup %12039  ;;  %12047 = vrcp.f32 %v2880_v18 }
 0x8f4   : > { %v16490_v18 = vld [vmem:[#allocation62_spill] sm:$0xff] }
 0x8f5   : > { %9493 = vmatmul.mubr.msk.f32.gmra.mrb[52].mxu1 %vm16430_vm1, %v16470_v53  ;;  %v16480_v53 = vld [vmem:[#allocation56_spill] sm:$0xff] }
 0x8f6   : > { %10629 = vmatpush3.bf16.msra.mxu1 %v10626_v58  ;;  %9495 = vmatprep.mubr.msk.f32.mxu1 %vm16472_vm3, %v16471_v31  ;;  %v2884_v50 = vpop.xlane.xlu1 %2883  ;;  %v11513_v58 = vunpack.i.h.bf16 %v14010_v7  ;;  %vm16479_vm3 = vmmov %vm16430_vm1  ;;  %v11518_v7 = vunpack.i.h.bf16 %v14002_v30 }
 0x8f7   : > { %10631 = vmatprep.subr.bf16.mxu1 %v10630_v54 }
 0x8f8   : > { %v10646_v30 = vpack.c.bf16 %v11518_v7, %v11517_v24 }
 0x8f9   : > { %9496 = vmatmul.mubr.msk.f32.gmra.mrb[54].mxu1 %vm16474_vm11, %v16473_v2  ;;  %vm16481_vm11 = vmmov %vm16430_vm1  ;;  %v16486_v2 = vld [vmem:[#allocation61_spill] sm:$0xff] }
 0x8fa   : > { %10633 = vmatpush3.bf16.msra.mxu1 %v10630_v54  ;;  %9498 = vmatprep.mubr.msk.f32.mxu1 %vm16476_vm8, %v16475_v60  ;;  %v2882_v28 = vpop.xlane.xlu1 %2881  ;;  %v10642_v54 = vpack.c.bf16 %v11513_v58, %v11512_v62  ;;  %vm16483_vm8 = vmmov %vm16430_vm1  ;;  %v12042_v60 = vpop.eup %12041  ;;  %v2917_v58 = vmul.f32 %v12040_v19, %v16490_v18  ;;  %v16491_v62 = vld [vmem:[#allocation22_spill] sm:$0xff] }
 0x8fb   : > { %10635 = vmatprep.subr.bf16.mxu1 %v10634_v52  ;;  %12049 = vrcp.f32 %v2882_v28  ;;  %v2918_v7 = vmul.f32 %v12042_v60, %v13953_v20 }
 0x8fd   : > { %9499 = vmatmul.mubr.msk.f32.gmra.mrb[56].mxu1 %vm16430_vm1, %v16477_v61  ;;  %v12044_v61 = vpop.eup %12043 }
 0x8fe   : > { %10637 = vmatpush3.bf16.msra.mxu1 %v10634_v52  ;;  %3127 = vrot.lane.b32.xlu1 %v14238_v25, %s12470_s7  ;;  %v2888_v31 = vpop.xlane.xlu1 %2887  ;;  %v12046_v24 = vpop.eup %12045 }
 0x8ff   : > { %9501 = vmatprep.mubr.msk.f32.mxu1 %vm16479_vm3, %v16478_v47  ;;  %10639 = vmatprep.subr.bf16.mxu1 %v10638_v34  ;;  %vm16487_vm3 = vmmov %vm16430_vm1  ;;  %v16492_v47 = vld [vmem:[#allocation19_spill] sm:$0xff]  ;;  %v12048_v19 = vpop.eup %12047 }
 0x900   : > { %v2922_v60 = vmul.f32 %v12048_v19, %v13981_v49 }
 0x901   : > { %9502 = vmatmul.mubr.msk.f32.gmra.mrb[58].mxu1 %vm16481_vm11, %v16480_v53  ;;  %vm16489_vm11 = vmmov %vm16430_vm1 }
 0x902   : > { %10641 = vmatpush3.bf16.msra.mxu1 %v10638_v34  ;;  %11565 = vrot.lane.b32.xlu1 %v16401_v55, %s12474_s12  ;;  %v16488_v34 = vld [vmem:[#allocation60_spill] sm:$0xff]  ;;  %v2890_v28 = vpop.xlane.xlu1 %2889 }
 0x903   : > { %11560 = vrot.lane.b32.xlu0 %v16400_v51, %s12474_s12  ;;  %9504 = vmatprep.mubr.msk.f32.mxu1 %vm16483_vm8, %v16482_v10  ;;  %vm16498_vm8 = vmmov %vm16430_vm1 }
 0x904   : > { %10643 = vmatprep.subr.bf16.mxu1 %v10642_v54 }
 0x905   : > { %9505 = vmatmul.mubr.msk.f32.gmra.mrb[60].mxu1 %vm16430_vm1, %v16484_v17  ;;  %v2920_v17 = vmul.f32 %v12046_v24, %v13969_v11  ;;  %v12050_v20 = vpop.eup %12049  ;;  %vm16517_vm1 = vcmask 1043456  }
 0x906   : > { %10645 = vmatpush3.bf16.msra.mxu1 %v10642_v54  ;;  %11575 = vrot.lane.b32.xlu1 %v16403_v41, %s12474_s12  ;;  %v2919_v54 = vmul.f32 %v12044_v61, %v13975_v4  ;;  %v16494_v4 = vld [vmem:[#allocation28_spill] sm:$0xff]  ;;  %v2923_v61 = vmul.f32 %v12050_v20, %v14000_v14  ;;  %v16495_v14 = vld [vmem:[#allocation5_spill] sm:$0xff] }
 0x907   : > { %11570 = vrot.lane.b32.xlu0 %v16485_v21, %s12474_s12  ;;  %9507 = vmatprep.mubr.msk.f32.mxu1 %vm16487_vm3, %v16486_v2  ;;  %v2878_v52 = vpop.xlane.xlu0 %2877  ;;  %vm16518_vm3 = vmmov %vm16517_vm1 }
 0x908   : > { %10647 = vmatprep.subr.bf16.mxu1 %v10646_v30  ;;  %12051 = vrcp.f32 %v2878_v52 }
 0x909   : > { %9508 = vmatmul.mubr.msk.f32.gmra.mrb[62].mxu1 %vm16489_vm11, %v16488_v34  ;;  %12053 = vrcp.f32 %v2884_v50  ;;  %v16493_v50 = vld [vmem:[#allocation25_spill] sm:$0xff]  ;;  %vm16523_vm11 = vnez %v16302_v40 }
 0x90a   : > { %10649 = vmatpush3.bf16.msra.mxu1 %v10646_v30  ;;  %11585 = vrot.lane.b32.xlu1 %v16491_v62, %s12474_s12  ;;  %v2894_v30 = vpop.xlane.xlu1 %2893 }
 0x90b   : > { %11580 = vrot.lane.b32.xlu0 %v16492_v47, %s12474_s12  ;;  %9598 = vmatprep.mubr.f32.mxu1 %v2917_v58  ;;  %v2886_v53 = vpop.xlane.xlu0 %2885 }
 0x90c   : > { %12055 = vrcp.f32 %v2886_v53 }
 0x90d   : > { %9599 = vmatmul.mubr.f32.vlgmr.msra.gmra.mrb[64].mxu1 %v2918_v7  ;;  %12057 = vrcp.f32 %v2888_v31  ;;  %v16496_v7 = vld [vmem:[#allocation64_spill] sm:$0xff] }
 0x90e   : > { %11600 = vrot.lane.b32.xlu1 %v16400_v51, %s12475_s13  ;;  %9601 = vmatprep.mubr.f32.mxu1 %v2919_v54  ;;  %12059 = vrcp.f32 %v2890_v28 }
 0x90f   : > { %11590 = vrot.lane.b32.xlu0 %v16493_v50, %s12474_s12  ;;  %v2892_v10 = vpop.xlane.xlu0 %2891 }
 0x910   : > { %12061 = vrcp.f32 %v2892_v10 }
 0x911   : > { %9602 = vmatmul.mubr.f32.gmra.mrb[66].mxu1 %v2920_v17  ;;  %12063 = vrcp.f32 %v2894_v30 }
 0x912   : > { %v12052_v2 = vpop.eup %12051  ;;  %11605 = vrot.lane.b32.xlu1 %v16401_v55, %s12475_s13 }
 0x913   : > { %11595 = vrot.lane.b32.xlu0 %v16494_v4, %s12474_s12  ;;  %v2896_v31 = vpop.xlane.xlu0 %2895  ;;  %v2921_v52 = vmul.f32 %v12052_v2, %v14021_v45  ;;  %v12054_v11 = vpop.eup %12053 }
 0x914   : > { %12065 = vrcp.f32 %v2896_v31  ;;  %v2924_v45 = vmul.f32 %v12054_v11, %v13993_v12  ;;  %v16501_v11 = vld [vmem:[#allocation6_spill] sm:$0xff] }
 0x915   : > { %9604 = vmatprep.mubr.f32.mxu1 %v2921_v52 }
 0x916   : > { %v12056_v34 = vpop.eup %12055  ;;  %11615 = vrot.lane.b32.xlu1 %v16403_v41, %s12475_s13  ;;  %9605 = vmatmul.mubr.f32.gmra.mrb[68].mxu1 %v2922_v60 }
 0x917   : > { %11610 = vrot.lane.b32.xlu0 %v16485_v21, %s12475_s13  ;;  %v2900_v18 = vpop.xlane.xlu0 %2899  ;;  %9607 = vmatprep.mubr.f32.mxu1 %v2923_v61  ;;  %v12058_v58 = vpop.eup %12057  ;;  %v2925_v49 = vmul.f32 %v12056_v34, %v14040_v23  ;;  %v16497_v23 = vld [vmem:[#allocation8_spill] sm:$0xff]  ;;  %v16503_v61 = vld [vmem:[#allocation9_spill] sm:$0xff] }
 0x918   : > { %v12060_v28 = vpop.eup %12059  ;;  %12067 = vrcp.f32 %v2900_v18  ;;  %v2926_v24 = vmul.f32 %v12058_v58, %v16496_v7  ;;  %v16504_v34 = vld [vmem:[#allocation20_spill] sm:$0xff]  ;;  %v3650_v58 = vpop.xlane.xlu1 %3649 }
 0x919   : > { %v2927_v12 = vmul.f32 %v12060_v28, %v14014_v32  ;;  %v16499_v32 = vld [vmem:[#allocation11_spill] sm:$0xff]  ;;  %v16505_v18 = vld [vmem:[#allocation12_spill] sm:$0xff] }
 0x91a   : > { %11620 = vrot.lane.b32.xlu1 %v16492_v47, %s12475_s13  ;;  %9608 = vmatmul.mubr.f32.gmra.mrb[70].mxu1 %v2924_v45  ;;  %v12062_v54 = vpop.eup %12061  ;;  %v16508_v45 = vld [vmem:[#allocation21_spill] sm:$0xff] }
 0x91b   : > { %5054 = vrot.lane.b32.xlu0 %v16495_v14, %s12476_s14  ;;  %v2898_v53 = vpop.xlane.xlu0 %2897  ;;  %9610 = vmatprep.mubr.f32.mxu1 %v2925_v49  ;;  %v12064_v10 = vpop.eup %12063  ;;  %v2928_v19 = vmul.f32 %v12062_v54, %v14053_v56  ;;  %v16500_v56 = vld [vmem:[#allocation14_spill] sm:$0xff]  ;;  %v16509_v49 = vld [vmem:[#allocation24_spill] sm:$0xff] }
 0x91c   : > { %12069 = vrcp.f32 %v2898_v53  ;;  %v2929_v30 = vmul.f32 %v12064_v10, %v14018_v5  ;;  %v3654_v28 = vpop.xlane.xlu1 %3653  ;;  %v16510_v10 = vld [vmem:[#allocation63_spill] sm:$0xff] }
 0x91e   : > { %11625 = vrot.lane.b32.xlu1 %v16491_v62, %s12475_s13  ;;  %9611 = vmatmul.mubr.f32.gmra.mrb[72].mxu1 %v2926_v24  ;;  %v12066_v20 = vpop.eup %12065  ;;  %v3681_v24 = vsub.f32 %v14049_v8, %v3654_v28  ;;  %v3679_v8 = vsub.f32 %v14038_v38, %v3650_v58 }
 0x91f   : > { %5058 = vrot.lane.b32.xlu0 %v16497_v23, %s12476_s14  ;;  %v4227_v17 = vpop.permute.xlu0 %4226  ;;  %9613 = vmatprep.mubr.f32.mxu1 %v2927_v12  ;;  %v2930_v2 = vmul.f32 %v12066_v20, %v14069_v59  ;;  %v16502_v59 = vld [vmem:[#allocation17_spill] sm:$0xff] }
 0x920   : > { %9840 = vmatmul.mubr.msk.f32.gmra.mrb[94].mxu0 %vm16498_vm8, %v4227_v17  ;;  %v3658_v53 = vpop.xlane.xlu1 %3657  ;;  %v3677_v17 = vsub.f32 %v16510_v10, %v14186_v63  ;;  %v3697_v63 = vmul.f32 1.442695, %v3679_v8 }
 0x922   : > { %11630 = vrot.lane.b32.xlu1 %v16493_v50, %s12475_s13  ;;  %9614 = vmatmul.mubr.f32.gmra.mrb[74].mxu1 %v2928_v19  ;;  %v12068_v31 = vpop.eup %12067 }
 0x923   : > { %5062 = vrot.lane.b32.xlu0 %v16499_v32, %s12476_s14  ;;  %9616 = vmatprep.mubr.f32.mxu1 %v2929_v30  ;;  %v2932_v60 = vmul.f32 %v12068_v31, %v14077_v3  ;;  %v16507_v3 = vld [vmem:[#allocation18_spill] sm:$0xff]  ;;  %v3701_v30 = vmul.f32 1.442695, %v3681_v24  ;;  %v3693_v31 = vmul.f32 1.442695, %v3677_v17 }
 0x924   : > { %v3662_v12 = vpop.xlane.xlu1 %3661 }
 0x926   : > { %v12070_v52 = vpop.eup %12069  ;;  %11635 = vrot.lane.b32.xlu1 %v16494_v4, %s12475_s13  ;;  %9617 = vmatmul.mubr.f32.gmra.mrb[76].mxu1 %v2930_v2  ;;  %v3685_v2 = vsub.f32 %v14075_v39, %v3662_v12  ;;  %v3683_v12 = vsub.f32 %v14067_v6, %v3658_v53  ;;  %s15986_s13 = scalar_lea.hbm %s16039_s4, %s8425_s23 }
 0x927   : > { %5066 = vrot.lane.b32.xlu0 %v16500_v56, %s12476_s14  ;;  %v2931_v5 = vmul.f32 %v12070_v52, %v14086_v48  ;;  %v16506_v48 = vld [vmem:[#allocation15_spill] sm:$0xff] }
 0x929   : > { %9619 = vmatprep.mubr.f32.mxu1 %v2931_v5  ;;  %v3709_v5 = vmul.f32 1.442695, %v3685_v2 }
 0x92a   : > { %5052 = vrot.lane.b32.xlu1 %v16501_v11, %s12476_s14  ;;  %9620 = vmatmul.mubr.f32.gmra.mrb[78].mxu1 %v2932_v60 }
 0x92b   : > { %5070 = vrot.lane.b32.xlu0 %v16502_v59, %s12476_s14 }
 0x92e   : > { %5056 = vrot.lane.b32.xlu1 %v16503_v61, %s12476_s14 }
 0x92f   : > { %5074 = vrot.lane.b32.xlu0 %v16504_v34, %s12476_s14 }
 0x932   : > { %5060 = vrot.lane.b32.xlu1 %v16505_v18, %s12476_s14  ;;  %v16519_v18 = vld [vmem:[#allocation27_spill] sm:$0xff] }
 0x936   : > { %5064 = vrot.lane.b32.xlu1 %v16506_v48, %s12476_s14 }
 0x93a   : > { %5068 = vrot.lane.b32.xlu1 %v16507_v3, %s12476_s14 }
 0x93e   : > { %5072 = vrot.lane.b32.xlu1 %v16508_v45, %s12476_s14 }
 0x942   : > { %5076 = vrot.lane.b32.xlu1 %v16509_v49, %s12476_s14 }
 0x950   : > { %v3648_v7 = vpop.xlane.xlu0 %3647 }
 0x951   : > { %v3678_v54 = vsub.f32 %v14124_v43, %v3648_v7 }
 0x953   : > { %v3695_v19 = vmul.f32 1.442695, %v3678_v54 }
 0x954   : > { %v3652_v20 = vpop.xlane.xlu0 %3651 }
 0x955   : > { %12071 = vpow2.f32 %v3695_v19  ;;  %v3680_v52 = vsub.f32 %v14132_v26, %v3652_v20 }
 0x956   : > { %12073 = vpow2.f32 %v3701_v30 }
 0x957   : > { %12075 = vpow2.f32 %v3693_v31  ;;  %v3699_v43 = vmul.f32 1.442695, %v3680_v52 }
 0x958   : > { %v3656_v60 = vpop.xlane.xlu0 %3655  ;;  %12077 = vpow2.f32 %v3709_v5 }
 0x959   : > { %12079 = vpow2.f32 %v3699_v43  ;;  %v3682_v7 = vsub.f32 %v14140_v0, %v3656_v60 }
 0x95a   : > { %12081 = vpow2.f32 %v3697_v63 }
 0x95b   : > { %v3703_v26 = vmul.f32 1.442695, %v3682_v7 }
 0x95c   : > { %v3660_v24 = vpop.xlane.xlu0 %3659 }
 0x95d   : > { %v3684_v54 = vsub.f32 %v14148_v57, %v3660_v24  ;;  %12083 = vpow2.f32 %v3703_v26  ;;  %v3705_v57 = vmul.f32 1.442695, %v3683_v12  ;;  %v16516_v26 = vld [vmem:[#allocation23_spill] sm:$0xff] }
 0x95f   : > { %v14338_v28 = vpop.eup %12071  ;;  %v3707_v0 = vmul.f32 1.442695, %v3684_v54 }
 0x960   : > { %3727 = vadd.xlane.f32.xlu0 %v14338_v28  ;;  %v14342_v39 = vpop.eup %12073  ;;  %v3664_v10 = vpop.xlane.xlu0 %3663 }
 0x961   : > { %v14346_v38 = vpop.eup %12075  ;;  %12085 = vpow2.f32 %v3707_v0  ;;  %v3686_v19 = vsub.f32 %v14159_v13, %v3664_v10 }
 0x962   : > { %v14349_v58 = vpop.eup %12077  ;;  %12087 = vpow2.f32 %v3705_v57 }
 0x963   : > { %16511 = vst [vmem:[#allocation46_spill] sm:$0xff] %v14349_v58  ;;  %v14353_v17 = vpop.eup %12079  ;;  %v3711_v30 = vmul.f32 1.442695, %v3686_v19 }
 0x964   : > { %3733 = vadd.xlane.f32.xlu0 %v14342_v39  ;;  %v14357_v20 = vpop.eup %12081 }
 0x965   : > { %12089 = vpow2.f32 %v3711_v30 }
 0x966   : > { %3725 = vadd.xlane.f32.xlu1 %v14346_v38 }
 0x967   : > { %v14364_v2 = vpop.eup %12083 }
 0x968   : > { %3741 = vadd.xlane.f32.xlu0 %v14349_v58 }
 0x96a   : > { %3731 = vadd.xlane.f32.xlu1 %v14353_v17 }
 0x96b   : > { %v14367_v31 = vpop.eup %12085 }
 0x96c   : > { %v14372_v13 = vpop.eup %12087 }
 0x96e   : > { %3729 = vadd.xlane.f32.xlu1 %v14357_v20 }
 0x96f   : > { %v14360_v6 = vpop.xlane.xlu0 %3667  ;;  %v14379_v43 = vpop.eup %12089 }
 0x970   : > { %v14362_v53 = vpop.xlane.xlu1 %3665  ;;  %16515 = vst [vmem:[#allocation50_spill] sm:$0xff] %v14379_v43 }
 0x972   : > { %3735 = vadd.xlane.f32.xlu1 %v14364_v2 }
 0x973   : > { %v3672_v52 = vpop.xlane.xlu0 %3671 }
 0x974   : > { %v14369_v5 = vpop.xlane.xlu1 %3669 }
 0x975   : > { %16512 = vst [vmem:[#allocation49_spill] sm:$0xff] %v14369_v5 }
 0x976   : > { %3739 = vadd.xlane.f32.xlu1 %v14367_v31 }
 0x979   : > { %v14374_v60 = vpop.xlane.xlu0 %3675 }
 0x97a   : > { %16513 = vst [vmem:[#allocation48_spill] sm:$0xff] %v14374_v60  ;;  %3737 = vadd.xlane.f32.xlu1 %v14372_v13  ;;  %v14377_v8 = vpop.xlane.xlu1 %3673 }
 0x97b   : > { %16514 = vst [vmem:[#allocation51_spill] sm:$0xff] %v14377_v8 }
 0x97d   : > { %v11561_v63 = vpop.permute.xlu0 %11560 }
 0x97e   : > { %v11563_v7 = vunpack.i.h.bf16 %v11561_v63  ;;  %v11562_v24 = vunpack.i.l.bf16 %v11561_v63  ;;  %3743 = vadd.xlane.f32.xlu1 %v14379_v43  ;;  %5078 = vrot.lane.b32.xlu0 %v16516_v26, %s12476_s14  ;;  %v3128_v54 = vpop.permute.xlu1 %3127 }
 0x97f   : > { %9622 = vmatprep.subr.msk.mxu1 %vm16517_vm1, %v3128_v54  ;;  %vm16525_vm1 = vnez %v16305_v36 }
 0x980   : > { %9623 = vmatpush3.msk.msra.mxu1 %vm16518_vm3, %v3128_v54  ;;  %v14386_v12 = vpack.c.bf16 %v11563_v7, %v11562_v24  ;;  %v3690_v7 = vsub.f32 %v14179_v22, %v3672_v52 }
 0x981   : > { %v14388_v0 = vpop.permute.xlu0 %11570 }
 0x982   : > { %v14390_v10 = vpop.permute.xlu1 %11565  ;;  %10699 = vmatprep.subr.bf16.mxu1 %v14386_v12  ;;  %v3719_v26 = vmul.f32 1.442695, %v3690_v7 }
 0x984   : > { %12091 = vpow2.f32 %v3719_v26 }
 0x985   : > { %v14393_v57 = vpop.permute.xlu0 %11580 }
 0x986   : > { %v14395_v19 = vpop.permute.xlu1 %11575 }
 0x989   : > { %v14397_v30 = vpop.permute.xlu0 %11590 }
 0x98a   : > { %v14399_v63 = vpop.permute.xlu1 %11585 }
 0x98d   : > { %v14401_v49 = vpop.permute.xlu0 %11595  ;;  %v14403_v45 = vpop.f32.mrb[80].mxu0 }
 0x98e   : > { %v11601_v24 = vpop.permute.xlu1 %11600  ;;  %v4390_v54 = vpop.f32.mrb[81].mxu0 }
 0x98f   : > { %v11603_v3 = vunpack.i.h.bf16 %v11601_v24  ;;  %v11602_v48 = vunpack.i.l.bf16 %v11601_v24  ;;  %5080 = vrot.lane.b32.xlu1 %v16519_v18, %s12476_s14  ;;  %v14429_v14 = vpop.eup %12091 }
 0x990   : > { %16522 = vst [vmem:[#allocation52_spill] sm:$0xff] %v14429_v14 }
 0x991   : > { %v10810_v61 = vpack.c.bf16 %v11603_v3, %v11602_v48  ;;  %v9823_v11 = vpop.f32.mrb[82].mxu0  ;;  %v11611_v22 = vpop.permute.xlu0 %11610 }
 0x992   : > { %v11606_v8 = vpop.permute.xlu1 %11605  ;;  %v4400_v34 = vpop.f32.mrb[83].mxu0  ;;  %v11613_v7 = vunpack.i.h.bf16 %v11611_v22  ;;  %v11612_v18 = vunpack.i.l.bf16 %v11611_v22  ;;  %v4472_v4 = vmul.f32 0.17677669, %v9823_v11 }
 0x993   : > { %v11608_v60 = vunpack.i.h.bf16 %v11606_v8  ;;  %v11607_v59 = vunpack.i.l.bf16 %v11606_v8  ;;  %5082 = vrot.lane.b32.xlu1 %v12802_v9, %s12476_s14  ;;  %10812 = vmatprep.subr.msk.bf16.mxu0 %vm16427_vm6, %v10810_v61  ;;  %v4469_v8 = vmul.f32 0.17677669, %v4390_v54 }
 0x994   : > { %10815 = vmatpush3.bf16.xpose.msk.msra.mxu0 %vm16427_vm6, %v10810_v61  ;;  %v10822_v32 = vpack.c.bf16 %v11613_v7, %v11612_v18  ;;  %v4471_v18 = vmul.f32 0.17677669, %v4400_v34 }
 0x995   : > { %v10816_v52 = vpack.c.bf16 %v11608_v60, %v11607_v59  ;;  %v9826_v24 = vpop.f32.mrb[84].mxu0  ;;  %v14422_v59 = vsel %vm16361_vm10, %v4469_v8, -1e+30 }
 0x996   : > { %v11616_v48 = vpop.permute.xlu1 %11615  ;;  %v4410_v3 = vpop.f32.mrb[85].mxu0  ;;  %16521 = vst [vmem:[#allocation53_spill] sm:$0xff] %v14422_v59  ;;  %v4474_v58 = vmul.f32 0.17677669, %v9826_v24 }
 0x997   : > { %10818 = vmatprep.subr.msk.bf16.mxu0 %vm16427_vm6, %v10816_v52  ;;  %v11618_v22 = vunpack.i.h.bf16 %v11616_v48  ;;  %v11617_v23 = vunpack.i.l.bf16 %v11616_v48  ;;  %v4473_v11 = vmul.f32 0.17677669, %v4410_v3 }
 0x999   : > { %v9829_v5 = vpop.f32.mrb[86].mxu0  ;;  %v10828_v61 = vpack.c.bf16 %v11618_v22, %v11617_v23  ;;  %v3688_v23 = vsub.f32 %v14168_v27, %v14360_v6 }
 0x99a   : > { %v11621_v9 = vpop.permute.xlu1 %11620  ;;  %v14416_v56 = vpop.f32.mrb[87].mxu0  ;;  %v4476_v6 = vmul.f32 0.17677669, %v9829_v5 }
 0x99b   : > { %v11623_v50 = vunpack.i.h.bf16 %v11621_v9  ;;  %v11622_v43 = vunpack.i.l.bf16 %v11621_v9  ;;  %v3715_v40 = vmul.f32 1.442695, %v3688_v23  ;;  %v14459_v9 = vsel %vm16525_vm1, %v4473_v11, -1e+30 }
 0x99c   : > { %10821 = vmatpush3.bf16.xpose.msk.msra.mxu0 %vm16427_vm6, %v10816_v52  ;;  %v14474_v3 = vsel %vm12901_vm7, %v4476_v6, -1e+30  ;;  %v4475_v23 = vmul.f32 0.17677669, %v14416_v56 }
 0x99d   : > { %10824 = vmatprep.subr.msk.bf16.mxu0 %vm16427_vm6, %v10822_v32  ;;  %4501 = vmax.xlane.f32.xlu0 %v14422_v59  ;;  %v9832_v60 = vpop.f32.mrb[88].mxu0  ;;  %v14438_v59 = vsel %vm16523_vm11, %v4471_v18, -1e+30  ;;  %v10834_v18 = vpack.c.bf16 %v11623_v50, %v11622_v43  ;;  %12093 = vpow2.f32 %v3715_v40  ;;  %v16594_v35 = vld [vmem:[#allocation53_spill] sm:$0xff] }
 0x99e   : > { %v11626_v26 = vpop.permute.xlu1 %11625  ;;  %v14427_v54 = vpop.f32.mrb[89].mxu0  ;;  %16524 = vst [vmem:[#allocation55_spill] sm:$0xff] %v14438_v59  ;;  %v4478_v24 = vmul.f32 0.17677669, %v9832_v60 }
 0x99f   : > { %v11628_v27 = vunpack.i.h.bf16 %v11626_v26  ;;  %v11627_v50 = vunpack.i.l.bf16 %v11626_v26 }
 0x9a1   : > { %3751 = vadd.xlane.f32.xlu0 %v14429_v14  ;;  %v9835_v52 = vpop.f32.mrb[90].mxu0  ;;  %v10840_v43 = vpack.c.bf16 %v11628_v27, %v11627_v50  ;;  %v16526_v27 = vld [vmem:[#allocation31_spill] sm:$0xff] }
 0x9a2   : > { %v11631_v7 = vpop.permute.xlu1 %11630  ;;  %v14432_v8 = vpop.f32.mrb[91].mxu0  ;;  %v4480_v5 = vmul.f32 0.17677669, %v9835_v52  ;;  %vm16527_vm3 = vnez %v16526_v27 }
 0x9a3   : > { %v14513_v50 = vsel %vm16527_vm3, %v4475_v23, -1e+30  ;;  %v4479_v56 = vmul.f32 0.17677669, %v14432_v8 }
 0x9a4   : > { %10827 = vmatpush3.bf16.xpose.msk.msra.mxu0 %vm16427_vm6, %v10822_v32  ;;  %v14449_v32 = vsel %vm16362_vm9, %v4472_v4, -1e+30 }
 0x9a5   : > { %10830 = vmatprep.subr.msk.bf16.mxu0 %vm16427_vm6, %v10828_v61  ;;  %4505 = vmax.xlane.f32.xlu0 %v14438_v59  ;;  %v9838_v34 = vpop.f32.mrb[92].mxu0  ;;  %v3687_v59 = vsub.f32 %v14174_v16, %v14362_v53  ;;  %v14466_v16 = vsel %vm13031_vm15, %v4474_v58, -1e+30  ;;  %v4470_v53 = vmul.f32 0.17677669, %v14403_v45  ;;  %v11633_v45 = vunpack.i.h.bf16 %v11631_v7 }
 0x9a6   : > { %v11636_v48 = vpop.permute.xlu1 %11635  ;;  %v14443_v14 = vpop.f32.mrb[93].mxu0  ;;  %v11632_v58 = vunpack.i.l.bf16 %v11631_v7  ;;  %v4482_v26 = vmul.f32 0.17677669, %v9838_v34  ;;  %v14496_v7 = vsel %vm16393_vm13, %v4480_v5, -1e+30 }
 0x9a7   : > { %v3713_v4 = vmul.f32 1.442695, %v3687_v59  ;;  %v14481_v40 = vsel %vm16359_vm4, %v4470_v53, -1e+30  ;;  %v14489_v59 = vpop.eup %12093  ;;  %v11638_v11 = vunpack.i.h.bf16 %v11636_v48 }
 0x9a8   : > { %v10846_v60 = vpack.c.bf16 %v11633_v45, %v11632_v58  ;;  %v14507_v34 = vsel %vm16396_vm0, %v4482_v26, -1e+30  ;;  %v14529_v45 = vsel %vm16367_vm2, %v4479_v56, -1e+30  ;;  %v16531_v58 = vld [vmem:[#allocation37_spill] sm:$0xff]  ;;  %vm16532_vm0 = vcmask 31744  }
 0x9a9   : > { %4507 = vmax.xlane.f32.xlu0 %v14449_v32  ;;  %12095 = vpow2.f32 %v3713_v4  ;;  %vm16533_vm13 = vmmov %vm16532_vm0 }
 0x9aa   : > { %v5053_v22 = vpop.permute.xlu1 %5052  ;;  %vm16535_vm7 = vmmov %vm16532_vm0 }
 0x9ab   : > { %9956 = vmatprep.mubr.msk.f32.mxu0 %vm16498_vm8, %v5053_v22  ;;  %v11637_v22 = vunpack.i.l.bf16 %v11636_v48  ;;  %v16528_v48 = vld [vmem:[#allocation33_spill] sm:$0xff]  ;;  %vm16536_vm15 = vmmov %vm16532_vm0 }
 0x9ac   : > { %10833 = vmatpush3.bf16.xpose.msk.msra.mxu0 %vm16427_vm6, %v10828_v61  ;;  %v14486_v61 = vsel %vm16390_vm5, %v4478_v24, -1e+30  ;;  %vm16529_vm8 = vnez %v16528_v48  ;;  %vm16534_vm5 = vmmov %vm16532_vm0 }
 0x9ad   : > { %10836 = vmatprep.subr.msk.bf16.mxu0 %vm16427_vm6, %v10834_v18  ;;  %4509 = vmax.xlane.f32.xlu0 %v14459_v9  ;;  %v10852_v4 = vpack.c.bf16 %v11638_v11, %v11637_v22  ;;  %vm16537_vm4 = vmmov %vm16532_vm0  ;;  %v11568_v22 = vunpack.i.h.bf16 %v14390_v10 }
 0x9ae   : > { %v5057_v53 = vpop.permute.xlu1 %5056 }
 0x9b1   : > { %4511 = vmax.xlane.f32.xlu0 %v14466_v16 }
 0x9b3   : > { %v14501_v52 = vpop.eup %12095 }
 0x9b4   : > { %10839 = vmatpush3.bf16.xpose.msk.msra.mxu0 %vm16427_vm6, %v10834_v18  ;;  %v4477_v18 = vmul.f32 0.17677669, %v14427_v54  ;;  %v5055_v54 = vpop.permute.xlu0 %5054 }
 0x9b5   : > { %10842 = vmatprep.subr.msk.bf16.mxu0 %vm16427_vm6, %v10840_v43  ;;  %4515 = vmax.xlane.f32.xlu0 %v14474_v3 }
 0x9b6   : > { %v14523_v6 = vsel %vm16529_vm8, %v4477_v18, -1e+30  ;;  %v11567_v18 = vunpack.i.l.bf16 %v14390_v10 }
 0x9b7   : > { %4503 = vmax.xlane.f32.xlu1 %v14481_v40 }
 0x9b8   : > { %v5059_v8 = vpop.permute.xlu0 %5058 }
 0x9b9   : > { %4519 = vmax.xlane.f32.xlu0 %v14486_v61 }
 0x9bb   : > { %3747 = vadd.xlane.f32.xlu1 %v14489_v59 }
 0x9bc   : > { %10845 = vmatpush3.bf16.xpose.msk.msra.mxu0 %vm16427_vm6, %v10840_v43  ;;  %v4481_v43 = vmul.f32 0.17677669, %v14443_v14  ;;  %v5063_v14 = vpop.permute.xlu0 %5062 }
 0x9bd   : > { %10848 = vmatprep.subr.msk.bf16.mxu0 %vm16427_vm6, %v10846_v60  ;;  %4523 = vmax.xlane.f32.xlu0 %v14496_v7 }
 0x9be   : > { %v14536_v5 = vsel %vm16453_vm14, %v4481_v43, -1e+30  ;;  %vm16538_vm14 = vmmov %vm16532_vm0  ;;  %v11573_v43 = vunpack.i.h.bf16 %v14388_v0 }
 0x9bf   : > { %3745 = vadd.xlane.f32.xlu1 %v14501_v52 }
 0x9c0   : > { %v5067_v23 = vpop.permute.xlu0 %5066 }
 0x9c1   : > { %4527 = vmax.xlane.f32.xlu0 %v14507_v34 }
 0x9c3   : > { %4513 = vmax.xlane.f32.xlu1 %v14513_v50 }
 0x9c4   : > { %10851 = vmatpush3.bf16.xpose.msk.msra.mxu0 %vm16427_vm6, %v10846_v60  ;;  %v5061_v60 = vpop.permute.xlu1 %5060 }
 0x9c5   : > { %10854 = vmatprep.subr.msk.bf16.mxu0 %vm16427_vm6, %v10852_v4 }
 0x9c7   : > { %4517 = vmax.xlane.f32.xlu1 %v14523_v6 }
 0x9c8   : > { %v5065_v26 = vpop.permute.xlu1 %5064 }
 0x9cb   : > { %4521 = vmax.xlane.f32.xlu1 %v14529_v45 }
 0x9cc   : > { %10857 = vmatpush3.bf16.xpose.msk.msra.mxu0 %vm16427_vm6, %v10852_v4  ;;  %v5069_v11 = vpop.permute.xlu1 %5068  ;;  %v5071_v4 = vpop.permute.xlu0 %5070 }
 0x9cf   : > { %4525 = vmax.xlane.f32.xlu1 %v14536_v5 }
 0x9d3   : > { %9957 = vmatmul.mubr.msk.f32.vlgmr.msra.gmra.mrb[96].mxu0 %vm16532_vm0, %v5055_v54  ;;  %v5073_v54 = vpop.permute.xlu1 %5072 }
 0x9d4   : > { %9959 = vmatprep.mubr.msk.f32.mxu0 %vm16533_vm13, %v5057_v53  ;;  %vm16539_vm13 = vmmov %vm16532_vm0 }
 0x9d7   : > { %9960 = vmatmul.mubr.msk.f32.gmra.mrb[98].mxu0 %vm16534_vm5, %v5059_v8  ;;  %vm16540_vm5 = vmmov %vm16532_vm0  ;;  %v11572_v8 = vunpack.i.l.bf16 %v14388_v0  ;;  %v5077_v0 = vpop.permute.xlu1 %5076 }
 0x9d8   : > { %9962 = vmatprep.mubr.msk.f32.mxu0 %vm16535_vm7, %v5061_v60  ;;  %vm16541_vm7 = vmmov %vm16532_vm0  ;;  %v10702_v60 = vpack.c.bf16 %v11568_v22, %v11567_v18 }
 0x9d9   : > { %v10706_v22 = vpack.c.bf16 %v11573_v43, %v11572_v8  ;;  %v11588_v8 = vunpack.i.h.bf16 %v14399_v63 }
 0x9db   : > { %9963 = vmatmul.mubr.msk.f32.gmra.mrb[100].mxu0 %vm16536_vm15, %v5063_v14  ;;  %vm16542_vm15 = vmmov %vm16532_vm0 }
 0x9dc   : > { %9965 = vmatprep.mubr.msk.f32.mxu0 %vm16537_vm4, %v5065_v26  ;;  %vm16543_vm4 = vmmov %vm16532_vm0  ;;  %v5075_v26 = vpop.permute.xlu0 %5074 }
 0x9df   : > { %9966 = vmatmul.mubr.msk.f32.gmra.mrb[102].mxu0 %vm16538_vm14, %v5067_v23  ;;  %v11578_v23 = vunpack.i.h.bf16 %v14395_v19  ;;  %vm16544_vm14 = vmmov %vm16532_vm0 }
 0x9e0   : > { %v9600_v56 = vpop.f32.mrb[64].mxu1  ;;  %9968 = vmatprep.mubr.msk.f32.mxu0 %vm16539_vm13, %v5069_v11  ;;  %v11577_v11 = vunpack.i.l.bf16 %v14395_v19  ;;  %vm16545_vm13 = vmmov %vm16532_vm0 }
 0x9e1   : > { %v3047_v53 = vpop.f32.mrb[65].mxu1 }
 0x9e2   : > { %9624 = vmatprep.mubr.msk.f32.mxu1 %vm16540_vm5, %v3047_v53  ;;  %vm16546_vm5 = vmmov %vm16532_vm0 }
 0x9e3   : > { %9625 = vmatmul.mubr.msk.f32.vlgmr.msra.gmra.mrb[48].mxu1 %vm16541_vm7, %v9600_v56  ;;  %9969 = vmatmul.mubr.msk.f32.gmra.mrb[104].mxu0 %vm16542_vm15, %v5071_v4  ;;  %v11583_v4 = vunpack.i.h.bf16 %v14393_v57  ;;  %v11582_v56 = vunpack.i.l.bf16 %v14393_v57  ;;  %vm16547_vm7 = vmmov %vm16532_vm0 }
 0x9e4   : > { %10701 = vmatpush3.bf16.msra.mxu1 %v14386_v12  ;;  %v9603_v10 = vpop.f32.mrb[66].mxu1  ;;  %9971 = vmatprep.mubr.msk.f32.mxu0 %vm16543_vm4, %v5073_v54  ;;  %v10710_v54 = vpack.c.bf16 %v11578_v23, %v11577_v11  ;;  %vm16548_vm15 = vmmov %vm16532_vm0  ;;  %v11593_v23 = vunpack.i.h.bf16 %v14397_v30  ;;  %v11592_v11 = vunpack.i.l.bf16 %v14397_v30 }
 0x9e5   : > { %10703 = vmatprep.subr.bf16.mxu1 %v10702_v60  ;;  %v3057_v14 = vpop.f32.mrb[67].mxu1  ;;  %vm16549_vm4 = vmmov %vm16532_vm0 }
 0x9e6   : > { %9627 = vmatprep.mubr.msk.f32.mxu1 %vm16532_vm0, %v3057_v14 }
 0x9e7   : > { %9628 = vmatmul.mubr.msk.f32.gmra.mrb[50].mxu1 %vm16544_vm14, %v9603_v10  ;;  %9972 = vmatmul.mubr.msk.f32.gmra.mrb[106].mxu0 %vm16545_vm13, %v5075_v26  ;;  %v10714_v10 = vpack.c.bf16 %v11583_v4, %v11582_v56  ;;  %vm16550_vm14 = vmmov %vm16532_vm0 }
 0x9e8   : > { %10705 = vmatpush3.bf16.msra.mxu1 %v10702_v60  ;;  %9974 = vmatprep.mubr.msk.f32.mxu0 %vm16546_vm5, %v5077_v0  ;;  %v11587_v60 = vunpack.i.l.bf16 %v14399_v63  ;;  %vm16551_vm13 = vmmov %vm16532_vm0 }
 0x9e9   : > { %10707 = vmatprep.subr.bf16.mxu1 %v10706_v22  ;;  %v9606_v12 = vpop.f32.mrb[68].mxu1  ;;  %vm16552_vm5 = vmmov %vm16532_vm0 }
 0x9ea   : > { %v3067_v18 = vpop.f32.mrb[69].mxu1 }
 0x9eb   : > { %9630 = vmatprep.mubr.msk.f32.mxu1 %vm16547_vm7, %v3067_v18 }
 0x9ec   : > { %10709 = vmatpush3.bf16.msra.mxu1 %v10706_v22 }
 0x9ed   : > { %9631 = vmatmul.mubr.msk.f32.gmra.mrb[52].mxu1 %vm16548_vm15, %v9606_v12  ;;  %10711 = vmatprep.subr.bf16.mxu1 %v10710_v54  ;;  %v3728_v19 = vpop.xlane.xlu0 %3727  ;;  %v9609_v53 = vpop.f32.mrb[70].mxu1  ;;  %v10718_v12 = vpack.c.bf16 %v11588_v8, %v11587_v60  ;;  %v11597_v8 = vunpack.i.l.bf16 %v14401_v49  ;;  %vm16555_vm15 = vmmov %vm16532_vm0 }
 0x9ee   : > { %v3077_v43 = vpop.f32.mrb[71].mxu1 }
 0x9ef   : > { %9633 = vmatprep.mubr.msk.f32.mxu1 %vm16549_vm4, %v3077_v43  ;;  %v11598_v43 = vunpack.i.h.bf16 %v14401_v49  ;;  %vm16556_vm4 = vmmov %vm16532_vm0 }
 0x9f0   : > { %10713 = vmatpush3.bf16.msra.mxu1 %v10710_v54 }
 0x9f1   : > { %9634 = vmatmul.mubr.msk.f32.gmra.mrb[54].mxu1 %vm16532_vm0, %v9609_v53  ;;  %10715 = vmatprep.subr.bf16.mxu1 %v10714_v10  ;;  %v3734_v57 = vpop.xlane.xlu0 %3733  ;;  %v9612_v14 = vpop.f32.mrb[72].mxu1 }
 0x9f2   : > { %v3087_v26 = vpop.f32.mrb[73].mxu1 }
 0x9f3   : > { %v3726_v0 = vpop.xlane.xlu1 %3725  ;;  %9636 = vmatprep.mubr.msk.f32.mxu1 %vm16550_vm14, %v3087_v26  ;;  %v9841_v22 = vpop.f32.mrb[94].mxu0  ;;  %v10722_v26 = vpack.c.bf16 %v11593_v23, %v11592_v11  ;;  %vm16557_vm14 = vmmov %vm16532_vm0 }
 0x9f4   : > { %12097 = vrcp.f32 %v3726_v0  ;;  %10717 = vmatpush3.bf16.msra.mxu1 %v10714_v10  ;;  %v4484_v63 = vmul.f32 0.17677669, %v9841_v22  ;;  %v4460_v18 = vpop.f32.mrb[95].mxu0  ;;  %v16553_v10 = vld [vmem:[#allocation39_spill] sm:$0xff] }
 0x9f5   : > { %9637 = vmatmul.mubr.msk.f32.gmra.mrb[56].mxu1 %vm16551_vm13, %v9612_v14  ;;  %10719 = vmatprep.subr.bf16.mxu1 %v10718_v12  ;;  %v4483_v4 = vmul.f32 0.17677669, %v4460_v18  ;;  %v3742_v56 = vpop.xlane.xlu0 %3741  ;;  %v9615_v54 = vpop.f32.mrb[74].mxu1  ;;  %12099 = vrcp.f32 %v3728_v19  ;;  %vm16554_vm7 = vnez %v16553_v10  ;;  %vm16558_vm13 = vmmov %vm16532_vm0 }
 0x9f6   : > { %v3097_v53 = vpop.f32.mrb[75].mxu1  ;;  %v14576_v30 = vsel %vm16458_vm12, %v4484_v63, -1e+30  ;;  %12101 = vrcp.f32 %v3734_v57  ;;  %v10726_v63 = vpack.c.bf16 %v11598_v43, %v11597_v8 }
 0x9f7   : > { %v3732_v60 = vpop.xlane.xlu1 %3731  ;;  %4531 = vmax.xlane.f32.xlu0 %v14576_v30  ;;  %9639 = vmatprep.mubr.msk.f32.mxu1 %vm16552_vm5, %v3097_v53  ;;  %v14584_v14 = vsel %vm16554_vm7, %v4483_v4, -1e+30  ;;  %vm16559_vm5 = vmmov %vm16532_vm0 }
 0x9f8   : > { %10721 = vmatpush3.bf16.msra.mxu1 %v10718_v12  ;;  %4529 = vmax.xlane.f32.xlu1 %v14584_v14  ;;  %12103 = vrcp.f32 %v3732_v60  ;;  %v3982_v60 = vrot.slane %v14238_v25, 4 }
 0x9f9   : > { %9640 = vmatmul.mubr.msk.f32.gmra.mrb[58].mxu1 %vm16555_vm15, %v9615_v54  ;;  %10723 = vmatprep.subr.bf16.mxu1 %v10722_v26  ;;  %v5079_v19 = vpop.permute.xlu0 %5078  ;;  %v9618_v0 = vpop.f32.mrb[76].mxu1  ;;  %vm16560_vm15 = vmmov %vm16532_vm0 }
 0x9fa   : > { %v3107_v49 = vpop.f32.mrb[77].mxu1  ;;  %9975 = vmatmul.mubr.msk.f32.gmra.mrb[108].mxu0 %vm16556_vm4, %v5079_v19  ;;  %vm16561_vm4 = vmmov %vm16532_vm0 }
 0x9fb   : > { %v3730_v22 = vpop.xlane.xlu1 %3729  ;;  %9642 = vmatprep.mubr.msk.f32.mxu1 %vm16532_vm0, %v3107_v49  ;;  %vm16587_vm0 = vcmask 1043456  }
 0x9fc   : > { %12105 = vrcp.f32 %v3730_v22  ;;  %10725 = vmatpush3.bf16.msra.mxu1 %v10722_v26 }
 0x9fd   : > { %9643 = vmatmul.mubr.msk.f32.gmra.mrb[60].mxu1 %vm16557_vm14, %v9618_v0  ;;  %10727 = vmatprep.subr.bf16.mxu1 %v10726_v63  ;;  %v9621_v23 = vpop.f32.mrb[78].mxu1  ;;  %vm16588_vm14 = vmmov %vm16587_vm0 }
 0x9fe   : > { %v12098_v11 = vpop.eup %12097  ;;  %v3117_v12 = vpop.f32.mrb[79].mxu1 }
 0x9ff   : > { %v3736_v18 = vpop.xlane.xlu1 %3735  ;;  %9645 = vmatprep.mubr.msk.f32.mxu1 %vm16558_vm13, %v3117_v12  ;;  %v3773_v57 = vmul.f32 %v12098_v11, %v14346_v38  ;;  %v12100_v4 = vpop.eup %12099  ;;  %v16562_v12 = vld [vmem:[#allocation46_spill] sm:$0xff]  ;;  %vm16598_vm13 = vnez %v16531_v58 }
 0xa00   : > { %12107 = vrcp.f32 %v3736_v18  ;;  %10729 = vmatpush3.bf16.msra.mxu1 %v10726_v63  ;;  %v3774_v53 = vmul.f32 %v12100_v4, %v14338_v28  ;;  %v12102_v43 = vpop.eup %12101 }
 0xa01   : > { %9646 = vmatmul.mubr.msk.f32.gmra.mrb[62].mxu1 %vm16559_vm5, %v9621_v23  ;;  %v3777_v49 = vmul.f32 %v12102_v43, %v14342_v39  ;;  %v16568_v43 = vld [vmem:[#allocation11_spill] sm:$0xff]  ;;  %vm16600_vm5 = vnez %v16358_v29 }
 0xa02   : > { %9736 = vmatprep.mubr.f32.mxu1 %v3773_v57  ;;  %v12104_v8 = vpop.eup %12103  ;;  %v16563_v57 = vld [vmem:[#allocation50_spill] sm:$0xff] }
 0xa03   : > { %v3740_v54 = vpop.xlane.xlu1 %3739  ;;  %v3776_v38 = vmul.f32 %v12104_v8, %v14353_v17  ;;  %v16569_v8 = vld [vmem:[#allocation14_spill] sm:$0xff] }
 0xa04   : > { %12109 = vrcp.f32 %v3740_v54  ;;  %v16564_v54 = vld [vmem:[#allocation25_spill] sm:$0xff] }
 0xa05   : > { %9737 = vmatmul.mubr.f32.vlgmr.msra.gmra.mrb[80].mxu1 %v3774_v53  ;;  %v16567_v53 = vld [vmem:[#allocation8_spill] sm:$0xff] }
 0xa06   : > { %v12106_v26 = vpop.eup %12105 }
 0xa07   : > { %v3738_v19 = vpop.xlane.xlu1 %3737  ;;  %v3775_v0 = vmul.f32 %v12106_v26, %v14357_v20  ;;  %v16571_v26 = vld [vmem:[#allocation65_spill] sm:$0xff] }
 0xa08   : > { %12111 = vrcp.f32 %v3738_v19 }
 0xa09   : > { %12113 = vrcp.f32 %v3742_v56  ;;  %3983 = vrot.lane.b32.xlu1 %v3982_v60, %s12470_s7  ;;  %9739 = vmatprep.mubr.f32.mxu1 %v3775_v0  ;;  %v16570_v60 = vld [vmem:[#allocation49_spill] sm:$0xff] }
 0xa0a   : > { %v12108_v28 = vpop.eup %12107  ;;  %9740 = vmatmul.mubr.f32.gmra.mrb[82].mxu1 %v3776_v38  ;;  %v3689_v19 = vsub.f32 %v16571_v26, %v16570_v60  ;;  %v16572_v0 = vld [vmem:[#allocation17_spill] sm:$0xff] }
 0xa0b   : > { %v3744_v22 = vpop.xlane.xlu1 %3743  ;;  %9742 = vmatprep.mubr.f32.mxu1 %v3777_v49  ;;  %v3778_v25 = vmul.f32 %v12108_v28, %v14364_v2  ;;  %v16573_v49 = vld [vmem:[#allocation48_spill] sm:$0xff]  ;;  %v16574_v28 = vld [vmem:[#allocation66_spill] sm:$0xff] }
 0xa0c   : > { %12115 = vrcp.f32 %v3744_v22  ;;  %v3717_v38 = vmul.f32 1.442695, %v3689_v19  ;;  %v3692_v22 = vsub.f32 %v16574_v28, %v16573_v49 }
 0xa0d   : > { %11640 = vrot.lane.b32.xlu0 %v16400_v51, %s12477_s20  ;;  %11645 = vrot.lane.b32.xlu1 %v16401_v55, %s12477_s20 }
 0xa0e   : > { %9743 = vmatmul.mubr.f32.gmra.mrb[84].mxu1 %v3778_v25  ;;  %v12110_v20 = vpop.eup %12109  ;;  %v16575_v25 = vld [vmem:[#allocation20_spill] sm:$0xff]  ;;  %12117 = vpow2.f32 %v3717_v38 }
 0xa0f   : > { %v5081_v17 = vpop.permute.xlu1 %5080  ;;  %v3780_v23 = vmul.f32 %v12110_v20, %v14367_v31  ;;  %v16566_v31 = vld [vmem:[#allocation5_spill] sm:$0xff]  ;;  %v16576_v20 = vld [vmem:[#allocation51_spill] sm:$0xff] }
 0xa10   : > { %9977 = vmatprep.mubr.msk.f32.mxu0 %vm16560_vm15, %v5081_v17  ;;  %v3723_v17 = vmul.f32 1.442695, %v3692_v22  ;;  %vm16601_vm15 = vnez %v16308_v42 }
 0xa11   : > { %11650 = vrot.lane.b32.xlu0 %v16485_v21, %s12477_s20  ;;  %11655 = vrot.lane.b32.xlu1 %v16403_v41, %s12477_s20 }
 0xa12   : > { %v12112_v39 = vpop.eup %12111  ;;  %12119 = vpow2.f32 %v3723_v17 }
 0xa13   : > { %v12114_v56 = vpop.eup %12113  ;;  %v5083_v63 = vpop.permute.xlu1 %5082  ;;  %v3779_v2 = vmul.f32 %v12112_v39, %v14372_v13  ;;  %v16565_v13 = vld [vmem:[#allocation28_spill] sm:$0xff]  ;;  %v16577_v39 = vld [vmem:[#allocation47_spill] sm:$0xff] }
 0xa14   : > { %9978 = vmatmul.mubr.msk.f32.gmra.mrb[110].mxu0 %vm16561_vm4, %v5083_v63  ;;  %v3781_v18 = vmul.f32 %v12114_v56, %v16562_v12  ;;  %v3691_v56 = vsub.f32 %v16577_v39, %v16576_v20  ;;  %v16578_v63 = vld [vmem:[#allocation23_spill] sm:$0xff]  ;;  %vm16602_vm4 = vnez %v16263_v44 }
 0xa15   : > { %11660 = vrot.lane.b32.xlu0 %v16492_v47, %s12477_s20  ;;  %11665 = vrot.lane.b32.xlu1 %v16491_v62, %s12477_s20 }
 0xa16   : > { %v12116_v11 = vpop.eup %12115  ;;  %9745 = vmatprep.mubr.f32.mxu1 %v3779_v2  ;;  %v3721_v2 = vmul.f32 1.442695, %v3691_v56 }
 0xa17   : > { %9746 = vmatmul.mubr.f32.gmra.mrb[86].mxu1 %v3780_v23  ;;  %v3782_v4 = vmul.f32 %v12116_v11, %v16563_v57 }
 0xa18   : > { %9748 = vmatprep.mubr.f32.mxu1 %v3781_v18  ;;  %12121 = vpow2.f32 %v3721_v2  ;;  %v14643_v23 = vpop.eup %12117  ;;  %v16580_v2 = vld [vmem:[#allocation9_spill] sm:$0xff] }
 0xa19   : > { %11670 = vrot.lane.b32.xlu0 %v16564_v54, %s12477_s20  ;;  %11680 = vrot.lane.b32.xlu1 %v16400_v51, %s12478_s22 }
 0xa1b   : > { %9749 = vmatmul.mubr.f32.gmra.mrb[88].mxu1 %v3782_v4 }
 0xa1c   : > { %v14648_v12 = vpop.eup %12119 }
 0xa1d   : > { %11675 = vrot.lane.b32.xlu0 %v16565_v13, %s12477_s20  ;;  %11685 = vrot.lane.b32.xlu1 %v16401_v55, %s12478_s22  ;;  %s12485_s20 = smov [#allocation2]  }
 0xa21   : > { %11690 = vrot.lane.b32.xlu0 %v16485_v21, %s12478_s22  ;;  %11695 = vrot.lane.b32.xlu1 %v16403_v41, %s12478_s22 }
 0xa22   : > { %v14653_v4 = vpop.eup %12121 }
 0xa25   : > { %5910 = vrot.lane.b32.xlu0 %v16566_v31, %s12479_s28 }
 0xa29   : > { %5914 = vrot.lane.b32.xlu0 %v16567_v53, %s12479_s28 }
 0xa2a   : > { %v14651_v57 = vpop.xlane.xlu0 %4501 }
 0xa2d   : > { %5918 = vrot.lane.b32.xlu0 %v16568_v43, %s12479_s28 }
 0xa2e   : > { %v14656_v26 = vpop.xlane.xlu0 %3751 }
 0xa31   : > { %5922 = vrot.lane.b32.xlu0 %v16569_v8, %s12479_s28  ;;  %v16585_v8 = vld [vmem:[#allocation24_spill] sm:$0xff] }
 0xa32   : > { %v14658_v38 = vpop.xlane.xlu0 %4505 }
 0xa35   : > { %5926 = vrot.lane.b32.xlu0 %v16572_v0, %s12479_s28 }
 0xa36   : > { %v14662_v17 = vpop.xlane.xlu0 %4507 }
 0xa39   : > { %5930 = vrot.lane.b32.xlu0 %v16575_v25, %s12479_s28 }
 0xa3a   : > { %v4510_v20 = vpop.xlane.xlu0 %4509 }
 0xa3d   : > { %5934 = vrot.lane.b32.xlu0 %v16578_v63, %s12479_s28 }
 0xa3e   : > { %v14670_v39 = vpop.xlane.xlu0 %4511 }
 0xa44   : > { %v14645_v11 = vpop.xlane.xlu1 %4503 }
 0xa45   : > { %3749 = vadd.xlane.f32.xlu1 %v14643_v23  ;;  %v4534_v21 = vsub.f32 %v14481_v40, %v14645_v11 }
 0xa48   : > { %v3748_v18 = vpop.xlane.xlu1 %3747 }
 0xa49   : > { %3755 = vadd.xlane.f32.xlu1 %v14648_v12  ;;  %12123 = vrcp.f32 %v3748_v18 }
 0xa4c   : > { %v3746_v60 = vpop.xlane.xlu1 %3745 }
 0xa4d   : > { %12125 = vrcp.f32 %v3746_v60  ;;  %3753 = vadd.xlane.f32.xlu1 %v14653_v4 }
 0xa50   : > { %v14678_v56 = vpop.xlane.xlu1 %4513 }
 0xa53   : > { %v12124_v19 = vpop.eup %12123 }
 0xa54   : > { %v3784_v22 = vmul.f32 %v12124_v19, %v14489_v59  ;;  %v14674_v59 = vpop.xlane.xlu0 %4515  ;;  %v4518_v60 = vpop.xlane.xlu1 %4517  ;;  %v16581_v19 = vld [vmem:[#allocation12_spill] sm:$0xff] }
 0xa57   : > { %v12126_v49 = vpop.eup %12125 }
 0xa58   : > { %v3783_v28 = vmul.f32 %v12126_v49, %v14501_v52  ;;  %v16579_v52 = vld [vmem:[#allocation6_spill] sm:$0xff]  ;;  %v14682_v18 = vpop.xlane.xlu0 %4519 }
 0xa5a   : > { %9751 = vmatprep.mubr.f32.mxu1 %v3783_v28  ;;  %v16582_v28 = vld [vmem:[#allocation15_spill] sm:$0xff] }
 0xa5b   : > { %9752 = vmatmul.mubr.f32.gmra.mrb[90].mxu1 %v3784_v22  ;;  %v14690_v22 = vpop.xlane.xlu1 %4521 }
 0xa5c   : > { %v14686_v49 = vpop.xlane.xlu0 %4523 }
 0xa5e   : > { %11700 = vrot.lane.b32.xlu1 %v16492_v47, %s12478_s22 }
 0xa5f   : > { %v14696_v25 = vpop.xlane.xlu1 %4525 }
 0xa60   : > { %v14694_v63 = vpop.xlane.xlu0 %4527 }
 0xa62   : > { %11705 = vrot.lane.b32.xlu1 %v16491_v62, %s12478_s22 }
 0xa66   : > { %11710 = vrot.lane.b32.xlu1 %v16564_v54, %s12478_s22 }
 0xa6a   : > { %11715 = vrot.lane.b32.xlu1 %v16565_v13, %s12478_s22  ;;  %s12399_s22 = sshll.u32 %s12485_s20, 4  ;;  %s12400_s22 = int_to_ptr.vmem [resolvable:$false] %s12399_s22 }
 0xa6e   : > { %5908 = vrot.lane.b32.xlu1 %v16579_v52, %s12479_s28  ;;  %v16583_v52 = vld [vmem:[#allocation18_spill] sm:$0xff] }
 0xa72   : > { %5912 = vrot.lane.b32.xlu1 %v16580_v2, %s12479_s28  ;;  %v16584_v2 = vld [vmem:[#allocation21_spill] sm:$0xff] }
 0xa76   : > { %5916 = vrot.lane.b32.xlu1 %v16581_v19, %s12479_s28 }
 0xa7a   : > { %5920 = vrot.lane.b32.xlu1 %v16582_v28, %s12479_s28 }
 0xa7e   : > { %5924 = vrot.lane.b32.xlu1 %v16583_v52, %s12479_s28  ;;  %v16586_v52 = vld [vmem:[#allocation27_spill] sm:$0xff] }
 0xa82   : > { %5928 = vrot.lane.b32.xlu1 %v16584_v2, %s12479_s28 }
 0xa84   : > { %v14700_v0 = vpop.xlane.xlu0 %4531 }
 0xa85   : > { %v14702_v19 = vpop.xlane.xlu1 %4529 }
 0xa86   : > { %5932 = vrot.lane.b32.xlu1 %v16585_v8, %s12479_s28  ;;  %v16589_v8 = vld [vmem:[#allocation26_spill] sm:$0xff] }
 0xa88   : > { %v11641_v28 = vpop.permute.xlu0 %11640 }
 0xa89   : > { %v11643_v43 = vunpack.i.h.bf16 %v11641_v28  ;;  %v11642_v53 = vunpack.i.l.bf16 %v11641_v28  ;;  %v3984_v31 = vpop.permute.xlu1 %3983 }
 0xa8a   : > { %5936 = vrot.lane.b32.xlu1 %v16586_v52, %s12479_s28  ;;  %9760 = vmatprep.subr.msk.mxu1 %vm16587_vm0, %v3984_v31  ;;  %vm16603_vm0 = vcmask 31744  }
 0xa8b   : > { %9761 = vmatpush3.msk.msra.mxu1 %vm16588_vm14, %v3984_v31  ;;  %v14710_v54 = vpack.c.bf16 %v11643_v43, %v11642_v53  ;;  %vm16604_vm14 = vmmov %vm16603_vm0 }
 0xa8c   : > { %v14712_v2 = vpop.permute.xlu0 %11650 }
 0xa8d   : > { %v14714_v13 = vpop.permute.xlu1 %11645  ;;  %10779 = vmatprep.subr.bf16.mxu1 %v14710_v54 }
 0xa8e   : > { %5938 = vrot.lane.b32.xlu1 %v16589_v8, %s12479_s28 }
 0xa90   : > { %v14719_v28 = vpop.permute.xlu0 %11660 }
 0xa91   : > { %16590 = vst [vmem:[#allocation54_spill] sm:$0xff] %v14719_v28  ;;  %v14721_v41 = vpop.permute.xlu1 %11655 }
 0xa94   : > { %v14723_v52 = vpop.permute.xlu0 %11670 }
 0xa95   : > { %16591 = vst [vmem:[#allocation57_spill] sm:$0xff] %v14723_v52  ;;  %v14725_v62 = vpop.permute.xlu1 %11665  ;;  %v4533_v52 = vsub.f32 %v16594_v35, %v14651_v57  ;;  %v4541_v35 = vsub.f32 %v14523_v6, %v4518_v60 }
 0xa96   : > { %16592 = vst [vmem:[#allocation56_spill] sm:$0xff] %v14725_v62 }
 0xa98   : > { %v14727_v31 = vpop.permute.xlu0 %11675 }
 0xa99   : > { %16593 = vst [vmem:[#allocation59_spill] sm:$0xff] %v14727_v31  ;;  %v11681_v53 = vpop.permute.xlu1 %11680  ;;  %v4537_v31 = vsub.f32 %v14459_v9, %v4510_v20 }
 0xa9a   : > { %v11683_v43 = vunpack.i.h.bf16 %v11681_v53  ;;  %v11682_v47 = vunpack.i.l.bf16 %v11681_v53  ;;  %v4551_v53 = vmul.f32 1.442695, %v4534_v21 }
 0xa9b   : > { %v4557_v11 = vmul.f32 1.442695, %v4537_v31 }
 0xa9c   : > { %v10890_v55 = vpack.c.bf16 %v11683_v43, %v11682_v47  ;;  %v11691_v28 = vpop.permute.xlu0 %11690  ;;  %v4536_v47 = vsub.f32 %v14449_v32, %v14662_v17  ;;  %12127 = vpow2.f32 %v4551_v53  ;;  %v4546_v32 = vsub.f32 %v14507_v34, %v14694_v63 }
 0xa9d   : > { %v11686_v51 = vpop.permute.xlu1 %11685  ;;  %v11693_v1 = vunpack.i.h.bf16 %v11691_v28  ;;  %v11692_v40 = vunpack.i.l.bf16 %v11691_v28  ;;  %v4565_v17 = vmul.f32 1.442695, %v4541_v35 }
 0xa9e   : > { %v11688_v33 = vunpack.i.h.bf16 %v11686_v51  ;;  %v11687_v8 = vunpack.i.l.bf16 %v11686_v51  ;;  %10892 = vmatprep.subr.msk.bf16.mxu0 %vm16427_vm6, %v10890_v55  ;;  %v4549_v51 = vmul.f32 1.442695, %v4533_v52  ;;  %v4555_v21 = vmul.f32 1.442695, %v4536_v47 }
 0xa9f   : > { %10895 = vmatpush3.bf16.xpose.msk.msra.mxu0 %vm16427_vm6, %v10890_v55  ;;  %v10902_v57 = vpack.c.bf16 %v11693_v1, %v11692_v40  ;;  %v16595_v55 = vld [vmem:[#allocation55_spill] sm:$0xff]  ;;  %v4575_v63 = vmul.f32 1.442695, %v4546_v32  ;;  %v4540_v47 = vsub.f32 %v14474_v3, %v14674_v59  ;;  %v4539_v59 = vsub.f32 %v14513_v50, %v14678_v56 }
 0xaa0   : > { %v10896_v62 = vpack.c.bf16 %v11688_v33, %v11687_v8  ;;  %12129 = vpow2.f32 %v4549_v51  ;;  %v4535_v33 = vsub.f32 %v16595_v55, %v14658_v38 }
 0xaa1   : > { %v11696_v9 = vpop.permute.xlu1 %11695  ;;  %12131 = vpow2.f32 %v4557_v11  ;;  %v4563_v3 = vmul.f32 1.442695, %v4540_v47  ;;  %v4545_v47 = vsub.f32 %v14536_v5, %v14696_v25  ;;  %v4547_v5 = vsub.f32 %v14584_v14, %v14702_v19 }
 0xaa2   : > { %10898 = vmatprep.subr.msk.bf16.mxu0 %vm16427_vm6, %v10896_v62  ;;  %v11698_v1 = vunpack.i.h.bf16 %v11696_v9  ;;  %v11697_v6 = vunpack.i.l.bf16 %v11696_v9  ;;  %v4553_v28 = vmul.f32 1.442695, %v4535_v33  ;;  %12133 = vpow2.f32 %v4555_v21 }
 0xaa3   : > { %12135 = vpow2.f32 %v4565_v17  ;;  %v4542_v9 = vsub.f32 %v14486_v61, %v14682_v18  ;;  %v4544_v61 = vsub.f32 %v14496_v7, %v14686_v49 }
 0xaa4   : > { %v10908_v53 = vpack.c.bf16 %v11698_v1, %v11697_v6  ;;  %12137 = vpow2.f32 %v4553_v28 }
 0xaa5   : > { %12139 = vpow2.f32 %v4575_v63  ;;  %v4567_v1 = vmul.f32 1.442695, %v4542_v9  ;;  %v4571_v63 = vmul.f32 1.442695, %v4544_v61 }
 0xaa6   : > { %v14743_v43 = vpop.f32.mrb[96].mxu0  ;;  %v14760_v31 = vpop.eup %12127 }
 0xaa7   : > { %v5246_v8 = vpop.f32.mrb[97].mxu0  ;;  %10901 = vmatpush3.bf16.xpose.msk.msra.mxu0 %vm16427_vm6, %v10896_v62  ;;  %v4538_v62 = vsub.f32 %v14466_v16, %v14670_v39 }
 0xaa8   : > { %v5325_v20 = vmul.f32 0.17677669, %v5246_v8  ;;  %10904 = vmatprep.subr.msk.bf16.mxu0 %vm16427_vm6, %v10902_v57  ;;  %v4561_v8 = vmul.f32 1.442695, %v4539_v59  ;;  %v4548_v59 = vsub.f32 %v14576_v30, %v14700_v0  ;;  %v4577_v30 = vmul.f32 1.442695, %v4547_v5 }
 0xaa9   : > { %v4559_v51 = vmul.f32 1.442695, %v4538_v62 }
 0xaaa   : > { %v9961_v52 = vpop.f32.mrb[98].mxu0  ;;  %v14755_v38 = vsel %vm16361_vm10, %v5325_v20, -1e+30  ;;  %v14771_v16 = vpop.eup %12129 }
 0xaab   : > { %5357 = vmax.xlane.f32.xlu0 %v14755_v38  ;;  %v5256_v34 = vpop.f32.mrb[99].mxu0  ;;  %v14773_v39 = vpop.eup %12131  ;;  %12141 = vpow2.f32 %v4559_v51  ;;  %v5328_v28 = vmul.f32 0.17677669, %v9961_v52 }
 0xaac   : > { %v14781_v55 = vpop.eup %12133  ;;  %12143 = vpow2.f32 %v4563_v3  ;;  %v5327_v17 = vmul.f32 0.17677669, %v5256_v34 }
 0xaad   : > { %v14783_v33 = vpop.eup %12135  ;;  %12145 = vpow2.f32 %v4561_v8  ;;  %v14818_v52 = vsel %vm16362_vm9, %v5328_v28, -1e+30  ;;  %v4579_v8 = vmul.f32 1.442695, %v4548_v59 }
 0xaae   : > { %v14762_v40 = vpop.f32.mrb[100].mxu0  ;;  %v14793_v50 = vpop.eup %12137  ;;  %v14808_v34 = vsel %vm16523_vm11, %v5327_v17, -1e+30  ;;  %12147 = vpow2.f32 %v4567_v1 }
 0xaaf   : > { %4583 = vadd.xlane.f32.xlu0 %v14760_v31  ;;  %v5266_v11 = vpop.f32.mrb[101].mxu0  ;;  %10907 = vmatpush3.bf16.xpose.msk.msra.mxu0 %vm16427_vm6, %v10902_v57  ;;  %v14795_v56 = vpop.eup %12139  ;;  %12149 = vpow2.f32 %v4571_v63 }
 0xab0   : > { %10910 = vmatprep.subr.msk.bf16.mxu0 %vm16427_vm6, %v10908_v53  ;;  %v5329_v49 = vmul.f32 0.17677669, %v5266_v11  ;;  %v4573_v11 = vmul.f32 1.442695, %v4545_v47 }
 0xab2   : > { %v14775_v35 = vpop.f32.mrb[102].mxu0  ;;  %4581 = vadd.xlane.f32.xlu1 %v14771_v16 }
 0xab3   : > { %4589 = vadd.xlane.f32.xlu0 %v14773_v39  ;;  %v5276_v57 = vpop.f32.mrb[103].mxu0 }
 0xab5   : > { %v14803_v6 = vpop.eup %12141 }
 0xab6   : > { %v14785_v21 = vpop.f32.mrb[104].mxu0  ;;  %4587 = vadd.xlane.f32.xlu1 %v14781_v55  ;;  %v14813_v7 = vpop.eup %12143 }
 0xab7   : > { %4597 = vadd.xlane.f32.xlu0 %v14783_v33  ;;  %v5286_v32 = vpop.f32.mrb[105].mxu0  ;;  %10913 = vmatpush3.bf16.xpose.msk.msra.mxu0 %vm16427_vm6, %v10908_v53  ;;  %v4543_v53 = vsub.f32 %v14529_v45, %v14690_v22  ;;  %v14823_v3 = vpop.eup %12145  ;;  %v5331_v45 = vmul.f32 0.17677669, %v5276_v57  ;;  %v14828_v22 = vsel %vm16525_vm1, %v5329_v49, -1e+30 }
 0xab8   : > { %v14833_v9 = vpop.eup %12147  ;;  %v5333_v25 = vmul.f32 0.17677669, %v5286_v32 }
 0xab9   : > { %v4569_v51 = vmul.f32 1.442695, %v4543_v53  ;;  %v14840_v57 = vsel %vm16527_vm3, %v5331_v45, -1e+30  ;;  %v14843_v17 = vpop.eup %12149 }
 0xaba   : > { %v14797_v20 = vpop.f32.mrb[106].mxu0  ;;  %4585 = vadd.xlane.f32.xlu1 %v14793_v50  ;;  %v14850_v14 = vsel %vm16529_vm8, %v5333_v25, -1e+30  ;;  %v5326_v25 = vmul.f32 0.17677669, %v14743_v43 }
 0xabb   : > { %4607 = vadd.xlane.f32.xlu0 %v14795_v56  ;;  %v5296_v18 = vpop.f32.mrb[107].mxu0  ;;  %12151 = vpow2.f32 %v4569_v51 }
 0xabc   : > { %12153 = vpow2.f32 %v4573_v11  ;;  %v5335_v1 = vmul.f32 0.17677669, %v5296_v18  ;;  %v14888_v43 = vsel %vm16600_vm5, %v5326_v25, -1e+30 }
 0xabd   : > { %12155 = vpow2.f32 %v4579_v8 }
 0xabe   : > { %4591 = vadd.xlane.f32.xlu1 %v14803_v6  ;;  %12157 = vrcp.f32 %v14656_v26  ;;  %v14859_v18 = vsel %vm16367_vm2, %v5335_v1, -1e+30 }
 0xabf   : > { %5361 = vmax.xlane.f32.xlu0 %v14808_v34  ;;  %12159 = vpow2.f32 %v4577_v30 }
 0xac2   : > { %4595 = vadd.xlane.f32.xlu1 %v14813_v7 }
 0xac3   : > { %5363 = vmax.xlane.f32.xlu0 %v14818_v52 }
 0xac5   : > { %v14853_v19 = vpop.eup %12151 }
 0xac6   : > { %4593 = vadd.xlane.f32.xlu1 %v14823_v3  ;;  %v14862_v63 = vpop.eup %12153 }
 0xac7   : > { %5365 = vmax.xlane.f32.xlu0 %v14828_v22  ;;  %v14872_v51 = vpop.eup %12155 }
 0xac8   : > { %v12158_v11 = vpop.eup %12157 }
 0xac9   : > { %v14875_v59 = vpop.eup %12159 }
 0xaca   : > { %4599 = vadd.xlane.f32.xlu1 %v14833_v9 }
 0xacb   : > { %5369 = vmax.xlane.f32.xlu0 %v14840_v57 }
 0xacd   : > { %v14845_v0 = vpop.f32.mrb[108].mxu0 }
 0xace   : > { %v5306_v61 = vpop.f32.mrb[109].mxu0  ;;  %4603 = vadd.xlane.f32.xlu1 %v14843_v17 }
 0xacf   : > { %5373 = vmax.xlane.f32.xlu0 %v14850_v14  ;;  %v5337_v32 = vmul.f32 0.17677669, %v5306_v61 }
 0xad1   : > { %v14867_v26 = vsel %vm16598_vm13, %v5337_v32, -1e+30 }
 0xad2   : > { %4601 = vadd.xlane.f32.xlu1 %v14853_v19  ;;  %v3750_v28 = vpop.xlane.xlu1 %3749 }
 0xad3   : > { %12161 = vrcp.f32 %v3750_v28  ;;  %5377 = vmax.xlane.f32.xlu0 %v14859_v18 }
 0xad6   : > { %4605 = vadd.xlane.f32.xlu1 %v14862_v63  ;;  %v3756_v53 = vpop.xlane.xlu1 %3755 }
 0xad7   : > { %5381 = vmax.xlane.f32.xlu0 %v14867_v26  ;;  %12163 = vrcp.f32 %v3756_v53  ;;  %v16599_v53 = vld [vmem:[#allocation52_spill] sm:$0xff] }
 0xad8   : > { %v14870_v49 = vpop.f32.mrb[80].mxu1  ;;  %v3786_v58 = vmul.f32 %v12158_v11, %v16599_v53 }
 0xad9   : > { %v3903_v47 = vpop.f32.mrb[81].mxu1 }
 0xada   : > { %4611 = vadd.xlane.f32.xlu1 %v14872_v51  ;;  %v3754_v45 = vpop.xlane.xlu1 %3753 }
 0xadb   : > { %12165 = vrcp.f32 %v3754_v45  ;;  %v5330_v45 = vmul.f32 0.17677669, %v14762_v40 }
 0xadd   : > { %v12162_v5 = vpop.eup %12161  ;;  %v14878_v8 = vpop.f32.mrb[82].mxu1  ;;  %v14898_v25 = vsel %vm16601_vm15, %v5330_v45, -1e+30  ;;  %v11647_v45 = vunpack.i.l.bf16 %v14714_v13 }
 0xade   : > { %4609 = vadd.xlane.f32.xlu1 %v14875_v59  ;;  %v11701_v30 = vpop.permute.xlu1 %11700  ;;  %v3913_v1 = vpop.f32.mrb[83].mxu1  ;;  %v3785_v61 = vmul.f32 %v12162_v5, %v14643_v23 }
 0xadf   : > { %v11703_v32 = vunpack.i.h.bf16 %v11701_v30  ;;  %v11702_v28 = vunpack.i.l.bf16 %v11701_v30 }
 0xae0   : > { %9754 = vmatprep.mubr.f32.mxu1 %v3785_v61 }
 0xae1   : > { %v10914_v24 = vpack.c.bf16 %v11703_v32, %v11702_v28  ;;  %v14884_v48 = vpop.f32.mrb[84].mxu1  ;;  %9755 = vmatmul.mubr.f32.gmra.mrb[92].mxu1 %v3786_v58  ;;  %v12164_v11 = vpop.eup %12163  ;;  %v5332_v58 = vmul.f32 0.17677669, %v14775_v35  ;;  %v11648_v35 = vunpack.i.h.bf16 %v14714_v13  ;;  %v11653_v13 = vunpack.i.h.bf16 %v14712_v2 }
 0xae2   : > { %5359 = vmax.xlane.f32.xlu1 %v14888_v43  ;;  %v11706_v27 = vpop.permute.xlu1 %11705  ;;  %v3923_v36 = vpop.f32.mrb[85].mxu1 }
 0xae3   : > { %v11708_v23 = vunpack.i.h.bf16 %v11706_v27  ;;  %v11707_v5 = vunpack.i.l.bf16 %v11706_v27  ;;  %10916 = vmatprep.subr.msk.bf16.mxu0 %vm16427_vm6, %v10914_v24 }
 0xae4   : > { %10919 = vmatpush3.bf16.xpose.msk.msra.mxu0 %vm16427_vm6, %v10914_v24  ;;  %v3788_v24 = vmul.f32 %v12164_v11, %v14648_v12 }
 0xae5   : > { %v12166_v40 = vpop.eup %12165  ;;  %v10920_v30 = vpack.c.bf16 %v11708_v23, %v11707_v5  ;;  %v5334_v5 = vmul.f32 0.17677669, %v14785_v21  ;;  %v11652_v21 = vunpack.i.l.bf16 %v14712_v2 }
 0xae6   : > { %5367 = vmax.xlane.f32.xlu1 %v14898_v25  ;;  %v11711_v61 = vpop.permute.xlu1 %11710  ;;  %v3787_v27 = vmul.f32 %v12166_v40, %v14653_v4  ;;  %v14910_v4 = vsel %vm16602_vm4, %v5332_v58, -1e+30  ;;  %v5336_v58 = vmul.f32 0.17677669, %v14797_v20  ;;  %vm16606_vm4 = vmmov %vm16604_vm14 }
 0xae7   : > { %v11713_v32 = vunpack.i.h.bf16 %v11711_v61  ;;  %v11712_v28 = vunpack.i.l.bf16 %v11711_v61  ;;  %v9979_v53 = vpop.f32.mrb[110].mxu0  ;;  %10922 = vmatprep.subr.msk.bf16.mxu0 %vm16427_vm6, %v10920_v30 }
 0xae8   : > { %9757 = vmatprep.mubr.f32.mxu1 %v3787_v27  ;;  %v5316_v23 = vpop.f32.mrb[111].mxu0 }
 0xae9   : > { %v5339_v42 = vmul.f32 0.17677669, %v5316_v23  ;;  %9758 = vmatmul.mubr.f32.gmra.mrb[94].mxu1 %v3788_v24  ;;  %v10926_v12 = vpack.c.bf16 %v11713_v32, %v11712_v28  ;;  %v11658_v24 = vunpack.i.h.bf16 %v14721_v41  ;;  %v11657_v23 = vunpack.i.l.bf16 %v14721_v41 }
 0xaea   : > { %v9747_v40 = vpop.f32.mrb[86].mxu1  ;;  %5371 = vmax.xlane.f32.xlu1 %v14910_v4  ;;  %v11716_v61 = vpop.permute.xlu1 %11715  ;;  %9762 = vmatprep.mubr.msk.f32.mxu1 %vm16603_vm0, %v3903_v47  ;;  %vm16605_vm0 = vnez %v16389_v37  ;;  %v10782_v47 = vpack.c.bf16 %v11648_v35, %v11647_v45  ;;  %v5338_v35 = vmul.f32 0.17677669, %v14845_v0  ;;  %v5340_v0 = vmul.f32 0.17677669, %v9979_v53 }
 0xaeb   : > { %v3933_v11 = vpop.f32.mrb[87].mxu1  ;;  %v14916_v27 = vsel %vm16554_vm7, %v5339_v42, -1e+30  ;;  %v14930_v42 = vsel %vm16605_vm0, %v5334_v5, -1e+30  ;;  %v11717_v28 = vunpack.i.l.bf16 %v11716_v61  ;;  %vm16608_vm0 = vmmov %vm16606_vm4  ;;  %v16612_v5 = vld [vmem:[#allocation54_spill] sm:$0xff] }
 0xaec   : > { %5385 = vmax.xlane.f32.xlu0 %v14916_v27  ;;  %10925 = vmatpush3.bf16.xpose.msk.msra.mxu0 %vm16427_vm6, %v10920_v30  ;;  %v11718_v30 = vunpack.i.h.bf16 %v11716_v61  ;;  %v11663_v61 = vunpack.i.h.bf16 %v16612_v5  ;;  %v11662_v41 = vunpack.i.l.bf16 %v16612_v5  ;;  %v16621_v5 = vld [vmem:[#allocation59_spill] sm:$0xff]  ;;  %vm16633_vm5 = vmmov %vm16608_vm0 }
 0xaed   : > { %9763 = vmatmul.mubr.msk.f32.vlgmr.msra.gmra.mrb[48].mxu1 %vm16604_vm14, %v14870_v49  ;;  %10928 = vmatprep.subr.msk.bf16.mxu0 %vm16427_vm6, %v10926_v12  ;;  %vm16607_vm14 = vmmov %vm16606_vm4  ;;  %v10786_v49 = vpack.c.bf16 %v11653_v13, %v11652_v21 }
 0xaee   : > { %v9750_v32 = vpop.f32.mrb[88].mxu1  ;;  %10781 = vmatpush3.bf16.msra.mxu1 %v14710_v54  ;;  %5375 = vmax.xlane.f32.xlu1 %v14930_v42  ;;  %v5909_v2 = vpop.permute.xlu1 %5908  ;;  %v16609_v54 = vld [vmem:[#allocation34_spill] sm:$0xff]  ;;  %vm16636_vm7 = vmmov %vm16608_vm0 }
 0xaef   : > { %v3943_v20 = vpop.f32.mrb[89].mxu1  ;;  %9765 = vmatprep.mubr.msk.f32.mxu1 %vm16606_vm4, %v3913_v1  ;;  %10783 = vmatprep.subr.bf16.mxu1 %v10782_v47  ;;  %vm16610_vm15 = vnez %v16609_v54  ;;  %v10932_v1 = vpack.c.bf16 %v11718_v30, %v11717_v28  ;;  %vm16611_vm4 = vmmov %vm16608_vm0  ;;  %v10794_v30 = vpack.c.bf16 %v11663_v61, %v11662_v41  ;;  %v11678_v61 = vunpack.i.h.bf16 %v16621_v5 }
 0xaf0   : > { %10094 = vmatprep.mubr.msk.f32.mxu0 %vm16607_vm14, %v5909_v2  ;;  %v14943_v45 = vsel %vm16610_vm15, %v5336_v58, -1e+30  ;;  %v5911_v58 = vpop.permute.xlu0 %5910  ;;  %v14966_v2 = vsel %vm16458_vm12, %v5340_v0, -1e+30  ;;  %v11677_v41 = vunpack.i.l.bf16 %v16621_v5  ;;  %vm16627_vm12 = vmmov %vm16608_vm0 }
 0xaf1   : > { %9766 = vmatmul.mubr.msk.f32.gmra.mrb[50].mxu1 %vm16608_vm0, %v14878_v8  ;;  %v16613_v8 = vld [vmem:[#allocation36_spill] sm:$0xff]  ;;  %vm16632_vm15 = vmmov %vm16608_vm0 }
 0xaf2   : > { %10785 = vmatpush3.bf16.msra.mxu1 %v10782_v47  ;;  %5379 = vmax.xlane.f32.xlu1 %v14943_v45  ;;  %v5913_v13 = vpop.permute.xlu1 %5912  ;;  %vm16614_vm14 = vnez %v16613_v8 }
 0xaf3   : > { %9768 = vmatprep.mubr.msk.f32.mxu1 %vm16611_vm4, %v3923_v36  ;;  %10787 = vmatprep.subr.bf16.mxu1 %v10786_v49  ;;  %v14957_v21 = vsel %vm16614_vm14, %v5338_v35, -1e+30  ;;  %v10790_v36 = vpack.c.bf16 %v11658_v24, %v11657_v23  ;;  %vm16615_vm4 = vmmov %vm16608_vm0 }
 0xaf4   : > { %10931 = vmatpush3.bf16.xpose.msk.msra.mxu0 %vm16427_vm6, %v10926_v12  ;;  %v16616_v12 = vld [vmem:[#allocation56_spill] sm:$0xff]  ;;  %vm16618_vm14 = vmmov %vm16608_vm0 }
 0xaf5   : > { %9769 = vmatmul.mubr.msk.f32.gmra.mrb[52].mxu1 %vm16608_vm0, %v14884_v48  ;;  %10934 = vmatprep.subr.msk.bf16.mxu0 %vm16427_vm6, %v10932_v1  ;;  %v11668_v53 = vunpack.i.h.bf16 %v16616_v12  ;;  %v11667_v47 = vunpack.i.l.bf16 %v16616_v12 }
 0xaf6   : > { %10789 = vmatpush3.bf16.msra.mxu1 %v10786_v49  ;;  %5383 = vmax.xlane.f32.xlu1 %v14957_v21  ;;  %v5917_v28 = vpop.permute.xlu1 %5916  ;;  %v16619_v49 = vld [vmem:[#allocation57_spill] sm:$0xff] }
 0xaf7   : > { %9771 = vmatprep.mubr.msk.f32.mxu1 %vm16615_vm4, %v3933_v11  ;;  %10791 = vmatprep.subr.bf16.mxu1 %v10790_v36  ;;  %v5915_v11 = vpop.permute.xlu0 %5914  ;;  %v11673_v24 = vunpack.i.h.bf16 %v16619_v49  ;;  %vm16620_vm4 = vmmov %vm16608_vm0  ;;  %v10798_v23 = vpack.c.bf16 %v11668_v53, %v11667_v47  ;;  %v16626_v53 = vld [vmem:[#allocation7_spill] sm:$0xff] }
 0xaf9   : > { %9772 = vmatmul.mubr.msk.f32.gmra.mrb[54].mxu1 %vm16608_vm0, %v9747_v40  ;;  %v11672_v40 = vunpack.i.l.bf16 %v16619_v49 }
 0xafa   : > { %10793 = vmatpush3.bf16.msra.mxu1 %v10790_v36  ;;  %5387 = vmax.xlane.f32.xlu1 %v14966_v2  ;;  %v5921_v35 = vpop.permute.xlu1 %5920 }
 0xafb   : > { %9774 = vmatprep.mubr.msk.f32.mxu1 %vm16618_vm14, %v3943_v20  ;;  %10795 = vmatprep.subr.bf16.mxu1 %v10794_v30  ;;  %v10802_v20 = vpack.c.bf16 %v11673_v24, %v11672_v40  ;;  %v5919_v0 = vpop.permute.xlu0 %5918  ;;  %vm16623_vm14 = vmmov %vm16608_vm0 }
 0xafc   : > { %10937 = vmatpush3.bf16.xpose.msk.msra.mxu0 %vm16427_vm6, %v10932_v1  ;;  %v14980_v1 = vld [vmem:[%s16037_s2 + $0x10] sm:$0xff]  ;;  %vm16625_vm6 = vmmov %vm16608_vm0 }
 0xafd   : > { %9775 = vmatmul.mubr.msk.f32.gmra.mrb[56].mxu1 %vm16620_vm4, %v9750_v32  ;;  %16622 = vst [vmem:[#allocation58_spill] sm:$0xff] %v14980_v1  ;;  %v10806_v32 = vpack.c.bf16 %v11678_v61, %v11677_v41  ;;  %vm16624_vm4 = vmmov %vm16608_vm0 }
 0xafe   : > { %10797 = vmatpush3.bf16.msra.mxu1 %v10794_v30  ;;  %v5925_v36 = vpop.permute.xlu1 %5924 }
 0xaff   : > { %10799 = vmatprep.subr.bf16.mxu1 %v10798_v23  ;;  %v5923_v12 = vpop.permute.xlu0 %5922 }
 0xb02   : > { %10801 = vmatpush3.bf16.msra.mxu1 %v10798_v23  ;;  %4839 = vrot.lane.b32.xlu0 %v14980_v1, %s12470_s7  ;;  %v5929_v47 = vpop.permute.xlu1 %5928 }
 0xb03   : > { %10803 = vmatprep.subr.bf16.mxu1 %v10802_v20  ;;  %10095 = vmatmul.mubr.msk.f32.vlgmr.msra.gmra.mrb[112].mxu0 %vm16623_vm14, %v5911_v58  ;;  %vm16628_vm14 = vmmov %vm16608_vm0  ;;  %v16629_v58 = vld [vmem:[#allocation10_spill] sm:$0xff] }
 0xb04   : > { %10097 = vmatprep.mubr.msk.f32.mxu0 %vm16608_vm0, %v5913_v13  ;;  %v5927_v13 = vpop.permute.xlu0 %5926 }
 0xb06   : > { %10805 = vmatpush3.bf16.msra.mxu1 %v10802_v20  ;;  %v5933_v30 = vpop.permute.xlu1 %5932 }
 0xb07   : > { %10807 = vmatprep.subr.bf16.mxu1 %v10806_v32  ;;  %10098 = vmatmul.mubr.msk.f32.gmra.mrb[114].mxu0 %vm16624_vm4, %v5915_v11  ;;  %vm16630_vm4 = vmmov %vm16608_vm0 }
 0xb08   : > { %10100 = vmatprep.mubr.msk.f32.mxu0 %vm16625_vm6, %v5917_v28  ;;  %vm16631_vm6 = vmmov %vm16608_vm0  ;;  %v5931_v28 = vpop.permute.xlu0 %5930 }
 0xb0a   : > { %10809 = vmatpush3.bf16.msra.mxu1 %v10806_v32  ;;  %v5937_v11 = vpop.permute.xlu1 %5936 }
 0xb0b   : > { %11720 = vrot.lane.b32.xlu1 %v16626_v53, %s12480_s30  ;;  %10101 = vmatmul.mubr.msk.f32.gmra.mrb[116].mxu0 %vm16627_vm12, %v5919_v0  ;;  %vm16634_vm12 = vmmov %vm16608_vm0 }
 0xb0c   : > { %10103 = vmatprep.mubr.msk.f32.mxu0 %vm16628_vm14, %v5921_v35  ;;  %v5935_v49 = vpop.permute.xlu0 %5934  ;;  %vm16635_vm14 = vmmov %vm16608_vm0 }
 0xb0e   : > { %v5939_v24 = vpop.permute.xlu1 %5938 }
 0xb0f   : > { %11725 = vrot.lane.b32.xlu1 %v16629_v58, %s12480_s30  ;;  %10104 = vmatmul.mubr.msk.f32.gmra.mrb[118].mxu0 %vm16608_vm0, %v5923_v12 }
 0xb10   : > { %10106 = vmatprep.mubr.msk.f32.mxu0 %vm16630_vm4, %v5925_v36  ;;  %vm16637_vm4 = vmmov %vm16608_vm0 }
 0xb13   : > { %10107 = vmatmul.mubr.msk.f32.gmra.mrb[120].mxu0 %vm16631_vm6, %v5927_v13  ;;  %vm16638_vm6 = vmmov %vm16608_vm0 }
 0xb14   : > { %10109 = vmatprep.mubr.msk.f32.mxu0 %vm16632_vm15, %v5929_v47  ;;  %vm16650_vm15 = vmmov %vm16608_vm0 }
 0xb17   : > { %10110 = vmatmul.mubr.msk.f32.gmra.mrb[122].mxu0 %vm16633_vm5, %v5931_v28  ;;  %vm16649_vm5 = vmmov %vm16608_vm0 }
 0xb18   : > { %10112 = vmatprep.mubr.msk.f32.mxu0 %vm16634_vm12, %v5933_v30  ;;  %vm16651_vm12 = vmmov %vm16608_vm0 }
 0xb1b   : > { %10113 = vmatmul.mubr.msk.f32.gmra.mrb[124].mxu0 %vm16635_vm14, %v5935_v49  ;;  %vm16652_vm14 = vmmov %vm16608_vm0 }
 0xb1c   : > { %10115 = vmatprep.mubr.msk.f32.mxu0 %vm16636_vm7, %v5937_v11  ;;  %vm16643_vm7 = vcmask 1043456  }
 0xb1f   : > { %10116 = vmatmul.mubr.msk.f32.gmra.mrb[126].mxu0 %vm16608_vm0, %v5939_v24  ;;  %vm16653_vm0 = vmmov %vm16643_vm7 }
 0xb2e   : > { %v9753_v40 = vpop.f32.mrb[90].mxu1 }
 0xb2f   : > { %v3953_v23 = vpop.f32.mrb[91].mxu1 }
 0xb30   : > { %9777 = vmatprep.mubr.msk.f32.mxu1 %vm16637_vm4, %v3953_v23 }
 0xb31   : > { %9778 = vmatmul.mubr.msk.f32.gmra.mrb[58].mxu1 %vm16638_vm6, %v9753_v40 }
 0xb38   : > { %v5358_v35 = vpop.xlane.xlu0 %5357 }
 0xb39   : > { %v5389_v5 = vsub.f32 %v14755_v38, %v5358_v35  ;;  %v16640_v35 = vld [vmem:[#allocation13_spill] sm:$0xff] }
 0xb3b   : > { %v5405_v61 = vmul.f32 1.442695, %v5389_v5 }
 0xb3c   : > { %v15006_v41 = vpop.xlane.xlu0 %4583 }
 0xb3d   : > { %12167 = vpow2.f32 %v5405_v61 }
 0xb3f   : > { %v15008_v20 = vpop.xlane.xlu1 %4581 }
 0xb40   : > { %v15010_v0 = vpop.xlane.xlu0 %4589 }
 0xb43   : > { %v15012_v32 = vpop.xlane.xlu1 %4587 }
 0xb44   : > { %v15014_v36 = vpop.xlane.xlu0 %4597 }
 0xb47   : > { %v15016_v12 = vpop.eup %12167  ;;  %v15018_v47 = vpop.xlane.xlu1 %4585 }
 0xb48   : > { %16639 = vst [vmem:[#allocation61_spill] sm:$0xff] %v15016_v12  ;;  %5437 = vadd.xlane.f32.xlu0 %v15016_v12  ;;  %v15021_v13 = vpop.xlane.xlu0 %4607 }
 0xb4b   : > { %v15023_v38 = vpop.xlane.xlu1 %4591 }
 0xb4c   : > { %v5362_v28 = vpop.xlane.xlu0 %5361 }
 0xb4d   : > { %v5391_v1 = vsub.f32 %v14808_v34, %v5362_v28 }
 0xb4f   : > { %v15025_v30 = vpop.xlane.xlu1 %4595  ;;  %v5409_v62 = vmul.f32 1.442695, %v5391_v1 }
 0xb50   : > { %v5364_v49 = vpop.xlane.xlu0 %5363 }
 0xb51   : > { %v5392_v60 = vsub.f32 %v14818_v52, %v5364_v49 }
 0xb53   : > { %v15027_v11 = vpop.xlane.xlu1 %4593 }
 0xb54   : > { %v5366_v23 = vpop.xlane.xlu0 %5365 }
 0xb55   : > { %v5393_v8 = vsub.f32 %v14828_v22, %v5366_v23  ;;  %v5411_v22 = vmul.f32 1.442695, %v5392_v60  ;;  %v16646_v60 = vld [vmem:[#allocation19_spill] sm:$0xff] }
 0xb57   : > { %v15029_v24 = vpop.xlane.xlu1 %4599  ;;  %v5413_v37 = vmul.f32 1.442695, %v5393_v8 }
 0xb58   : > { %v5370_v61 = vpop.xlane.xlu0 %5369 }
 0xb59   : > { %12169 = vpow2.f32 %v5413_v37 }
 0xb5b   : > { %v15031_v40 = vpop.xlane.xlu1 %4603 }
 0xb5c   : > { %v15041_v48 = vpop.xlane.xlu0 %5373 }
 0xb5e   : > { %11730 = vrot.lane.b32.xlu0 %v16640_v35, %s12480_s30 }
 0xb5f   : > { %v15035_v5 = vpop.xlane.xlu1 %4601 }
 0xb60   : > { %v15046_v44 = vpop.xlane.xlu0 %5377 }
 0xb63   : > { %v15037_v12 = vpop.xlane.xlu1 %4605  ;;  %v15055_v8 = vpop.eup %12169 }
 0xb64   : > { %v15051_v35 = vpop.xlane.xlu0 %5381  ;;  %16641 = vst [vmem:[#allocation60_spill] sm:$0xff] %v15055_v8 }
 0xb67   : > { %v15039_v15 = vpop.xlane.xlu1 %4611 }
 0xb6b   : > { %v15044_v54 = vpop.xlane.xlu1 %4609 }
 0xb6f   : > { %v5360_v29 = vpop.xlane.xlu1 %5359 }
 0xb70   : > { %v5390_v10 = vsub.f32 %v14888_v43, %v5360_v29  ;;  %v16648_v43 = vld [vmem:[#allocation16_spill] sm:$0xff] }
 0xb72   : > { %v5407_v46 = vmul.f32 1.442695, %v5390_v10 }
 0xb73   : > { %v5368_v10 = vpop.xlane.xlu1 %5367 }
 0xb74   : > { %12171 = vpow2.f32 %v5407_v46 }
 0xb75   : > { %12173 = vpow2.f32 %v5409_v62  ;;  %v16647_v62 = vld [vmem:[#allocation22_spill] sm:$0xff] }
 0xb76   : > { %12175 = vpow2.f32 %v5411_v22 }
 0xb77   : > { %v5372_v52 = vpop.xlane.xlu1 %5371 }
 0xb79   : > { %v15053_v23 = vpop.xlane.xlu0 %5385 }
 0xb7b   : > { %v5376_v1 = vpop.xlane.xlu1 %5375 }
 0xb7c   : > { %v5398_v28 = vsub.f32 %v14930_v42, %v5376_v1  ;;  %v5396_v42 = vsub.f32 %v14910_v4, %v5372_v52 }
 0xb7d   : > { %5445 = vadd.xlane.f32.xlu0 %v15055_v8  ;;  %v15058_v34 = vpop.permute.xlu0 %4839 }
 0xb7e   : > { %v15060_v29 = vpop.eup %12171  ;;  %9898 = vmatprep.subr.msk.mxu1 %vm16643_vm7, %v15058_v34  ;;  %v5423_v22 = vmul.f32 1.442695, %v5398_v28 }
 0xb7f   : > { %16642 = vst [vmem:[#allocation62_spill] sm:$0xff] %v15060_v29  ;;  %5439 = vadd.xlane.f32.xlu1 %v15060_v29  ;;  %v15065_v46 = vpop.eup %12173  ;;  %v5380_v49 = vpop.xlane.xlu1 %5379  ;;  %v5395_v29 = vsub.f32 %v14840_v57, %v5370_v61  ;;  %v5419_v57 = vmul.f32 1.442695, %v5396_v42 }
 0xb80   : > { %16644 = vst [vmem:[#allocation64_spill] sm:$0xff] %v15065_v46  ;;  %v15068_v37 = vpop.eup %12175  ;;  %v5400_v8 = vsub.f32 %v14943_v45, %v5380_v49  ;;  %12177 = vpow2.f32 %v5423_v22 }
 0xb81   : > { %16645 = vst [vmem:[#allocation63_spill] sm:$0xff] %v15068_v37  ;;  %v5417_v58 = vmul.f32 1.442695, %v5395_v29 }
 0xb83   : > { %5441 = vadd.xlane.f32.xlu1 %v15065_v46  ;;  %v5427_v46 = vmul.f32 1.442695, %v5400_v8 }
 0xb85   : > { %12179 = vpow2.f32 %v5427_v46 }
 0xb86   : > { %12181 = vrcp.f32 %v15008_v20 }
 0xb87   : > { %5443 = vadd.xlane.f32.xlu1 %v15068_v37  ;;  %v5394_v37 = vsub.f32 %v14898_v25, %v5368_v10  ;;  %v5397_v25 = vsub.f32 %v14850_v14, %v15041_v48 }
 0xb8a   : > { %v15086_v45 = vpop.eup %12177 }
 0xb8f   : > { %v15098_v4 = vpop.eup %12179 }
 0xb90   : > { %v12182_v14 = vpop.eup %12181 }
 0xb91   : > { %v4629_v8 = vmul.f32 %v12182_v14, %v14771_v16 }
 0xb93   : > { %11740 = vrot.lane.b32.xlu0 %v16646_v60, %s12480_s30  ;;  %v5415_v60 = vmul.f32 1.442695, %v5394_v37 }
 0xb95   : > { %12183 = vpow2.f32 %v5415_v60 }
 0xb96   : > { %12185 = vrcp.f32 %v15006_v41 }
 0xb97   : > { %11745 = vrot.lane.b32.xlu0 %v16647_v62, %s12480_s30  ;;  %v15082_v62 = vpop.xlane.xlu1 %5383  ;;  %12187 = vpow2.f32 %v5417_v58  ;;  %v5421_v58 = vmul.f32 1.442695, %v5397_v25 }
 0xb98   : > { %11735 = vrot.lane.b32.xlu1 %v16648_v43, %s12480_s30  ;;  %12189 = vrcp.f32 %v15018_v47 }
 0xb99   : > { %12191 = vrcp.f32 %v15010_v0 }
 0xb9a   : > { %12193 = vrcp.f32 %v15012_v32 }
 0xb9b   : > { %v15091_v20 = vpop.xlane.xlu1 %5387  ;;  %12195 = vpow2.f32 %v5419_v57 }
 0xb9c   : > { %12197 = vrcp.f32 %v15023_v38 }
 0xb9d   : > { %12199 = vrcp.f32 %v15027_v11 }
 0xb9e   : > { %12201 = vpow2.f32 %v5421_v58 }
 0xb9f   : > { %v15101_v48 = vpop.eup %12183  ;;  %v11721_v41 = vpop.permute.xlu1 %11720  ;;  %12203 = vrcp.f32 %v15025_v30 }
 0xba0   : > { %v12186_v32 = vpop.eup %12185  ;;  %v11723_v46 = vunpack.i.h.bf16 %v11721_v41  ;;  %v11722_v37 = vunpack.i.l.bf16 %v11721_v41  ;;  %12205 = vrcp.f32 %v15014_v36 }
 0xba1   : > { %v15108_v29 = vpop.eup %12187  ;;  %v4630_v10 = vmul.f32 %v12186_v32, %v14760_v31  ;;  %12207 = vrcp.f32 %v15029_v24 }
 0xba2   : > { %v12190_v38 = vpop.eup %12189  ;;  %v15118_v28 = vpack.c.bf16 %v11723_v46, %v11722_v37  ;;  %12209 = vrcp.f32 %v15035_v5 }
 0xba3   : > { %v12192_v11 = vpop.eup %12191  ;;  %v4631_v16 = vmul.f32 %v12190_v38, %v14793_v50  ;;  %12211 = vrcp.f32 %v15031_v40 }
 0xba4   : > { %v12194_v60 = vpop.eup %12193  ;;  %v4633_v50 = vmul.f32 %v12192_v11, %v14773_v39  ;;  %12213 = vrcp.f32 %v15037_v12  ;;  %v5401_v11 = vsub.f32 %v14867_v26, %v15051_v35  ;;  %v5404_v26 = vsub.f32 %v14966_v2, %v15091_v20  ;;  %v16656_v2 = vld [vmem:[#allocation5_spill] sm:$0xff]  ;;  %v16657_v20 = vld [vmem:[#allocation8_spill] sm:$0xff] }
 0xba5   : > { %v15115_v52 = vpop.eup %12195  ;;  %v4632_v31 = vmul.f32 %v12194_v60, %v14781_v55  ;;  %12215 = vrcp.f32 %v15021_v13 }
 0xba6   : > { %v12198_v30 = vpop.eup %12197  ;;  %12217 = vrcp.f32 %v15044_v54  ;;  %v5435_v35 = vmul.f32 1.442695, %v5404_v26  ;;  %v16680_v26 = vld [vmem:[#allocation27_spill] sm:$0xff] }
 0xba7   : > { %v12200_v36 = vpop.eup %12199  ;;  %v4634_v24 = vmul.f32 %v12198_v30, %v14803_v6  ;;  %12219 = vrcp.f32 %v15039_v15  ;;  %v16654_v6 = vld [vmem:[#allocation28_spill] sm:$0xff] }
 0xba8   : > { %v15128_v49 = vpop.eup %12201 }
 0xba9   : > { %v12204_v5 = vpop.eup %12203 }
 0xbaa   : > { %v12206_v22 = vpop.eup %12205  ;;  %v4636_v39 = vmul.f32 %v12204_v5, %v14813_v7  ;;  %v16659_v5 = vld [vmem:[#allocation14_spill] sm:$0xff] }
 0xbab   : > { %v12208_v55 = vpop.eup %12207  ;;  %v4637_v40 = vmul.f32 %v12206_v22, %v14783_v33  ;;  %v16661_v22 = vld [vmem:[#allocation20_spill] sm:$0xff] }
 0xbac   : > { %v12210_v42 = vpop.eup %12209 }
 0xbad   : > { %v12212_v12 = vpop.eup %12211  ;;  %v4639_v13 = vmul.f32 %v12210_v42, %v14853_v19  ;;  %v16665_v42 = vld [vmem:[#allocation19_spill] sm:$0xff] }
 0xbae   : > { %v4640_v7 = vmul.f32 %v12212_v12, %v14843_v17  ;;  %v16667_v12 = vld [vmem:[#allocation6_spill] sm:$0xff] }
 0xbb4   : > { %v9756_v1 = vpop.f32.mrb[92].mxu1 }
 0xbb5   : > { %v3963_v61 = vpop.f32.mrb[93].mxu1 }
 0xbb6   : > { %5455 = vadd.xlane.f32.xlu0 %v15086_v45  ;;  %9780 = vmatprep.mubr.msk.f32.mxu1 %vm16649_vm5, %v3963_v61 }
 0xbb7   : > { %9781 = vmatmul.mubr.msk.f32.gmra.mrb[60].mxu1 %vm16650_vm15, %v9756_v1  ;;  %v12214_v1 = vpop.eup %12213 }
 0xbb8   : > { %v12216_v54 = vpop.eup %12215  ;;  %v4641_v25 = vmul.f32 %v12214_v1, %v14862_v63  ;;  %v5402_v63 = vsub.f32 %v14957_v21, %v15082_v62  ;;  %v5399_v21 = vsub.f32 %v14859_v18, %v15046_v44  ;;  %v5403_v44 = vsub.f32 %v14916_v27, %v15053_v23 }
 0xbb9   : > { %v12218_v15 = vpop.eup %12217  ;;  %v4642_v19 = vmul.f32 %v12216_v54, %v14795_v56 }
 0xbba   : > { %5459 = vadd.xlane.f32.xlu0 %v15098_v4  ;;  %v12220_v61 = vpop.eup %12219  ;;  %v4643_v17 = vmul.f32 %v12218_v15, %v14875_v59  ;;  %v5431_v32 = vmul.f32 1.442695, %v5402_v63  ;;  %v5425_v38 = vmul.f32 1.442695, %v5399_v21  ;;  %v16675_v21 = vld [vmem:[#allocation21_spill] sm:$0xff] }
 0xbbb   : > { %v4644_v41 = vmul.f32 %v12220_v61, %v14872_v51 }
 0xbbc   : > { %5447 = vadd.xlane.f32.xlu1 %v15101_v48  ;;  %v9759_v0 = vpop.f32.mrb[94].mxu1  ;;  %12221 = vpow2.f32 %v5431_v32 }
 0xbbd   : > { %v3973_v47 = vpop.f32.mrb[95].mxu1  ;;  %12223 = vpow2.f32 %v5425_v38 }
 0xbbe   : > { %9783 = vmatprep.mubr.msk.f32.mxu1 %vm16651_vm12, %v3973_v47 }
 0xbbf   : > { %9784 = vmatmul.mubr.msk.f32.gmra.mrb[62].mxu1 %vm16652_vm14, %v9759_v0 }
 0xbc0   : > { %5449 = vadd.xlane.f32.xlu1 %v15108_v29  ;;  %9874 = vmatprep.mubr.f32.mxu1 %v4629_v8 }
 0xbc3   : > { %9875 = vmatmul.mubr.f32.vlgmr.msra.gmra.mrb[96].mxu1 %v4630_v10 }
 0xbc4   : > { %9899 = vmatpush3.msk.msra.mxu1 %vm16653_vm0, %v15058_v34  ;;  %5451 = vadd.xlane.f32.xlu1 %v15115_v52  ;;  %v4635_v34 = vmul.f32 %v12200_v36, %v14823_v3  ;;  %v4638_v3 = vmul.f32 %v12208_v55, %v14833_v9  ;;  %v16655_v9 = vld [vmem:[#allocation25_spill] sm:$0xff]  ;;  %v16663_v55 = vld [vmem:[#allocation23_spill] sm:$0xff] }
 0xbc5   : > { %9877 = vmatprep.mubr.f32.mxu1 %v4631_v16  ;;  %10859 = vmatprep.subr.bf16.mxu1 %v15118_v28  ;;  %v5429_v16 = vmul.f32 1.442695, %v5401_v11 }
 0xbc6   : > { %v15177_v37 = vpop.eup %12221 }
 0xbc7   : > { %9878 = vmatmul.mubr.f32.gmra.mrb[98].mxu1 %v4632_v31  ;;  %12225 = vpow2.f32 %v5429_v16  ;;  %v5433_v31 = vmul.f32 1.442695, %v5403_v44  ;;  %v15194_v36 = vpop.eup %12223  ;;  %v16677_v16 = vld [vmem:[#allocation24_spill] sm:$0xff] }
 0xbc8   : > { %5453 = vadd.xlane.f32.xlu1 %v15128_v49  ;;  %9880 = vmatprep.mubr.f32.mxu1 %v4633_v50 }
 0xbc9   : > { %12227 = vpow2.f32 %v5433_v31 }
 0xbca   : > { %12229 = vpow2.f32 %v5435_v35 }
 0xbcb   : > { %9881 = vmatmul.mubr.f32.gmra.mrb[100].mxu1 %v4634_v24  ;;  %v16658_v24 = vld [vmem:[#allocation11_spill] sm:$0xff] }
 0xbcc   : > { %9883 = vmatprep.mubr.f32.mxu1 %v4635_v34  ;;  %v16660_v34 = vld [vmem:[#allocation17_spill] sm:$0xff] }
 0xbcf   : > { %9884 = vmatmul.mubr.f32.gmra.mrb[102].mxu1 %v4636_v39  ;;  %v16662_v39 = vld [vmem:[#allocation10_spill] sm:$0xff] }
 0xbd0   : > { %11755 = vrot.lane.b32.xlu0 %v16654_v6, %s12480_s30  ;;  %9886 = vmatprep.mubr.f32.mxu1 %v4637_v40  ;;  %v16664_v40 = vld [vmem:[#allocation13_spill] sm:$0xff] }
 0xbd1   : > { %v15197_v50 = vpop.eup %12225 }
 0xbd3   : > { %9887 = vmatmul.mubr.f32.gmra.mrb[104].mxu1 %v4638_v3  ;;  %v15200_v27 = vpop.eup %12227  ;;  %v16666_v3 = vld [vmem:[#allocation22_spill] sm:$0xff] }
 0xbd4   : > { %9889 = vmatprep.mubr.f32.mxu1 %v4639_v13  ;;  %v15204_v23 = vpop.eup %12229  ;;  %v16668_v13 = vld [vmem:[#allocation9_spill] sm:$0xff] }
 0xbd6   : > { %v15145_v33 = vpop.f32.mrb[112].mxu0 }
 0xbd7   : > { %9890 = vmatmul.mubr.f32.gmra.mrb[106].mxu1 %v4640_v7  ;;  %v15148_v57 = vpop.f32.mrb[113].mxu0  ;;  %v16669_v7 = vld [vmem:[#allocation12_spill] sm:$0xff] }
 0xbd8   : > { %9892 = vmatprep.mubr.f32.mxu1 %v4641_v25  ;;  %v6181_v1 = vmul.f32 0.17677669, %v15148_v57  ;;  %v16673_v57 = vld [vmem:[#allocation18_spill] sm:$0xff] }
 0xbd9   : > { %11750 = vrot.lane.b32.xlu1 %v16655_v9, %s12480_s30  ;;  %s189_s30 = sand.u32 1, %s12449_s16  }
 0xbda   : > { %v15153_v58 = vpop.f32.mrb[114].mxu0  ;;  %v15237_v15 = vsel %vm16361_vm10, %v6181_v1, -1e+30  ;;  %v16688_v1 = vld [vmem:[#allocation39_spill] sm:$0xff]  ;;  %s15994_s19 = scalar_lea.sflag [#allocation3], %s189_s30 }
 0xbdb   : > { %9893 = vmatmul.mubr.f32.gmra.mrb[108].mxu1 %v4642_v19  ;;  %v6112_v14 = vpop.f32.mrb[115].mxu0  ;;  %v16671_v19 = vld [vmem:[#allocation15_spill] sm:$0xff]  ;;  %v6184_v61 = vmul.f32 0.17677669, %v15153_v58  ;;  %vm16689_vm4 = vnez %v16688_v1 }
 0xbdc   : > { %9895 = vmatprep.mubr.f32.mxu1 %v4643_v17  ;;  %v6183_v54 = vmul.f32 0.17677669, %v6112_v14 }
 0xbdd   : > { %v15253_v32 = vsel %vm16362_vm9, %v6184_v61, -1e+30  ;;  %v16691_v61 = vld [vmem:[#allocation58_spill] sm:$0xff] }
 0xbde   : > { %v15159_v0 = vpop.f32.mrb[116].mxu0  ;;  %v15245_v63 = vsel %vm16523_vm11, %v6183_v54, -1e+30 }
 0xbdf   : > { %9896 = vmatmul.mubr.f32.gmra.mrb[110].mxu1 %v4644_v41  ;;  %v15161_v47 = vpop.f32.mrb[117].mxu0  ;;  %v16706_v41 = vld [vmem:[#allocation38_spill] sm:$0xff] }
 0xbe0   : > { %v6185_v14 = vmul.f32 0.17677669, %v15161_v47  ;;  %vm16707_vm0 = vnez %v16706_v41 }
 0xbe2   : > { %v15163_v56 = vpop.f32.mrb[118].mxu0  ;;  %v15261_v11 = vsel %vm16525_vm1, %v6185_v14, -1e+30 }
 0xbe3   : > { %v15165_v8 = vpop.f32.mrb[119].mxu0 }
 0xbe4   : > { %v6187_v58 = vmul.f32 0.17677669, %v15165_v8 }
 0xbe6   : > { %v15167_v59 = vpop.f32.mrb[120].mxu0  ;;  %v15269_v31 = vsel %vm16527_vm3, %v6187_v58, -1e+30 }
 0xbe7   : > { %v15169_v46 = vpop.f32.mrb[121].mxu0  ;;  %16679 = vst [vmem:[#allocation46_spill] sm:$0xff] %v15269_v31 }
 0xbe8   : > { %v6189_v47 = vmul.f32 0.17677669, %v15169_v46  ;;  %v16683_v46 = vld [vmem:[#allocation26_spill] sm:$0xff] }
 0xbea   : > { %v15173_v62 = vpop.f32.mrb[122].mxu0 }
 0xbeb   : > { %v15175_v51 = vpop.f32.mrb[123].mxu0 }
 0xbec   : > { %v6191_v8 = vmul.f32 0.17677669, %v15175_v51 }
 0xbee   : > { %v15181_v10 = vpop.f32.mrb[124].mxu0 }
 0xbef   : > { %5463 = vadd.xlane.f32.xlu0 %v15177_v37  ;;  %v15184_v60 = vpop.f32.mrb[125].mxu0 }
 0xbf2   : > { %v15188_v18 = vpop.f32.mrb[126].mxu0 }
 0xbf3   : > { %v15190_v30 = vpop.f32.mrb[127].mxu0 }
 0xbf4   : > { %v6195_v51 = vmul.f32 0.17677669, %v15190_v30  ;;  %v15311_v30 = vpop.xlane.xlu0 %5437 }
 0xbf5   : > { %12231 = vrcp.f32 %v15311_v30 }
 0xbf8   : > { %v11731_v58 = vpop.permute.xlu0 %11730 }
 0xbf9   : > { %v11732_v41 = vunpack.i.l.bf16 %v11731_v58 }
 0xbfd   : > { %5457 = vadd.xlane.f32.xlu1 %v15194_v36 }
 0xc01   : > { %5461 = vadd.xlane.f32.xlu1 %v15197_v50 }
 0xc05   : > { %5465 = vadd.xlane.f32.xlu1 %v15200_v27  ;;  %11775 = vrot.lane.b32.xlu0 %v16648_v43, %s12481_s5 }
 0xc09   : > { %6766 = vrot.lane.b32.xlu0 %v16656_v2, %s12482_s6  ;;  %5467 = vadd.xlane.f32.xlu1 %v15204_v23  ;;  %v15277_v2 = vsel %vm16529_vm8, %v6189_v47, -1e+30 }
 0xc0a   : > { %16682 = vst [vmem:[#allocation50_spill] sm:$0xff] %v15277_v2  ;;  %v15319_v47 = vpop.xlane.xlu0 %5445 }
 0xc0d   : > { %6770 = vrot.lane.b32.xlu0 %v16657_v20, %s12482_s6  ;;  %v15279_v20 = vpop.permute.xlu1 %11725 }
 0xc11   : > { %6774 = vrot.lane.b32.xlu0 %v16658_v24, %s12482_s6  ;;  %v6193_v24 = vmul.f32 0.17677669, %v15184_v60  ;;  %v15302_v60 = vsel %vm16689_vm4, %v6195_v51, -1e+30  ;;  %v16694_v51 = vld [vmem:[#allocation45_spill] sm:$0xff] }
 0xc12   : > { %16690 = vst [vmem:[#allocation48_spill] sm:$0xff] %v15302_v60  ;;  %vm16695_vm7 = vnez %v16694_v51 }
 0xc15   : > { %6778 = vrot.lane.b32.xlu0 %v16659_v5, %s12482_s6 }
 0xc19   : > { %6782 = vrot.lane.b32.xlu0 %v16660_v34, %s12482_s6  ;;  %v15287_v34 = vsel %vm16367_vm2, %v6191_v8, -1e+30 }
 0xc1a   : > { %11760 = vrot.lane.b32.xlu1 %v16626_v53, %s12481_s5  ;;  %16685 = vst [vmem:[#allocation49_spill] sm:$0xff] %v15287_v34 }
 0xc1d   : > { %6786 = vrot.lane.b32.xlu0 %v16661_v22, %s12482_s6  ;;  %v15289_v22 = vpop.xlane.xlu1 %5439 }
 0xc1e   : > { %11765 = vrot.lane.b32.xlu1 %v16662_v39, %s12481_s5  ;;  %12233 = vrcp.f32 %v15289_v22 }
 0xc21   : > { %6790 = vrot.lane.b32.xlu0 %v16663_v55, %s12482_s6 }
 0xc22   : > { %11770 = vrot.lane.b32.xlu1 %v16664_v40, %s12481_s5 }
 0xc26   : > { %11780 = vrot.lane.b32.xlu1 %v16665_v42, %s12481_s5 }
 0xc2a   : > { %11785 = vrot.lane.b32.xlu1 %v16666_v3, %s12481_s5 }
 0xc2e   : > { %11790 = vrot.lane.b32.xlu1 %v16655_v9, %s12481_s5 }
 0xc32   : > { %11795 = vrot.lane.b32.xlu1 %v16654_v6, %s12481_s5  ;;  %s7959_s5 = sshll.u32 %s189_s30, 7 }
 0xc33   : > { %s15965_s9 = scalar_lea.vmem [#allocation2], %s7959_s5 }
 0xc36   : > { %6764 = vrot.lane.b32.xlu1 %v16667_v12, %s12482_s6  ;;  %v15295_v12 = vsel %vm16598_vm13, %v6193_v24, -1e+30  ;;  %v6188_v24 = vmul.f32 0.17677669, %v15163_v56  ;;  %v6192_v56 = vmul.f32 0.17677669, %v15173_v62 }
 0xc37   : > { %16687 = vst [vmem:[#allocation65_spill] sm:$0xff] %v15295_v12  ;;  %v6196_v62 = vmul.f32 0.17677669, %v15188_v18  ;;  %v11728_v18 = vunpack.i.h.bf16 %v15279_v20 }
 0xc3a   : > { %6768 = vrot.lane.b32.xlu1 %v16668_v13, %s12482_s6  ;;  %v15298_v13 = vpop.xlane.xlu1 %5441 }
 0xc3b   : > { %12235 = vrcp.f32 %v15298_v13 }
 0xc3e   : > { %6772 = vrot.lane.b32.xlu1 %v16669_v7, %s12482_s6  ;;  %v15305_v7 = vpop.xlane.xlu1 %5443 }
 0xc3f   : > { %12237 = vrcp.f32 %v15305_v7 }
 0xc40   : > { %6213 = vmax.xlane.f32.xlu0 %v15237_v15  ;;  %12239 = vrcp.f32 %v15319_v47 }
 0xc42   : > { %6776 = vrot.lane.b32.xlu1 %v16671_v19, %s12482_s6  ;;  %v15307_v54 = vpop.permute.xlu1 %11735 }
 0xc43   : > { %v11738_v6 = vunpack.i.h.bf16 %v15307_v54 }
 0xc44   : > { %6217 = vmax.xlane.f32.xlu0 %v15245_v63 }
 0xc46   : > { %6780 = vrot.lane.b32.xlu1 %v16673_v57, %s12482_s6  ;;  %v5694_v57 = vrot.slane %v16691_v61, 4  ;;  %v15334_v61 = vpop.permute.xlu0 %11740 }
 0xc48   : > { %6219 = vmax.xlane.f32.xlu0 %v15253_v32 }
 0xc49   : > { %v15309_v19 = vpop.xlane.xlu1 %5447 }
 0xc4a   : > { %6784 = vrot.lane.b32.xlu1 %v16675_v21, %s12482_s6  ;;  %v6182_v21 = vmul.f32 0.17677669, %v15145_v33  ;;  %v15345_v55 = vpop.permute.xlu0 %11745  ;;  %12241 = vrcp.f32 %v15309_v19 }
 0xc4c   : > { %6221 = vmax.xlane.f32.xlu0 %v15261_v11 }
 0xc4d   : > { %v15314_v14 = vpop.xlane.xlu1 %5449 }
 0xc4e   : > { %6788 = vrot.lane.b32.xlu1 %v16677_v16, %s12482_s6  ;;  %v6186_v16 = vmul.f32 0.17677669, %v15159_v0  ;;  %v15355_v38 = vpop.xlane.xlu0 %5455  ;;  %12243 = vrcp.f32 %v15314_v14 }
 0xc50   : > { %6225 = vmax.xlane.f32.xlu0 %v15269_v31  ;;  %v15331_v33 = vsel %vm16695_vm7, %v6186_v16, -1e+30  ;;  %v16699_v16 = vld [vmem:[#allocation32_spill] sm:$0xff]  ;;  %v16713_v31 = vld [vmem:[#allocation29_spill] sm:$0xff] }
 0xc51   : > { %vm16700_vm15 = vnez %v16699_v16 }
 0xc52   : > { %6792 = vrot.lane.b32.xlu1 %v16680_v26, %s12482_s6  ;;  %v16692_v26 = vld [vmem:[#allocation40_spill] sm:$0xff] }
 0xc53   : > { %vm16693_vm6 = vnez %v16692_v26 }
 0xc54   : > { %6229 = vmax.xlane.f32.xlu0 %v15277_v2  ;;  %v15323_v8 = vsel %vm16693_vm6, %v6182_v21, -1e+30  ;;  %v16696_v21 = vld [vmem:[#allocation30_spill] sm:$0xff] }
 0xc55   : > { %vm16697_vm5 = vnez %v16696_v21 }
 0xc56   : > { %6794 = vrot.lane.b32.xlu1 %v16683_v46, %s12482_s6  ;;  %v15325_v46 = vpop.xlane.xlu1 %5451  ;;  %v15341_v1 = vsel %vm16697_vm5, %v6188_v24, -1e+30  ;;  %v16701_v24 = vld [vmem:[#allocation34_spill] sm:$0xff] }
 0xc57   : > { %16698 = vst [vmem:[#allocation66_spill] sm:$0xff] %v15341_v1  ;;  %vm16702_vm12 = vnez %v16701_v24  ;;  %12245 = vrcp.f32 %v15325_v46  ;;  %v16725_v46 = vld [vmem:[#allocation63_spill] sm:$0xff] }
 0xc58   : > { %6233 = vmax.xlane.f32.xlu0 %v15287_v34  ;;  %v15359_v21 = vsel %vm16702_vm12, %v6192_v56, -1e+30  ;;  %v15376_v56 = vsel %vm16707_vm0, %v6196_v62, -1e+30 }
 0xc59   : > { %16708 = vst [vmem:[#allocation47_spill] sm:$0xff] %v15376_v56 }
 0xc5a   : > { %v15336_v0 = vpop.xlane.xlu1 %5453 }
 0xc5b   : > { %12247 = vrcp.f32 %v15336_v0 }
 0xc5c   : > { %6237 = vmax.xlane.f32.xlu0 %v15295_v12  ;;  %12249 = vrcp.f32 %v15355_v38 }
 0xc5e   : > { %v15351_v5 = vpop.permute.xlu1 %11750 }
 0xc60   : > { %6241 = vmax.xlane.f32.xlu0 %v15302_v60  ;;  %v11733_v60 = vunpack.i.h.bf16 %v11731_v58 }
 0xc62   : > { %v10866_v2 = vpack.c.bf16 %v11733_v60, %v11732_v41  ;;  %v11742_v41 = vunpack.i.l.bf16 %v15334_v61 }
 0xc76   : > { %5695 = vrot.lane.b32.xlu0 %v5694_v57, %s12470_s7  ;;  %v6190_v57 = vmul.f32 0.17677669, %v15167_v59  ;;  %v6194_v59 = vmul.f32 0.17677669, %v15181_v10  ;;  %v15372_v10 = vpop.xlane.xlu0 %5459 }
 0xc78   : > { %v15349_v51 = vsel %vm16700_vm15, %v6190_v57, -1e+30  ;;  %v16703_v57 = vld [vmem:[#allocation36_spill] sm:$0xff] }
 0xc79   : > { %vm16704_vm14 = vnez %v16703_v57  ;;  %v11727_v57 = vunpack.i.l.bf16 %v15279_v20 }
 0xc7a   : > { %6215 = vmax.xlane.f32.xlu1 %v15323_v8  ;;  %v15367_v16 = vsel %vm16704_vm14, %v6194_v59, -1e+30  ;;  %v15383_v59 = vpop.permute.xlu0 %11755  ;;  %vm16709_vm14 = vcmask 31744  }
 0xc7b   : > { %16705 = vst [vmem:[#allocation51_spill] sm:$0xff] %v15367_v16  ;;  %vm16710_vm0 = vmmov %vm16709_vm14  ;;  %v10862_v12 = vpack.c.bf16 %v11728_v18, %v11727_v57  ;;  %v11758_v22 = vunpack.i.h.bf16 %v15383_v59 }
 0xc7c   : > { %vm16711_vm12 = vmmov %vm16710_vm0 }
 0xc7d   : > { %vm16719_vm15 = vmmov %vm16711_vm12 }
 0xc7e   : > { %6223 = vmax.xlane.f32.xlu1 %v15331_v33  ;;  %v15388_v62 = vpop.xlane.xlu0 %5463 }
 0xc82   : > { %6227 = vmax.xlane.f32.xlu1 %v15341_v1 }
 0xc86   : > { %6231 = vmax.xlane.f32.xlu1 %v15349_v51 }
 0xc8a   : > { %v15361_v35 = vpop.xlane.xlu1 %5457  ;;  %6235 = vmax.xlane.f32.xlu1 %v15359_v21 }
 0xc8b   : > { %12251 = vrcp.f32 %v15361_v35 }
 0xc8c   : > { %12253 = vrcp.f32 %v15372_v10 }
 0xc8e   : > { %v15369_v44 = vpop.xlane.xlu1 %5461  ;;  %6239 = vmax.xlane.f32.xlu1 %v15367_v16 }
 0xc8f   : > { %12255 = vrcp.f32 %v15369_v44 }
 0xc90   : > { %12257 = vrcp.f32 %v15388_v62 }
 0xc92   : > { %v15378_v24 = vpop.xlane.xlu1 %5465  ;;  %6243 = vmax.xlane.f32.xlu1 %v15376_v56 }
 0xc93   : > { %12259 = vrcp.f32 %v15378_v24 }
 0xc96   : > { %v15385_v17 = vpop.xlane.xlu1 %5467  ;;  %v9876_v26 = vpop.f32.mrb[96].mxu1 }
 0xc97   : > { %v4759_v25 = vpop.f32.mrb[97].mxu1  ;;  %12261 = vrcp.f32 %v15385_v17 }
 0xc98   : > { %9900 = vmatprep.mubr.msk.f32.mxu1 %vm16709_vm14, %v4759_v25  ;;  %v11737_v25 = vunpack.i.l.bf16 %v15307_v54  ;;  %vm16712_vm14 = vmmov %vm16710_vm0 }
 0xc99   : > { %9901 = vmatmul.mubr.msk.f32.vlgmr.msra.gmra.mrb[48].mxu1 %vm16710_vm0, %v9876_v26  ;;  %vm16714_vm0 = vnez %v16713_v31 }
 0xc9a   : > { %10861 = vmatpush3.bf16.msra.mxu1 %v15118_v28  ;;  %v11761_v56 = vpop.permute.xlu1 %11760  ;;  %v9879_v34 = vpop.f32.mrb[98].mxu1 }
 0xc9b   : > { %v11763_v20 = vunpack.i.h.bf16 %v11761_v56  ;;  %v11762_v9 = vunpack.i.l.bf16 %v11761_v56  ;;  %10863 = vmatprep.subr.bf16.mxu1 %v10862_v12  ;;  %v4769_v16 = vpop.f32.mrb[99].mxu1  ;;  %v15396_v28 = vpop.permute.xlu0 %11775 }
 0xc9c   : > { %9903 = vmatprep.mubr.msk.f32.mxu1 %vm16711_vm12, %v4769_v16 }
 0xc9d   : > { %v10970_v58 = vpack.c.bf16 %v11763_v20, %v11762_v9  ;;  %9904 = vmatmul.mubr.msk.f32.gmra.mrb[50].mxu1 %vm16712_vm14, %v9879_v34  ;;  %v11743_v9 = vunpack.i.h.bf16 %v15334_v61  ;;  %vm16715_vm14 = vmmov %vm16711_vm12 }
 0xc9e   : > { %10865 = vmatpush3.bf16.msra.mxu1 %v10862_v12  ;;  %v11766_v26 = vpop.permute.xlu1 %11765  ;;  %v9882_v57 = vpop.f32.mrb[100].mxu1  ;;  %v10870_v12 = vpack.c.bf16 %v11738_v6, %v11737_v25  ;;  %v11747_v6 = vunpack.i.l.bf16 %v15345_v55 }
 0xc9f   : > { %v11768_v18 = vunpack.i.h.bf16 %v11766_v26  ;;  %v11767_v1 = vunpack.i.l.bf16 %v11766_v26  ;;  %10867 = vmatprep.subr.bf16.mxu1 %v10866_v2  ;;  %v4779_v56 = vpop.f32.mrb[101].mxu1  ;;  %10972 = vmatprep.subr.msk.bf16.mxu0 %vm16714_vm0, %v10970_v58  ;;  %v10874_v61 = vpack.c.bf16 %v11743_v9, %v11742_v41 }
 0xca0   : > { %9906 = vmatprep.mubr.msk.f32.mxu1 %vm16711_vm12, %v4779_v56  ;;  %10975 = vmatpush3.bf16.xpose.msk.msra.mxu0 %vm16714_vm0, %v10970_v58  ;;  %v11753_v56 = vunpack.i.h.bf16 %v15351_v5 }
 0xca1   : > { %v10976_v34 = vpack.c.bf16 %v11768_v18, %v11767_v1  ;;  %9907 = vmatmul.mubr.msk.f32.gmra.mrb[52].mxu1 %vm16715_vm14, %v9882_v57  ;;  %v11748_v1 = vunpack.i.h.bf16 %v15345_v55  ;;  %vm16716_vm14 = vmmov %vm16711_vm12 }
 0xca2   : > { %10869 = vmatpush3.bf16.msra.mxu1 %v10866_v2  ;;  %v11771_v60 = vpop.permute.xlu1 %11770  ;;  %v9885_v54 = vpop.f32.mrb[102].mxu1 }
 0xca3   : > { %10871 = vmatprep.subr.bf16.mxu1 %v10870_v12  ;;  %10978 = vmatprep.subr.msk.bf16.mxu0 %vm16714_vm0, %v10976_v34  ;;  %v4789_v16 = vpop.f32.mrb[103].mxu1  ;;  %v11773_v20 = vunpack.i.h.bf16 %v11771_v60  ;;  %v11772_v26 = vunpack.i.l.bf16 %v11771_v60  ;;  %v15413_v2 = vpop.permute.xlu0 %6766  ;;  %v10878_v55 = vpack.c.bf16 %v11748_v1, %v11747_v6  ;;  %v11752_v60 = vunpack.i.l.bf16 %v15351_v5 }
 0xca4   : > { %11800 = vrot.lane.b32.xlu1 %v16626_v53, %s12483_s8  ;;  %9909 = vmatprep.mubr.msk.f32.mxu1 %vm16711_vm12, %v4789_v16  ;;  %v12232_v1 = vpop.eup %12231 }
 0xca5   : > { %9910 = vmatmul.mubr.msk.f32.gmra.mrb[54].mxu1 %vm16716_vm14, %v9885_v54  ;;  %v10982_v18 = vpack.c.bf16 %v11773_v20, %v11772_v26  ;;  %vm16717_vm14 = vmmov %vm16711_vm12  ;;  %v11757_v54 = vunpack.i.l.bf16 %v15383_v59  ;;  %v10882_v16 = vpack.c.bf16 %v11753_v56, %v11752_v60 }
 0xca6   : > { %10873 = vmatpush3.bf16.msra.mxu1 %v10870_v12  ;;  %v15416_v25 = vpop.permute.xlu1 %11780  ;;  %v9888_v58 = vpop.f32.mrb[104].mxu1  ;;  %v11778_v12 = vunpack.i.h.bf16 %v15396_v28 }
 0xca7   : > { %10875 = vmatprep.subr.bf16.mxu1 %v10874_v61  ;;  %v4799_v57 = vpop.f32.mrb[105].mxu1  ;;  %v15433_v41 = vpop.permute.xlu0 %6770  ;;  %v10886_v6 = vpack.c.bf16 %v11758_v22, %v11757_v54 }
 0xca8   : > { %11805 = vrot.lane.b32.xlu1 %v16662_v39, %s12483_s8  ;;  %9912 = vmatprep.mubr.msk.f32.mxu1 %vm16711_vm12, %v4799_v57  ;;  %v11783_v57 = vunpack.i.h.bf16 %v15416_v25 }
 0xca9   : > { %10981 = vmatpush3.bf16.xpose.msk.msra.mxu0 %vm16714_vm0, %v10976_v34  ;;  %9913 = vmatmul.mubr.msk.f32.gmra.mrb[56].mxu1 %vm16717_vm14, %v9888_v58  ;;  %v11777_v34 = vunpack.i.l.bf16 %v15396_v28  ;;  %vm16718_vm14 = vmmov %vm16711_vm12  ;;  %v12234_v58 = vpop.eup %12233 }
 0xcaa   : > { %10877 = vmatpush3.bf16.msra.mxu1 %v10874_v61  ;;  %10984 = vmatprep.subr.msk.bf16.mxu0 %vm16714_vm0, %v10982_v18  ;;  %v15430_v30 = vpop.permute.xlu1 %11785  ;;  %v9891_v9 = vpop.f32.mrb[106].mxu1 }
 0xcab   : > { %10879 = vmatprep.subr.bf16.mxu1 %v10878_v55  ;;  %v4809_v5 = vpop.f32.mrb[107].mxu1  ;;  %v10988_v28 = vpack.c.bf16 %v11778_v12, %v11777_v34  ;;  %v15446_v61 = vpop.permute.xlu0 %6774  ;;  %v16724_v34 = vld [vmem:[#allocation64_spill] sm:$0xff] }
 0xcac   : > { %9915 = vmatprep.mubr.msk.f32.mxu1 %vm16711_vm12, %v4809_v5  ;;  %v12236_v56 = vpop.eup %12235 }
 0xcad   : > { %9916 = vmatmul.mubr.msk.f32.gmra.mrb[58].mxu1 %vm16718_vm14, %v9891_v9  ;;  %vm16722_vm14 = vmmov %vm16711_vm12  ;;  %v16723_v9 = vld [vmem:[#allocation62_spill] sm:$0xff]  ;;  %v12238_v5 = vpop.eup %12237  ;;  %v5487_v22 = vmul.f32 %v12236_v56, %v16724_v34 }
 0xcae   : > { %10881 = vmatpush3.bf16.msra.mxu1 %v10878_v55  ;;  %v15442_v13 = vpop.permute.xlu1 %11790  ;;  %v9894_v20 = vpop.f32.mrb[108].mxu1  ;;  %v16721_v55 = vld [vmem:[#allocation61_spill] sm:$0xff]  ;;  %v5488_v0 = vmul.f32 %v12238_v5, %v16725_v46 }
 0xcaf   : > { %10883 = vmatprep.subr.bf16.mxu1 %v10882_v16  ;;  %v4819_v26 = vpop.f32.mrb[109].mxu1  ;;  %v5485_v19 = vmul.f32 %v12232_v1, %v16721_v55  ;;  %v15464_v14 = vpop.permute.xlu0 %6778  ;;  %v16726_v1 = vld [vmem:[#allocation60_spill] sm:$0xff] }
 0xcb0   : > { %9918 = vmatprep.mubr.msk.f32.mxu1 %vm16719_vm15, %v4819_v26  ;;  %vm16720_vm15 = vmmov %vm16711_vm12  ;;  %v12240_v54 = vpop.eup %12239  ;;  %v11787_v26 = vunpack.i.l.bf16 %v15430_v30 }
 0xcb1   : > { %10987 = vmatpush3.bf16.xpose.msk.msra.mxu0 %vm16714_vm0, %v10982_v18  ;;  %9919 = vmatmul.mubr.msk.f32.gmra.mrb[60].mxu1 %vm16711_vm12, %v9894_v20  ;;  %v11782_v18 = vunpack.i.l.bf16 %v15416_v25  ;;  %v5486_v25 = vmul.f32 %v12234_v58, %v16723_v9  ;;  %v11788_v20 = vunpack.i.h.bf16 %v15430_v30  ;;  %v11792_v30 = vunpack.i.l.bf16 %v15442_v13 }
 0xcb2   : > { %10885 = vmatpush3.bf16.msra.mxu1 %v10882_v16  ;;  %10990 = vmatprep.subr.msk.bf16.mxu0 %vm16714_vm0, %v10988_v28  ;;  %v15454_v7 = vpop.permute.xlu1 %11795  ;;  %v9897_v47 = vpop.f32.mrb[110].mxu1 }
 0xcb3   : > { %10887 = vmatprep.subr.bf16.mxu1 %v10886_v6  ;;  %v4829_v59 = vpop.f32.mrb[111].mxu1  ;;  %v10994_v12 = vpack.c.bf16 %v11783_v57, %v11782_v18  ;;  %v12242_v16 = vpop.eup %12241 }
 0xcb4   : > { %9921 = vmatprep.mubr.msk.f32.mxu1 %vm16720_vm15, %v4829_v59  ;;  %v5490_v38 = vmul.f32 %v12242_v16, %v15101_v48  ;;  %v11000_v59 = vpack.c.bf16 %v11788_v20, %v11787_v26  ;;  %vm16727_vm15 = vmmov %vm16711_vm12 }
 0xcb5   : > { %9922 = vmatmul.mubr.msk.f32.gmra.mrb[62].mxu1 %vm16722_vm14, %v9897_v47  ;;  %v12244_v47 = vpop.eup %12243  ;;  %vm16728_vm14 = vmmov %vm16711_vm12 }
 0xcb6   : > { %10889 = vmatpush3.bf16.msra.mxu1 %v10886_v6  ;;  %v6765_v60 = vpop.permute.xlu1 %6764  ;;  %10012 = vmatprep.mubr.f32.mxu1 %v5485_v19  ;;  %v5489_v6 = vmul.f32 %v12240_v54, %v16726_v1  ;;  %v12246_v35 = vpop.eup %12245  ;;  %v5491_v58 = vmul.f32 %v12244_v47, %v15108_v29  ;;  %v11793_v29 = vunpack.i.h.bf16 %v15442_v13  ;;  %v11798_v13 = vunpack.i.h.bf16 %v15454_v7 }
 0xcb7   : > { %10232 = vmatprep.mubr.msk.f32.mxu0 %vm16711_vm12, %v6765_v60  ;;  %v12248_v57 = vpop.eup %12247  ;;  %v5492_v48 = vmul.f32 %v12246_v35, %v15115_v52 }
 0xcb8   : > { %v12250_v10 = vpop.eup %12249  ;;  %v5493_v18 = vmul.f32 %v12248_v57, %v15128_v49  ;;  %v11006_v24 = vpack.c.bf16 %v11793_v29, %v11792_v30 }
 0xcb9   : > { %10993 = vmatpush3.bf16.xpose.msk.msra.mxu0 %vm16714_vm0, %v10988_v28  ;;  %10013 = vmatmul.mubr.f32.vlgmr.msra.gmra.mrb[112].mxu1 %v5486_v25  ;;  %v15479_v28 = vpop.permute.xlu0 %6782  ;;  %v12252_v55 = vpop.eup %12251  ;;  %v5494_v62 = vmul.f32 %v12250_v10, %v15086_v45  ;;  %v11797_v45 = vunpack.i.l.bf16 %v15454_v7 }
 0xcba   : > { %10996 = vmatprep.subr.msk.bf16.mxu0 %vm16714_vm0, %v10994_v12  ;;  %10015 = vmatprep.mubr.f32.mxu1 %v5487_v22  ;;  %v12254_v19 = vpop.eup %12253  ;;  %v5495_v56 = vmul.f32 %v12252_v55, %v15194_v36  ;;  %v6769_v46 = vpop.permute.xlu1 %6768 }
 0xcbb   : > { %v12256_v60 = vpop.eup %12255  ;;  %v5496_v49 = vmul.f32 %v12254_v19, %v15098_v4  ;;  %v11012_v22 = vpack.c.bf16 %v11798_v13, %v11797_v45 }
 0xcbc   : > { %v12258_v17 = vpop.eup %12257  ;;  %v5497_v9 = vmul.f32 %v12256_v60, %v15197_v50 }
 0xcbd   : > { %10016 = vmatmul.mubr.f32.gmra.mrb[114].mxu1 %v5488_v0  ;;  %v15491_v44 = vpop.permute.xlu0 %6786  ;;  %v12260_v36 = vpop.eup %12259 }
 0xcbe   : > { %10018 = vmatprep.mubr.f32.mxu1 %v5489_v6  ;;  %v12262_v34 = vpop.eup %12261  ;;  %v5499_v4 = vmul.f32 %v12260_v36, %v15200_v27  ;;  %v16742_v36 = vld [vmem:[#allocation46_spill] sm:$0xff] }
 0xcbf   : > { %v5500_v50 = vmul.f32 %v12262_v34, %v15204_v23  ;;  %v16743_v34 = vld [vmem:[#allocation66_spill] sm:$0xff] }
 0xcc1   : > { %10999 = vmatpush3.bf16.xpose.msk.msra.mxu0 %vm16714_vm0, %v10994_v12  ;;  %10019 = vmatmul.mubr.f32.gmra.mrb[116].mxu1 %v5490_v38  ;;  %v6791_v52 = vpop.permute.xlu0 %6790  ;;  %v5498_v12 = vmul.f32 %v12258_v17, %v15177_v37  ;;  %v6773_v37 = vpop.permute.xlu1 %6772 }
 0xcc2   : > { %11002 = vmatprep.subr.msk.bf16.mxu0 %vm16714_vm0, %v11000_v59  ;;  %10021 = vmatprep.mubr.f32.mxu1 %v5491_v58 }
 0xcc5   : > { %10022 = vmatmul.mubr.f32.gmra.mrb[118].mxu1 %v5492_v48  ;;  %v6777_v16 = vpop.permute.xlu1 %6776 }
 0xcc6   : > { %10024 = vmatprep.mubr.f32.mxu1 %v5493_v18 }
 0xcc9   : > { %11005 = vmatpush3.bf16.xpose.msk.msra.mxu0 %vm16714_vm0, %v11000_v59  ;;  %10025 = vmatmul.mubr.f32.gmra.mrb[120].mxu1 %v5494_v62  ;;  %v6781_v26 = vpop.permute.xlu1 %6780 }
 0xcca   : > { %11008 = vmatprep.subr.msk.bf16.mxu0 %vm16714_vm0, %v11006_v24  ;;  %10027 = vmatprep.mubr.f32.mxu1 %v5495_v56 }
 0xccd   : > { %v6214_v25 = vpop.xlane.xlu0 %6213  ;;  %10028 = vmatmul.mubr.f32.gmra.mrb[122].mxu1 %v5496_v49  ;;  %v6785_v1 = vpop.permute.xlu1 %6784 }
 0xcce   : > { %v6245_v5 = vsub.f32 %v15237_v15, %v6214_v25  ;;  %10030 = vmatprep.mubr.f32.mxu1 %v5497_v9 }
 0xcd0   : > { %v6261_v54 = vmul.f32 1.442695, %v6245_v5 }
 0xcd1   : > { %11011 = vmatpush3.bf16.xpose.msk.msra.mxu0 %vm16714_vm0, %v11006_v24  ;;  %v6218_v7 = vpop.xlane.xlu0 %6217  ;;  %10031 = vmatmul.mubr.f32.gmra.mrb[124].mxu1 %v5498_v12 }
 0xcd2   : > { %12263 = vpow2.f32 %v6261_v54  ;;  %11014 = vmatprep.subr.msk.bf16.mxu0 %vm16714_vm0, %v11012_v22  ;;  %10033 = vmatprep.mubr.f32.mxu1 %v5499_v4  ;;  %v6247_v59 = vsub.f32 %v15245_v63, %v6218_v7 }
 0xcd4   : > { %v6265_v48 = vmul.f32 1.442695, %v6247_v59 }
 0xcd5   : > { %v6220_v15 = vpop.xlane.xlu0 %6219  ;;  %10034 = vmatmul.mubr.f32.gmra.mrb[126].mxu1 %v5500_v50 }
 0xcd6   : > { %v6248_v10 = vsub.f32 %v15253_v32, %v6220_v15 }
 0xcd8   : > { %v6267_v30 = vmul.f32 1.442695, %v6248_v10 }
 0xcd9   : > { %11017 = vmatpush3.bf16.xpose.msk.msra.mxu0 %vm16714_vm0, %v11012_v22  ;;  %v6222_v27 = vpop.xlane.xlu0 %6221  ;;  %vm16729_vm0 = vmmov %vm16711_vm12 }
 0xcda   : > { %vm16730_vm4 = vmmov %vm16729_vm0 }
 0xcdb   : > { %vm16731_vm13 = vmmov %vm16729_vm0 }
 0xcdc   : > { %v15518_v0 = vpop.eup %12263  ;;  %vm16739_vm5 = vmmov %vm16729_vm0 }
 0xcdd   : > { %v15520_v20 = vpop.xlane.xlu0 %6225  ;;  %6293 = vadd.xlane.f32.xlu0 %v15518_v0  ;;  %vm16740_vm7 = vmmov %vm16729_vm0 }
 0xcde   : > { %v6251_v25 = vsub.f32 %v16742_v36, %v15520_v20 }
 0xce0   : > { %10233 = vmatmul.mubr.msk.f32.vlgmr.msra.gmra.mrb[128].mxu0 %vm16727_vm15, %v15413_v2  ;;  %vm16732_vm15 = vmmov %vm16729_vm0  ;;  %v6273_v12 = vmul.f32 1.442695, %v6251_v25 }
 0xce1   : > { %10235 = vmatprep.mubr.msk.f32.mxu0 %vm16728_vm14, %v6769_v46  ;;  %v15526_v23 = vpop.xlane.xlu0 %6229  ;;  %vm16733_vm14 = vmmov %vm16729_vm0 }
 0xce4   : > { %10236 = vmatmul.mubr.msk.f32.gmra.mrb[130].mxu0 %vm16711_vm12, %v15433_v41  ;;  %v6789_v41 = vpop.permute.xlu1 %6788  ;;  %vm16734_vm12 = vmmov %vm16729_vm0 }
 0xce5   : > { %10238 = vmatprep.mubr.msk.f32.mxu0 %vm16729_vm0, %v6773_v37  ;;  %v15531_v31 = vpop.xlane.xlu0 %6233 }
 0xce8   : > { %10239 = vmatmul.mubr.msk.f32.gmra.mrb[132].mxu0 %vm16730_vm4, %v15446_v61  ;;  %vm16735_vm4 = vcmask 1043456   ;;  %v6793_v61 = vpop.permute.xlu1 %6792 }
 0xce9   : > { %10241 = vmatprep.mubr.msk.f32.mxu0 %vm16731_vm13, %v6777_v16  ;;  %v15536_v6 = vpop.xlane.xlu0 %6237  ;;  %vm16736_vm13 = vmmov %vm16735_vm4  ;;  %v16746_v16 = vld [vmem:[#allocation51_spill] sm:$0xff] }
 0xcec   : > { %10242 = vmatmul.mubr.msk.f32.gmra.mrb[134].mxu0 %vm16732_vm15, %v15464_v14  ;;  %vm16737_vm15 = vmmov %vm16729_vm0  ;;  %v6795_v14 = vpop.permute.xlu1 %6794 }
 0xced   : > { %10244 = vmatprep.mubr.msk.f32.mxu0 %vm16733_vm14, %v6781_v26  ;;  %v15541_v2 = vpop.xlane.xlu0 %6241  ;;  %vm16738_vm14 = vmmov %vm16729_vm0 }
 0xcf0   : > { %10245 = vmatmul.mubr.msk.f32.gmra.mrb[136].mxu0 %vm16734_vm12, %v15479_v28  ;;  %vm16741_vm12 = vmmov %vm16729_vm0  ;;  %v6249_v28 = vsub.f32 %v15261_v11, %v6222_v27  ;;  %v16745_v27 = vld [vmem:[#allocation28_spill] sm:$0xff] }
 0xcf1   : > { %10247 = vmatprep.mubr.msk.f32.mxu0 %vm16729_vm0, %v6785_v1  ;;  %v5696_v47 = vpop.permute.xlu0 %5695  ;;  %v16748_v1 = vld [vmem:[#allocation49_spill] sm:$0xff] }
 0xcf2   : > { %10036 = vmatprep.subr.msk.mxu1 %vm16735_vm4, %v5696_v47  ;;  %v6269_v38 = vmul.f32 1.442695, %v6249_v28  ;;  %vm16754_vm4 = vmmov %vm16729_vm0 }
 0xcf3   : > { %11810 = vrot.lane.b32.xlu0 %v16664_v40, %s12483_s8  ;;  %10037 = vmatpush3.msk.msra.mxu1 %vm16736_vm13, %v5696_v47  ;;  %vm16755_vm13 = vmmov %vm16729_vm0 }
 0xcf4   : > { %10248 = vmatmul.mubr.msk.f32.gmra.mrb[138].mxu0 %vm16737_vm15, %v15491_v44  ;;  %12265 = vpow2.f32 %v6269_v38  ;;  %vm16756_vm15 = vmmov %vm16729_vm0 }
 0xcf5   : > { %10250 = vmatprep.mubr.msk.f32.mxu0 %vm16738_vm14, %v6789_v41  ;;  %v6255_v41 = vsub.f32 %v16748_v1, %v15531_v31  ;;  %vm16757_vm14 = vmmov %vm16729_vm0 }
 0xcf8   : > { %10251 = vmatmul.mubr.msk.f32.gmra.mrb[140].mxu0 %vm16739_vm5, %v6791_v52  ;;  %vm16753_vm5 = vmmov %vm16729_vm0 }
 0xcf9   : > { %10253 = vmatprep.mubr.msk.f32.mxu0 %vm16740_vm7, %v6793_v61  ;;  %v6281_v61 = vmul.f32 1.442695, %v6255_v41  ;;  %vm16752_vm7 = vmmov %vm16729_vm0 }
 0xcfc   : > { %10254 = vmatmul.mubr.msk.f32.gmra.mrb[142].mxu0 %vm16741_vm12, %v6795_v14  ;;  %v16749_v14 = vld [vmem:[#allocation65_spill] sm:$0xff]  ;;  %vm16758_vm12 = vmmov %vm16729_vm0 }
 0xcfd   : > { %v6257_v28 = vsub.f32 %v16749_v14, %v15536_v6 }
 0xcfe   : > { %v15560_v18 = vpop.eup %12265 }
 0xcff   : > { %v6285_v59 = vmul.f32 1.442695, %v6257_v28 }
 0xd07   : > { %v6216_v35 = vpop.xlane.xlu1 %6215 }
 0xd08   : > { %v6246_v58 = vsub.f32 %v15323_v8, %v6216_v35 }
 0xd0a   : > { %v6263_v57 = vmul.f32 1.442695, %v6246_v58  ;;  %v16750_v58 = vld [vmem:[#allocation48_spill] sm:$0xff] }
 0xd0b   : > { %v6224_v44 = vpop.xlane.xlu1 %6223 }
 0xd0c   : > { %12267 = vpow2.f32 %v6263_v57  ;;  %v6250_v9 = vsub.f32 %v15331_v33, %v6224_v44  ;;  %v6259_v57 = vsub.f32 %v16750_v58, %v15541_v2 }
 0xd0d   : > { %12269 = vpow2.f32 %v6265_v48 }
 0xd0e   : > { %12271 = vpow2.f32 %v6267_v30  ;;  %v6271_v5 = vmul.f32 1.442695, %v6250_v9  ;;  %v6289_v30 = vmul.f32 1.442695, %v6259_v57 }
 0xd0f   : > { %v6228_v29 = vpop.xlane.xlu1 %6227 }
 0xd10   : > { %v6252_v22 = vsub.f32 %v16743_v34, %v6228_v29 }
 0xd12   : > { %6301 = vadd.xlane.f32.xlu0 %v15560_v18  ;;  %v6275_v4 = vmul.f32 1.442695, %v6252_v22 }
 0xd13   : > { %v6232_v11 = vpop.xlane.xlu1 %6231 }
 0xd14   : > { %v6254_v49 = vsub.f32 %v15349_v51, %v6232_v11  ;;  %v16744_v51 = vld [vmem:[#allocation50_spill] sm:$0xff]  ;;  %v16751_v11 = vld [vmem:[#allocation47_spill] sm:$0xff] }
 0xd16   : > { %v15563_v55 = vpop.eup %12267  ;;  %v6279_v17 = vmul.f32 1.442695, %v6254_v49 }
 0xd17   : > { %v6236_v63 = vpop.xlane.xlu1 %6235  ;;  %6295 = vadd.xlane.f32.xlu1 %v15563_v55  ;;  %v15566_v8 = vpop.eup %12269 }
 0xd18   : > { %v15569_v32 = vpop.eup %12271  ;;  %v6256_v13 = vsub.f32 %v15359_v21, %v6236_v63  ;;  %12273 = vpow2.f32 %v6279_v17  ;;  %v6253_v21 = vsub.f32 %v16744_v51, %v15526_v23  ;;  %v16747_v23 = vld [vmem:[#allocation25_spill] sm:$0xff] }
 0xd1a   : > { %v6283_v45 = vmul.f32 1.442695, %v6256_v13  ;;  %v6277_v33 = vmul.f32 1.442695, %v6253_v21 }
 0xd1b   : > { %v6240_v62 = vpop.xlane.xlu1 %6239  ;;  %6297 = vadd.xlane.f32.xlu1 %v15566_v8 }
 0xd1c   : > { %12275 = vpow2.f32 %v6283_v45  ;;  %v6258_v20 = vsub.f32 %v16746_v16, %v6240_v62 }
 0xd1d   : > { %12277 = vpow2.f32 %v6271_v5 }
 0xd1e   : > { %12279 = vpow2.f32 %v6273_v12  ;;  %v6287_v26 = vmul.f32 1.442695, %v6258_v20 }
 0xd1f   : > { %6299 = vadd.xlane.f32.xlu1 %v15569_v32  ;;  %v15572_v19 = vpop.xlane.xlu1 %6243  ;;  %12281 = vpow2.f32 %v6275_v4 }
 0xd20   : > { %12283 = vpow2.f32 %v6277_v33  ;;  %v6260_v63 = vsub.f32 %v16751_v11, %v15572_v19 }
 0xd21   : > { %12285 = vpow2.f32 %v6287_v26 }
 0xd22   : > { %v15589_v54 = vpop.eup %12273  ;;  %12287 = vpow2.f32 %v6281_v61 }
 0xd23   : > { %v11801_v24 = vpop.permute.xlu1 %11800  ;;  %12289 = vpow2.f32 %v6285_v59 }
 0xd24   : > { %v11803_v56 = vunpack.i.h.bf16 %v11801_v24  ;;  %v11802_v60 = vunpack.i.l.bf16 %v11801_v24  ;;  %12291 = vpow2.f32 %v6289_v30 }
 0xd26   : > { %v15574_v52 = vpack.c.bf16 %v11803_v56, %v11802_v60  ;;  %v15594_v46 = vpop.eup %12275  ;;  %v6291_v60 = vmul.f32 1.442695, %v6260_v63 }
 0xd27   : > { %v15597_v7 = vpop.eup %12277  ;;  %v11806_v35 = vpop.permute.xlu1 %11805 }
 0xd28   : > { %11820 = vrot.lane.b32.xlu0 %v16665_v42, %s12483_s8  ;;  %10939 = vmatprep.subr.bf16.mxu1 %v15574_v52  ;;  %v15600_v50 = vpop.eup %12279  ;;  %v11808_v44 = vunpack.i.h.bf16 %v11806_v35  ;;  %v11807_v48 = vunpack.i.l.bf16 %v11806_v35  ;;  %12293 = vpow2.f32 %v6291_v60 }
 0xd29   : > { %v15603_v15 = vpop.eup %12281 }
 0xd2a   : > { %v15606_v37 = vpop.eup %12283  ;;  %v10942_v6 = vpack.c.bf16 %v11808_v44, %v11807_v48 }
 0xd2b   : > { %v15616_v47 = vpop.eup %12285 }
 0xd2c   : > { %11825 = vrot.lane.b32.xlu0 %v16666_v3, %s12483_s8  ;;  %v15630_v19 = vpop.eup %12287 }
 0xd30   : > { %11815 = vrot.lane.b32.xlu1 %v16648_v43, %s12483_s8 }
 0xd4b   : > { %6311 = vadd.xlane.f32.xlu0 %v15589_v54 }
 0xd4f   : > { %6315 = vadd.xlane.f32.xlu0 %v15594_v46 }
 0xd54   : > { %6303 = vadd.xlane.f32.xlu1 %v15597_v7 }
 0xd58   : > { %6305 = vadd.xlane.f32.xlu1 %v15600_v50 }
 0xd5c   : > { %6307 = vadd.xlane.f32.xlu1 %v15603_v15 }
 0xd60   : > { %6309 = vadd.xlane.f32.xlu1 %v15606_v37 }
 0xd65   : > { %11835 = vrot.lane.b32.xlu0 %v16745_v27, %s12483_s8 }
 0xd6a   : > { %v6294_v38 = vpop.xlane.xlu0 %6293 }
 0xd6b   : > { %12295 = vrcp.f32 %v6294_v38 }
 0xd6e   : > { %v11811_v10 = vpop.permute.xlu0 %11810 }
 0xd6f   : > { %v11813_v62 = vunpack.i.h.bf16 %v11811_v10  ;;  %v11812_v24 = vunpack.i.l.bf16 %v11811_v10 }
 0xd71   : > { %11830 = vrot.lane.b32.xlu1 %v16747_v23, %s12483_s8  ;;  %v10946_v49 = vpack.c.bf16 %v11813_v62, %v11812_v24 }
 0xd84   : > { %6319 = vadd.xlane.f32.xlu0 %v15616_v47 }
 0xd8c   : > { %v10014_v29 = vpop.f32.mrb[112].mxu1 }
 0xd8d   : > { %v5615_v31 = vpop.f32.mrb[113].mxu1 }
 0xd8e   : > { %10038 = vmatprep.mubr.msk.f32.mxu1 %vm16752_vm7, %v5615_v31  ;;  %vm16759_vm7 = vmmov %vm16729_vm0 }
 0xd8f   : > { %10039 = vmatmul.mubr.msk.f32.vlgmr.msra.gmra.mrb[48].mxu1 %vm16753_vm5, %v10014_v29  ;;  %vm16760_vm5 = vmmov %vm16729_vm0 }
 0xd90   : > { %10941 = vmatpush3.bf16.msra.mxu1 %v15574_v52  ;;  %v10017_v2 = vpop.f32.mrb[114].mxu1  ;;  %v15635_v52 = vpop.eup %12289 }
 0xd91   : > { %10943 = vmatprep.subr.bf16.mxu1 %v10942_v6  ;;  %v5625_v56 = vpop.f32.mrb[115].mxu1  ;;  %v15640_v36 = vpop.eup %12291 }
 0xd92   : > { %10041 = vmatprep.mubr.msk.f32.mxu1 %vm16729_vm0, %v5625_v56  ;;  %v15645_v12 = vpop.eup %12293 }
 0xd93   : > { %10042 = vmatmul.mubr.msk.f32.gmra.mrb[50].mxu1 %vm16754_vm4, %v10017_v2  ;;  %vm16761_vm4 = vmmov %vm16729_vm0  ;;  %v12296_v16 = vpop.eup %12295 }
 0xd94   : > { %10945 = vmatpush3.bf16.msra.mxu1 %v10942_v6  ;;  %v10020_v17 = vpop.f32.mrb[116].mxu1  ;;  %v6341_v41 = vmul.f32 %v12296_v16, %v15518_v0 }
 0xd95   : > { %10947 = vmatprep.subr.bf16.mxu1 %v10946_v49  ;;  %6313 = vadd.xlane.f32.xlu1 %v15630_v19  ;;  %v5635_v13 = vpop.f32.mrb[117].mxu1 }
 0xd96   : > { %10044 = vmatprep.mubr.msk.f32.mxu1 %vm16755_vm13, %v5635_v13  ;;  %vm16762_vm13 = vmmov %vm16729_vm0 }
 0xd97   : > { %10045 = vmatmul.mubr.msk.f32.gmra.mrb[52].mxu1 %vm16756_vm15, %v10020_v17  ;;  %vm16763_vm15 = vmmov %vm16729_vm0 }
 0xd98   : > { %10949 = vmatpush3.bf16.msra.mxu1 %v10946_v49  ;;  %v10023_v45 = vpop.f32.mrb[118].mxu1 }
 0xd99   : > { %6317 = vadd.xlane.f32.xlu1 %v15635_v52  ;;  %v5645_v9 = vpop.f32.mrb[119].mxu1 }
 0xd9a   : > { %10047 = vmatprep.mubr.msk.f32.mxu1 %vm16757_vm14, %v5645_v9  ;;  %vm16764_vm14 = vmmov %vm16729_vm0 }
 0xd9b   : > { %10048 = vmatmul.mubr.msk.f32.gmra.mrb[54].mxu1 %vm16758_vm12, %v10023_v45  ;;  %vm16765_vm12 = vmmov %vm16729_vm0 }
 0xd9c   : > { %v10026_v25 = vpop.f32.mrb[120].mxu1 }
 0xd9d   : > { %6321 = vadd.xlane.f32.xlu1 %v15640_v36  ;;  %v5655_v5 = vpop.f32.mrb[121].mxu1 }
 0xd9e   : > { %10050 = vmatprep.mubr.msk.f32.mxu1 %vm16759_vm7, %v5655_v5  ;;  %vm16790_vm7 = vcmask 1043456  }
 0xd9f   : > { %10051 = vmatmul.mubr.msk.f32.gmra.mrb[56].mxu1 %vm16760_vm5, %v10026_v25  ;;  %v15652_v33 = vpop.xlane.xlu0 %6301  ;;  %vm16791_vm5 = vmmov %vm16790_vm7 }
 0xda0   : > { %v10029_v34 = vpop.f32.mrb[122].mxu1 }
 0xda1   : > { %6323 = vadd.xlane.f32.xlu1 %v15645_v12  ;;  %v5665_v22 = vpop.f32.mrb[123].mxu1 }
 0xda2   : > { %10053 = vmatprep.mubr.msk.f32.mxu1 %vm16729_vm0, %v5665_v22 }
 0xda3   : > { %10054 = vmatmul.mubr.msk.f32.gmra.mrb[58].mxu1 %vm16761_vm4, %v10029_v34  ;;  %v11821_v61 = vpop.permute.xlu0 %11820  ;;  %vm16792_vm4 = vmmov %vm16729_vm0 }
 0xda4   : > { %v15650_v51 = vpop.xlane.xlu1 %6295  ;;  %v10032_v21 = vpop.f32.mrb[124].mxu1  ;;  %v11823_v38 = vunpack.i.h.bf16 %v11821_v61  ;;  %v11822_v35 = vunpack.i.l.bf16 %v11821_v61 }
 0xda5   : > { %v5675_v4 = vpop.f32.mrb[125].mxu1  ;;  %12297 = vrcp.f32 %v15650_v51 }
 0xda6   : > { %10056 = vmatprep.mubr.msk.f32.mxu1 %vm16762_vm13, %v5675_v4  ;;  %v10954_v29 = vpack.c.bf16 %v11823_v38, %v11822_v35  ;;  %vm16793_vm13 = vmmov %vm16729_vm0 }
 0xda7   : > { %10057 = vmatmul.mubr.msk.f32.gmra.mrb[60].mxu1 %vm16763_vm15, %v10032_v21  ;;  %v11826_v57 = vpop.permute.xlu0 %11825  ;;  %vm16794_vm15 = vmmov %vm16729_vm0 }
 0xda8   : > { %v15656_v20 = vpop.xlane.xlu1 %6297  ;;  %v10035_v26 = vpop.f32.mrb[126].mxu1  ;;  %v11828_v31 = vunpack.i.h.bf16 %v11826_v57  ;;  %v11827_v30 = vunpack.i.l.bf16 %v11826_v57  ;;  %v16788_v57 = vld [vmem:[#allocation38_spill] sm:$0xff] }
 0xda9   : > { %v5685_v1 = vpop.f32.mrb[127].mxu1  ;;  %12299 = vrcp.f32 %v15656_v20 }
 0xdaa   : > { %10059 = vmatprep.mubr.msk.f32.mxu1 %vm16764_vm14, %v5685_v1  ;;  %v10958_v2 = vpack.c.bf16 %v11828_v31, %v11827_v30  ;;  %vm16795_vm14 = vmmov %vm16729_vm0 }
 0xdab   : > { %10060 = vmatmul.mubr.msk.f32.gmra.mrb[62].mxu1 %vm16765_vm12, %v10035_v26  ;;  %vm16796_vm12 = vmmov %vm16729_vm0 }
 0xdac   : > { %v15661_v14 = vpop.xlane.xlu1 %6299  ;;  %10150 = vmatprep.mubr.f32.mxu1 %v6341_v41 }
 0xdad   : > { %12301 = vrcp.f32 %v15661_v14 }
 0xdae   : > { %12303 = vrcp.f32 %v15652_v33 }
 0xdb0   : > { %v11816_v28 = vpop.permute.xlu1 %11815 }
 0xdb1   : > { %v11818_v59 = vunpack.i.h.bf16 %v11816_v28  ;;  %v11817_v58 = vunpack.i.l.bf16 %v11816_v28 }
 0xdb3   : > { %v10950_v44 = vpack.c.bf16 %v11818_v59, %v11817_v58  ;;  %v10234_v48 = vpop.f32.mrb[128].mxu0 }
 0xdb4   : > { %v6958_v10 = vpop.f32.mrb[129].mxu0  ;;  %v7038_v0 = vmul.f32 0.17677669, %v10234_v48 }
 0xdb5   : > { %v7037_v11 = vmul.f32 0.17677669, %v6958_v10  ;;  %10951 = vmatprep.subr.bf16.mxu1 %v10950_v44 }
 0xdb6   : > { %10953 = vmatpush3.bf16.msra.mxu1 %v10950_v44  ;;  %v15670_v17 = vsel %vm16693_vm6, %v7038_v0, -1e+30  ;;  %v16774_v0 = vld [vmem:[#allocation45_spill] sm:$0xff]  ;;  %vm16789_vm6 = vnez %v16788_v57 }
 0xdb7   : > { %v10237_v63 = vpop.f32.mrb[130].mxu0  ;;  %v15665_v62 = vsel %vm16361_vm10, %v7037_v11, -1e+30  ;;  %10955 = vmatprep.subr.bf16.mxu1 %v10954_v29  ;;  %vm16775_vm10 = vnez %v16774_v0 }
 0xdb8   : > { %v6968_v24 = vpop.f32.mrb[131].mxu0  ;;  %7069 = vmax.xlane.f32.xlu1 %v15665_v62  ;;  %v7040_v45 = vmul.f32 0.17677669, %v10237_v63 }
 0xdb9   : > { %v7039_v56 = vmul.f32 0.17677669, %v6968_v24 }
 0xdba   : > { %10957 = vmatpush3.bf16.msra.mxu1 %v10954_v29  ;;  %v15680_v4 = vsel %vm16362_vm9, %v7040_v45, -1e+30 }
 0xdbb   : > { %v10240_v60 = vpop.f32.mrb[132].mxu0  ;;  %10959 = vmatprep.subr.bf16.mxu1 %v10958_v2  ;;  %v15675_v5 = vsel %vm16523_vm11, %v7039_v56, -1e+30 }
 0xdbc   : > { %v6978_v13 = vpop.f32.mrb[133].mxu0  ;;  %7071 = vmax.xlane.f32.xlu1 %v15670_v17  ;;  %v7042_v38 = vmul.f32 0.17677669, %v10240_v60 }
 0xdbd   : > { %v7041_v16 = vmul.f32 0.17677669, %v6978_v13  ;;  %v16778_v13 = vld [vmem:[#allocation37_spill] sm:$0xff] }
 0xdbe   : > { %10961 = vmatpush3.bf16.msra.mxu1 %v10958_v2  ;;  %v15704_v63 = vsel %vm16775_vm10, %v7042_v38, -1e+30  ;;  %v16776_v2 = vld [vmem:[#allocation30_spill] sm:$0xff]  ;;  %vm16779_vm11 = vnez %v16778_v13  ;;  %vm16797_vm10 = vmmov %vm16729_vm0 }
 0xdbf   : > { %v10243_v9 = vpop.f32.mrb[134].mxu0  ;;  %v15694_v44 = vsel %vm16525_vm1, %v7041_v16, -1e+30  ;;  %vm16777_vm9 = vnez %v16776_v2  ;;  %v16782_v16 = vld [vmem:[#allocation32_spill] sm:$0xff] }
 0xdc0   : > { %v6988_v34 = vpop.f32.mrb[135].mxu0  ;;  %7073 = vmax.xlane.f32.xlu1 %v15675_v5  ;;  %v7044_v29 = vmul.f32 0.17677669, %v10243_v9  ;;  %vm16783_vm1 = vnez %v16782_v16 }
 0xdc1   : > { %v7043_v22 = vmul.f32 0.17677669, %v6988_v34 }
 0xdc2   : > { %v15710_v56 = vsel %vm16777_vm9, %v7044_v29, -1e+30  ;;  %vm16798_vm9 = vmmov %vm16729_vm0 }
 0xdc3   : > { %v10246_v26 = vpop.f32.mrb[136].mxu0  ;;  %v15684_v41 = vsel %vm16527_vm3, %v7043_v22, -1e+30  ;;  %v16780_v22 = vld [vmem:[#allocation39_spill] sm:$0xff] }
 0xdc4   : > { %v6998_v61 = vpop.f32.mrb[137].mxu0  ;;  %7081 = vmax.xlane.f32.xlu0 %v15684_v41  ;;  %7075 = vmax.xlane.f32.xlu1 %v15680_v4  ;;  %v7046_v60 = vmul.f32 0.17677669, %v10246_v26 }
 0xdc5   : > { %v7045_v28 = vmul.f32 0.17677669, %v6998_v61  ;;  %v16784_v61 = vld [vmem:[#allocation34_spill] sm:$0xff] }
 0xdc6   : > { %v15724_v1 = vsel %vm16783_vm1, %v7046_v60, -1e+30  ;;  %vm16785_vm3 = vnez %v16784_v61  ;;  %vm16801_vm1 = vmmov %vm16729_vm0 }
 0xdc7   : > { %v10249_v35 = vpop.f32.mrb[138].mxu0  ;;  %v15690_v58 = vsel %vm16529_vm8, %v7045_v28, -1e+30 }
 0xdc8   : > { %v7008_v48 = vpop.f32.mrb[139].mxu0  ;;  %7085 = vmax.xlane.f32.xlu0 %v15690_v58  ;;  %7077 = vmax.xlane.f32.xlu1 %v15694_v44  ;;  %v7048_v34 = vmul.f32 0.17677669, %v10249_v35  ;;  %v16786_v35 = vld [vmem:[#allocation36_spill] sm:$0xff] }
 0xdc9   : > { %v7047_v10 = vmul.f32 0.17677669, %v7008_v48  ;;  %vm16787_vm8 = vnez %v16786_v35 }
 0xdca   : > { %v15730_v28 = vsel %vm16785_vm3, %v7048_v34, -1e+30  ;;  %vm16802_vm3 = vmmov %vm16729_vm0 }
 0xdcb   : > { %v10252_v31 = vpop.f32.mrb[140].mxu0  ;;  %v15700_v11 = vsel %vm16367_vm2, %v7047_v10, -1e+30  ;;  %vm16781_vm2 = vnez %v16780_v22 }
 0xdcc   : > { %v7018_v6 = vpop.f32.mrb[141].mxu0  ;;  %7089 = vmax.xlane.f32.xlu0 %v15700_v11  ;;  %7079 = vmax.xlane.f32.xlu1 %v15704_v63  ;;  %v7050_v26 = vmul.f32 0.17677669, %v10252_v31 }
 0xdcd   : > { %v7049_v24 = vmul.f32 0.17677669, %v7018_v6  ;;  %v15746_v6 = vld [vmem:[%s16037_s2 + $0x18] sm:$0xff] }
 0xdce   : > { %v15735_v59 = vsel %vm16787_vm8, %v7050_v26, -1e+30  ;;  %vm16803_vm8 = vmmov %vm16729_vm0 }
 0xdcf   : > { %v10255_v49 = vpop.f32.mrb[142].mxu0  ;;  %v15714_v45 = vsel %vm16779_vm11, %v7049_v24, -1e+30  ;;  %vm16799_vm11 = vmmov %vm16729_vm0 }
 0xdd0   : > { %v7028_v9 = vpop.f32.mrb[143].mxu0  ;;  %7093 = vmax.xlane.f32.xlu0 %v15714_v45  ;;  %7083 = vmax.xlane.f32.xlu1 %v15710_v56  ;;  %v7052_v38 = vmul.f32 0.17677669, %v10255_v49 }
 0xdd1   : > { %v7051_v25 = vmul.f32 0.17677669, %v7028_v9 }
 0xdd2   : > { %v15740_v48 = vsel %vm16789_vm6, %v7052_v38, -1e+30  ;;  %vm16804_vm6 = vmmov %vm16729_vm0 }
 0xdd3   : > { %v15720_v21 = vsel %vm16781_vm2, %v7051_v25, -1e+30  ;;  %vm16800_vm2 = vmmov %vm16729_vm0 }
 0xdd4   : > { %7097 = vmax.xlane.f32.xlu0 %v15720_v21  ;;  %7087 = vmax.xlane.f32.xlu1 %v15724_v1 }
 0xdd8   : > { %7091 = vmax.xlane.f32.xlu1 %v15730_v28  ;;  %v6312_v29 = vpop.xlane.xlu0 %6311 }
 0xddc   : > { %7095 = vmax.xlane.f32.xlu1 %v15735_v59  ;;  %v6316_v30 = vpop.xlane.xlu0 %6315 }
 0xde0   : > { %7099 = vmax.xlane.f32.xlu1 %v15740_v48  ;;  %v11836_v2 = vpop.permute.xlu0 %11835 }
 0xde1   : > { %v6304_v10 = vpop.xlane.xlu1 %6303  ;;  %v11838_v49 = vunpack.i.h.bf16 %v11836_v2  ;;  %v11837_v13 = vunpack.i.l.bf16 %v11836_v2 }
 0xde2   : > { %12305 = vrcp.f32 %v6304_v10 }
 0xde3   : > { %v10966_v51 = vpack.c.bf16 %v11838_v49, %v11837_v13 }
 0xde5   : > { %v6306_v31 = vpop.xlane.xlu1 %6305 }
 0xde6   : > { %12307 = vrcp.f32 %v6306_v31 }
 0xde9   : > { %v6308_v0 = vpop.xlane.xlu1 %6307 }
 0xdea   : > { %6551 = vrot.lane.b32.xlu0 %v15746_v6, %s12470_s7  ;;  %12309 = vrcp.f32 %v6308_v0 }
 0xded   : > { %v6310_v24 = vpop.xlane.xlu1 %6309 }
 0xdee   : > { %12311 = vrcp.f32 %v6310_v24 }
 0xdef   : > { %12313 = vrcp.f32 %v6312_v29 }
 0xdf0   : > { %12315 = vrcp.f32 %v6316_v30 }
 0xdf1   : > { %11840 = vrot.lane.b32.xlu1 %v16626_v53, %s12484_s10  ;;  %v11831_v60 = vpop.permute.xlu1 %11830  ;;  %v12298_v53 = vpop.eup %12297 }
 0xdf2   : > { %v11833_v9 = vunpack.i.h.bf16 %v11831_v60  ;;  %v11832_v25 = vunpack.i.l.bf16 %v11831_v60  ;;  %v12300_v20 = vpop.eup %12299  ;;  %v6342_v22 = vmul.f32 %v12298_v53, %v15563_v55 }
 0xdf3   : > { %v12302_v14 = vpop.eup %12301  ;;  %v6343_v33 = vmul.f32 %v12300_v20, %v15566_v8 }
 0xdf4   : > { %v10962_v34 = vpack.c.bf16 %v11833_v9, %v11832_v25  ;;  %v12304_v16 = vpop.eup %12303 }
 0xdf5   : > { %11845 = vrot.lane.b32.xlu1 %v16662_v39, %s12484_s10  ;;  %v6344_v39 = vmul.f32 %v12302_v14, %v15569_v32  ;;  %v12306_v26 = vpop.eup %12305  ;;  %v6345_v61 = vmul.f32 %v12304_v16, %v15560_v18 }
 0xdf6   : > { %10963 = vmatprep.subr.bf16.mxu1 %v10962_v34  ;;  %v12308_v38 = vpop.eup %12307  ;;  %v6346_v35 = vmul.f32 %v12306_v26, %v15597_v7 }
 0xdf7   : > { %10965 = vmatpush3.bf16.msra.mxu1 %v10962_v34  ;;  %v12310_v57 = vpop.eup %12309  ;;  %v6347_v55 = vmul.f32 %v12308_v38, %v15600_v50 }
 0xdf8   : > { %10967 = vmatprep.subr.bf16.mxu1 %v10966_v51  ;;  %v12312_v10 = vpop.eup %12311  ;;  %v6348_v8 = vmul.f32 %v12310_v57, %v15603_v15 }
 0xdf9   : > { %v12314_v29 = vpop.eup %12313  ;;  %v6349_v31 = vmul.f32 %v12312_v10, %v15606_v37 }
 0xdfa   : > { %v6350_v18 = vmul.f32 %v12314_v29, %v15589_v54  ;;  %v12316_v24 = vpop.eup %12315 }
 0xdfb   : > { %10969 = vmatpush3.bf16.msra.mxu1 %v10966_v51  ;;  %v6352_v37 = vmul.f32 %v12316_v24, %v15594_v46 }
 0xdfe   : > { %10151 = vmatmul.mubr.f32.vlgmr.msra.gmra.mrb[128].mxu1 %v6342_v22 }
 0xdff   : > { %10153 = vmatprep.mubr.f32.mxu1 %v6343_v33 }
 0xe02   : > { %10154 = vmatmul.mubr.f32.gmra.mrb[130].mxu1 %v6344_v39 }
 0xe03   : > { %10156 = vmatprep.mubr.f32.mxu1 %v6345_v61 }
 0xe06   : > { %10157 = vmatmul.mubr.f32.gmra.mrb[132].mxu1 %v6346_v35 }
 0xe07   : > { %10159 = vmatprep.mubr.f32.mxu1 %v6347_v55 }
 0xe0a   : > { %10160 = vmatmul.mubr.f32.gmra.mrb[134].mxu1 %v6348_v8 }
 0xe0b   : > { %10162 = vmatprep.mubr.f32.mxu1 %v6349_v31 }
 0xe0e   : > { %10163 = vmatmul.mubr.f32.gmra.mrb[136].mxu1 %v6350_v18 }
 0xe11   : > { %v6320_v0 = vpop.xlane.xlu0 %6319 }
 0xe22   : > { %v6314_v32 = vpop.xlane.xlu1 %6313 }
 0xe23   : > { %12317 = vrcp.f32 %v6314_v32 }
 0xe24   : > { %12319 = vrcp.f32 %v6320_v0 }
 0xe26   : > { %v6318_v7 = vpop.xlane.xlu1 %6317 }
 0xe27   : > { %12321 = vrcp.f32 %v6318_v7 }
 0xe2a   : > { %v6322_v50 = vpop.xlane.xlu1 %6321 }
 0xe2b   : > { %12323 = vrcp.f32 %v6322_v50 }
 0xe2d   : > { %v12318_v2 = vpop.eup %12317 }
 0xe2e   : > { %v6324_v15 = vpop.xlane.xlu1 %6323  ;;  %v6351_v60 = vmul.f32 %v12318_v2, %v15630_v19  ;;  %v12320_v49 = vpop.eup %12319 }
 0xe2f   : > { %12325 = vrcp.f32 %v6324_v15  ;;  %v6354_v13 = vmul.f32 %v12320_v49, %v15616_v47 }
 0xe30   : > { %10165 = vmatprep.mubr.f32.mxu1 %v6351_v60 }
 0xe31   : > { %v12322_v54 = vpop.eup %12321  ;;  %10166 = vmatmul.mubr.f32.gmra.mrb[138].mxu1 %v6352_v37 }
 0xe32   : > { %v6353_v30 = vmul.f32 %v12322_v54, %v15635_v52 }
 0xe34   : > { %10168 = vmatprep.mubr.f32.mxu1 %v6353_v30 }
 0xe35   : > { %v12324_v9 = vpop.eup %12323  ;;  %10169 = vmatmul.mubr.f32.gmra.mrb[140].mxu1 %v6354_v13 }
 0xe36   : > { %v6355_v25 = vmul.f32 %v12324_v9, %v15640_v36 }
 0xe38   : > { %10171 = vmatprep.mubr.f32.mxu1 %v6355_v25 }
 0xe39   : > { %v12326_v34 = vpop.eup %12325 }
 0xe3a   : > { %v6356_v19 = vmul.f32 %v12326_v34, %v15645_v12 }
 0xe3c   : > { %10172 = vmatmul.mubr.f32.gmra.mrb[142].mxu1 %v6356_v19 }
 0xe45   : > { %v7070_v51 = vpop.xlane.xlu1 %7069 }
 0xe46   : > { %v7101_v46 = vsub.f32 %v15665_v62, %v7070_v51 }
 0xe48   : > { %v7117_v53 = vmul.f32 1.442695, %v7101_v46 }
 0xe49   : > { %v7072_v20 = vpop.xlane.xlu1 %7071 }
 0xe4a   : > { %12327 = vpow2.f32 %v7117_v53  ;;  %v7102_v52 = vsub.f32 %v15670_v17, %v7072_v20 }
 0xe4c   : > { %v7119_v22 = vmul.f32 1.442695, %v7102_v52 }
 0xe4d   : > { %v7074_v47 = vpop.xlane.xlu1 %7073 }
 0xe4e   : > { %12329 = vpow2.f32 %v7119_v22  ;;  %v7103_v14 = vsub.f32 %v15675_v5, %v7074_v47 }
 0xe50   : > { %v7121_v33 = vmul.f32 1.442695, %v7103_v14 }
 0xe51   : > { %v7076_v36 = vpop.xlane.xlu1 %7075  ;;  %v7082_v16 = vpop.xlane.xlu0 %7081 }
 0xe52   : > { %12331 = vpow2.f32 %v7121_v33  ;;  %v7104_v12 = vsub.f32 %v15680_v4, %v7076_v36  ;;  %v7107_v37 = vsub.f32 %v15684_v41, %v7082_v16 }
 0xe54   : > { %v15777_v39 = vpop.eup %12327  ;;  %v7123_v26 = vmul.f32 1.442695, %v7104_v12  ;;  %v7129_v54 = vmul.f32 1.442695, %v7107_v37 }
 0xe55   : > { %7149 = vadd.xlane.f32.xlu0 %v15777_v39  ;;  %v7078_v62 = vpop.xlane.xlu1 %7077  ;;  %v7086_v61 = vpop.xlane.xlu0 %7085 }
 0xe56   : > { %12333 = vpow2.f32 %v7123_v26  ;;  %v7105_v2 = vsub.f32 %v15694_v44, %v7078_v62 }
 0xe58   : > { %v15780_v17 = vpop.eup %12329  ;;  %v7125_v15 = vmul.f32 1.442695, %v7105_v2 }
 0xe59   : > { %7151 = vadd.xlane.f32.xlu1 %v15780_v17  ;;  %v7080_v38 = vpop.xlane.xlu1 %7079  ;;  %v7090_v5 = vpop.xlane.xlu0 %7089 }
 0xe5a   : > { %12335 = vpow2.f32 %v7125_v15  ;;  %v7106_v60 = vsub.f32 %v15704_v63, %v7080_v38  ;;  %v7109_v63 = vsub.f32 %v15690_v58, %v7086_v61  ;;  %v7111_v34 = vsub.f32 %v15700_v11, %v7090_v5 }
 0xe5c   : > { %v15783_v35 = vpop.eup %12331  ;;  %v7127_v49 = vmul.f32 1.442695, %v7106_v60  ;;  %v7137_v51 = vmul.f32 1.442695, %v7111_v34 }
 0xe5d   : > { %7153 = vadd.xlane.f32.xlu1 %v15783_v35  ;;  %v7084_v57 = vpop.xlane.xlu1 %7083  ;;  %v15786_v4 = vpop.xlane.xlu0 %7093 }
 0xe5e   : > { %12337 = vpow2.f32 %v7127_v49  ;;  %v7108_v30 = vsub.f32 %v15710_v56, %v7084_v57  ;;  %v7133_v56 = vmul.f32 1.442695, %v7109_v63 }
 0xe5f   : > { %12339 = vpow2.f32 %v7129_v54 }
 0xe60   : > { %v15788_v55 = vpop.eup %12333 }
 0xe61   : > { %7155 = vadd.xlane.f32.xlu1 %v15788_v55  ;;  %v7088_v10 = vpop.xlane.xlu1 %7087  ;;  %v15791_v8 = vpop.xlane.xlu0 %7097 }
 0xe62   : > { %v7110_v25 = vsub.f32 %v15724_v1, %v7088_v10 }
 0xe64   : > { %v7135_v19 = vmul.f32 1.442695, %v7110_v25 }
 0xe65   : > { %v15793_v29 = vpop.xlane.xlu1 %7091  ;;  %v6552_v31 = vpop.permute.xlu0 %6551 }
 0xe66   : > { %10174 = vmatprep.subr.msk.mxu1 %vm16790_vm7, %v6552_v31  ;;  %v7112_v36 = vsub.f32 %v15730_v28, %v15793_v29  ;;  %v7115_v28 = vsub.f32 %v15720_v21, %v15791_v8  ;;  %vm16805_vm7 = vmmov %vm16729_vm0 }
 0xe67   : > { %10175 = vmatpush3.msk.msra.mxu1 %vm16791_vm5, %v6552_v31  ;;  %vm16806_vm5 = vmmov %vm16729_vm0 }
 0xe68   : > { %v7139_v62 = vmul.f32 1.442695, %v7112_v36 }
 0xe69   : > { %v15797_v18 = vpop.xlane.xlu1 %7095 }
 0xe6a   : > { %v7114_v61 = vsub.f32 %v15735_v59, %v15797_v18 }
 0xe6b   : > { %11850 = vrot.lane.b32.xlu0 %v16664_v40, %s12484_s10  ;;  %v15808_v40 = vpop.eup %12335 }
 0xe6c   : > { %v15812_v13 = vpop.eup %12337  ;;  %v7143_v29 = vmul.f32 1.442695, %v7114_v61 }
 0xe6d   : > { %v15801_v32 = vpop.xlane.xlu1 %7099  ;;  %v15815_v44 = vpop.eup %12339 }
 0xe6e   : > { %v7116_v59 = vsub.f32 %v15740_v48, %v15801_v32  ;;  %v7113_v48 = vsub.f32 %v15714_v45, %v15786_v4 }
 0xe70   : > { %v7141_v60 = vmul.f32 1.442695, %v7113_v48 }
 0xe71   : > { %v11841_v0 = vpop.permute.xlu1 %11840 }
 0xe72   : > { %v11843_v7 = vunpack.i.h.bf16 %v11841_v0  ;;  %v11842_v50 = vunpack.i.l.bf16 %v11841_v0  ;;  %11855 = vrot.lane.b32.xlu1 %v16648_v43, %s12484_s10  ;;  %v7131_v43 = vmul.f32 1.442695, %v7108_v30 }
 0xe74   : > { %v11018_v24 = vpack.c.bf16 %v11843_v7, %v11842_v50  ;;  %12341 = vpow2.f32 %v7131_v43  ;;  %v7145_v7 = vmul.f32 1.442695, %v7115_v28  ;;  %v7147_v50 = vmul.f32 1.442695, %v7116_v59 }
 0xe75   : > { %12343 = vpow2.f32 %v7133_v56 }
 0xe76   : > { %11019 = vmatprep.subr.bf16.mxu1 %v11018_v24  ;;  %12345 = vpow2.f32 %v7135_v19 }
 0xe77   : > { %12347 = vpow2.f32 %v7137_v51 }
 0xe78   : > { %12349 = vpow2.f32 %v7139_v62 }
 0xe79   : > { %12351 = vpow2.f32 %v7143_v29 }
 0xe7a   : > { %12353 = vpow2.f32 %v7145_v7 }
 0xe7b   : > { %12355 = vpow2.f32 %v7147_v50 }
 0xe7c   : > { %12357 = vpow2.f32 %v7141_v60 }
 0xe7e   : > { %v15818_v41 = vpop.eup %12341 }
 0xe7f   : > { %v15826_v9 = vpop.eup %12343 }
 0xe80   : > { %v15831_v20 = vpop.eup %12345 }
 0xe81   : > { %v15838_v1 = vpop.eup %12347 }
 0xe8a   : > { %7157 = vadd.xlane.f32.xlu0 %v15808_v40 }
 0xe96   : > { %7159 = vadd.xlane.f32.xlu1 %v15812_v13 }
 0xe9a   : > { %7161 = vadd.xlane.f32.xlu1 %v15815_v44 }
 0xe9e   : > { %7163 = vadd.xlane.f32.xlu1 %v15818_v41 }
 0xea0   : > { %11860 = vrot.lane.b32.xlu0 %v16665_v42, %s12484_s10  ;;  %v11846_v42 = vpop.permute.xlu1 %11845 }
 0xea1   : > { %v11848_v46 = vunpack.i.h.bf16 %v11846_v42  ;;  %v11847_v58 = vunpack.i.l.bf16 %v11846_v42 }
 0xea3   : > { %v11022_v52 = vpack.c.bf16 %v11848_v46, %v11847_v58 }
 0xeaf   : > { %11865 = vrot.lane.b32.xlu1 %v16666_v3, %s12484_s10 }
 0xebf   : > { %7165 = vadd.xlane.f32.xlu0 %v15826_v9 }
 0xed1   : > { %v10152_v53 = vpop.f32.mrb[128].mxu1 }
 0xed2   : > { %v6471_v3 = vpop.f32.mrb[129].mxu1 }
 0xed3   : > { %7167 = vadd.xlane.f32.xlu1 %v15831_v20  ;;  %10176 = vmatprep.mubr.msk.f32.mxu1 %vm16729_vm0, %v6471_v3  ;;  %vm16807_vm0 = vcmask 1043456  }
 0xed4   : > { %10177 = vmatmul.mubr.msk.f32.vlgmr.msra.gmra.mrb[48].mxu1 %vm16792_vm4, %v10152_v53  ;;  %vm16808_vm4 = vmmov %vm16807_vm0 }
 0xed5   : > { %11870 = vrot.lane.b32.xlu0 %v16747_v23, %s12484_s10  ;;  %11021 = vmatpush3.bf16.msra.mxu1 %v11018_v24  ;;  %v10155_v11 = vpop.f32.mrb[130].mxu1  ;;  %v15865_v24 = vpop.eup %12349 }
 0xed6   : > { %11023 = vmatprep.subr.bf16.mxu1 %v11022_v52  ;;  %v6481_v22 = vpop.f32.mrb[131].mxu1  ;;  %v15868_v15 = vpop.eup %12351 }
 0xed7   : > { %7169 = vadd.xlane.f32.xlu1 %v15838_v1  ;;  %10179 = vmatprep.mubr.msk.f32.mxu1 %vm16793_vm13, %v6481_v22  ;;  %v15873_v32 = vpop.eup %12353  ;;  %vm16809_vm13 = vmmov %vm16801_vm1 }
 0xed8   : > { %10180 = vmatmul.mubr.msk.f32.gmra.mrb[50].mxu1 %vm16794_vm15, %v10155_v11  ;;  %v15876_v37 = vpop.eup %12355  ;;  %vm16810_vm15 = vmmov %vm16801_vm1 }
 0xed9   : > { %11025 = vmatpush3.bf16.msra.mxu1 %v11022_v52  ;;  %v10158_v47 = vpop.f32.mrb[132].mxu1  ;;  %v15882_v45 = vpop.eup %12357  ;;  %v7406_v52 = vrot.slane %v15746_v6, 4 }
 0xeda   : > { %v6491_v14 = vpop.f32.mrb[133].mxu1 }
 0xedb   : > { %10182 = vmatprep.mubr.msk.f32.mxu1 %vm16795_vm14, %v6491_v14  ;;  %vm16811_vm14 = vmmov %vm16801_vm1 }
 0xedc   : > { %10183 = vmatmul.mubr.msk.f32.gmra.mrb[52].mxu1 %vm16796_vm12, %v10158_v47  ;;  %vm16812_vm12 = vmmov %vm16801_vm1 }
 0xedd   : > { %v10161_v23 = vpop.f32.mrb[134].mxu1 }
 0xede   : > { %v6501_v33 = vpop.f32.mrb[135].mxu1 }
 0xedf   : > { %10185 = vmatprep.mubr.msk.f32.mxu1 %vm16797_vm10, %v6501_v33  ;;  %vm16813_vm10 = vmmov %vm16801_vm1 }
 0xee0   : > { %10186 = vmatmul.mubr.msk.f32.gmra.mrb[54].mxu1 %vm16798_vm9, %v10161_v23  ;;  %vm16814_vm9 = vmmov %vm16801_vm1 }
 0xee1   : > { %v10164_v16 = vpop.f32.mrb[136].mxu1 }
 0xee2   : > { %v7150_v12 = vpop.xlane.xlu0 %7149  ;;  %v6511_v26 = vpop.f32.mrb[137].mxu1 }
 0xee3   : > { %10188 = vmatprep.mubr.msk.f32.mxu1 %vm16799_vm11, %v6511_v26  ;;  %12359 = vrcp.f32 %v7150_v12  ;;  %vm16815_vm11 = vmmov %vm16801_vm1 }
 0xee4   : > { %10189 = vmatmul.mubr.msk.f32.gmra.mrb[56].mxu1 %vm16800_vm2, %v10164_v16  ;;  %vm16816_vm2 = vmmov %vm16801_vm1 }
 0xee6   : > { %v15853_v38 = vpop.xlane.xlu1 %7151  ;;  %v11851_v5 = vpop.permute.xlu0 %11850 }
 0xee7   : > { %v11853_v57 = vunpack.i.h.bf16 %v11851_v5  ;;  %v11852_v10 = vunpack.i.l.bf16 %v11851_v5  ;;  %12361 = vrcp.f32 %v15853_v38 }
 0xee8   : > { %11875 = vrot.lane.b32.xlu1 %v16745_v27, %s12484_s10  ;;  %s7893_s10 = sshll.u32 %s15965_s9, 4  ;;  %s15988_s10 = int_to_ptr.vmem [resolvable:$true] %s7893_s10 }
 0xee9   : > { %v11026_v31 = vpack.c.bf16 %v11853_v57, %v11852_v10  ;;  %s12395_s14 = scalar_lea.vmem %s15988_s10, 2048  ;;  %p12402_p0 = scmp.lt.s32.totalorder %s15988_s10, %s12400_s22 }
 0xeea   : > { %v15859_v0 = vpop.xlane.xlu1 %7153  ;;  %p12396_p11 = scmp.ne.s32.totalorder %s15988_s10, %s12395_s14 }
 0xeeb   : > { %11027 = vmatprep.subr.bf16.mxu1 %v11026_v31  ;;  %12363 = vrcp.f32 %v15859_v0 }
 0xeec   : > { %11029 = vmatpush3.bf16.msra.mxu1 %v11026_v31  ;;  %p12397_p12 = pnand %p12396_p11, %p12551_p5 }
 0xeed   : > { %v12360_v4 = vpop.eup %12359 }
 0xeee   : > { %v15863_v18 = vpop.xlane.xlu1 %7155  ;;  %v7197_v25 = vmul.f32 %v12360_v4, %v15777_v39  ;;  %p12398_p13 = pneg %p12397_p12 }
 0xeef   : > { %12365 = vrcp.f32 %v15863_v18 }
 0xef1   : > { %v12362_v57 = vpop.eup %12361 }
 0xef2   : > { %v11856_v27 = vpop.permute.xlu1 %11855  ;;  %v7198_v28 = vmul.f32 %v12362_v57, %v15780_v17 }
 0xef3   : > { %v11858_v21 = vunpack.i.h.bf16 %v11856_v27  ;;  %v11857_v8 = vunpack.i.l.bf16 %v11856_v27 }
 0xef4   : > { %7171 = vadd.xlane.f32.xlu0 %v15865_v24 }
 0xef5   : > { %v11030_v2 = vpack.c.bf16 %v11858_v21, %v11857_v8  ;;  %v12364_v10 = vpop.eup %12363 }
 0xef6   : > { %v7199_v29 = vmul.f32 %v12364_v10, %v15783_v35 }
 0xef7   : > { %11031 = vmatprep.subr.bf16.mxu1 %v11030_v2 }
 0xef8   : > { %7175 = vadd.xlane.f32.xlu0 %v15868_v15  ;;  %11033 = vmatpush3.bf16.msra.mxu1 %v11030_v2 }
 0xef9   : > { %v12366_v38 = vpop.eup %12365 }
 0xefa   : > { %v7200_v0 = vmul.f32 %v12366_v38, %v15788_v55 }
 0xefc   : > { %7177 = vadd.xlane.f32.xlu0 %v15873_v32 }
 0xf00   : > { %7179 = vadd.xlane.f32.xlu0 %v15876_v37 }
 0xf04   : > { %v10167_v49 = vpop.f32.mrb[138].mxu1 }
 0xf05   : > { %v6521_v54 = vpop.f32.mrb[139].mxu1 }
 0xf06   : > { %10191 = vmatprep.mubr.msk.f32.mxu1 %vm16801_vm1, %v6521_v54 }
 0xf07   : > { %10192 = vmatmul.mubr.msk.f32.gmra.mrb[58].mxu1 %vm16802_vm3, %v10167_v49  ;;  %vm16817_vm3 = vmmov %vm16801_vm1 }
 0xf08   : > { %v10170_v30 = vpop.f32.mrb[140].mxu1 }
 0xf09   : > { %v6531_v43 = vpop.f32.mrb[141].mxu1 }
 0xf0a   : > { %10194 = vmatprep.mubr.msk.f32.mxu1 %vm16803_vm8, %v6531_v43  ;;  %vm16818_vm8 = vmmov %vm16801_vm1 }
 0xf0b   : > { %10195 = vmatmul.mubr.msk.f32.gmra.mrb[60].mxu1 %vm16804_vm6, %v10170_v30  ;;  %vm16819_vm6 = vmmov %vm16801_vm1 }
 0xf0c   : > { %7173 = vadd.xlane.f32.xlu1 %v15882_v45 }
 0xf0f   : > { %v10173_v63 = vpop.f32.mrb[142].mxu1 }
 0xf10   : > { %v6541_v56 = vpop.f32.mrb[143].mxu1 }
 0xf11   : > { %10197 = vmatprep.mubr.msk.f32.mxu1 %vm16805_vm7, %v6541_v56  ;;  %vm16820_vm7 = vmmov %vm16801_vm1 }
 0xf12   : > { %10198 = vmatmul.mubr.msk.f32.gmra.mrb[62].mxu1 %vm16806_vm5, %v10173_v63  ;;  %vm16821_vm5 = vmmov %vm16801_vm1 }
 0xf13   : > { %10288 = vmatprep.mubr.f32.mxu1 %v7197_v25 }
 0xf16   : > { %7407 = vrot.lane.b32.xlu0 %v7406_v52, %s12470_s7 }
 0xf17   : > { %v7158_v34 = vpop.xlane.xlu0 %7157 }
 0xf18   : > { %12367 = vrcp.f32 %v7158_v34  ;;  %v8402_v34 = vld [vmem:[%s16037_s2 + $0x20] ss:$0 sm:$0xff] }
 0xf1b   : > { %v11861_v19 = vpop.permute.xlu0 %11860 }
 0xf1c   : > { %v11863_v51 = vunpack.i.h.bf16 %v11861_v19  ;;  %v11862_v42 = vunpack.i.l.bf16 %v11861_v19  ;;  %v7661_v19 = vld [vmem:[%s16038_s3] sm:$0xff] }
 0xf1d   : > { %7626 = vrot.lane.b32.xlu1 %v8402_v34, %s12470_s7  ;;  %s12401_s7 = scalar_lea.vmem %s12400_s22, 4096 }
 0xf1e   : > { %v11034_v46 = vpack.c.bf16 %v11863_v51, %v11862_v42  ;;  %p12403_p1 = scmp.lt.s32.totalorder %s12401_s7, %s12395_s14 }
 0xf20   : > { %11035 = vmatprep.subr.bf16.mxu1 %v11034_v46  ;;  %p12404_p2 = por %p12403_p1, %p12402_p0 }
 0xf21   : > { %11037 = vmatpush3.bf16.msra.mxu1 %v11034_v46 }
 0xf22   : > { %v12368_v31 = vpop.eup %12367  ;;  %p12405_p3 = pnand %p12404_p2, %p12398_p13 }
 0xf23   : > { %v7160_v58 = vpop.xlane.xlu1 %7159  ;;  %v7201_v59 = vmul.f32 %v12368_v31, %v15808_v40 }
 0xf24   : > { %12369 = vrcp.f32 %v7160_v58 }
 0xf27   : > { %v7162_v53 = vpop.xlane.xlu1 %7161 }
 0xf28   : > { %12371 = vrcp.f32 %v7162_v53 }
 0xf2b   : > { %v7164_v3 = vpop.xlane.xlu1 %7163 }
 0xf2c   : > { %12373 = vrcp.f32 %v7164_v3 }
 0xf2e   : > { %v12370_v7 = vpop.eup %12369 }
 0xf2f   : > { %v11866_v11 = vpop.permute.xlu1 %11865  ;;  %v7202_v50 = vmul.f32 %v12370_v7, %v15812_v13 }
 0xf30   : > { %v11868_v22 = vunpack.i.h.bf16 %v11866_v11  ;;  %v11867_v39 = vunpack.i.l.bf16 %v11866_v11 }
 0xf32   : > { %v11038_v47 = vpack.c.bf16 %v11868_v22, %v11867_v39  ;;  %v12372_v18 = vpop.eup %12371 }
 0xf33   : > { %v7203_v27 = vmul.f32 %v12372_v18, %v15815_v44 }
 0xf34   : > { %11039 = vmatprep.subr.bf16.mxu1 %v11038_v47 }
 0xf35   : > { %11041 = vmatpush3.bf16.msra.mxu1 %v11038_v47 }
 0xf36   : > { %v12374_v17 = vpop.eup %12373 }
 0xf37   : > { %v7204_v35 = vmul.f32 %v12374_v17, %v15818_v41 }
 0xf4c   : > { %v7166_v14 = vpop.xlane.xlu0 %7165 }
 0xf4d   : > { %12375 = vrcp.f32 %v7166_v14 }
 0xf50   : > { %v11871_v23 = vpop.permute.xlu0 %11870 }
 0xf51   : > { %v11873_v33 = vunpack.i.h.bf16 %v11871_v23  ;;  %v11872_v36 = vunpack.i.l.bf16 %v11871_v23 }
 0xf53   : > { %v11042_v16 = vpack.c.bf16 %v11873_v33, %v11872_v36  ;;  %v7663_v36 = vld [vmem:[%s16038_s3 + $0x10] sm:$0xff] }
 0xf55   : > { %11043 = vmatprep.subr.bf16.mxu1 %v11042_v16 }
 0xf56   : > { %11045 = vmatpush3.bf16.msra.mxu1 %v11042_v16  ;;  %v7664_v16 = vld [vmem:[%s16038_s3 + $0x18] sm:$0xff] }
 0xf57   : > { %v12376_v21 = vpop.eup %12375 }
 0xf58   : > { %v7205_v2 = vmul.f32 %v12376_v21, %v15826_v9 }
 0xf60   : > { %v7168_v12 = vpop.xlane.xlu1 %7167 }
 0xf61   : > { %12377 = vrcp.f32 %v7168_v12  ;;  %v11054_v12 = vpack.c.bf16 %v7664_v16, %v7663_v36 }
 0xf64   : > { %v7170_v6 = vpop.xlane.xlu1 %7169 }
 0xf65   : > { %12379 = vrcp.f32 %v7170_v6 }
 0xf68   : > { %v11876_v26 = vpop.permute.xlu1 %11875 }
 0xf69   : > { %v11878_v62 = vunpack.i.h.bf16 %v11876_v26  ;;  %v11877_v61 = vunpack.i.l.bf16 %v11876_v26 }
 0xf6b   : > { %v11046_v5 = vpack.c.bf16 %v11878_v62, %v11877_v61  ;;  %v12378_v8 = vpop.eup %12377 }
 0xf6c   : > { %v7206_v40 = vmul.f32 %v12378_v8, %v15831_v20 }
 0xf6d   : > { %11047 = vmatprep.subr.bf16.mxu1 %v11046_v5 }
 0xf6e   : > { %11049 = vmatpush3.bf16.msra.mxu1 %v11046_v5 }
 0xf6f   : > { %v12380_v55 = vpop.eup %12379 }
 0xf70   : > { %v7207_v48 = vmul.f32 %v12380_v55, %v15838_v1 }
 0xf71   : > { %10289 = vmatmul.mubr.f32.vlgmr.msra.gmra.mrb[144].mxu1 %v7198_v28 }
 0xf72   : > { %10291 = vmatprep.mubr.f32.mxu1 %v7199_v29 }
 0xf75   : > { %10292 = vmatmul.mubr.f32.gmra.mrb[146].mxu1 %v7200_v0 }
 0xf76   : > { %10294 = vmatprep.mubr.f32.mxu1 %v7201_v59 }
 0xf79   : > { %10295 = vmatmul.mubr.f32.gmra.mrb[148].mxu1 %v7202_v50 }
 0xf7a   : > { %10297 = vmatprep.mubr.f32.mxu1 %v7203_v27 }
 0xf7d   : > { %10298 = vmatmul.mubr.f32.gmra.mrb[150].mxu1 %v7204_v35 }
 0xf7e   : > { %10300 = vmatprep.mubr.f32.mxu1 %v7205_v2 }
 0xf81   : > { %v7172_v60 = vpop.xlane.xlu0 %7171  ;;  %10301 = vmatmul.mubr.f32.gmra.mrb[152].mxu1 %v7206_v40 }
 0xf82   : > { %12381 = vrcp.f32 %v7172_v60  ;;  %10303 = vmatprep.mubr.f32.mxu1 %v7207_v48 }
 0xf85   : > { %v7176_v49 = vpop.xlane.xlu0 %7175 }
 0xf86   : > { %12383 = vrcp.f32 %v7176_v49 }
 0xf89   : > { %v7178_v41 = vpop.xlane.xlu0 %7177 }
 0xf8a   : > { %12385 = vrcp.f32 %v7178_v41 }
 0xf8c   : > { %v12382_v13 = vpop.eup %12381 }
 0xf8d   : > { %v7208_v44 = vmul.f32 %v12382_v13, %v15865_v24  ;;  %v7180_v54 = vpop.xlane.xlu0 %7179 }
 0xf8f   : > { %10304 = vmatmul.mubr.f32.gmra.mrb[154].mxu1 %v7208_v44 }
 0xf90   : > { %v12384_v20 = vpop.eup %12383 }
 0xf91   : > { %v7408_v30 = vpop.permute.xlu0 %7407  ;;  %v7210_v24 = vmul.f32 %v12384_v20, %v15868_v15  ;;  %v7662_v15 = vld [vmem:[%s16038_s3 + $0x8] sm:$0xff] }
 0xf92   : > { %10312 = vmatprep.subr.msk.mxu1 %vm16807_vm0, %v7408_v30  ;;  %vm16822_vm0 = vmmov %vm16801_vm1 }
 0xf93   : > { %10313 = vmatpush3.msk.msra.mxu1 %vm16808_vm4, %v7408_v30  ;;  %vm16823_vm4 = vmmov %vm16822_vm0 }
 0xf94   : > { %v12386_v1 = vpop.eup %12385 }
 0xf95   : > { %v7211_v56 = vmul.f32 %v12386_v1, %v15873_v32  ;;  %v11050_v32 = vpack.c.bf16 %v7662_v15, %v7661_v19 }
 0xf97   : > { %11051 = vmatprep.subr.bf16.mxu0 %v11050_v32 }
 0xf98   : > { %11053 = vmatpush3.bf16.msra.mxu0 %v11050_v32 }
 0xf99   : > { %v7174_v9 = vpop.xlane.xlu1 %7173  ;;  %11055 = vmatprep.subr.bf16.mxu0 %v11054_v12 }
 0xf9a   : > { %12387 = vrcp.f32 %v7174_v9 }
 0xf9b   : > { %12389 = vrcp.f32 %v7180_v54 }
 0xf9c   : > { %11057 = vmatpush3.bf16.msra.mxu0 %v11054_v12 }
 0xf9d   : > { %v7627_v6 = vpop.permute.xlu1 %7626 }
 0xfa4   : > { %v12388_v43 = vpop.eup %12387 }
 0xfa5   : > { %v7209_v4 = vmul.f32 %v12388_v43, %v15882_v45  ;;  %v12390_v63 = vpop.eup %12389 }
 0xfa6   : > { %v7212_v25 = vmul.f32 %v12390_v63, %v15876_v37 }
 0xfa7   : > { %10306 = vmatprep.mubr.f32.mxu1 %v7209_v4 }
 0xfa8   : > { %10307 = vmatmul.mubr.f32.gmra.mrb[156].mxu1 %v7210_v24 }
 0xfa9   : > { %10309 = vmatprep.mubr.f32.mxu1 %v7211_v56 }
 0xfac   : > { %10310 = vmatmul.mubr.f32.gmra.mrb[158].mxu1 %v7212_v25 }
0x1044   : > { %v10290_v45 = vpop.f32.mrb[144].mxu1 }
0x1045   : > { %v7327_v37 = vpop.f32.mrb[145].mxu1 }
0x1046   : > { %10314 = vmatprep.mubr.msk.f32.mxu1 %vm16809_vm13, %v7327_v37  ;;  %vm16824_vm13 = vcmask 261120  }
0x1047   : > { %10315 = vmatmul.mubr.msk.f32.vlgmr.msra.gmra.mrb[48].mxu1 %vm16810_vm15, %v10290_v45  ;;  %vm16825_vm15 = vmmov %vm16824_vm13 }
0x1048   : > { %v10293_v51 = vpop.f32.mrb[146].mxu1 }
0x1049   : > { %v7337_v42 = vpop.f32.mrb[147].mxu1 }
0x104a   : > { %10317 = vmatprep.mubr.msk.f32.mxu1 %vm16811_vm14, %v7337_v42  ;;  %vm16826_vm14 = vmmov %vm16824_vm13 }
0x104b   : > { %10318 = vmatmul.mubr.msk.f32.gmra.mrb[50].mxu1 %vm16812_vm12, %v10293_v51  ;;  %vm16827_vm12 = vmmov %vm16824_vm13 }
0x104c   : > { %v10296_v46 = vpop.f32.mrb[148].mxu1 }
0x104d   : > { %v7347_v58 = vpop.f32.mrb[149].mxu1 }
0x104e   : > { %10320 = vmatprep.mubr.msk.f32.mxu1 %vm16813_vm10, %v7347_v58  ;;  %vm16828_vm10 = vmmov %vm16827_vm12 }
0x104f   : > { %10321 = vmatmul.mubr.msk.f32.gmra.mrb[52].mxu1 %vm16814_vm9, %v10296_v46  ;;  %vm16829_vm9 = vmmov %vm16828_vm10  ;;  %v8403_v46 = vld [vmem:[%s16038_s3 + $0x20] ss:$0 sm:$0xff] }
0x1050   : > { %v10299_v53 = vpop.f32.mrb[150].mxu1 }
0x1051   : > { %v7357_v3 = vpop.f32.mrb[151].mxu1 }
0x1052   : > { %10323 = vmatprep.mubr.msk.f32.mxu1 %vm16815_vm11, %v7357_v3  ;;  %vm16830_vm11 = vmmov %vm16829_vm9 }
0x1053   : > { %10324 = vmatmul.mubr.msk.f32.gmra.mrb[54].mxu1 %vm16816_vm2, %v10299_v53  ;;  %vm16831_vm2 = vmmov %vm16829_vm9 }
0x1054   : > { %v10302_v52 = vpop.f32.mrb[152].mxu1 }
0x1055   : > { %v7367_v11 = vpop.f32.mrb[153].mxu1 }
0x1056   : > { %10326 = vmatprep.mubr.msk.f32.mxu1 %vm16801_vm1, %v7367_v11  ;;  %vm16832_vm1 = vmmov %vm16831_vm2 }
0x1057   : > { %10327 = vmatmul.mubr.msk.f32.gmra.mrb[56].mxu1 %vm16817_vm3, %v10302_v52  ;;  %vm16833_vm3 = vmmov %vm16832_vm1 }
0x1062   : > { %v10305_v22 = vpop.f32.mrb[154].mxu1 }
0x1063   : > { %v7377_v39 = vpop.f32.mrb[155].mxu1 }
0x1064   : > { %10329 = vmatprep.mubr.msk.f32.mxu1 %vm16818_vm8, %v7377_v39  ;;  %vm16834_vm8 = vmmov %vm16832_vm1 }
0x1065   : > { %10330 = vmatmul.mubr.msk.f32.gmra.mrb[58].mxu1 %vm16819_vm6, %v10305_v22  ;;  %vm16835_vm6 = vmmov %vm16832_vm1 }
0x107b   : > { %v10308_v47 = vpop.f32.mrb[156].mxu1 }
0x107c   : > { %v7387_v14 = vpop.f32.mrb[157].mxu1 }
0x107d   : > { %10332 = vmatprep.mubr.msk.f32.mxu1 %vm16820_vm7, %v7387_v14  ;;  %vm16836_vm7 = vmmov %vm16832_vm1 }
0x107e   : > { %10333 = vmatmul.mubr.msk.f32.gmra.mrb[60].mxu1 %vm16821_vm5, %v10308_v47  ;;  %vm16837_vm5 = vmmov %vm16832_vm1 }
0x107f   : > { %v10311_v23 = vpop.f32.mrb[158].mxu1 }
0x1080   : > { %v7397_v33 = vpop.f32.mrb[159].mxu1 }
0x1081   : > { %10335 = vmatprep.mubr.msk.f32.mxu1 %vm16822_vm0, %v7397_v33  ;;  %vm16838_vm0 = vmmov %vm16832_vm1 }
0x1082   : > { %10336 = vmatmul.mubr.msk.f32.gmra.mrb[62].mxu1 %vm16823_vm4, %v10311_v23  ;;  %vm16839_vm4 = vmmov %vm16838_vm0 }
0x111a   : > { %v10316_v26 = vpop.f32.mrb[48].mxu1 }
0x111b   : > { %v7630_v62 = vadd.f32 %v10316_v26, %v7627_v6  ;;  %v7525_v61 = vpop.f32.mrb[49].mxu1 }
0x111c   : > { %v7629_v5 = vadd.f32 %v7627_v6, %v7525_v61 }
0x111d   : > { %v7646_v28 = vmax.f32 %v7630_v62, 0.0 }
0x111e   : > { %v7645_v57 = vmax.f32 %v7629_v5, 0.0  ;;  %v10319_v10 = vpop.f32.mrb[50].mxu1 }
0x111f   : > { %v7632_v38 = vadd.f32 %v10319_v10, %v7627_v6  ;;  %v7535_v29 = vpop.f32.mrb[51].mxu1 }
0x1120   : > { %v7631_v31 = vadd.f32 %v7627_v6, %v7535_v29  ;;  %10346 = vmatprep.mubr.msk.f32.mxu0 %vm16824_vm13, %v7645_v57 }
0x1121   : > { %10347 = vmatmul.mubr.msk.f32.vlgmr.msra.gmra.mrb[144].mxu0 %vm16825_vm15, %v7646_v28  ;;  %v7648_v59 = vmax.f32 %v7632_v38, 0.0 }
0x1122   : > { %v7647_v0 = vmax.f32 %v7631_v31, 0.0  ;;  %v10322_v7 = vpop.f32.mrb[52].mxu1 }
0x1123   : > { %v7634_v18 = vadd.f32 %v10322_v7, %v7627_v6  ;;  %v7545_v50 = vpop.f32.mrb[53].mxu1 }
0x1124   : > { %v7633_v17 = vadd.f32 %v7627_v6, %v7545_v50  ;;  %10349 = vmatprep.mubr.msk.f32.mxu0 %vm16826_vm14, %v7647_v0 }
0x1125   : > { %10350 = vmatmul.mubr.msk.f32.gmra.mrb[146].mxu0 %vm16827_vm12, %v7648_v59  ;;  %v7650_v35 = vmax.f32 %v7634_v18, 0.0 }
0x1126   : > { %v7649_v27 = vmax.f32 %v7633_v17, 0.0  ;;  %v10325_v21 = vpop.f32.mrb[54].mxu1 }
0x1127   : > { %v7636_v8 = vadd.f32 %v10325_v21, %v7627_v6  ;;  %v7555_v2 = vpop.f32.mrb[55].mxu1 }
0x1128   : > { %v7635_v55 = vadd.f32 %v7627_v6, %v7555_v2  ;;  %10352 = vmatprep.mubr.msk.f32.mxu0 %vm16828_vm10, %v7649_v27 }
0x1129   : > { %10353 = vmatmul.mubr.msk.f32.gmra.mrb[148].mxu0 %vm16829_vm9, %v7650_v35  ;;  %v7652_v60 = vmax.f32 %v7636_v8, 0.0 }
0x112a   : > { %v7651_v40 = vmax.f32 %v7635_v55, 0.0  ;;  %v10328_v48 = vpop.f32.mrb[56].mxu1 }
0x112b   : > { %v7638_v13 = vadd.f32 %v10328_v48, %v7627_v6  ;;  %v7565_v44 = vpop.f32.mrb[57].mxu1 }
0x112c   : > { %v7637_v49 = vadd.f32 %v7627_v6, %v7565_v44  ;;  %10355 = vmatprep.mubr.msk.f32.mxu0 %vm16830_vm11, %v7651_v40 }
0x112d   : > { %10356 = vmatmul.mubr.msk.f32.gmra.mrb[150].mxu0 %vm16831_vm2, %v7652_v60  ;;  %v7654_v9 = vmax.f32 %v7638_v13, 0.0 }
0x112e   : > { %v7653_v41 = vmax.f32 %v7637_v49, 0.0 }
0x1130   : > { %10358 = vmatprep.mubr.msk.f32.mxu0 %vm16832_vm1, %v7653_v41 }
0x1131   : > { %10359 = vmatmul.mubr.msk.f32.gmra.mrb[152].mxu0 %vm16833_vm3, %v7654_v9 }
0x1138   : > { %v10331_v54 = vpop.f32.mrb[58].mxu1 }
0x1139   : > { %v7640_v30 = vadd.f32 %v10331_v54, %v7627_v6  ;;  %v7575_v20 = vpop.f32.mrb[59].mxu1 }
0x113a   : > { %v7639_v1 = vadd.f32 %v7627_v6, %v7575_v20 }
0x113b   : > { %v7656_v4 = vmax.f32 %v7640_v30, 0.0 }
0x113c   : > { %v7655_v43 = vmax.f32 %v7639_v1, 0.0 }
0x113e   : > { %10361 = vmatprep.mubr.msk.f32.mxu0 %vm16834_vm8, %v7655_v43 }
0x113f   : > { %10362 = vmatmul.mubr.msk.f32.gmra.mrb[154].mxu0 %vm16835_vm6, %v7656_v4 }
0x1151   : > { %v10334_v24 = vpop.f32.mrb[60].mxu1 }
0x1152   : > { %v7642_v63 = vadd.f32 %v10334_v24, %v7627_v6  ;;  %v7585_v56 = vpop.f32.mrb[61].mxu1 }
0x1153   : > { %v7641_v25 = vadd.f32 %v7627_v6, %v7585_v56 }
0x1154   : > { %v7658_v15 = vmax.f32 %v7642_v63, 0.0 }
0x1155   : > { %v7657_v34 = vmax.f32 %v7641_v25, 0.0  ;;  %v10337_v19 = vpop.f32.mrb[62].mxu1 }
0x1156   : > { %v7644_v32 = vadd.f32 %v10337_v19, %v7627_v6  ;;  %v7595_v45 = vpop.f32.mrb[63].mxu1 }
0x1157   : > { %v7643_v37 = vadd.f32 %v7627_v6, %v7595_v45  ;;  %10364 = vmatprep.mubr.msk.f32.mxu0 %vm16836_vm7, %v7657_v34 }
0x1158   : > { %10365 = vmatmul.mubr.msk.f32.gmra.mrb[156].mxu0 %vm16837_vm5, %v7658_v15  ;;  %v7660_v42 = vmax.f32 %v7644_v32, 0.0 }
0x1159   : > { %v7659_v51 = vmax.f32 %v7643_v37, 0.0 }
0x115b   : > { %10367 = vmatprep.mubr.msk.f32.mxu0 %vm16838_vm0, %v7659_v51 }
0x115c   : > { %10368 = vmatmul.mubr.msk.f32.gmra.mrb[158].mxu0 %vm16839_vm4, %v7660_v42 }
0x11f4   : > { %v10348_v58 = vpop.f32.mrb[144].mxu0 }
0x11f5   : > { %v7790_v53 = vadd.f32 %v10348_v58, %v8403_v46  ;;  %v7784_v3 = vpop.f32.mrb[145].mxu0 }
0x11f6   : > { %v7785_v52 = vadd.f32 %v8403_v46, %v7784_v3 }
0x11f7   : > { %7864 = vst [vmem:[%s15965_s9 + $0x8] sm:$0xff] %v7790_v53 }
0x11f8   : > { %7863 = vst [vmem:[%s15965_s9] sm:$0xff] %v7785_v52  ;;  %v10351_v11 = vpop.f32.mrb[146].mxu0 }
0x11f9   : > { %v7800_v22 = vadd.f32 %v10351_v11, %v8403_v46  ;;  %v7794_v39 = vpop.f32.mrb[147].mxu0 }
0x11fa   : > { %v7795_v47 = vadd.f32 %v8403_v46, %v7794_v39 }
0x11fb   : > { %7866 = vst [vmem:[%s15965_s9 + $0x18] sm:$0xff] %v7800_v22 }
0x11fc   : > { %7865 = vst [vmem:[%s15965_s9 + $0x10] sm:$0xff] %v7795_v47  ;;  %v10354_v14 = vpop.f32.mrb[148].mxu0 }
0x11fd   : > { %v7810_v23 = vadd.f32 %v10354_v14, %v8403_v46  ;;  %v7804_v33 = vpop.f32.mrb[149].mxu0 }
0x11fe   : > { %v7805_v36 = vadd.f32 %v8403_v46, %v7804_v33 }
0x11ff   : > { %7868 = vst [vmem:[%s15965_s9 + $0x28] sm:$0xff] %v7810_v23 }
0x1200   : > { %7867 = vst [vmem:[%s15965_s9 + $0x20] sm:$0xff] %v7805_v36  ;;  %v10357_v16 = vpop.f32.mrb[150].mxu0 }
0x1201   : > { %v7820_v12 = vadd.f32 %v10357_v16, %v8403_v46  ;;  %v7814_v6 = vpop.f32.mrb[151].mxu0 }
0x1202   : > { %v7815_v26 = vadd.f32 %v8403_v46, %v7814_v6 }
0x1203   : > { %7870 = vst [vmem:[%s15965_s9 + $0x38] sm:$0xff] %v7820_v12 }
0x1204   : > { %7869 = vst [vmem:[%s15965_s9 + $0x30] sm:$0xff] %v7815_v26  ;;  %v10360_v62 = vpop.f32.mrb[152].mxu0 }
0x1205   : > { %v7830_v61 = vadd.f32 %v10360_v62, %v8403_v46  ;;  %v7824_v5 = vpop.f32.mrb[153].mxu0 }
0x1206   : > { %v7825_v57 = vadd.f32 %v8403_v46, %v7824_v5 }
0x1207   : > { %7872 = vst [vmem:[%s15965_s9 + $0x48] sm:$0xff] %v7830_v61 }
0x1208   : > { %7871 = vst [vmem:[%s15965_s9 + $0x40] sm:$0xff] %v7825_v57 }
0x1212   : > { %v10363_v10 = vpop.f32.mrb[154].mxu0 }
0x1213   : > { %v7840_v28 = vadd.f32 %v10363_v10, %v8403_v46  ;;  %v7834_v38 = vpop.f32.mrb[155].mxu0 }
0x1214   : > { %v7835_v29 = vadd.f32 %v8403_v46, %v7834_v38 }
0x1215   : > { %7874 = vst [vmem:[%s15965_s9 + $0x58] sm:$0xff] %v7840_v28 }
0x1216   : > { %7873 = vst [vmem:[%s15965_s9 + $0x50] sm:$0xff] %v7835_v29 }
0x122b   : > { %v10366_v31 = vpop.f32.mrb[156].mxu0 }
0x122c   : > { %v7850_v0 = vadd.f32 %v10366_v31, %v8403_v46  ;;  %v7844_v7 = vpop.f32.mrb[157].mxu0 }
0x122d   : > { %v7845_v59 = vadd.f32 %v8403_v46, %v7844_v7 }
0x122e   : > { %7876 = vst [vmem:[%s15965_s9 + $0x68] sm:$0xff] %v7850_v0 }
0x122f   : > { %7875 = vst [vmem:[%s15965_s9 + $0x60] sm:$0xff] %v7845_v59  ;;  %v10369_v18 = vpop.f32.mrb[158].mxu0 }
0x1230   : > { %v7860_v50 = vadd.f32 %v10369_v18, %v8403_v46  ;;  %v7854_v17 = vpop.f32.mrb[159].mxu0 }
0x1231   : > { %v7855_v27 = vadd.f32 %v8403_v46, %v7854_v17 }
0x1232   : > { %7878 = vst [vmem:[%s15965_s9 + $0x78] sm:$0xff] %v7860_v50 }
0x1233   : > { %7877 = vst [vmem:[%s15965_s9 + $0x70] sm:$0xff] %v7855_v27 }
0x1234   : > { %12408 = shalt.err (!%p12405_p3)
}
0x1235   : > { %s12409_s28 = scalar_lea.hbm %s15986_s13, 2048  ;;  %s12413_s30 = scalar_lea.hbm %s16039_s4, 4096 }
0x1236   : > { %p12410_p4 = scmp.ne.s32.totalorder %s15986_s13, %s12409_s28  ;;  %p12414_p9 = scmp.lt.u32.totalorder %s15986_s13, %s16039_s4 }
0x1237   : > { %p12415_p10 = scmp.lt.u32.totalorder %s12413_s30, %s12409_s28  ;;  %p12417_p12 = scmp.lt.u32.totalorder %s12409_s28, %s15986_s13 }
0x1238   : > { %p12411_p7 = pnand %p12410_p4, %p12551_p5 }
0x1239   : > { %p12416_p11 = por %p12415_p10, %p12414_p9 }
0x123a   : > { %p12412_p8 = pneg %p12411_p7 }
0x123b   : > { %p12418_p13 = por %p12417_p12, %p12416_p11 }
0x123d   : > { %p12419_p0 = pnand %p12418_p13, %p12412_p8 }
0x123f   : > { %12422 = shalt.err (!%p12419_p0)
}
0x1240   : > { %s12486_s8 = smov 128   ;;  %s12487_s9 = smov 8  }
0x1241   : > { %11170 = dma.vmem_to_hbm [thread:$0]  (%p12551_p5), %s15988_s10, 2048, %s15986_s13, %s15994_s19, %s12486_s8, %s12486_s8, %s12487_s9  }
0x1242 PF: > { %p11176_p1 = scmp.ge.s32.totalorder %s12457_s18, 2  ;;  %s7908_s23 = sand.u32 1, %s12445_s15  }
0x1243   : > { %s7909_s11 = scalar_lea.sflag [#allocation3], %s7908_s23 }
0x1244   : > { %p11173_p2 = pnand %p11176_p1, %p12555_p6 }
0x1246   : > { %12440 = dma.done.wait (!%p11173_p2), %s7909_s11, 2048  }
0x1247   : > { %12442 = vsyncadd (!%p11173_p2), %s7909_s11, 4294965248  ;;  %p14_p3 = scmp.ge.s32.totalorder %s12538_s21, 4   ;;  %s16840_s15 = smov %s12449_s16 }
0x1248   : > { %s16841_s16 = smov %s12453_s17  ;;  %s16842_s17 = smov %s12549_s24 }
0x1249   : > { %s16843_s18 = smov %s12538_s21  ;;  %16 = sbr.rel (!%p14_p3) target bundleno = 3 (0x3), region = 71 }
0x1250   :  { %7914 = vsyncpa [#allocation3], 1 }
0x1251   :  { %7916 = vsyncpa [#allocation3 + $0x1], 1 }

</bundles_post_ra>
